<compile_context>
chip_gen: v7x
topology: tpu7x:2x2x1
jax: 0.10.0
libtpu: 0.0.40
codegen_flags: <defaults>
</compile_context>

<pallas_src>
import math

import jax
import jax.numpy as jnp
from jax.experimental import pallas as pl
from jax.experimental.pallas import tpu as pltpu

# ----------------------------- model dims (small, synthetic, TPU-aligned) -----------------------------
H = 4             # attention heads
KV = 2            # kv heads (GQA)
DH = 128          # head dim (lane-dense: RoPE roll + head slices are full 128-lane)
D = H * DH        # hidden size = 512
GQA = H // KV     # query heads per kv head
I = 1024          # MLP intermediate size
V = 512           # vocab size
L = 2             # decoder layers
QKV_DIM = (H + 2 * KV) * DH
RMS_EPS = 1e-6
ROPE_BASE = 10000.0
NEG_INF = -1e9    # f32 mask bias (matmuls run bf16, softmax math stays f32)


# ---------------------- fused decoder-layer kernel (1 pallas_call / layer) ----------------------
def _layer_kernel(x_ref, mask_ref, cos_ref, sin_ref,
                  ln1_ref, wqkv_ref, bqkv_ref, wo_ref,
                  ln2_ref, wg_ref, wu_ref, wd_ref,
                  o_ref):
    S = x_ref.shape[1]
    x = x_ref[0].astype(jnp.float32)                          # (S, D) residual stream, f32 in VMEM

    # ---- RMSNorm 1 (f32 elementwise) ----
    var = jnp.mean(x * x, axis=-1, keepdims=True)
    h = (x * jax.lax.rsqrt(var + RMS_EPS) * ln1_ref[...]).astype(jnp.bfloat16)

    # ---- fused Q/K/V projection: one MXU pass over the concatenated weight ----
    qkv = jnp.dot(h, wqkv_ref[...],
                  preferred_element_type=jnp.float32) + bqkv_ref[...]        # (S, QKV_DIM) f32

    cos = cos_ref[...]                                        # (S, DH) f32
    sin = sin_ref[...]                                        # (S, DH) f32, sign-folded (first half negated)

    # ---- causal + key-padding bias generated in-kernel (no (B,S,S) HBM bias) ----
    rows = jax.lax.broadcasted_iota(jnp.int32, (S, S), 0)
    cols = jax.lax.broadcasted_iota(jnp.int32, (S, S), 1)
    key_ok = mask_ref[0] > 0.5                                # (1, S) -> broadcasts over query rows
    bias = jnp.where((rows >= cols) & key_ok, 0.0, NEG_INF).astype(jnp.float32)  # (S, S) f32

    scale = 1.0 / math.sqrt(DH)
    half = DH // 2

    # Tables / bias tiled once for the GQA-grouped (GQA*S, ...) row layout.
    cos_g = jnp.concatenate([cos] * GQA, axis=0)              # (GQA*S, DH)
    sin_g = jnp.concatenate([sin] * GQA, axis=0)
    bias_g = jnp.concatenate([bias] * GQA, axis=0)            # (GQA*S, S)

    def rope(v, c, s_signed):
        # rotate_half(v) == roll(v, DH/2) * [-1]*half + [1]*half; the sign is folded into s_signed.
        return v * c + pltpu.roll(v, shift=half, axis=1) * s_signed

    out_groups = []
    for kvh in range(KV):                                     # static loop: one GEMM pair per KV head
        k_lo = (H + kvh) * DH
        v_lo = (H + KV + kvh) * DH
        kh = qkv[:, k_lo:k_lo + DH]                           # (S, DH) f32
        vh = qkv[:, v_lo:v_lo + DH].astype(jnp.bfloat16)
        kh = rope(kh, cos, sin).astype(jnp.bfloat16)

        # GQA folded into M: stack this kv head's GQA query heads along rows -> (GQA*S, DH)
        q_lo = kvh * GQA * DH
        qg = jnp.concatenate(
            [qkv[:, q_lo + g * DH:q_lo + (g + 1) * DH] for g in range(GQA)], axis=0)
        qg = (rope(qg, cos_g, sin_g) * scale).astype(jnp.bfloat16)   # 1/sqrt(DH) folded into Q

        s = jax.lax.dot_general(qg, kh, (((1,), (1,)), ((), ())),
                                preferred_element_type=jnp.float32) + bias_g   # (GQA*S, S) f32
        m = jnp.max(s, axis=-1, keepdims=True)
        p = jnp.exp(s - m)
        p = p * pl.reciprocal(jnp.sum(p, axis=-1, keepdims=True), approx=True)
        out_groups.append(jnp.dot(p.astype(jnp.bfloat16), vh,
                                  preferred_element_type=jnp.float32))         # (GQA*S, DH)

    # Reassemble (S, H*DH): head h = kvh*GQA + g lives at rows [g*S:(g+1)*S] of out_groups[kvh].
    attn = jnp.concatenate(
        [out_groups[kvh][g * S:(g + 1) * S, :] for kvh in range(KV) for g in range(GQA)],
        axis=1)                                               # (S, H*DH)

    # ---- output projection + residual (f32) ----
    x = x + jnp.dot(attn.astype(jnp.bfloat16), wo_ref[...],
                    preferred_element_type=jnp.float32)

    # ---- RMSNorm 2 + SwiGLU MLP + residual ----
    var2 = jnp.mean(x * x, axis=-1, keepdims=True)
    h2 = (x * jax.lax.rsqrt(var2 + RMS_EPS) * ln2_ref[...]).astype(jnp.bfloat16)
    gate = jnp.dot(h2, wg_ref[...], preferred_element_type=jnp.float32)
    up = jnp.dot(h2, wu_ref[...], preferred_element_type=jnp.float32)
    ff = ((gate * jax.nn.sigmoid(gate)) * up).astype(jnp.bfloat16)   # SiLU/product in f32
    y = x + jnp.dot(ff, wd_ref[...], preferred_element_type=jnp.float32)

    o_ref[0] = y.astype(o_ref.dtype)                          # bf16 residual back to HBM (lane-dense)


# ------------- fused final-RMSNorm + lm_head + shifted cross-entropy kernel -------------
def _head_kernel(h_ref, lnf_ref, wlm_ref, lbl_ref,
                 logits_ref, loss_ref, cnt_ref):
    @pl.when(pl.program_id(0) == 0)
    def _():
        loss_ref[...] = jnp.zeros_like(loss_ref)
        cnt_ref[...] = jnp.zeros_like(cnt_ref)

    x = h_ref[...].astype(jnp.float32)                        # (tm, D)
    var = jnp.mean(x * x, axis=-1, keepdims=True)
    hn = (x * jax.lax.rsqrt(var + RMS_EPS) * lnf_ref[...]).astype(jnp.bfloat16)
    logits = jnp.dot(hn, wlm_ref[...], preferred_element_type=jnp.float32)   # (tm, V) f32 in VMEM
    logits_ref[...] = logits.astype(logits_ref.dtype)         # bf16 lane-dense writeback

    labels = lbl_ref[...]                                     # (tm, 1) int32, shifted; -100 = ignore
    valid = labels != -100
    safe = jnp.where(valid, labels, 0)
    m = jnp.max(logits, axis=-1, keepdims=True)
    lse = jnp.log(jnp.sum(jnp.exp(logits - m), axis=-1, keepdims=True)) + m
    ids = jax.lax.broadcasted_iota(jnp.int32, logits.shape, 1)
    picked = jnp.sum(jnp.where(ids == safe, logits, 0.0), axis=-1, keepdims=True)
    # TODO(synk): when V is grid-tiled at real vocab sizes, fold the label pick and a running
    #             max/sum logsumexp into the V-tile loop instead of this full-row pass.
    w = valid.astype(jnp.float32)                             # (tm, 1)
    loss_ref[...] += jnp.sum((lse - picked) * w, axis=0, keepdims=True)   # masked loss sum
    cnt_ref[...] += jnp.sum(w, axis=0, keepdims=True)                     # valid-token count


# --------------------------------- Pallas call wrappers ---------------------------------
def _full_spec(a):
    # whole array as a single block, re-used across all grid steps
    return pl.BlockSpec(a.shape, lambda b: (0,) * a.ndim)


def pallas_decoder_layer(x, mask, cos, sin, p):
    B, S, _ = x.shape
    return pl.pallas_call(
        _layer_kernel,
        out_shape=jax.ShapeDtypeStruct((B, S, D), jnp.bfloat16),
        grid=(B,),
        in_specs=[
            pl.BlockSpec((1, S, D), lambda b: (b, 0, 0)),     # bf16 residual activations
            pl.BlockSpec((1, 1, S), lambda b: (b, 0, 0)),     # key-valid mask (B,1,S)
            _full_spec(cos), _full_spec(sin),
            _full_spec(p["ln1"]), _full_spec(p["wqkv"]),
            _full_spec(p["bqkv"]), _full_spec(p["wo"]),
            _full_spec(p["ln2"]), _full_spec(p["wg"]),
            _full_spec(p["wu"]), _full_spec(p["wd"]),
        ],
        out_specs=pl.BlockSpec((1, S, D), lambda b: (b, 0, 0)),
        compiler_params=pltpu.CompilerParams(
            dimension_semantics=("parallel",)),
    )(x, mask, cos, sin,
      p["ln1"], p["wqkv"], p["bqkv"], p["wo"],
      p["ln2"], p["wg"], p["wu"], p["wd"])


def pallas_lm_head_and_loss(h_flat, lnf, wlm, shifted_labels):
    M = h_flat.shape[0]
    tm = M                                                    # largest sublane-aligned divisor <= 512
    for cand in (512, 256, 128, 64, 32, 16, 8):
        if M % cand == 0:
            tm = cand
            break
    return pl.pallas_call(
        _head_kernel,
        out_shape=(jax.ShapeDtypeStruct((M, V), jnp.bfloat16),   # lane-dense bf16 logits
                   jax.ShapeDtypeStruct((1, 1), jnp.float32),    # masked loss sum
                   jax.ShapeDtypeStruct((1, 1), jnp.float32)),   # valid-token count
        grid=(M // tm,),
        in_specs=[
            pl.BlockSpec((tm, D), lambda i: (i, 0)),
            pl.BlockSpec((1, D), lambda i: (0, 0)),
            pl.BlockSpec((D, V), lambda i: (0, 0)),
            pl.BlockSpec((tm, 1), lambda i: (i, 0)),
        ],
        out_specs=(pl.BlockSpec((tm, V), lambda i: (i, 0)),
                   pl.BlockSpec((1, 1), lambda i: (0, 0)),
                   pl.BlockSpec((1, 1), lambda i: (0, 0))),
        compiler_params=pltpu.CompilerParams(
            dimension_semantics=("arbitrary",)),              # loss accumulates across this axis
    )(h_flat, lnf, wlm, shifted_labels)


# ---------------------------------- model glue (JAX) ----------------------------------
def rope_tables(S, Dh, base=ROPE_BASE):
    inv_freq = 1.0 / (base ** (jnp.arange(0, Dh, 2, dtype=jnp.float32) / Dh))
    t = jnp.arange(S, dtype=jnp.float32)
    freqs = jnp.outer(t, inv_freq)                            # (S, Dh/2)
    emb = jnp.concatenate([freqs, freqs], axis=-1)            # (S, Dh)
    sign = jnp.concatenate([-jnp.ones((Dh // 2,), jnp.float32),
                            jnp.ones((Dh // 2,), jnp.float32)])
    # sign-folded sin so that in-kernel rotate_half is a single pltpu.roll (XLU) + multiply
    return jnp.cos(emb), jnp.sin(emb) * sign


def init_params(key):
    def nrm(k, shape):
        return 0.02 * jax.random.normal(k, shape, jnp.float32)

    keys = jax.random.split(key, 2 + 7 * L)
    params = {
        "embed": nrm(keys[0], (V, D)),                               # f32 embedding table
        "lm_head": nrm(keys[1], (D, V)).astype(jnp.bfloat16),        # bf16 matmul weight
        "final_norm": jnp.ones((1, D), jnp.float32),
        "layers": [],
    }
    ki = 2
    for _ in range(L):
        wq = nrm(keys[ki + 0], (D, H * DH))
        wk = nrm(keys[ki + 1], (D, KV * DH))
        wv = nrm(keys[ki + 2], (D, KV * DH))
        layer = {
            "ln1": jnp.ones((1, D), jnp.float32),
            "ln2": jnp.ones((1, D), jnp.float32),
            # Q/K/V weights concatenated once -> single fused GEMM; bf16 storage
            "wqkv": jnp.concatenate([wq, wk, wv], axis=1).astype(jnp.bfloat16),
            "bqkv": jnp.zeros((1, QKV_DIM), jnp.float32),
            "wo": nrm(keys[ki + 3], (H * DH, D)).astype(jnp.bfloat16),
            "wg": nrm(keys[ki + 4], (D, I)).astype(jnp.bfloat16),
            "wu": nrm(keys[ki + 5], (D, I)).astype(jnp.bfloat16),
            "wd": nrm(keys[ki + 6], (I, D)).astype(jnp.bfloat16),
        }
        params["layers"].append(layer)
        ki += 7
    return params


def qwen_decoder_forward(params, input_ids, attention_mask=None, labels=None):
    """Returns (loss_or_None, logits) — mirrors Qwen2ForCausalLM(return_dict=True)."""
    B, S = input_ids.shape
    # embedding gather stays in XLA (glue); residual stream travels in bf16 between layer kernels
    x = jnp.take(params["embed"], input_ids, axis=0).astype(jnp.bfloat16)   # (B, S, D)

    if attention_mask is None:
        attention_mask = jnp.ones((B, S), jnp.int32)
    mask = attention_mask.astype(jnp.float32).reshape(B, 1, S)

    cos, sin_signed = rope_tables(S, DH)

    for layer in params["layers"]:
        x = pallas_decoder_layer(x, mask, cos, sin_signed, layer)

    # Shifted labels: position t predicts labels[t+1]; last position ignored (-100).
    if labels is None:
        shifted = jnp.full((B * S, 1), -100, jnp.int32)
    else:
        shifted = jnp.concatenate(
            [labels[:, 1:], jnp.full((B, 1), -100, labels.dtype)], axis=1
        ).reshape(B * S, 1).astype(jnp.int32)

    logits_flat, loss_sum, cnt = pallas_lm_head_and_loss(
        x.reshape(B * S, D), params["final_norm"], params["lm_head"], shifted)
    logits = logits_flat.reshape(B, S, V)

    loss = None
    if labels is not None:
        # No clamp: if every label is -100 this is 0/0 = NaN, matching torch CrossEntropyLoss.
        loss = loss_sum[0, 0] / cnt[0, 0]
    return loss, logits


# TODO(synk): tokenizer (encode/decode), HF checkpoint loading / 4-bit/8-bit quantization,
#             LoRA adapters, and sampling-based generate() have no Pallas equivalent.

if __name__ == "__main__":
    key = jax.random.PRNGKey(0)
    pkey, ikey = jax.random.split(key)
    params = init_params(pkey)

    B, S = 2, 16
    input_ids = jax.random.randint(ikey, (B, S), 0, V, dtype=jnp.int32)
    attention_mask = jnp.ones((B, S), jnp.int32)
    labels = input_ids  # standard causal-LM training targets

    loss, logits = qwen_decoder_forward(params, input_ids, attention_mask, labels)
    jax.block_until_ready(logits)
    jax.block_until_ready(loss)

    assert logits.shape == (B, S, V)
    assert bool(jnp.isfinite(loss.astype(jnp.float32)))
    print("KERNEL_OK")
</pallas_src>

<mosaic_0001>
module attributes {stable_mosaic.version = 11 : i64} {
  func.func @_layer_kernel(%arg0: i32, %arg1: memref<1x16x512xbf16, #tpu.memory_space<vmem>>, %arg2: memref<1x1x16xf32, #tpu.memory_space<vmem>>, %arg3: memref<16x128xf32, #tpu.memory_space<vmem>>, %arg4: memref<16x128xf32, #tpu.memory_space<vmem>>, %arg5: memref<1x512xf32, #tpu.memory_space<vmem>>, %arg6: memref<512x1024xbf16, #tpu.memory_space<vmem>>, %arg7: memref<1x1024xf32, #tpu.memory_space<vmem>>, %arg8: memref<512x512xbf16, #tpu.memory_space<vmem>>, %arg9: memref<1x512xf32, #tpu.memory_space<vmem>>, %arg10: memref<512x1024xbf16, #tpu.memory_space<vmem>>, %arg11: memref<512x1024xbf16, #tpu.memory_space<vmem>>, %arg12: memref<1024x512xbf16, #tpu.memory_space<vmem>>, %arg13: memref<1x16x512xbf16, #tpu.memory_space<vmem>>) attributes {dimension_semantics = [#tpu.dimension_semantics<parallel>], iteration_bounds = array<i64: 2>, scalar_prefetch = 0 : i64, scratch_operands = 0 : i64, tpu.core_type = #tpu.core_type<tc>, window_params = [{transform_indices = @transform_0, window_bounds = array<i64: 1, 16, 512>}, {transform_indices = @transform_1, window_bounds = array<i64: 1, 1, 16>}, {pipeline_mode = #tpu.pipeline_mode<synchronous>, transform_indices = @transform_2, window_bounds = array<i64: 16, 128>}, {pipeline_mode = #tpu.pipeline_mode<synchronous>, transform_indices = @transform_3, window_bounds = array<i64: 16, 128>}, {pipeline_mode = #tpu.pipeline_mode<synchronous>, transform_indices = @transform_4, window_bounds = array<i64: 1, 512>}, {pipeline_mode = #tpu.pipeline_mode<synchronous>, transform_indices = @transform_5, window_bounds = array<i64: 512, 1024>}, {pipeline_mode = #tpu.pipeline_mode<synchronous>, transform_indices = @transform_6, window_bounds = array<i64: 1, 1024>}, {pipeline_mode = #tpu.pipeline_mode<synchronous>, transform_indices = @transform_7, window_bounds = array<i64: 512, 512>}, {pipeline_mode = #tpu.pipeline_mode<synchronous>, transform_indices = @transform_8, window_bounds = array<i64: 1, 512>}, {pipeline_mode = #tpu.pipeline_mode<synchronous>, transform_indices = @transform_9, window_bounds = array<i64: 512, 1024>}, {pipeline_mode = #tpu.pipeline_mode<synchronous>, transform_indices = @transform_10, window_bounds = array<i64: 512, 1024>}, {pipeline_mode = #tpu.pipeline_mode<synchronous>, transform_indices = @transform_11, window_bounds = array<i64: 1024, 512>}, {transform_indices = @transform_12, window_bounds = array<i64: 1, 16, 512>}]} {
    %c0 = arith.constant 0 : index
    %c0_0 = arith.constant 0 : index
    %c0_1 = arith.constant 0 : index
    %0 = vector.load %arg1[%c0, %c0_0, %c0_1] : memref<1x16x512xbf16, #tpu.memory_space<vmem>>, vector<1x16x512xbf16>
    %1 = vector.shape_cast %0 : vector<1x16x512xbf16> to vector<16x512xbf16>
    %2 = arith.extf %1 : vector<16x512xbf16> to vector<16x512xf32>
    %3 = arith.mulf %2, %2 : vector<16x512xf32>
    %cst = arith.constant dense<0.000000e+00> : vector<16xf32>
    %4 = vector.multi_reduction <add>, %3, %cst [1] : vector<16x512xf32> to vector<16xf32>
    %5 = vector.shape_cast %4 : vector<16xf32> to vector<16x1xf32>
    %cst_2 = arith.constant 5.120000e+02 : f32
    %6 = vector.broadcast %cst_2 : f32 to vector<16x1xf32>
    %7 = arith.divf %5, %6 : vector<16x1xf32>
    %cst_3 = arith.constant 9.99999997E-7 : f32
    %8 = vector.broadcast %cst_3 : f32 to vector<16x1xf32>
    %9 = arith.addf %7, %8 : vector<16x1xf32>
    %10 = math.rsqrt %9 : vector<16x1xf32>
    %11 = vector.broadcast %10 : vector<16x1xf32> to vector<16x512xf32>
    %12 = arith.mulf %2, %11 : vector<16x512xf32>
    %c0_4 = arith.constant 0 : index
    %c0_5 = arith.constant 0 : index
    %13 = vector.load %arg5[%c0_4, %c0_5] : memref<1x512xf32, #tpu.memory_space<vmem>>, vector<1x512xf32>
    %14 = vector.broadcast %13 : vector<1x512xf32> to vector<16x512xf32>
    %15 = arith.mulf %12, %14 : vector<16x512xf32>
    %16 = arith.truncf %15 : vector<16x512xf32> to vector<16x512xbf16>
    %c0_6 = arith.constant 0 : index
    %c0_7 = arith.constant 0 : index
    %17 = vector.load %arg6[%c0_6, %c0_7] : memref<512x1024xbf16, #tpu.memory_space<vmem>>, vector<512x1024xbf16>
    %cst_8 = arith.constant dense<0.000000e+00> : vector<16x1024xf32>
    %18 = tpu.matmul %16, %17, %cst_8 {dimension_numbers = #tpu.dot_dimension_numbers<[1], [0], [0], [1], [0, 0, 1, 1], [], []>} : vector<16x512xbf16>, vector<512x1024xbf16>, vector<16x1024xf32> -> vector<16x1024xf32>
    %c0_9 = arith.constant 0 : index
    %c0_10 = arith.constant 0 : index
    %19 = vector.load %arg7[%c0_9, %c0_10] : memref<1x1024xf32, #tpu.memory_space<vmem>>, vector<1x1024xf32>
    %20 = vector.broadcast %19 : vector<1x1024xf32> to vector<16x1024xf32>
    %21 = arith.addf %18, %20 : vector<16x1024xf32>
    %c0_11 = arith.constant 0 : index
    %c0_12 = arith.constant 0 : index
    %22 = vector.load %arg3[%c0_11, %c0_12] : memref<16x128xf32, #tpu.memory_space<vmem>>, vector<16x128xf32>
    %c0_13 = arith.constant 0 : index
    %c0_14 = arith.constant 0 : index
    %23 = vector.load %arg4[%c0_13, %c0_14] : memref<16x128xf32, #tpu.memory_space<vmem>>, vector<16x128xf32>
    %24 = tpu.iota {dimensions = array<i32: 0>} : vector<16x16xi32>
    %25 = tpu.iota {dimensions = array<i32: 1>} : vector<16x16xi32>
    %c0_15 = arith.constant 0 : index
    %c0_16 = arith.constant 0 : index
    %c0_17 = arith.constant 0 : index
    %26 = vector.load %arg2[%c0_15, %c0_16, %c0_17] : memref<1x1x16xf32, #tpu.memory_space<vmem>>, vector<1x1x16xf32>
    %27 = vector.shape_cast %26 : vector<1x1x16xf32> to vector<1x16xf32>
    %cst_18 = arith.constant 5.000000e-01 : f32
    %28 = vector.broadcast %cst_18 : f32 to vector<1x16xf32>
    %29 = arith.cmpf ogt, %27, %28 : vector<1x16xf32>
    %30 = arith.cmpi sge, %24, %25 : vector<16x16xi32>
    %31 = vector.broadcast %29 : vector<1x16xi1> to vector<16x16xi1>
    %32 = arith.andi %30, %31 : vector<16x16xi1>
    %cst_19 = arith.constant 0.000000e+00 : f32
    %cst_20 = arith.constant -1.000000e+09 : f32
    %33 = vector.broadcast %cst_19 : f32 to vector<16x16xf32>
    %34 = vector.broadcast %cst_20 : f32 to vector<16x16xf32>
    %35 = arith.select %32, %33, %34 : vector<16x16xi1>, vector<16x16xf32>
    %36 = tpu.concatenate %22, %22 in 0 : vector<16x128xf32>, vector<16x128xf32> -> vector<32x128xf32>
    %37 = tpu.concatenate %23, %23 in 0 : vector<16x128xf32>, vector<16x128xf32> -> vector<32x128xf32>
    %38 = tpu.concatenate %35, %35 in 0 : vector<16x16xf32>, vector<16x16xf32> -> vector<32x16xf32>
    %39 = vector.extract_strided_slice %21 {offsets = [0, 512], sizes = [16, 128], strides = [1, 1]} : vector<16x1024xf32> to vector<16x128xf32>
    %40 = vector.extract_strided_slice %21 {offsets = [0, 768], sizes = [16, 128], strides = [1, 1]} : vector<16x1024xf32> to vector<16x128xf32>
    %41 = arith.truncf %40 : vector<16x128xf32> to vector<16x128xbf16>
    %42 = arith.mulf %39, %22 : vector<16x128xf32>
    %c64_i32 = arith.constant 64 : i32
    %43 = tpu.dynamic_rotate %39 by %c64_i32 dim 1 : vector<16x128xf32>, i32 -> vector<16x128xf32>
    %44 = arith.mulf %43, %23 : vector<16x128xf32>
    %45 = arith.addf %42, %44 : vector<16x128xf32>
    %46 = arith.truncf %45 : vector<16x128xf32> to vector<16x128xbf16>
    %47 = vector.extract_strided_slice %21 {offsets = [0, 0], sizes = [16, 128], strides = [1, 1]} : vector<16x1024xf32> to vector<16x128xf32>
    %48 = vector.extract_strided_slice %21 {offsets = [0, 128], sizes = [16, 128], strides = [1, 1]} : vector<16x1024xf32> to vector<16x128xf32>
    %49 = tpu.concatenate %47, %48 in 0 : vector<16x128xf32>, vector<16x128xf32> -> vector<32x128xf32>
    %50 = arith.mulf %49, %36 : vector<32x128xf32>
    %c64_i32_21 = arith.constant 64 : i32
    %51 = tpu.dynamic_rotate %49 by %c64_i32_21 dim 1 : vector<32x128xf32>, i32 -> vector<32x128xf32>
    %52 = arith.mulf %51, %37 : vector<32x128xf32>
    %53 = arith.addf %50, %52 : vector<32x128xf32>
    %cst_22 = arith.constant 0.0883883461 : f32
    %54 = vector.broadcast %cst_22 : f32 to vector<32x128xf32>
    %55 = arith.mulf %53, %54 : vector<32x128xf32>
    %56 = arith.truncf %55 : vector<32x128xf32> to vector<32x128xbf16>
    %cst_23 = arith.constant dense<0.000000e+00> : vector<32x16xf32>
    %57 = tpu.matmul %56, %46, %cst_23 {dimension_numbers = #tpu.dot_dimension_numbers<[1], [1], [0], [0], [0, 0, 1, 0], [], []>} : vector<32x128xbf16>, vector<16x128xbf16>, vector<32x16xf32> -> vector<32x16xf32>
    %58 = arith.addf %57, %38 : vector<32x16xf32>
    %cst_24 = arith.constant dense<0xFF800000> : vector<32xf32>
    %59 = vector.multi_reduction <maximumf>, %58, %cst_24 [1] : vector<32x16xf32> to vector<32xf32>
    %60 = vector.shape_cast %59 : vector<32xf32> to vector<32x1xf32>
    %61 = vector.broadcast %60 : vector<32x1xf32> to vector<32x16xf32>
    %62 = arith.subf %58, %61 : vector<32x16xf32>
    %63 = math.exp %62 : vector<32x16xf32>
    %cst_25 = arith.constant dense<0.000000e+00> : vector<32xf32>
    %64 = vector.multi_reduction <add>, %63, %cst_25 [1] : vector<32x16xf32> to vector<32xf32>
    %65 = vector.shape_cast %64 : vector<32xf32> to vector<32x1xf32>
    %66 = tpu.reciprocal %65 {approx = true} : vector<32x1xf32> -> vector<32x1xf32>
    %67 = vector.broadcast %66 : vector<32x1xf32> to vector<32x16xf32>
    %68 = arith.mulf %63, %67 : vector<32x16xf32>
    %69 = arith.truncf %68 : vector<32x16xf32> to vector<32x16xbf16>
    %cst_26 = arith.constant dense<0.000000e+00> : vector<32x128xf32>
    %70 = tpu.matmul %69, %41, %cst_26 {dimension_numbers = #tpu.dot_dimension_numbers<[1], [0], [0], [1], [0, 0, 1, 1], [], []>} : vector<32x16xbf16>, vector<16x128xbf16>, vector<32x128xf32> -> vector<32x128xf32>
    %71 = vector.extract_strided_slice %21 {offsets = [0, 640], sizes = [16, 128], strides = [1, 1]} : vector<16x1024xf32> to vector<16x128xf32>
    %72 = vector.extract_strided_slice %21 {offsets = [0, 896], sizes = [16, 128], strides = [1, 1]} : vector<16x1024xf32> to vector<16x128xf32>
    %73 = arith.truncf %72 : vector<16x128xf32> to vector<16x128xbf16>
    %74 = arith.mulf %71, %22 : vector<16x128xf32>
    %c64_i32_27 = arith.constant 64 : i32
    %75 = tpu.dynamic_rotate %71 by %c64_i32_27 dim 1 : vector<16x128xf32>, i32 -> vector<16x128xf32>
    %76 = arith.mulf %75, %23 : vector<16x128xf32>
    %77 = arith.addf %74, %76 : vector<16x128xf32>
    %78 = arith.truncf %77 : vector<16x128xf32> to vector<16x128xbf16>
    %79 = vector.extract_strided_slice %21 {offsets = [0, 256], sizes = [16, 128], strides = [1, 1]} : vector<16x1024xf32> to vector<16x128xf32>
    %80 = vector.extract_strided_slice %21 {offsets = [0, 384], sizes = [16, 128], strides = [1, 1]} : vector<16x1024xf32> to vector<16x128xf32>
    %81 = tpu.concatenate %79, %80 in 0 : vector<16x128xf32>, vector<16x128xf32> -> vector<32x128xf32>
    %82 = arith.mulf %81, %36 : vector<32x128xf32>
    %c64_i32_28 = arith.constant 64 : i32
    %83 = tpu.dynamic_rotate %81 by %c64_i32_28 dim 1 : vector<32x128xf32>, i32 -> vector<32x128xf32>
    %84 = arith.mulf %83, %37 : vector<32x128xf32>
    %85 = arith.addf %82, %84 : vector<32x128xf32>
    %cst_29 = arith.constant 0.0883883461 : f32
    %86 = vector.broadcast %cst_29 : f32 to vector<32x128xf32>
    %87 = arith.mulf %85, %86 : vector<32x128xf32>
    %88 = arith.truncf %87 : vector<32x128xf32> to vector<32x128xbf16>
    %cst_30 = arith.constant dense<0.000000e+00> : vector<32x16xf32>
    %89 = tpu.matmul %88, %78, %cst_30 {dimension_numbers = #tpu.dot_dimension_numbers<[1], [1], [0], [0], [0, 0, 1, 0], [], []>} : vector<32x128xbf16>, vector<16x128xbf16>, vector<32x16xf32> -> vector<32x16xf32>
    %90 = arith.addf %89, %38 : vector<32x16xf32>
    %cst_31 = arith.constant dense<0xFF800000> : vector<32xf32>
    %91 = vector.multi_reduction <maximumf>, %90, %cst_31 [1] : vector<32x16xf32> to vector<32xf32>
    %92 = vector.shape_cast %91 : vector<32xf32> to vector<32x1xf32>
    %93 = vector.broadcast %92 : vector<32x1xf32> to vector<32x16xf32>
    %94 = arith.subf %90, %93 : vector<32x16xf32>
    %95 = math.exp %94 : vector<32x16xf32>
    %cst_32 = arith.constant dense<0.000000e+00> : vector<32xf32>
    %96 = vector.multi_reduction <add>, %95, %cst_32 [1] : vector<32x16xf32> to vector<32xf32>
    %97 = vector.shape_cast %96 : vector<32xf32> to vector<32x1xf32>
    %98 = tpu.reciprocal %97 {approx = true} : vector<32x1xf32> -> vector<32x1xf32>
    %99 = vector.broadcast %98 : vector<32x1xf32> to vector<32x16xf32>
    %100 = arith.mulf %95, %99 : vector<32x16xf32>
    %101 = arith.truncf %100 : vector<32x16xf32> to vector<32x16xbf16>
    %cst_33 = arith.constant dense<0.000000e+00> : vector<32x128xf32>
    %102 = tpu.matmul %101, %73, %cst_33 {dimension_numbers = #tpu.dot_dimension_numbers<[1], [0], [0], [1], [0, 0, 1, 1], [], []>} : vector<32x16xbf16>, vector<16x128xbf16>, vector<32x128xf32> -> vector<32x128xf32>
    %103 = vector.extract_strided_slice %70 {offsets = [0, 0], sizes = [16, 128], strides = [1, 1]} : vector<32x128xf32> to vector<16x128xf32>
    %104 = vector.extract_strided_slice %70 {offsets = [16, 0], sizes = [16, 128], strides = [1, 1]} : vector<32x128xf32> to vector<16x128xf32>
    %105 = vector.extract_strided_slice %102 {offsets = [0, 0], sizes = [16, 128], strides = [1, 1]} : vector<32x128xf32> to vector<16x128xf32>
    %106 = vector.extract_strided_slice %102 {offsets = [16, 0], sizes = [16, 128], strides = [1, 1]} : vector<32x128xf32> to vector<16x128xf32>
    %107 = tpu.concatenate %103, %104, %105, %106 in 1 : vector<16x128xf32>, vector<16x128xf32>, vector<16x128xf32>, vector<16x128xf32> -> vector<16x512xf32>
    %108 = arith.truncf %107 : vector<16x512xf32> to vector<16x512xbf16>
    %c0_34 = arith.constant 0 : index
    %c0_35 = arith.constant 0 : index
    %109 = vector.load %arg8[%c0_34, %c0_35] : memref<512x512xbf16, #tpu.memory_space<vmem>>, vector<512x512xbf16>
    %cst_36 = arith.constant dense<0.000000e+00> : vector<16x512xf32>
    %110 = tpu.matmul %108, %109, %cst_36 {dimension_numbers = #tpu.dot_dimension_numbers<[1], [0], [0], [1], [0, 0, 1, 1], [], []>} : vector<16x512xbf16>, vector<512x512xbf16>, vector<16x512xf32> -> vector<16x512xf32>
    %111 = arith.addf %2, %110 : vector<16x512xf32>
    %112 = arith.mulf %111, %111 : vector<16x512xf32>
    %cst_37 = arith.constant dense<0.000000e+00> : vector<16xf32>
    %113 = vector.multi_reduction <add>, %112, %cst_37 [1] : vector<16x512xf32> to vector<16xf32>
    %114 = vector.shape_cast %113 : vector<16xf32> to vector<16x1xf32>
    %cst_38 = arith.constant 5.120000e+02 : f32
    %115 = vector.broadcast %cst_38 : f32 to vector<16x1xf32>
    %116 = arith.divf %114, %115 : vector<16x1xf32>
    %cst_39 = arith.constant 9.99999997E-7 : f32
    %117 = vector.broadcast %cst_39 : f32 to vector<16x1xf32>
    %118 = arith.addf %116, %117 : vector<16x1xf32>
    %119 = math.rsqrt %118 : vector<16x1xf32>
    %120 = vector.broadcast %119 : vector<16x1xf32> to vector<16x512xf32>
    %121 = arith.mulf %111, %120 : vector<16x512xf32>
    %c0_40 = arith.constant 0 : index
    %c0_41 = arith.constant 0 : index
    %122 = vector.load %arg9[%c0_40, %c0_41] : memref<1x512xf32, #tpu.memory_space<vmem>>, vector<1x512xf32>
    %123 = vector.broadcast %122 : vector<1x512xf32> to vector<16x512xf32>
    %124 = arith.mulf %121, %123 : vector<16x512xf32>
    %125 = arith.truncf %124 : vector<16x512xf32> to vector<16x512xbf16>
    %c0_42 = arith.constant 0 : index
    %c0_43 = arith.constant 0 : index
    %126 = vector.load %arg10[%c0_42, %c0_43] : memref<512x1024xbf16, #tpu.memory_space<vmem>>, vector<512x1024xbf16>
    %cst_44 = arith.constant dense<0.000000e+00> : vector<16x1024xf32>
    %127 = tpu.matmul %125, %126, %cst_44 {dimension_numbers = #tpu.dot_dimension_numbers<[1], [0], [0], [1], [0, 0, 1, 1], [], []>} : vector<16x512xbf16>, vector<512x1024xbf16>, vector<16x1024xf32> -> vector<16x1024xf32>
    %c0_45 = arith.constant 0 : index
    %c0_46 = arith.constant 0 : index
    %128 = vector.load %arg11[%c0_45, %c0_46] : memref<512x1024xbf16, #tpu.memory_space<vmem>>, vector<512x1024xbf16>
    %cst_47 = arith.constant dense<0.000000e+00> : vector<16x1024xf32>
    %129 = tpu.matmul %125, %128, %cst_47 {dimension_numbers = #tpu.dot_dimension_numbers<[1], [0], [0], [1], [0, 0, 1, 1], [], []>} : vector<16x512xbf16>, vector<512x1024xbf16>, vector<16x1024xf32> -> vector<16x1024xf32>
    %130 = arith.negf %127 : vector<16x1024xf32>
    %131 = math.exp %130 : vector<16x1024xf32>
    %cst_48 = arith.constant 1.000000e+00 : f32
    %132 = vector.broadcast %cst_48 : f32 to vector<16x1024xf32>
    %133 = arith.addf %132, %131 : vector<16x1024xf32>
    %134 = arith.divf %132, %133 : vector<16x1024xf32>
    %135 = arith.mulf %127, %134 : vector<16x1024xf32>
    %136 = arith.mulf %135, %129 : vector<16x1024xf32>
    %137 = arith.truncf %136 : vector<16x1024xf32> to vector<16x1024xbf16>
    %c0_49 = arith.constant 0 : index
    %c0_50 = arith.constant 0 : index
    %138 = vector.load %arg12[%c0_49, %c0_50] : memref<1024x512xbf16, #tpu.memory_space<vmem>>, vector<1024x512xbf16>
    %cst_51 = arith.constant dense<0.000000e+00> : vector<16x512xf32>
    %139 = tpu.matmul %137, %138, %cst_51 {dimension_numbers = #tpu.dot_dimension_numbers<[1], [0], [0], [1], [0, 0, 1, 1], [], []>} : vector<16x1024xbf16>, vector<1024x512xbf16>, vector<16x512xf32> -> vector<16x512xf32>
    %140 = arith.addf %111, %139 : vector<16x512xf32>
    %141 = arith.truncf %140 : vector<16x512xf32> to vector<16x512xbf16>
    %c0_52 = arith.constant 0 : index
    %c0_53 = arith.constant 0 : index
    %c0_54 = arith.constant 0 : index
    %142 = vector.load %arg13[%c0_52, %c0_53, %c0_54] : memref<1x16x512xbf16, #tpu.memory_space<vmem>>, vector<1x16x512xbf16>
    %143 = vector.shape_cast %142 : vector<1x16x512xbf16> to vector<16x512xbf16>
    %144 = vector.shape_cast %141 : vector<16x512xbf16> to vector<1x16x512xbf16>
    tpu.vector_store %arg13[%c0_52, %c0_53, %c0_54], %144 {strides = array<i32>} : memref<1x16x512xbf16, #tpu.memory_space<vmem>>, vector<1x16x512xbf16>,
    return
  }
  func.func @transform_0(%arg0: i32) -> (i32, i32, i32) {
    %c0_i32 = arith.constant 0 : i32
    %c0_i32_0 = arith.constant 0 : i32
    %c0_i32_1 = arith.constant 0 : i32
    return %arg0, %c0_i32, %c0_i32_0 : i32, i32, i32
  }
  func.func @transform_1(%arg0: i32) -> (i32, i32, i32) {
    %c0_i32 = arith.constant 0 : i32
    %c0_i32_0 = arith.constant 0 : i32
    %c0_i32_1 = arith.constant 0 : i32
    return %arg0, %c0_i32, %c0_i32_0 : i32, i32, i32
  }
  func.func @transform_2(%arg0: i32) -> (i32, i32) {
    %c0_i32 = arith.constant 0 : i32
    %c0_i32_0 = arith.constant 0 : i32
    %c0_i32_1 = arith.constant 0 : i32
    return %c0_i32, %c0_i32_0 : i32, i32
  }
  func.func @transform_3(%arg0: i32) -> (i32, i32) {
    %c0_i32 = arith.constant 0 : i32
    %c0_i32_0 = arith.constant 0 : i32
    %c0_i32_1 = arith.constant 0 : i32
    return %c0_i32, %c0_i32_0 : i32, i32
  }
  func.func @transform_4(%arg0: i32) -> (i32, i32) {
    %c0_i32 = arith.constant 0 : i32
    %c0_i32_0 = arith.constant 0 : i32
    %c0_i32_1 = arith.constant 0 : i32
    return %c0_i32, %c0_i32_0 : i32, i32
  }
  func.func @transform_5(%arg0: i32) -> (i32, i32) {
    %c0_i32 = arith.constant 0 : i32
    %c0_i32_0 = arith.constant 0 : i32
    %c0_i32_1 = arith.constant 0 : i32
    return %c0_i32, %c0_i32_0 : i32, i32
  }
  func.func @transform_6(%arg0: i32) -> (i32, i32) {
    %c0_i32 = arith.constant 0 : i32
    %c0_i32_0 = arith.constant 0 : i32
    %c0_i32_1 = arith.constant 0 : i32
    return %c0_i32, %c0_i32_0 : i32, i32
  }
  func.func @transform_7(%arg0: i32) -> (i32, i32) {
    %c0_i32 = arith.constant 0 : i32
    %c0_i32_0 = arith.constant 0 : i32
    %c0_i32_1 = arith.constant 0 : i32
    return %c0_i32, %c0_i32_0 : i32, i32
  }
  func.func @transform_8(%arg0: i32) -> (i32, i32) {
    %c0_i32 = arith.constant 0 : i32
    %c0_i32_0 = arith.constant 0 : i32
    %c0_i32_1 = arith.constant 0 : i32
    return %c0_i32, %c0_i32_0 : i32, i32
  }
  func.func @transform_9(%arg0: i32) -> (i32, i32) {
    %c0_i32 = arith.constant 0 : i32
    %c0_i32_0 = arith.constant 0 : i32
    %c0_i32_1 = arith.constant 0 : i32
    return %c0_i32, %c0_i32_0 : i32, i32
  }
  func.func @transform_10(%arg0: i32) -> (i32, i32) {
    %c0_i32 = arith.constant 0 : i32
    %c0_i32_0 = arith.constant 0 : i32
    %c0_i32_1 = arith.constant 0 : i32
    return %c0_i32, %c0_i32_0 : i32, i32
  }
  func.func @transform_11(%arg0: i32) -> (i32, i32) {
    %c0_i32 = arith.constant 0 : i32
    %c0_i32_0 = arith.constant 0 : i32
    %c0_i32_1 = arith.constant 0 : i32
    return %c0_i32, %c0_i32_0 : i32, i32
  }
  func.func @transform_12(%arg0: i32) -> (i32, i32, i32) {
    %c0_i32 = arith.constant 0 : i32
    %c0_i32_0 = arith.constant 0 : i32
    %c0_i32_1 = arith.constant 0 : i32
    return %arg0, %c0_i32, %c0_i32_0 : i32, i32, i32
  }
}

</mosaic_0001>

<bundles_post_ra>
// kernel: tpu_custom_call.1
= control target key start
LH: loop header
LB: loop body
LE: loop exit
PB: predicated region body
PF: predicated region fallthrough
CT: control target
= control target key end

     0   :  { %s13286_s0 = inlined_call_operand.hbm [shape: bf16[2,16,512], index: 0, kind: input, shape index: {}]   ;;  %s13287_s1 = inlined_call_operand.vmem [shape: f32[2,1,16], index: 1, kind: input, shape index: {}]   ;;  %s13288_s2 = inlined_call_operand.hbm [shape: f32[16,128], index: 2, kind: input, shape index: {}]   ;;  %s13289_s3 = inlined_call_operand.hbm [shape: f32[16,128], index: 3, kind: input, shape index: {}]   ;;  %s13290_s4 = inlined_call_operand.vmem [shape: f32[1,512], index: 4, kind: input, shape index: {}]   ;;  %s13291_s5 = inlined_call_operand.hbm [shape: bf16[512,1024], index: 5, kind: input, shape index: {}]   ;;  %s13292_s6 = inlined_call_operand.vmem [shape: f32[1,1024], index: 6, kind: input, shape index: {}]   ;;  %s13293_s7 = inlined_call_operand.hbm [shape: bf16[512,512], index: 7, kind: input, shape index: {}]   ;;  %s13294_s8 = inlined_call_operand.vmem [shape: f32[1,512], index: 8, kind: input, shape index: {}]   ;;  %s13295_s9 = inlined_call_operand.hbm [shape: bf16[512,1024], index: 9, kind: input, shape index: {}]   ;;  %s13296_s10 = inlined_call_operand.hbm [shape: bf16[512,1024], index: 10, kind: input, shape index: {}]   ;;  %s13297_s11 = inlined_call_operand.hbm [shape: bf16[1024,512], index: 11, kind: input, shape index: {}]   ;;  %s13298_s12 = inlined_call_operand.hbm [shape: bf16[2,16,512], index: 12, kind: output, shape index: {}]  }
   0x1   :  { %13307 = sst [smem:[#allocation23_spill]] %s13287_s1 }
   0x2   :  { %13308 = sst [smem:[#allocation24_spill]] %s13288_s2 }
   0x3   :  { %13309 = sst [smem:[#allocation25_spill]] %s13289_s3 }
   0x4   :  { %13310 = sst [smem:[#allocation26_spill]] %s13292_s6 }
   0x5   :  { %13311 = sst [smem:[#allocation27_spill]] %s13294_s8 }
   0x6   :  { %13312 = sst [smem:[#allocation28_spill]] %s13298_s12 }
   0x7   :  { %17 = vsyncpa [#allocation3], 0 }
   0x8   :  { %19 = vsyncpa [#allocation3 + $0x1], 0 }
   0x9   :  { %20 = vsyncpa [#allocation6], 0 }
   0xa   :  { %21 = vsyncpa [#allocation9], 0 }
   0xb   :  { %22 = vsyncpa [#allocation12], 0 }
   0xc   :  { %23 = vsyncpa [#allocation15], 0 }
   0xd   :  { %24 = vsyncpa [#allocation4], 0 }
   0xe   :  { %26 = vsyncpa [#allocation4 + $0x1], 0  ;;  %s12488_s21 = smov 0   ;;  %s12490_s22 = smov 0  }
   0xf   :  { %s12492_s23 = smov 0   ;;  %s12494_s24 = smov 0  }
  0x10 LB: > { %s12403_s25 = smov [#allocation5]   ;;  %s12509_s27 = sadd.s32 4294967295, %s12401_s24   ;;  %s12401_s24 = sphi %s12494_s24, %s13346_s24   ;;  %s12397_s23 = sphi %s12492_s23, %s13345_s23   ;;  %s12393_s22 = sphi %s12490_s22, %s13344_s22   ;;  %s12389_s21 = sphi %s12488_s21, %s13343_s21  }
  0x11   : > { %s337_s26 = sshll.u32 %s12403_s25, 4  ;;  %p9944_p0 = scmp.ge.s32.totalorder %s12401_s24, 1  ;;  %s12514_s26 = int_to_ptr.vmem [resolvable:$true] %s337_s26 }
  0x12   : > { %p13301_p1 = scmp.eq.s32.totalorder %s12509_s27, 0  ;;  %p325_p2 = scmp.lt.s32.totalorder %s12401_s24, 3 }
  0x13   : > { %s12404_s29 = smov [#allocation8]   ;;  %s12405_s14 = smov [#allocation11]  }
  0x14   : > { %p12516_p3 = pnand %p9944_p0, %p325_p2  ;;  %s366_s30 = sshll.u32 %s12404_s29, 4  ;;  %s12529_s30 = int_to_ptr.vmem [resolvable:$true] %s366_s30 }
  0x15   : > { %s12531_s15 = sshll.u32 %s12405_s14, 4  ;;  %s13315_s2 = sld [smem:[#allocation24_spill]]  ;;  %s399_s15 = int_to_ptr.vmem [resolvable:$true] %s12531_s15 }
  0x16   : > { %s13313_s28 = scalar_select %p12516_p3, 1, 0 }
  0x17   : > { %p11317_p5 = pneg %p12516_p3 }
  0x19   : > { %p12525_p6 = pnand %p11317_p5, %p13301_p1 }
  0x1b   : > { %s12093_s18 = scalar_lea.hbm %s13315_s2, 256  ;;  %p12541_p8 = pneg %p12525_p6 }
  0x1c   : > { %p12094_p7 = scmp.ne.s32.totalorder %s13315_s2, %s12093_s18  ;;  %p12100_p11 = scmp.lt.u32.totalorder %s12093_s18, %s13315_s2 }
  0x1e   : > { %p12096_p9 = pnand %p12541_p8, %p12094_p7 }
  0x20   : > { %p12097_p10 = pneg %p12096_p9 }
  0x22   : > { %p12102_p12 = pnand %p12100_p11, %p12097_p10 }
  0x24   : > { %12105 = shalt.err (!%p12102_p12)
}
  0x25   : > { %s12106_s16 = scalar_lea.vmem %s12514_s26, 256  ;;  %p12114_p5 = scmp.lt.s32.totalorder %s12514_s26, %s12514_s26 }
  0x26   : > { %p12107_p13 = scmp.ne.s32.totalorder %s12514_s26, %s12106_s16  ;;  %p12115_p4 = scmp.lt.s32.totalorder %s12106_s16, %s12106_s16 }
  0x28   : > { %p12109_p0 = pnand %p12107_p13, %p12541_p8  ;;  %p12116_p7 = por %p12115_p4, %p12114_p5 }
  0x2a   : > { %p12110_p2 = pneg %p12109_p0 }
  0x2c   : > { %p12117_p9 = pnand %p12116_p7, %p12110_p2 }
  0x2e   : > { %12120 = shalt.err (!%p12117_p9)
}
  0x2f   : > { %s13300_s17 = smov 128   ;;  %s13303_s18 = smov 8  }
  0x30   : > { %11320 = dma.hbm_to_vmem [thread:$0]  (!%p12525_p6), %s13315_s2, 256, %s12514_s26, [#allocation6], %s13300_s17, %s13300_s17, %s13303_s18  }
  0x31   : > { %s12121_s16 = scalar_lea.hbm %s13291_s5, 32768 }
  0x32   : > { %p12122_p4 = scmp.ne.s32.totalorder %s13291_s5, %s12121_s16  ;;  %p12128_p12 = scmp.lt.u32.totalorder %s12121_s16, %s13291_s5 }
  0x34   : > { %p12124_p10 = pnand %p12122_p4, %p12541_p8 }
  0x36   : > { %p12125_p11 = pneg %p12124_p10 }
  0x38   : > { %p12130_p13 = pnand %p12128_p12, %p12125_p11 }
  0x3a   : > { %12133 = shalt.err (!%p12130_p13)
}
  0x3b   : > { %s12134_s26 = scalar_lea.vmem %s12529_s30, 32768  ;;  %p12142_p7 = scmp.lt.s32.totalorder %s12529_s30, %s12529_s30 }
  0x3c   : > { %p12135_p0 = scmp.ne.s32.totalorder %s12529_s30, %s12134_s26  ;;  %p12143_p9 = scmp.lt.s32.totalorder %s12134_s26, %s12134_s26 }
  0x3e   : > { %p12137_p2 = pnand %p12135_p0, %p12541_p8  ;;  %p12144_p4 = por %p12143_p9, %p12142_p7 }
  0x40   : > { %p12138_p5 = pneg %p12137_p2 }
  0x42   : > { %p12145_p10 = pnand %p12144_p4, %p12138_p5 }
  0x44   : > { %12148 = shalt.err (!%p12145_p10)
}
  0x45   : > { %s13304_s8 = smov 512   ;;  %s13305_s1 = smov 32  }
  0x46   : > { %11326 = dma.hbm_to_vmem [thread:$0]  (!%p12525_p6), %s13291_s5, 32768, %s12529_s30, [#allocation9], %s13304_s8, %s13304_s8, %s13305_s1  }
  0x47   : > { %s12149_s29 = scalar_lea.hbm %s13295_s9, 32768 }
  0x48   : > { %p12150_p11 = scmp.ne.s32.totalorder %s13295_s9, %s12149_s29  ;;  %p12156_p0 = scmp.lt.u32.totalorder %s12149_s29, %s13295_s9 }
  0x4a   : > { %p12152_p12 = pnand %p12150_p11, %p12541_p8 }
  0x4c   : > { %p12153_p13 = pneg %p12152_p12 }
  0x4e   : > { %p12158_p2 = pnand %p12156_p0, %p12153_p13 }
  0x50   : > { %12161 = shalt.err (!%p12158_p2)
}
  0x51   : > { %s12162_s6 = scalar_lea.vmem %s399_s15, 32768  ;;  %p12170_p4 = scmp.lt.s32.totalorder %s399_s15, %s399_s15 }
  0x52   : > { %p12163_p5 = scmp.ne.s32.totalorder %s399_s15, %s12162_s6  ;;  %p12171_p10 = scmp.lt.s32.totalorder %s12162_s6, %s12162_s6 }
  0x54   : > { %p12165_p7 = pnand %p12163_p5, %p12541_p8  ;;  %p12172_p1 = por %p12171_p10, %p12170_p4 }
  0x56   : > { %p12166_p9 = pneg %p12165_p7 }
  0x58   : > { %p12173_p3 = pnand %p12172_p1, %p12166_p9 }
  0x5a   : > { %12176 = shalt.err (!%p12173_p3)
}
  0x5b   : > { %11332 = dma.hbm_to_vmem [thread:$0]  (!%p12525_p6), %s13295_s9, 32768, %s399_s15, [#allocation12], %s13304_s8, %s13304_s8, %s13305_s1  }
  0x5c   : > { %s12410_s12 = smov [#allocation7]   ;;  %s12411_s20 = smov [#allocation10]  }
  0x5d   : > { %s350_s19 = sshll.u32 %s12410_s12, 4  ;;  %s382_s29 = sshll.u32 %s12411_s20, 4  ;;  %s351_s19 = int_to_ptr.vmem [resolvable:$true] %s350_s19  ;;  %s383_s29 = int_to_ptr.vmem [resolvable:$true] %s382_s29 }
  0x5e   : > { %s13317_s3 = sld [smem:[#allocation25_spill]] }
  0x64   : > { %s12177_s26 = scalar_lea.hbm %s13317_s3, 256 }
  0x65   : > { %p12178_p1 = scmp.ne.s32.totalorder %s13317_s3, %s12177_s26  ;;  %p12184_p12 = scmp.lt.u32.totalorder %s12177_s26, %s13317_s3 }
  0x67   : > { %p12180_p3 = pnand %p12178_p1, %p12541_p8 }
  0x69   : > { %p12181_p11 = pneg %p12180_p3 }
  0x6b   : > { %p12186_p13 = pnand %p12184_p12, %p12181_p11 }
  0x6d   : > { %12189 = shalt.err (!%p12186_p13)
}
  0x6e   : > { %s12190_s15 = scalar_lea.vmem %s351_s19, 256  ;;  %p12198_p7 = scmp.lt.s32.totalorder %s351_s19, %s351_s19 }
  0x6f   : > { %p12191_p0 = scmp.ne.s32.totalorder %s351_s19, %s12190_s15  ;;  %p12199_p9 = scmp.lt.s32.totalorder %s12190_s15, %s12190_s15 }
  0x71   : > { %p12193_p2 = pnand %p12191_p0, %p12541_p8  ;;  %p12200_p4 = por %p12199_p9, %p12198_p7 }
  0x73   : > { %p12194_p5 = pneg %p12193_p2 }
  0x75   : > { %p12201_p10 = pnand %p12200_p4, %p12194_p5 }
  0x77   : > { %12204 = shalt.err (!%p12201_p10)
}
  0x78   : > { %s13318_s18 = smov 8   ;;  %s13319_s17 = smov 128  }
  0x79   : > { %11323 = dma.hbm_to_vmem [thread:$0]  (!%p12525_p6), %s13317_s3, 256, %s351_s19, [#allocation6], %s13319_s17, %s13319_s17, %s13318_s18  }
  0x7a   : > { %s12205_s16 = scalar_lea.hbm %s13293_s7, 16384 }
  0x7b   : > { %p12206_p1 = scmp.ne.s32.totalorder %s13293_s7, %s12205_s16  ;;  %p12212_p12 = scmp.lt.u32.totalorder %s12205_s16, %s13293_s7 }
  0x7d   : > { %p12208_p3 = pnand %p12206_p1, %p12541_p8 }
  0x7f   : > { %p12209_p11 = pneg %p12208_p3 }
  0x81   : > { %p12214_p13 = pnand %p12212_p12, %p12209_p11 }
  0x83   : > { %12217 = shalt.err (!%p12214_p13)
}
  0x84   : > { %s12218_s2 = scalar_lea.vmem %s383_s29, 16384  ;;  %p12226_p7 = scmp.lt.s32.totalorder %s383_s29, %s383_s29 }
  0x85   : > { %p12219_p0 = scmp.ne.s32.totalorder %s383_s29, %s12218_s2  ;;  %p12227_p9 = scmp.lt.s32.totalorder %s12218_s2, %s12218_s2 }
  0x87   : > { %p12221_p2 = pnand %p12219_p0, %p12541_p8  ;;  %p12228_p4 = por %p12227_p9, %p12226_p7 }
  0x89   : > { %p12222_p5 = pneg %p12221_p2 }
  0x8b   : > { %p12229_p10 = pnand %p12228_p4, %p12222_p5 }
  0x8d   : > { %12232 = shalt.err (!%p12229_p10)
}
  0x8e   : > { %s12412_s19 = smov 256   ;;  %s12413_s18 = smov 16  }
  0x8f   : > { %11329 = dma.hbm_to_vmem [thread:$0]  (!%p12525_p6), %s13293_s7, 16384, %s383_s29, [#allocation9], %s12412_s19, %s12412_s19, %s12413_s18  }
  0x90   : > { %s12414_s20 = smov [#allocation13]   ;;  %s12415_s16 = smov [#allocation14]  }
  0x91   : > { %s411_s14 = sshll.u32 %s12414_s20, 4  ;;  %s424_s26 = sshll.u32 %s12415_s16, 4  ;;  %s412_s14 = int_to_ptr.vmem [resolvable:$true] %s411_s14  ;;  %s425_s26 = int_to_ptr.vmem [resolvable:$true] %s424_s26 }
  0x92   : > { %s12233_s15 = scalar_lea.hbm %s13296_s10, 32768 }
  0x93   : > { %p12234_p1 = scmp.ne.s32.totalorder %s13296_s10, %s12233_s15  ;;  %p12240_p12 = scmp.lt.u32.totalorder %s12233_s15, %s13296_s10 }
  0x95   : > { %p12236_p3 = pnand %p12234_p1, %p12541_p8 }
  0x97   : > { %p12237_p11 = pneg %p12236_p3 }
  0x99   : > { %p12242_p13 = pnand %p12240_p12, %p12237_p11 }
  0x9b   : > { %12245 = shalt.err (!%p12242_p13)
}
  0x9c   : > { %s12246_s29 = scalar_lea.vmem %s412_s14, 32768  ;;  %p12254_p7 = scmp.lt.s32.totalorder %s412_s14, %s412_s14 }
  0x9d   : > { %p12247_p0 = scmp.ne.s32.totalorder %s412_s14, %s12246_s29  ;;  %p12255_p9 = scmp.lt.s32.totalorder %s12246_s29, %s12246_s29 }
  0x9f   : > { %p12249_p2 = pnand %p12247_p0, %p12541_p8  ;;  %p12256_p4 = por %p12255_p9, %p12254_p7 }
  0xa1   : > { %p12250_p5 = pneg %p12249_p2 }
  0xa3   : > { %p12257_p10 = pnand %p12256_p4, %p12250_p5 }
  0xa5   : > { %12260 = shalt.err (!%p12257_p10)
}
  0xa6   : > { %s13320_s8 = smov 32   ;;  %s13321_s17 = smov 512  }
  0xa7   : > { %11335 = dma.hbm_to_vmem [thread:$0]  (!%p12525_p6), %s13296_s10, 32768, %s412_s14, [#allocation12], %s13321_s17, %s13321_s17, %s13320_s8  }
  0xa8   : > { %s12261_s16 = scalar_lea.hbm %s13297_s11, 32768 }
  0xa9   : > { %p12262_p1 = scmp.ne.s32.totalorder %s13297_s11, %s12261_s16  ;;  %p12268_p12 = scmp.lt.u32.totalorder %s12261_s16, %s13297_s11 }
  0xab   : > { %p12264_p3 = pnand %p12262_p1, %p12541_p8 }
  0xad   : > { %p12265_p11 = pneg %p12264_p3 }
  0xaf   : > { %p12270_p13 = pnand %p12268_p12, %p12265_p11 }
  0xb1   : > { %12273 = shalt.err (!%p12270_p13)
}
  0xb2   : > { %s12274_s29 = scalar_lea.vmem %s425_s26, 32768  ;;  %p12282_p7 = scmp.lt.s32.totalorder %s425_s26, %s425_s26 }
  0xb3   : > { %p12275_p0 = scmp.ne.s32.totalorder %s425_s26, %s12274_s29  ;;  %p12283_p9 = scmp.lt.s32.totalorder %s12274_s29, %s12274_s29 }
  0xb5   : > { %p12277_p2 = pnand %p12275_p0, %p12541_p8  ;;  %p12284_p4 = por %p12283_p9, %p12282_p7 }
  0xb7   : > { %p12278_p5 = pneg %p12277_p2 }
  0xb9   : > { %p12285_p10 = pnand %p12284_p4, %p12278_p5 }
  0xbb   : > { %12288 = shalt.err (!%p12285_p10)
}
  0xbc   : > { %11338 = dma.hbm_to_vmem [thread:$0]  (!%p12525_p6), %s13297_s11, 32768, %s425_s26, [#allocation15], %s12412_s19, %s12412_s19, %s12413_s18  }
  0xbd   : > { %s9943_s13 = sadd.s32 4294967294, %s12401_s24   ;;  %s12699_s25 = sadd.s32 1, %s12401_s24  }
  0xbe   : > { %s39_s17 = sadd.s32 1, %s12397_s23  ;;  %s36_s3 = ssub.s32 %s12401_s24, %s12699_s25 }
  0xbf   : > { %p46_p8 = scmp.ne.s32.totalorder %s12397_s23, %s12393_s22  ;;  %p37_p1 = scmp.eq.s32.totalorder %s36_s3, 0 }
  0xc0   : > { %p47_p3 = scmp.eq.s32.totalorder %s12401_s24, 0  ;;  %p52_p11 = scmp.ne.s32.totalorder %s12393_s22, %s12389_s21 }
  0xc1   : > { %p312_p12 = scmp.eq.s32.totalorder %s12509_s27, 1  ;;  %p13322_p0 = scmp.eq.s32.totalorder %s12509_s27, 0 }
  0xc2   : > { %s12711_s1 = scalar_select %p37_p1, %s12397_s23, %s39_s17  }
  0xc3   : > { %p48_p13 = por %p47_p3, %p46_p8  ;;  %p12715_p2 = por %p13322_p0, %p52_p11 }
  0xc4   : > { %p12719_p6 = por %p312_p12, %p46_p8  ;;  %p318_p5 = scmp.eq.s32.totalorder %s9943_s13, 1 }
  0xc5   : > { %p11354_p7 = scmp.lt.s32.totalorder %s12401_s24, 2  ;;  %s438_s20 = sand.u32 1, %s12397_s23  }
  0xc6   : > { %s13324_s26 = scalar_select %p12719_p6, 1, 0 }
  0xc7   : > { %p12725_p9 = por %p318_p5, %p52_p11  ;;  %s9953_s6 = sshll.u32 %s438_s20, 5 }
  0xc8   : > { %s11147_s30 = sshll.u32 %s12401_s24, 9  ;;  %s442_s14 = scalar_lea.vmem [#allocation2], %s9953_s6 }
  0xc9   : > { %s13325_s16 = scalar_select %p12725_p9, 1, 0 }
  0xca   : > { %s12733_s29 = scalar_lea.hbm %s13286_s0, %s11147_s30  ;;  %s449_s8 = sshll.u32 %s442_s14, 4  ;;  %s12739_s8 = int_to_ptr.vmem [resolvable:$true] %s449_s8 }
  0xcb   : > { %p12735_p4 = pnand %p11354_p7, %p48_p13  ;;  %s12741_s17 = scalar_lea.sflag [#allocation3], %s438_s20 }
  0xcc   : > { %s12289_s3 = scalar_lea.hbm %s12733_s29, 512  ;;  %s12294_s15 = scalar_lea.hbm %s13286_s0, 1024 }
  0xcd   : > { %p12290_p10 = scmp.ne.s32.totalorder %s12733_s29, %s12289_s3  ;;  %p12291_p8 = pneg %p12735_p4 }
  0xce   : > { %p12295_p11 = scmp.lt.u32.totalorder %s12733_s29, %s13286_s0  ;;  %p12296_p12 = scmp.lt.u32.totalorder %s12294_s15, %s12289_s3 }
  0xcf   : > { %p12292_p1 = pnand %p12291_p8, %p12290_p10  ;;  %p12298_p0 = scmp.lt.u32.totalorder %s12289_s3, %s12733_s29 }
  0xd0   : > { %p12297_p13 = por %p12296_p12, %p12295_p11 }
  0xd1   : > { %p12293_p3 = pneg %p12292_p1 }
  0xd2   : > { %p12299_p5 = por %p12298_p0, %p12297_p13 }
  0xd4   : > { %p12300_p7 = pnand %p12299_p5, %p12293_p3 }
  0xd6   : > { %12303 = shalt.err (!%p12300_p7)
}
  0xd7   : > { %s12304_s20 = scalar_lea.vmem %s12739_s8, 512  ;;  %s12416_s6 = smov [#allocation2]  }
  0xd8   : > { %p12305_p10 = scmp.ne.s32.totalorder %s12739_s8, %s12304_s20  ;;  %s12309_s30 = sshll.u32 %s12416_s6, 4  ;;  %s12310_s30 = int_to_ptr.vmem [resolvable:$false] %s12309_s30 }
  0xd9   : > { %s12311_s2 = scalar_lea.vmem %s12310_s30, 1024  ;;  %p12312_p6 = scmp.lt.s32.totalorder %s12739_s8, %s12310_s30 }
  0xda   : > { %p12307_p1 = pnand %p12305_p10, %p12291_p8  ;;  %p12313_p11 = scmp.lt.s32.totalorder %s12311_s2, %s12304_s20 }
  0xdc   : > { %p12308_p9 = pneg %p12307_p1  ;;  %p12314_p12 = por %p12313_p11, %p12312_p6 }
  0xde   : > { %p12315_p13 = pnand %p12314_p12, %p12308_p9 }
  0xe0   : > { %12318 = shalt.err (!%p12315_p13)
}
  0xe1   : > { %11342 = dma.hbm_to_vmem [thread:$0]  (!%p12735_p4), %s12733_s29, 512, %s12739_s8, %s12741_s17, %s12412_s19, %s12412_s19, %s12413_s18  }
  0xe2   : > { %p13327_p8 = scmp.ne.s32.totalorder %s13313_s28, 0 }
  0xe3   : > { %s12775_s3 = sand.u32 (!%p13327_p8), 1, %s12393_s22  }
  0xe4   : > { %467 = sbr.rel (%p13327_p8) target bundleno = 3143 (0xc47), region = 68  ;;  %s9957_s15 = sshll.u32 (!%p13327_p8), %s12775_s3, 5 }
  0xe5   : > { %s470_s14 = scalar_lea.sflag (!%p13327_p8), [#allocation3], %s12775_s3  ;;  %s473_s13 = scalar_lea.vmem (!%p13327_p8), [#allocation2], %s9957_s15 }
  0xeb   : > { %12364 = dma.done.wait (%p12715_p2), %s470_s14, 512  }
  0xec   : > { %12366 = vsyncadd (%p12715_p2), %s470_s14, 4294966784  ;;  %p13328_p6 = scmp.eq.s32.totalorder %s12509_s27, 0 }
  0xee   : > { %12368 = dma.done.wait (%p13328_p6), [#allocation6], 512   ;;  %p13329_p9 = pmov %p13328_p6 }
  0xef   : > { %p13330_p4 = pmov %p13328_p6 }
  0xf0   : > { %12370 = vsyncadd (%p13329_p9), [#allocation6], 4294966784 }
  0xf1   : > { %12372 = dma.done.wait (%p13330_p4), [#allocation9], 49152   ;;  %p13331_p3 = pmov %p13330_p4 }
  0xf3   : > { %12374 = vsyncadd (%p13331_p3), [#allocation9], 4294918144  ;;  %p13332_p0 = pmov %p13331_p3 }
  0xf5   : > { %12376 = dma.done.wait (%p13332_p0), [#allocation12], 65536   ;;  %p13333_p5 = pmov %p13332_p0 }
  0xf6   : > { %p13334_p2 = pmov %p13332_p0 }
  0xf7   : > { %12378 = vsyncadd (%p13333_p5), [#allocation12], 4294901760 }
  0xf8   : > { %12380 = dma.done.wait (%p13334_p2), [#allocation15], 32768   ;;  %p13335_p7 = pmov %p13332_p0 }
  0xf9   : > { %v549_v0 = vld [vmem:[%s473_s13] sm:$0xff]  ;;  %v550_v1 = vld [vmem:[%s473_s13 + $0x8] sm:$0xff]  ;;  %v551_v2 = vld [vmem:[%s473_s13 + $0x10] sm:$0xff]  ;;  %s13336_s29 = sld [smem:[#allocation26_spill]]  ;;  %s12417_s8 = smov 64   ;;  %vm2660_vm6 = vcmask 130048  }
  0xfa   : > { %12382 = vsyncadd (%p13335_p7), [#allocation15], 4294934528  ;;  %v12801_v3 = vunpack.c.l.bf16 %v549_v0  ;;  %v12803_v4 = vunpack.c.h.bf16 %v549_v0  ;;  %v12805_v5 = vunpack.c.l.bf16 %v550_v1  ;;  %v12807_v6 = vunpack.c.h.bf16 %v550_v1  ;;  %v552_v7 = vld [vmem:[%s473_s13 + $0x18] sm:$0xff]  ;;  %v628_v8 = vld [vmem:[#allocation8] sm:$0xff]  ;;  %p545_p10 = scmp.lt.s32.totalorder %s12509_s27, 1  ;;  %s13337_s30 = sld [smem:[#allocation23_spill]] }
  0xfb   : > { %v632_v9 = vld [vmem:[#allocation8 + $0x20] sm:$0xff]  ;;  %v12809_v10 = vunpack.c.l.bf16 %v551_v2  ;;  %v12811_v11 = vunpack.c.h.bf16 %v551_v2  ;;  %v12813_v12 = vunpack.c.l.bf16 %v552_v7  ;;  %v629_v13 = vld [vmem:[#allocation8 + $0x8] sm:$0xff]  ;;  %v12821_v19 = vunpack.c.h.bf16 %v552_v7  ;;  %s13338_s28 = sld [smem:[#allocation27_spill]]  ;;  %s544_s19 = scalar_lea.vmem [#allocation16], %s9957_s15 }
  0xfc   : > { %v633_v14 = vld [vmem:[#allocation8 + $0x28] sm:$0xff]  ;;  %v636_v15 = vld [vmem:[#allocation8 + $0x40] sm:$0xff]  ;;  %v561_v16 = vmul.f32 %v12801_v3, %v12801_v3  ;;  %v562_v17 = vmul.f32 %v12803_v4, %v12803_v4  ;;  %v563_v18 = vmul.f32 %v12805_v5, %v12805_v5  ;;  %v564_v23 = vmul.f32 %v12807_v6, %v12807_v6  ;;  %s546_s17 = scalar_select %p545_p10, %s12509_s27, 1 }
  0xfd   : > { %v640_v20 = vld [vmem:[#allocation8 + $0x60] sm:$0xff]  ;;  %v637_v21 = vld [vmem:[#allocation8 + $0x48] sm:$0xff]  ;;  %v565_v24 = vmul.f32 %v12809_v10, %v12809_v10  ;;  %v566_v25 = vmul.f32 %v12811_v11, %v12811_v11  ;;  %v567_v26 = vmul.f32 %v12813_v12, %v12813_v12  ;;  %v9967_v28 = vcombine.high %v628_v8, %v632_v9  ;;  %s9794_s18 = sshll.u32 %s544_s19, 4  ;;  %s11152_s12 = sshll.u32 %s12509_s27, 9  ;;  %s13235_s18 = int_to_ptr.vmem [resolvable:$true] %s9794_s18 }
  0xfe   : > { %v641_v22 = vld [vmem:[#allocation8 + $0x68] sm:$0xff]  ;;  %v569_v27 = vadd.f32 %v562_v17, %v561_v16  ;;  %v9969_v29 = vcombine.high %v629_v13, %v633_v14  ;;  %v9966_v30 = vcombine.low %v628_v8, %v632_v9  ;;  %v644_v31 = vld [vmem:[#allocation8 + $0x80] sm:$0xff]  ;;  %v9968_v33 = vcombine.low %v629_v13, %v633_v14  ;;  %s12319_s20 = scalar_lea.vmem %s13235_s18, 512  ;;  %p13340_p11 = scmp.ne.s32.totalorder %s13324_s26, 0 }
  0xff   : > { %v574_v32 = vadd.f32 %v566_v25, %v565_v24  ;;  %v9975_v34 = vcombine.high %v636_v15, %v640_v20  ;;  %v9977_v35 = vcombine.high %v637_v21, %v641_v22  ;;  %v648_v36 = vld [vmem:[#allocation8 + $0xa0] sm:$0xff]  ;;  %v645_v37 = vld [vmem:[#allocation8 + $0x88] sm:$0xff]  ;;  %v568_v40 = vmul.f32 %v12821_v19, %v12821_v19  ;;  %2206 = vmatprep.subr.bf16.mxu0 %v9967_v28  ;;  %p12320_p1 = scmp.ne.s32.totalorder %s13235_s18, %s12319_s20  ;;  %s12420_s6 = smov [#allocation16]  }
 0x100   : > { %v649_v38 = vld [vmem:[#allocation8 + $0xa8] sm:$0xff]  ;;  %v570_v39 = vadd.f32 %v569_v27, %v563_v18  ;;  %2292 = vmatprep.subr.bf16.mxu1 %v9969_v29  ;;  %2207 = vmatpush1.bf16.msra.mxu0 %v9966_v30  ;;  %v9974_v42 = vcombine.low %v636_v15, %v640_v20  ;;  %v9976_v43 = vcombine.low %v637_v21, %v641_v22  ;;  %v652_v47 = vld [vmem:[#allocation8 + $0xc0] sm:$0xff]  ;;  %s547_s2 = scalar_lea.vmem %s13337_s30, %s546_s17  ;;  %s9781_s17 = scalar_lea.sflag [#allocation4], %s12775_s3 }
 0x101   : > { %v575_v41 = vadd.f32 %v574_v32, %v567_v26  ;;  %2293 = vmatpush1.bf16.msra.mxu1 %v9968_v33  ;;  %2208 = vmatprep.subr.bf16.mxu0 %v9975_v34  ;;  %v9983_v45 = vcombine.high %v644_v31, %v648_v36  ;;  %v9985_v46 = vcombine.high %v645_v37, %v649_v38  ;;  %v656_v48 = vld [vmem:[#allocation8 + $0xe0] sm:$0xff]  ;;  %v653_v49 = vld [vmem:[#allocation8 + $0xc8] sm:$0xff]  ;;  %p12321_p12 = pnand %p12320_p1, %p13340_p11  ;;  %s12323_s30 = sshll.u32 %s12420_s6, 4  ;;  %s12324_s30 = int_to_ptr.vmem [resolvable:$false] %s12323_s30 }
 0x102   : > { %v571_v44 = vadd.f32 %v570_v39, %v564_v23  ;;  %2294 = vmatprep.subr.bf16.mxu1 %v9977_v35  ;;  %v657_v50 = vld [vmem:[#allocation8 + $0xe8] sm:$0xff]  ;;  %v9982_v52 = vcombine.low %v644_v31, %v648_v36  ;;  %v9984_v53 = vcombine.low %v645_v37, %v649_v38  ;;  %v9991_v54 = vcombine.high %v652_v47, %v656_v48  ;;  %v660_v56 = vld [vmem:[#allocation8 + $0x100] sm:$0xff]  ;;  %p12326_p8 = scmp.lt.s32.totalorder %s13235_s18, %s12324_s30 }
 0x103   : > { %v576_v51 = vadd.f32 %v575_v41, %v568_v40  ;;  %v9993_v55 = vcombine.high %v653_v49, %v657_v50  ;;  %v664_v57 = vld [vmem:[#allocation8 + $0x120] sm:$0xff]  ;;  %v661_v58 = vld [vmem:[#allocation8 + $0x108] sm:$0xff]  ;;  %v9990_v60 = vcombine.low %v652_v47, %v656_v48  ;;  %v9992_v61 = vcombine.low %v653_v49, %v657_v50  ;;  %p12322_p13 = pneg %p12321_p12 }
 0x104   : > { %572 = vadd.xlane.f32.xlu0 %v571_v44  ;;  %2209 = vmatpush1.bf16.msra.mxu0 %v9974_v42  ;;  %v665_v59 = vld [vmem:[#allocation8 + $0x128] sm:$0xff]  ;;  %v668_v62 = vld [vmem:[#allocation8 + $0x140] sm:$0xff]  ;;  %v9999_v2 = vcombine.high %v660_v56, %v664_v57  ;;  %v9998_v8 = vcombine.low %v660_v56, %v664_v57 }
 0x105   : > { %2295 = vmatpush1.bf16.msra.mxu1 %v9976_v43  ;;  %2210 = vmatprep.subr.bf16.mxu0 %v9983_v45  ;;  %v672_v63 = vld [vmem:[#allocation8 + $0x160] sm:$0xff]  ;;  %v669_v0 = vld [vmem:[#allocation8 + $0x148] sm:$0xff]  ;;  %v10001_v7 = vcombine.high %v661_v58, %v665_v59  ;;  %v10000_v9 = vcombine.low %v661_v58, %v665_v59 }
 0x106   : > { %2296 = vmatprep.subr.bf16.mxu1 %v9985_v46  ;;  %v673_v1 = vld [vmem:[#allocation8 + $0x168] sm:$0xff]  ;;  %v676_v13 = vld [vmem:[#allocation8 + $0x180] sm:$0xff]  ;;  %v10007_v17 = vcombine.high %v668_v62, %v672_v63  ;;  %v10006_v20 = vcombine.low %v668_v62, %v672_v63 }
 0x107   : > { %v680_v14 = vld [vmem:[#allocation8 + $0x1a0] sm:$0xff]  ;;  %v677_v15 = vld [vmem:[#allocation8 + $0x188] sm:$0xff]  ;;  %v10009_v18 = vcombine.high %v669_v0, %v673_v1  ;;  %v10008_v21 = vcombine.low %v669_v0, %v673_v1 }
 0x108   : > { %577 = vadd.xlane.f32.xlu0 %v576_v51  ;;  %2211 = vmatpush1.bf16.msra.mxu0 %v9982_v52  ;;  %v681_v16 = vld [vmem:[#allocation8 + $0x1a8] sm:$0xff]  ;;  %v684_v22 = vld [vmem:[#allocation8 + $0x1c0] sm:$0xff]  ;;  %v10015_v26 = vcombine.high %v676_v13, %v680_v14  ;;  %v10014_v28 = vcombine.low %v676_v13, %v680_v14 }
 0x109   : > { %2297 = vmatpush1.bf16.msra.mxu1 %v9984_v53  ;;  %2212 = vmatprep.subr.bf16.mxu0 %v9991_v54  ;;  %v688_v23 = vld [vmem:[#allocation8 + $0x1e0] sm:$0xff]  ;;  %v685_v24 = vld [vmem:[#allocation8 + $0x1c8] sm:$0xff]  ;;  %v10017_v27 = vcombine.high %v677_v15, %v681_v16  ;;  %v10016_v29 = vcombine.low %v677_v15, %v681_v16 }
 0x10a   : > { %2298 = vmatprep.subr.bf16.mxu1 %v9993_v55  ;;  %v689_v25 = vld [vmem:[#allocation8 + $0x1e8] sm:$0xff]  ;;  %v692_v30 = vld [vmem:[#allocation8 + $0x200] sm:$0xff]  ;;  %v10023_v34 = vcombine.high %v684_v22, %v688_v23  ;;  %v10022_v36 = vcombine.low %v684_v22, %v688_v23 }
 0x10b   : > { %v696_v31 = vld [vmem:[#allocation8 + $0x220] sm:$0xff]  ;;  %v693_v32 = vld [vmem:[#allocation8 + $0x208] sm:$0xff]  ;;  %v10025_v35 = vcombine.high %v685_v24, %v689_v25  ;;  %v10024_v37 = vcombine.low %v685_v24, %v689_v25 }
 0x10c   : > { %2213 = vmatpush1.bf16.msra.mxu0 %v9990_v60  ;;  %v697_v33 = vld [vmem:[#allocation8 + $0x228] sm:$0xff]  ;;  %v10031_v38 = vcombine.high %v692_v30, %v696_v31  ;;  %v700_v40 = vld [vmem:[#allocation8 + $0x240] sm:$0xff]  ;;  %v10030_v44 = vcombine.low %v692_v30, %v696_v31 }
 0x10d   : > { %2299 = vmatpush1.bf16.msra.mxu1 %v9992_v61  ;;  %2214 = vmatprep.subr.bf16.mxu0 %v9999_v2  ;;  %v10033_v39 = vcombine.high %v693_v32, %v697_v33  ;;  %v704_v41 = vld [vmem:[#allocation8 + $0x260] sm:$0xff]  ;;  %v701_v42 = vld [vmem:[#allocation8 + $0x248] sm:$0xff]  ;;  %v10032_v45 = vcombine.low %v693_v32, %v697_v33 }
 0x10e   : > { %2300 = vmatprep.subr.bf16.mxu1 %v10001_v7  ;;  %v705_v43 = vld [vmem:[#allocation8 + $0x268] sm:$0xff]  ;;  %v708_v46 = vld [vmem:[#allocation8 + $0x280] sm:$0xff]  ;;  %v10039_v50 = vcombine.high %v700_v40, %v704_v41  ;;  %v10038_v52 = vcombine.low %v700_v40, %v704_v41 }
 0x10f   : > { %v712_v47 = vld [vmem:[#allocation8 + $0x2a0] sm:$0xff]  ;;  %v709_v48 = vld [vmem:[#allocation8 + $0x288] sm:$0xff]  ;;  %v10041_v51 = vcombine.high %v701_v42, %v705_v43  ;;  %v10040_v53 = vcombine.low %v701_v42, %v705_v43 }
 0x110   : > { %2215 = vmatpush1.bf16.msra.mxu0 %v9998_v8  ;;  %v713_v49 = vld [vmem:[#allocation8 + $0x2a8] sm:$0xff]  ;;  %v716_v54 = vld [vmem:[#allocation8 + $0x2c0] sm:$0xff]  ;;  %v10047_v58 = vcombine.high %v708_v46, %v712_v47  ;;  %v10046_v62 = vcombine.low %v708_v46, %v712_v47 }
 0x111   : > { %2301 = vmatpush1.bf16.msra.mxu1 %v10000_v9  ;;  %2216 = vmatprep.subr.bf16.mxu0 %v10007_v17  ;;  %v720_v55 = vld [vmem:[#allocation8 + $0x2e0] sm:$0xff]  ;;  %v717_v56 = vld [vmem:[#allocation8 + $0x2c8] sm:$0xff]  ;;  %v10049_v59 = vcombine.high %v709_v48, %v713_v49  ;;  %v10048_v63 = vcombine.low %v709_v48, %v713_v49 }
 0x112   : > { %2302 = vmatprep.subr.bf16.mxu1 %v10009_v18  ;;  %v721_v57 = vld [vmem:[#allocation8 + $0x2e8] sm:$0xff]  ;;  %v724_v60 = vld [vmem:[#allocation8 + $0x300] sm:$0xff]  ;;  %v10055_v2 = vcombine.high %v716_v54, %v720_v55  ;;  %v10054_v14 = vcombine.low %v716_v54, %v720_v55 }
 0x113   : > { %v728_v61 = vld [vmem:[#allocation8 + $0x320] sm:$0xff]  ;;  %v725_v0 = vld [vmem:[#allocation8 + $0x308] sm:$0xff]  ;;  %v10057_v7 = vcombine.high %v717_v56, %v721_v57  ;;  %v10056_v15 = vcombine.low %v717_v56, %v721_v57 }
 0x114   : > { %2217 = vmatpush1.bf16.msra.mxu0 %v10006_v20  ;;  %v729_v1 = vld [vmem:[#allocation8 + $0x328] sm:$0xff]  ;;  %v12833_v8 = vld [vmem:[#allocation8 + $0x400] sm:$0xff]  ;;  %v10063_v16 = vcombine.high %v724_v60, %v728_v61 }
 0x115   : > { %2303 = vmatpush1.bf16.msra.mxu1 %v10008_v21  ;;  %2218 = vmatprep.subr.bf16.mxu0 %v10015_v26  ;;  %v12835_v9 = vld [vmem:[#allocation8 + $0x420] sm:$0xff]  ;;  %v12837_v13 = vld [vmem:[#allocation8 + $0x408] sm:$0xff]  ;;  %v10065_v22 = vcombine.high %v725_v0, %v729_v1  ;;  %v10062_v26 = vcombine.low %v724_v60, %v728_v61 }
 0x116   : > { %2304 = vmatprep.subr.bf16.mxu1 %v10017_v27  ;;  %v732_v17 = vld [vmem:[#allocation8 + $0x340] sm:$0xff]  ;;  %v733_v20 = vld [vmem:[#allocation8 + $0x348] sm:$0xff]  ;;  %v10094_v23 = vcombine.low %v12833_v8, %v12835_v9  ;;  %v10064_v27 = vcombine.low %v725_v0, %v729_v1  ;;  %v10095_v48 = vcombine.high %v12833_v8, %v12835_v9 }
 0x117   : > { %v736_v18 = vld [vmem:[#allocation8 + $0x360] sm:$0xff]  ;;  %v12839_v21 = vld [vmem:[#allocation8 + $0x428] sm:$0xff] }
 0x118   : > { %2219 = vmatpush1.bf16.msra.mxu0 %v10014_v28  ;;  %v10096_v24 = vcombine.low %v12837_v13, %v12839_v21  ;;  %v737_v25 = vld [vmem:[#allocation8 + $0x368] sm:$0xff]  ;;  %v740_v28 = vld [vmem:[#allocation8 + $0x380] sm:$0xff]  ;;  %v10071_v31 = vcombine.high %v732_v17, %v736_v18  ;;  %v10097_v49 = vcombine.high %v12837_v13, %v12839_v21 }
 0x119   : > { %2305 = vmatpush1.bf16.msra.mxu1 %v10016_v29  ;;  %2220 = vmatprep.subr.bf16.mxu0 %v10023_v34  ;;  %v744_v29 = vld [vmem:[#allocation8 + $0x3a0] sm:$0xff]  ;;  %v741_v30 = vld [vmem:[#allocation8 + $0x388] sm:$0xff]  ;;  %v10073_v32 = vcombine.high %v733_v20, %v737_v25  ;;  %v10070_v34 = vcombine.low %v732_v17, %v736_v18 }
 0x11a   : > { %2306 = vmatprep.subr.bf16.mxu1 %v10025_v35  ;;  %v745_v33 = vld [vmem:[#allocation8 + $0x3a8] sm:$0xff]  ;;  %v10072_v35 = vcombine.low %v733_v20, %v737_v25  ;;  %v10078_v42 = vcombine.low %v740_v28, %v744_v29 }
 0x11b   : > { %v10081_v40 = vcombine.high %v741_v30, %v745_v33  ;;  %v753_v41 = vld [vmem:[#allocation8 + $0x3e8] sm:$0xff]  ;;  %v10080_v43 = vcombine.low %v741_v30, %v745_v33  ;;  %v768_v30 = vld [vmem:[#allocation8 + $0x460] sm:$0xff] }
 0x11c   : > { %2221 = vmatpush1.bf16.msra.mxu0 %v10022_v36  ;;  %v748_v36 = vld [vmem:[#allocation8 + $0x3c0] sm:$0xff] }
 0x11d   : > { %2307 = vmatpush1.bf16.msra.mxu1 %v10024_v37  ;;  %2222 = vmatprep.subr.bf16.mxu0 %v10031_v38  ;;  %v752_v37 = vld [vmem:[#allocation8 + $0x3e0] sm:$0xff]  ;;  %v749_v38 = vld [vmem:[#allocation8 + $0x3c8] sm:$0xff] }
 0x11e   : > { %2308 = vmatprep.subr.bf16.mxu1 %v10033_v39  ;;  %v10079_v39 = vcombine.high %v740_v28, %v744_v29  ;;  %v10086_v46 = vcombine.low %v748_v36, %v752_v37  ;;  %v10088_v47 = vcombine.low %v749_v38, %v753_v41  ;;  %v764_v29 = vld [vmem:[#allocation8 + $0x440] sm:$0xff] }
 0x120   : > { %2223 = vmatpush1.bf16.msra.mxu0 %v10030_v44  ;;  %v10087_v44 = vcombine.high %v748_v36, %v752_v37 }
 0x121   : > { %2309 = vmatpush1.bf16.msra.mxu1 %v10032_v45  ;;  %2224 = vmatprep.subr.bf16.mxu0 %v10039_v50  ;;  %v10089_v45 = vcombine.high %v749_v38, %v753_v41 }
 0x122   : > { %2310 = vmatprep.subr.bf16.mxu1 %v10041_v51 }
 0x124   : > { %2225 = vmatpush1.bf16.msra.mxu0 %v10038_v52  ;;  %v596_v52 = vlaneseq }
 0x125   : > { %2311 = vmatpush1.bf16.msra.mxu1 %v10040_v53  ;;  %2226 = vmatprep.subr.bf16.mxu0 %v10047_v58  ;;  %v594_v58 = vld [vmem:[%s13290_s4] sm:$0xf] }
 0x126   : > { %2312 = vmatprep.subr.bf16.mxu1 %v10049_v59  ;;  %v12850_v56 = vshrl.u32 %v596_v52, 7 }
 0x128   : > { %2227 = vmatpush1.bf16.msra.mxu0 %v10046_v62  ;;  %v12856_v59 = vsub.s32 2, %v12850_v56  ;;  %v12859_v60 = vsub.s32 1, %v12850_v56  ;;  %v12862_v61 = vsub.s32 0, %v12850_v56 }
 0x129   : > { %2313 = vmatpush1.bf16.msra.mxu1 %v10048_v63  ;;  %2228 = vmatprep.subr.bf16.mxu0 %v10055_v2 }
 0x12a   : > { %2314 = vmatprep.subr.bf16.mxu1 %v10057_v7  ;;  %v607_v62 = vrot.slane %v594_v58, %v12856_v59  ;;  %v603_v2 = vrot.slane %v594_v58, %v12859_v60  ;;  %v12869_v7 = vsub.s32 3, %v12850_v56 }
 0x12c   : > { %2229 = vmatpush1.bf16.msra.mxu0 %v10054_v14  ;;  %v611_v28 = vrot.slane %v594_v58, %v12869_v7 }
 0x12d   : > { %2315 = vmatpush1.bf16.msra.mxu1 %v10056_v15  ;;  %2230 = vmatprep.subr.bf16.mxu0 %v10063_v16  ;;  %v599_v15 = vrot.slane %v594_v58, %v12862_v61  ;;  %v785_v58 = vld [vmem:[#allocation8 + $0x4e8] sm:$0xff] }
 0x12e   : > { %2316 = vmatprep.subr.bf16.mxu1 %v10065_v22 }
 0x130   : > { %2231 = vmatpush1.bf16.msra.mxu0 %v10062_v26 }
 0x131   : > { %2317 = vmatpush1.bf16.msra.mxu1 %v10064_v27  ;;  %2232 = vmatprep.subr.bf16.mxu0 %v10071_v31  ;;  %v765_v31 = vld [vmem:[#allocation8 + $0x448] sm:$0xff] }
 0x132   : > { %2318 = vmatprep.subr.bf16.mxu1 %v10073_v32 }
 0x134   : > { %2233 = vmatpush1.bf16.msra.mxu0 %v10070_v34 }
 0x135   : > { %2319 = vmatpush1.bf16.msra.mxu1 %v10072_v35  ;;  %2234 = vmatprep.subr.bf16.mxu0 %v10079_v39  ;;  %v769_v35 = vld [vmem:[#allocation8 + $0x468] sm:$0xff] }
 0x136   : > { %2320 = vmatprep.subr.bf16.mxu1 %v10081_v40 }
 0x138   : > { %2235 = vmatpush1.bf16.msra.mxu0 %v10078_v42  ;;  %v772_v42 = vld [vmem:[#allocation8 + $0x480] sm:$0xff] }
 0x139   : > { %2321 = vmatpush1.bf16.msra.mxu1 %v10080_v43  ;;  %2236 = vmatprep.subr.bf16.mxu0 %v10087_v44  ;;  %v776_v43 = vld [vmem:[#allocation8 + $0x4a0] sm:$0xff]  ;;  %v773_v44 = vld [vmem:[#allocation8 + $0x488] sm:$0xff] }
 0x13a   : > { %2322 = vmatprep.subr.bf16.mxu1 %v10089_v45  ;;  %v10103_v45 = vcombine.high %v764_v29, %v768_v30  ;;  %v10110_v8 = vcombine.low %v772_v42, %v776_v43 }
 0x13c   : > { %2237 = vmatpush1.bf16.msra.mxu0 %v10086_v46  ;;  %v10105_v46 = vcombine.high %v765_v31, %v769_v35 }
 0x13d   : > { %2323 = vmatpush1.bf16.msra.mxu1 %v10088_v47  ;;  %2249 = vmatprep.subr.bf16.mxu0 %v10095_v48  ;;  %v777_v47 = vld [vmem:[#allocation8 + $0x4a8] sm:$0xff] }
 0x13e   : > { %2335 = vmatprep.subr.bf16.mxu1 %v10097_v49  ;;  %v10102_v49 = vcombine.low %v764_v29, %v768_v30  ;;  %v10112_v9 = vcombine.low %v773_v44, %v777_v47  ;;  %v805_v29 = vld [vmem:[#allocation8 + $0x588] sm:$0xff] }
 0x13f   : > { %v809_v30 = vld [vmem:[#allocation8 + $0x5a8] sm:$0xff] }
 0x191   : > { %v573_v50 = vpop.xlane.xlu0 %572 }
 0x192   : > { %v580_v51 = vmul.f32 0.001953125, %v573_v50  ;;  %v10104_v50 = vcombine.low %v765_v31, %v769_v35  ;;  %v812_v35 = vld [vmem:[#allocation8 + $0x5c0] sm:$0xff] }
 0x194   : > { %v582_v53 = vadd.f32 1e-06, %v580_v51  ;;  %v780_v51 = vld [vmem:[#allocation8 + $0x4c0] sm:$0xff] }
 0x195   : > { %v578_v54 = vpop.xlane.xlu0 %577 }
 0x196   : > { %11989 = vrsqrt.f32 %v582_v53  ;;  %v581_v55 = vmul.f32 0.001953125, %v578_v54  ;;  %v10111_v53 = vcombine.high %v772_v42, %v776_v43  ;;  %v10113_v54 = vcombine.high %v773_v44, %v777_v47  ;;  %v824_v47 = vld [vmem:[#allocation8 + $0x620] sm:$0xff] }
 0x197   : > { %v10144_v43 = vcombine.low %v805_v29, %v809_v30 }
 0x198   : > { %v583_v57 = vadd.f32 1e-06, %v581_v55  ;;  %v784_v55 = vld [vmem:[#allocation8 + $0x4e0] sm:$0xff] }
 0x199   : > { %v10119_v13 = vcombine.high %v780_v51, %v784_v55 }
 0x19a   : > { %11991 = vrsqrt.f32 %v583_v57  ;;  %v781_v57 = vld [vmem:[#allocation8 + $0x4c8] sm:$0xff] }
 0x19b   : > { %v10121_v21 = vcombine.high %v781_v57, %v785_v58 }
 0x1a0   : > { %v11990_v63 = vpop.eup %11989 }
 0x1a1   : > { %v588_v0 = vmul.f32 %v11990_v63, %v12805_v5  ;;  %v587_v1 = vmul.f32 %v11990_v63, %v12803_v4  ;;  %v586_v14 = vmul.f32 %v11990_v63, %v12801_v3  ;;  %v589_v27 = vmul.f32 %v11990_v63, %v12807_v6  ;;  %v793_v63 = vld [vmem:[#allocation8 + $0x528] sm:$0xff] }
 0x1a3   : > { %v618_v16 = vmul.f32 %v607_v62, %v588_v0  ;;  %v617_v26 = vmul.f32 %v603_v2, %v587_v1  ;;  %v616_v33 = vmul.f32 %v599_v15, %v586_v14  ;;  %v619_v41 = vmul.f32 %v611_v28, %v589_v27  ;;  %v804_v27 = vld [vmem:[#allocation8 + $0x580] sm:$0xff] }
 0x1a4   : > { %v11992_v17 = vpop.eup %11991  ;;  %v10118_v0 = vcombine.low %v780_v51, %v784_v55  ;;  %v10120_v1 = vcombine.low %v781_v57, %v785_v58  ;;  %v828_v57 = vld [vmem:[#allocation8 + $0x640] sm:$0xff] }
 0x1a5   : > { %v591_v18 = vmul.f32 %v11992_v17, %v12811_v11  ;;  %v590_v20 = vmul.f32 %v11992_v17, %v12809_v10  ;;  %v593_v22 = vmul.f32 %v11992_v17, %v12821_v19  ;;  %v592_v25 = vmul.f32 %v11992_v17, %v12813_v12  ;;  %v797_v17 = vld [vmem:[#allocation8 + $0x548] sm:$0xff]  ;;  %v832_v58 = vld [vmem:[#allocation8 + $0x660] sm:$0xff] }
 0x1a7   : > { %v621_v32 = vmul.f32 %v603_v2, %v591_v18  ;;  %v620_v34 = vmul.f32 %v599_v15, %v590_v20  ;;  %v622_v36 = vmul.f32 %v607_v62, %v592_v25  ;;  %v623_v37 = vmul.f32 %v611_v28, %v593_v22  ;;  %v789_v62 = vld [vmem:[#allocation8 + $0x508] sm:$0xff]  ;;  %v796_v15 = vld [vmem:[#allocation8 + $0x540] sm:$0xff] }
 0x1a8   : > { %v10129_v14 = vcombine.high %v789_v62, %v793_v63  ;;  %v801_v18 = vld [vmem:[#allocation8 + $0x568] sm:$0xff]  ;;  %v10128_v22 = vcombine.low %v789_v62, %v793_v63  ;;  %v808_v28 = vld [vmem:[#allocation8 + $0x5a0] sm:$0xff] }
 0x1a9   : > { %v12879_v38 = vpack.c.bf16 %v621_v32, %v617_v26  ;;  %v12881_v39 = vpack.c.bf16 %v620_v34, %v616_v33  ;;  %v12883_v40 = vpack.c.bf16 %v622_v36, %v618_v16  ;;  %v12889_v48 = vpack.c.bf16 %v623_v37, %v619_v41  ;;  %v800_v16 = vld [vmem:[#allocation8 + $0x560] sm:$0xff]  ;;  %v813_v37 = vld [vmem:[#allocation8 + $0x5c8] sm:$0xff] }
 0x1aa   : > { %v10135_v25 = vcombine.high %v796_v15, %v800_v16  ;;  %v10137_v26 = vcombine.high %v797_v17, %v801_v18  ;;  %v10134_v31 = vcombine.low %v796_v15, %v800_v16  ;;  %v10136_v32 = vcombine.low %v797_v17, %v801_v18  ;;  %v816_v36 = vld [vmem:[#allocation8 + $0x5e0] sm:$0xff]  ;;  %v817_v41 = vld [vmem:[#allocation8 + $0x5e8] sm:$0xff] }
 0x1ab   : > { %2238 = vmatprep.mubr.bf16.mxu0 %v12879_v38  ;;  %2324 = vmatprep.mubr.bf16.mxu1 %v12879_v38  ;;  %v10143_v33 = vcombine.high %v804_v27, %v808_v28  ;;  %v10145_v34 = vcombine.high %v805_v29, %v809_v30  ;;  %v10142_v42 = vcombine.low %v804_v27, %v808_v28  ;;  %v836_v62 = vld [vmem:[#allocation8 + $0x680] sm:$0xff] }
 0x1ac   : > { %2239 = vmatmul.mubr.bf16.vlgmr.msra.gmra.mrb[0].mxu0 %v12881_v39  ;;  %2325 = vmatmul.mubr.bf16.vlgmr.msra.gmra.mrb[0].mxu1 %v12881_v39  ;;  %v10151_v44 = vcombine.high %v812_v35, %v816_v36  ;;  %v10150_v51 = vcombine.low %v812_v35, %v816_v36  ;;  %v840_v63 = vld [vmem:[#allocation8 + $0x6a0] sm:$0xff] }
 0x1ad   : > { %2250 = vmatpush1.bf16.msra.mxu0 %v10094_v23  ;;  %2336 = vmatpush1.bf16.msra.mxu1 %v10096_v24  ;;  %v788_v23 = vld [vmem:[#allocation8 + $0x500] sm:$0xff]  ;;  %v10175_v15 = vcombine.high %v836_v62, %v840_v63 }
 0x1ae   : > { %2281 = vmatprep.mubr.bf16.mxu0 %v12889_v48  ;;  %2367 = vmatprep.mubr.bf16.mxu1 %v12889_v48  ;;  %v792_v24 = vld [vmem:[#allocation8 + $0x520] sm:$0xff] }
 0x1af   : > { %2251 = vmatprep.subr.bf16.mxu0 %v10103_v45  ;;  %2337 = vmatprep.subr.bf16.mxu1 %v10105_v46  ;;  %v10127_v2 = vcombine.high %v788_v23, %v792_v24  ;;  %v10126_v20 = vcombine.low %v788_v23, %v792_v24  ;;  %v10153_v45 = vcombine.high %v813_v37, %v817_v41  ;;  %v820_v46 = vld [vmem:[#allocation8 + $0x600] sm:$0xff] }
 0x1b0   : > { %v10167_v23 = vcombine.high %v828_v57, %v832_v58  ;;  %v844_v17 = vld [vmem:[#allocation8 + $0x6c0] sm:$0xff] }
 0x1b1   : > { %2252 = vmatpush1.bf16.msra.mxu0 %v10102_v49  ;;  %2338 = vmatpush1.bf16.msra.mxu1 %v10104_v50  ;;  %v821_v49 = vld [vmem:[#allocation8 + $0x608] sm:$0xff]  ;;  %v848_v18 = vld [vmem:[#allocation8 + $0x6e0] sm:$0xff] }
 0x1b2   : > { %2253 = vmatprep.subr.bf16.mxu0 %v10111_v53  ;;  %2339 = vmatprep.subr.bf16.mxu1 %v10113_v54  ;;  %v825_v50 = vld [vmem:[#allocation8 + $0x628] sm:$0xff]  ;;  %v10152_v53 = vcombine.low %v813_v37, %v817_v41  ;;  %v10159_v54 = vcombine.high %v820_v46, %v824_v47  ;;  %v10183_v27 = vcombine.high %v844_v17, %v848_v18  ;;  %v852_v29 = vld [vmem:[#allocation8 + $0x700] sm:$0xff] }
 0x1b3   : > { %v10161_v55 = vcombine.high %v821_v49, %v825_v50  ;;  %v856_v30 = vld [vmem:[#allocation8 + $0x720] sm:$0xff] }
 0x1b4   : > { %v10191_v35 = vcombine.high %v852_v29, %v856_v30  ;;  %v860_v37 = vld [vmem:[#allocation8 + $0x740] sm:$0xff] }
 0x1b5   : > { %2254 = vmatpush1.bf16.msra.mxu0 %v10110_v8  ;;  %2340 = vmatpush1.bf16.msra.mxu1 %v10112_v9  ;;  %v829_v8 = vld [vmem:[#allocation8 + $0x648] sm:$0xff]  ;;  %v864_v41 = vld [vmem:[#allocation8 + $0x760] sm:$0xff] }
 0x1b6   : > { %2255 = vmatprep.subr.bf16.mxu0 %v10119_v13  ;;  %2341 = vmatprep.subr.bf16.mxu1 %v10121_v21  ;;  %v833_v9 = vld [vmem:[#allocation8 + $0x668] sm:$0xff]  ;;  %v10158_v13 = vcombine.low %v820_v46, %v824_v47  ;;  %v10160_v21 = vcombine.low %v821_v49, %v825_v50  ;;  %v10199_v46 = vcombine.high %v860_v37, %v864_v41  ;;  %v868_v49 = vld [vmem:[#allocation8 + $0x780] sm:$0xff] }
 0x1b7   : > { %v10169_v24 = vcombine.high %v829_v8, %v833_v9  ;;  %v872_v50 = vld [vmem:[#allocation8 + $0x7a0] sm:$0xff] }
 0x1b9   : > { %2256 = vmatpush1.bf16.msra.mxu0 %v10118_v0  ;;  %2342 = vmatpush1.bf16.msra.mxu1 %v10120_v1  ;;  %v837_v0 = vld [vmem:[#allocation8 + $0x688] sm:$0xff] }
 0x1ba   : > { %2257 = vmatprep.subr.bf16.mxu0 %v10127_v2  ;;  %2343 = vmatprep.subr.bf16.mxu1 %v10129_v14  ;;  %v841_v1 = vld [vmem:[#allocation8 + $0x6a8] sm:$0xff]  ;;  %v10166_v2 = vcombine.low %v828_v57, %v832_v58  ;;  %v10168_v14 = vcombine.low %v829_v8, %v833_v9  ;;  %v10207_v57 = vcombine.high %v868_v49, %v872_v50  ;;  %v876_v8 = vld [vmem:[#allocation8 + $0x7c0] sm:$0xff] }
 0x1bb   : > { %v10177_v16 = vcombine.high %v837_v0, %v841_v1  ;;  %v880_v9 = vld [vmem:[#allocation8 + $0x7e0] sm:$0xff] }
 0x1bd   : > { %2258 = vmatpush1.bf16.msra.mxu0 %v10126_v20  ;;  %2344 = vmatpush1.bf16.msra.mxu1 %v10128_v22  ;;  %v845_v20 = vld [vmem:[#allocation8 + $0x6c8] sm:$0xff] }
 0x1be   : > { %2259 = vmatprep.subr.bf16.mxu0 %v10135_v25  ;;  %2345 = vmatprep.subr.bf16.mxu1 %v10137_v26  ;;  %v849_v22 = vld [vmem:[#allocation8 + $0x6e8] sm:$0xff]  ;;  %v10174_v25 = vcombine.low %v836_v62, %v840_v63  ;;  %v10176_v26 = vcombine.low %v837_v0, %v841_v1  ;;  %v10215_v62 = vcombine.high %v876_v8, %v880_v9  ;;  %v630_v0 = vld [vmem:[#allocation8 + $0x10] sm:$0xff] }
 0x1bf   : > { %v10185_v28 = vcombine.high %v845_v20, %v849_v22  ;;  %v634_v1 = vld [vmem:[#allocation8 + $0x30] sm:$0xff] }
 0x1c1   : > { %2260 = vmatpush1.bf16.msra.mxu0 %v10134_v31  ;;  %2346 = vmatpush1.bf16.msra.mxu1 %v10136_v32  ;;  %v853_v31 = vld [vmem:[#allocation8 + $0x708] sm:$0xff] }
 0x1c2   : > { %2261 = vmatprep.subr.bf16.mxu0 %v10143_v33  ;;  %2347 = vmatprep.subr.bf16.mxu1 %v10145_v34  ;;  %v857_v32 = vld [vmem:[#allocation8 + $0x728] sm:$0xff]  ;;  %v10182_v33 = vcombine.low %v844_v17, %v848_v18  ;;  %v10184_v34 = vcombine.low %v845_v20, %v849_v22  ;;  %v9971_v17 = vcombine.high %v630_v0, %v634_v1  ;;  %v638_v20 = vld [vmem:[#allocation8 + $0x50] sm:$0xff] }
 0x1c3   : > { %v10193_v36 = vcombine.high %v853_v31, %v857_v32  ;;  %v642_v22 = vld [vmem:[#allocation8 + $0x70] sm:$0xff] }
 0x1c5   : > { %2262 = vmatpush1.bf16.msra.mxu0 %v10142_v42  ;;  %2348 = vmatpush1.bf16.msra.mxu1 %v10144_v43  ;;  %v861_v42 = vld [vmem:[#allocation8 + $0x748] sm:$0xff] }
 0x1c6   : > { %2263 = vmatprep.subr.bf16.mxu0 %v10151_v44  ;;  %2349 = vmatprep.subr.bf16.mxu1 %v10153_v45  ;;  %v865_v43 = vld [vmem:[#allocation8 + $0x768] sm:$0xff]  ;;  %v10190_v44 = vcombine.low %v852_v29, %v856_v30  ;;  %v10192_v45 = vcombine.low %v853_v31, %v857_v32  ;;  %v9979_v29 = vcombine.high %v638_v20, %v642_v22  ;;  %v646_v31 = vld [vmem:[#allocation8 + $0x90] sm:$0xff] }
 0x1c7   : > { %v10201_v47 = vcombine.high %v861_v42, %v865_v43  ;;  %v650_v32 = vld [vmem:[#allocation8 + $0xb0] sm:$0xff] }
 0x1c9   : > { %2264 = vmatpush1.bf16.msra.mxu0 %v10150_v51  ;;  %2350 = vmatpush1.bf16.msra.mxu1 %v10152_v53  ;;  %v869_v51 = vld [vmem:[#allocation8 + $0x788] sm:$0xff] }
 0x1ca   : > { %2265 = vmatprep.subr.bf16.mxu0 %v10159_v54  ;;  %2351 = vmatprep.subr.bf16.mxu1 %v10161_v55  ;;  %v873_v53 = vld [vmem:[#allocation8 + $0x7a8] sm:$0xff]  ;;  %v10198_v54 = vcombine.low %v860_v37, %v864_v41  ;;  %v10200_v55 = vcombine.low %v861_v42, %v865_v43  ;;  %v9987_v37 = vcombine.high %v646_v31, %v650_v32  ;;  %v654_v42 = vld [vmem:[#allocation8 + $0xd0] sm:$0xff] }
 0x1cb   : > { %v10209_v58 = vcombine.high %v869_v51, %v873_v53  ;;  %v658_v43 = vld [vmem:[#allocation8 + $0xf0] sm:$0xff] }
 0x1cd   : > { %2266 = vmatpush1.bf16.msra.mxu0 %v10158_v13  ;;  %2352 = vmatpush1.bf16.msra.mxu1 %v10160_v21  ;;  %v877_v13 = vld [vmem:[#allocation8 + $0x7c8] sm:$0xff] }
 0x1ce   : > { %2267 = vmatprep.subr.bf16.mxu0 %v10167_v23  ;;  %2353 = vmatprep.subr.bf16.mxu1 %v10169_v24  ;;  %v881_v21 = vld [vmem:[#allocation8 + $0x7e8] sm:$0xff]  ;;  %v10206_v23 = vcombine.low %v868_v49, %v872_v50  ;;  %v10208_v24 = vcombine.low %v869_v51, %v873_v53  ;;  %v9995_v49 = vcombine.high %v654_v42, %v658_v43  ;;  %v662_v51 = vld [vmem:[#allocation8 + $0x110] sm:$0xff] }
 0x1cf   : > { %v10217_v63 = vcombine.high %v877_v13, %v881_v21  ;;  %v666_v53 = vld [vmem:[#allocation8 + $0x130] sm:$0xff] }
 0x1d1   : > { %2268 = vmatpush1.bf16.msra.mxu0 %v10166_v2  ;;  %2354 = vmatpush1.bf16.msra.mxu1 %v10168_v14  ;;  %v631_v2 = vld [vmem:[#allocation8 + $0x18] sm:$0xff] }
 0x1d2   : > { %2269 = vmatprep.subr.bf16.mxu0 %v10175_v15  ;;  %2355 = vmatprep.subr.bf16.mxu1 %v10177_v16  ;;  %v635_v14 = vld [vmem:[#allocation8 + $0x38] sm:$0xff]  ;;  %v10214_v15 = vcombine.low %v876_v8, %v880_v9  ;;  %v10216_v16 = vcombine.low %v877_v13, %v881_v21  ;;  %v670_v9 = vld [vmem:[#allocation8 + $0x150] sm:$0xff] }
 0x1d3   : > { %v9973_v18 = vcombine.high %v631_v2, %v635_v14  ;;  %v674_v13 = vld [vmem:[#allocation8 + $0x170] sm:$0xff]  ;;  %v671_v21 = vld [vmem:[#allocation8 + $0x158] sm:$0xff] }
 0x1d5   : > { %2270 = vmatpush1.bf16.msra.mxu0 %v10174_v25  ;;  %2356 = vmatpush1.bf16.msra.mxu1 %v10176_v26  ;;  %v639_v25 = vld [vmem:[#allocation8 + $0x58] sm:$0xff] }
 0x1d6   : > { %2271 = vmatprep.subr.bf16.mxu0 %v10183_v27  ;;  %2357 = vmatprep.subr.bf16.mxu1 %v10185_v28  ;;  %v643_v26 = vld [vmem:[#allocation8 + $0x78] sm:$0xff]  ;;  %v9970_v27 = vcombine.low %v630_v0, %v634_v1  ;;  %v9972_v28 = vcombine.low %v631_v2, %v635_v14  ;;  %v678_v1 = vld [vmem:[#allocation8 + $0x190] sm:$0xff] }
 0x1d7   : > { %v9981_v30 = vcombine.high %v639_v25, %v643_v26  ;;  %v682_v2 = vld [vmem:[#allocation8 + $0x1b0] sm:$0xff]  ;;  %v679_v14 = vld [vmem:[#allocation8 + $0x198] sm:$0xff] }
 0x1d9   : > { %2272 = vmatpush1.bf16.msra.mxu0 %v10182_v33  ;;  %2358 = vmatpush1.bf16.msra.mxu1 %v10184_v34  ;;  %v647_v33 = vld [vmem:[#allocation8 + $0x98] sm:$0xff] }
 0x1da   : > { %2273 = vmatprep.subr.bf16.mxu0 %v10191_v35  ;;  %2359 = vmatprep.subr.bf16.mxu1 %v10193_v36  ;;  %v651_v34 = vld [vmem:[#allocation8 + $0xb8] sm:$0xff]  ;;  %v9978_v35 = vcombine.low %v638_v20, %v642_v22  ;;  %v9980_v36 = vcombine.low %v639_v25, %v643_v26  ;;  %v686_v22 = vld [vmem:[#allocation8 + $0x1d0] sm:$0xff] }
 0x1db   : > { %v9989_v41 = vcombine.high %v647_v33, %v651_v34  ;;  %v690_v25 = vld [vmem:[#allocation8 + $0x1f0] sm:$0xff]  ;;  %v687_v26 = vld [vmem:[#allocation8 + $0x1d8] sm:$0xff] }
 0x1dd   : > { %2274 = vmatpush1.bf16.msra.mxu0 %v10190_v44  ;;  %2360 = vmatpush1.bf16.msra.mxu1 %v10192_v45  ;;  %v655_v44 = vld [vmem:[#allocation8 + $0xd8] sm:$0xff] }
 0x1de   : > { %2275 = vmatprep.subr.bf16.mxu0 %v10199_v46  ;;  %2361 = vmatprep.subr.bf16.mxu1 %v10201_v47  ;;  %v659_v45 = vld [vmem:[#allocation8 + $0xf8] sm:$0xff]  ;;  %v9986_v46 = vcombine.low %v646_v31, %v650_v32  ;;  %v9988_v47 = vcombine.low %v647_v33, %v651_v34  ;;  %v694_v32 = vld [vmem:[#allocation8 + $0x210] sm:$0xff] }
 0x1df   : > { %v9997_v50 = vcombine.high %v655_v44, %v659_v45  ;;  %v698_v33 = vld [vmem:[#allocation8 + $0x230] sm:$0xff]  ;;  %v695_v34 = vld [vmem:[#allocation8 + $0x218] sm:$0xff] }
 0x1e1   : > { %2276 = vmatpush1.bf16.msra.mxu0 %v10198_v54  ;;  %2362 = vmatpush1.bf16.msra.mxu1 %v10200_v55  ;;  %v667_v54 = vld [vmem:[#allocation8 + $0x138] sm:$0xff]  ;;  %v9994_v55 = vcombine.low %v654_v42, %v658_v43  ;;  %v702_v43 = vld [vmem:[#allocation8 + $0x250] sm:$0xff] }
 0x1e2   : > { %2277 = vmatprep.subr.bf16.mxu0 %v10207_v57  ;;  %2363 = vmatprep.subr.bf16.mxu1 %v10209_v58  ;;  %v9996_v57 = vcombine.low %v655_v44, %v659_v45  ;;  %v10003_v58 = vcombine.high %v662_v51, %v666_v53  ;;  %v706_v44 = vld [vmem:[#allocation8 + $0x270] sm:$0xff]  ;;  %v703_v45 = vld [vmem:[#allocation8 + $0x258] sm:$0xff] }
 0x1e5   : > { %2278 = vmatpush1.bf16.msra.mxu0 %v10206_v23  ;;  %2364 = vmatpush1.bf16.msra.mxu1 %v10208_v24  ;;  %v675_v23 = vld [vmem:[#allocation8 + $0x178] sm:$0xff]  ;;  %v10002_v24 = vcombine.low %v662_v51, %v666_v53  ;;  %v710_v53 = vld [vmem:[#allocation8 + $0x290] sm:$0xff] }
 0x1e6   : > { %2279 = vmatprep.subr.bf16.mxu0 %v10215_v62  ;;  %2365 = vmatprep.subr.bf16.mxu1 %v10217_v63  ;;  %v10011_v63 = vcombine.high %v670_v9, %v674_v13  ;;  %v10013_v0 = vcombine.high %v671_v21, %v675_v23 }
 0x1e9   : > { %2280 = vmatpush1.bf16.msra.mxu0 %v10214_v15  ;;  %2366 = vmatpush1.bf16.msra.mxu1 %v10216_v16  ;;  %v683_v15 = vld [vmem:[#allocation8 + $0x1b8] sm:$0xff]  ;;  %v10010_v16 = vcombine.low %v670_v9, %v674_v13  ;;  %v718_v13 = vld [vmem:[#allocation8 + $0x2d0] sm:$0xff] }
 0x1ea   : > { %2378 = vmatprep.subr.bf16.mxu0 %v9971_v17  ;;  %2464 = vmatprep.subr.bf16.mxu1 %v9973_v18  ;;  %v10012_v17 = vcombine.low %v671_v21, %v675_v23  ;;  %v10019_v18 = vcombine.high %v678_v1, %v682_v2  ;;  %v10021_v20 = vcombine.high %v679_v14, %v683_v15  ;;  %v722_v21 = vld [vmem:[#allocation8 + $0x2f0] sm:$0xff]  ;;  %v719_v23 = vld [vmem:[#allocation8 + $0x2d8] sm:$0xff] }
 0x1ec   : > { %2282 = vmatmul.mubr.bf16.vlgmr.msra.gmra.mrb[0].mxu0 %v12883_v40  ;;  %2368 = vmatmul.mubr.bf16.vlgmr.msra.gmra.mrb[0].mxu1 %v12883_v40 }
 0x1ed   : > { %2379 = vmatpush1.bf16.msra.mxu0 %v9970_v27  ;;  %2410 = vmatprep.mubr.bf16.mxu0 %v12879_v38  ;;  %v691_v27 = vld [vmem:[#allocation8 + $0x1f8] sm:$0xff] }
 0x1ee   : > { %2465 = vmatpush1.bf16.msra.mxu1 %v9972_v28  ;;  %2496 = vmatprep.mubr.bf16.mxu1 %v12879_v38  ;;  %v663_v38 = vld [vmem:[#allocation8 + $0x118] sm:$0xff]  ;;  %v10018_v28 = vcombine.low %v678_v1, %v682_v2  ;;  %v10029_v31 = vcombine.high %v687_v26, %v691_v27  ;;  %v726_v2 = vld [vmem:[#allocation8 + $0x310] sm:$0xff] }
 0x1ef   : > { %2380 = vmatprep.subr.bf16.mxu0 %v9979_v29  ;;  %2466 = vmatprep.subr.bf16.mxu1 %v9981_v30  ;;  %v10005_v8 = vcombine.high %v663_v38, %v667_v54  ;;  %v10004_v62 = vcombine.low %v663_v38, %v667_v54  ;;  %v10020_v29 = vcombine.low %v679_v14, %v683_v15  ;;  %v714_v38 = vld [vmem:[#allocation8 + $0x2b0] sm:$0xff]  ;;  %v711_v54 = vld [vmem:[#allocation8 + $0x298] sm:$0xff] }
 0x1f0   : > { %v10027_v30 = vcombine.high %v686_v22, %v690_v25  ;;  %v730_v14 = vld [vmem:[#allocation8 + $0x330] sm:$0xff]  ;;  %v727_v15 = vld [vmem:[#allocation8 + $0x318] sm:$0xff] }
 0x1f1   : > { %2381 = vmatpush1.bf16.msra.mxu0 %v9978_v35  ;;  %v699_v35 = vld [vmem:[#allocation8 + $0x238] sm:$0xff] }
 0x1f2   : > { %2467 = vmatpush1.bf16.msra.mxu1 %v9980_v36  ;;  %2382 = vmatprep.subr.bf16.mxu0 %v9987_v37  ;;  %v10026_v36 = vcombine.low %v686_v22, %v690_v25  ;;  %v10028_v37 = vcombine.low %v687_v26, %v691_v27  ;;  %v10037_v42 = vcombine.high %v695_v34, %v699_v35  ;;  %v734_v25 = vld [vmem:[#allocation8 + $0x350] sm:$0xff]  ;;  %v735_v27 = vld [vmem:[#allocation8 + $0x358] sm:$0xff] }
 0x1f3   : > { %2468 = vmatprep.subr.bf16.mxu1 %v9989_v41  ;;  %v10035_v41 = vcombine.high %v694_v32, %v698_v33  ;;  %v738_v26 = vld [vmem:[#allocation8 + $0x370] sm:$0xff] }
 0x1f5   : > { %2383 = vmatpush1.bf16.msra.mxu0 %v9986_v46  ;;  %v707_v46 = vld [vmem:[#allocation8 + $0x278] sm:$0xff] }
 0x1f6   : > { %2469 = vmatpush1.bf16.msra.mxu1 %v9988_v47  ;;  %2384 = vmatprep.subr.bf16.mxu0 %v9995_v49  ;;  %v10034_v47 = vcombine.low %v694_v32, %v698_v33  ;;  %v10036_v49 = vcombine.low %v695_v34, %v699_v35  ;;  %v10045_v51 = vcombine.high %v703_v45, %v707_v46  ;;  %v742_v33 = vld [vmem:[#allocation8 + $0x390] sm:$0xff]  ;;  %v743_v35 = vld [vmem:[#allocation8 + $0x398] sm:$0xff] }
 0x1f7   : > { %2470 = vmatprep.subr.bf16.mxu1 %v9997_v50  ;;  %v10043_v50 = vcombine.high %v702_v43, %v706_v44  ;;  %v746_v34 = vld [vmem:[#allocation8 + $0x3b0] sm:$0xff] }
 0x1f9   : > { %2385 = vmatpush1.bf16.msra.mxu0 %v9994_v55  ;;  %v715_v55 = vld [vmem:[#allocation8 + $0x2b8] sm:$0xff] }
 0x1fa   : > { %2471 = vmatpush1.bf16.msra.mxu1 %v9996_v57  ;;  %2386 = vmatprep.subr.bf16.mxu0 %v10003_v58  ;;  %v10042_v57 = vcombine.low %v702_v43, %v706_v44  ;;  %v10044_v58 = vcombine.low %v703_v45, %v707_v46  ;;  %v10053_v9 = vcombine.high %v711_v54, %v715_v55  ;;  %v750_v44 = vld [vmem:[#allocation8 + $0x3d0] sm:$0xff]  ;;  %v751_v46 = vld [vmem:[#allocation8 + $0x3d8] sm:$0xff] }
 0x1fb   : > { %2472 = vmatprep.subr.bf16.mxu1 %v10005_v8  ;;  %v10051_v8 = vcombine.high %v710_v53, %v714_v38  ;;  %v754_v45 = vld [vmem:[#allocation8 + $0x3f0] sm:$0xff] }
 0x1fd   : > { %2387 = vmatpush1.bf16.msra.mxu0 %v10002_v24  ;;  %v723_v24 = vld [vmem:[#allocation8 + $0x2f8] sm:$0xff] }
 0x1fe   : > { %2473 = vmatpush1.bf16.msra.mxu1 %v10004_v62  ;;  %2388 = vmatprep.subr.bf16.mxu0 %v10011_v63  ;;  %v10050_v62 = vcombine.low %v710_v53, %v714_v38  ;;  %v10052_v63 = vcombine.low %v711_v54, %v715_v55  ;;  %v10061_v1 = vcombine.high %v719_v23, %v723_v24  ;;  %v758_v38 = vld [vmem:[#allocation8 + $0x410] sm:$0xff]  ;;  %v759_v55 = vld [vmem:[#allocation8 + $0x418] sm:$0xff] }
 0x1ff   : > { %2474 = vmatprep.subr.bf16.mxu1 %v10013_v0  ;;  %v10059_v0 = vcombine.high %v718_v13, %v722_v21  ;;  %v762_v54 = vld [vmem:[#allocation8 + $0x430] sm:$0xff] }
 0x201   : > { %2389 = vmatpush1.bf16.msra.mxu0 %v10010_v16  ;;  %v731_v16 = vld [vmem:[#allocation8 + $0x338] sm:$0xff] }
 0x202   : > { %2475 = vmatpush1.bf16.msra.mxu1 %v10012_v17  ;;  %2390 = vmatprep.subr.bf16.mxu0 %v10019_v18  ;;  %v10058_v17 = vcombine.low %v718_v13, %v722_v21  ;;  %v10060_v18 = vcombine.low %v719_v23, %v723_v24  ;;  %v10069_v22 = vcombine.high %v727_v15, %v731_v16  ;;  %v766_v21 = vld [vmem:[#allocation8 + $0x450] sm:$0xff] }
 0x203   : > { %2476 = vmatprep.subr.bf16.mxu1 %v10021_v20  ;;  %v10067_v20 = vcombine.high %v726_v2, %v730_v14  ;;  %v770_v23 = vld [vmem:[#allocation8 + $0x470] sm:$0xff]  ;;  %v10098_v24 = vcombine.low %v758_v38, %v762_v54 }
 0x205   : > { %2391 = vmatpush1.bf16.msra.mxu0 %v10018_v28  ;;  %v739_v28 = vld [vmem:[#allocation8 + $0x378] sm:$0xff] }
 0x206   : > { %2477 = vmatpush1.bf16.msra.mxu1 %v10020_v29  ;;  %2392 = vmatprep.subr.bf16.mxu0 %v10027_v30  ;;  %v10066_v29 = vcombine.low %v726_v2, %v730_v14  ;;  %v10068_v30 = vcombine.low %v727_v15, %v731_v16  ;;  %v10077_v32 = vcombine.high %v735_v27, %v739_v28  ;;  %v774_v2 = vld [vmem:[#allocation8 + $0x490] sm:$0xff]  ;;  %v775_v16 = vld [vmem:[#allocation8 + $0x498] sm:$0xff] }
 0x207   : > { %2478 = vmatprep.subr.bf16.mxu1 %v10029_v31  ;;  %v10075_v31 = vcombine.high %v734_v25, %v738_v26  ;;  %v778_v14 = vld [vmem:[#allocation8 + $0x4b0] sm:$0xff] }
 0x209   : > { %2393 = vmatpush1.bf16.msra.mxu0 %v10026_v36  ;;  %v747_v36 = vld [vmem:[#allocation8 + $0x3b8] sm:$0xff] }
 0x20a   : > { %2479 = vmatpush1.bf16.msra.mxu1 %v10028_v37  ;;  %2394 = vmatprep.subr.bf16.mxu0 %v10035_v41  ;;  %v10074_v37 = vcombine.low %v734_v25, %v738_v26  ;;  %v10076_v41 = vcombine.low %v735_v27, %v739_v28  ;;  %v10085_v43 = vcombine.high %v743_v35, %v747_v36  ;;  %v782_v26 = vld [vmem:[#allocation8 + $0x4d0] sm:$0xff]  ;;  %v783_v28 = vld [vmem:[#allocation8 + $0x4d8] sm:$0xff] }
 0x20b   : > { %2480 = vmatprep.subr.bf16.mxu1 %v10037_v42  ;;  %v10083_v42 = vcombine.high %v742_v33, %v746_v34  ;;  %v786_v27 = vld [vmem:[#allocation8 + $0x4f0] sm:$0xff] }
 0x20d   : > { %2395 = vmatpush1.bf16.msra.mxu0 %v10034_v47  ;;  %v755_v47 = vld [vmem:[#allocation8 + $0x3f8] sm:$0xff] }
 0x20e   : > { %2481 = vmatpush1.bf16.msra.mxu1 %v10036_v49  ;;  %2396 = vmatprep.subr.bf16.mxu0 %v10043_v50  ;;  %v10082_v49 = vcombine.low %v742_v33, %v746_v34  ;;  %v10084_v50 = vcombine.low %v743_v35, %v747_v36  ;;  %v10093_v53 = vcombine.high %v751_v46, %v755_v47  ;;  %v790_v33 = vld [vmem:[#allocation8 + $0x510] sm:$0xff]  ;;  %v791_v35 = vld [vmem:[#allocation8 + $0x518] sm:$0xff] }
 0x20f   : > { %2482 = vmatprep.subr.bf16.mxu1 %v10045_v51  ;;  %v10091_v51 = vcombine.high %v750_v44, %v754_v45  ;;  %v794_v34 = vld [vmem:[#allocation8 + $0x530] sm:$0xff]  ;;  %v795_v36 = vld [vmem:[#allocation8 + $0x538] sm:$0xff] }
 0x211   : > { %2397 = vmatpush1.bf16.msra.mxu0 %v10042_v57  ;;  %v763_v57 = vld [vmem:[#allocation8 + $0x438] sm:$0xff] }
 0x212   : > { %2483 = vmatpush1.bf16.msra.mxu1 %v10044_v58  ;;  %2398 = vmatprep.subr.bf16.mxu0 %v10051_v8  ;;  %v10090_v58 = vcombine.low %v750_v44, %v754_v45  ;;  %v10092_v8 = vcombine.low %v751_v46, %v755_v47  ;;  %v10101_v13 = vcombine.high %v759_v55, %v763_v57  ;;  %v802_v44 = vld [vmem:[#allocation8 + $0x570] sm:$0xff]  ;;  %v799_v45 = vld [vmem:[#allocation8 + $0x558] sm:$0xff] }
 0x213   : > { %2484 = vmatprep.subr.bf16.mxu1 %v10053_v9  ;;  %v10099_v9 = vcombine.high %v758_v38, %v762_v54  ;;  %v803_v46 = vld [vmem:[#allocation8 + $0x578] sm:$0xff]  ;;  %v10130_v47 = vcombine.low %v790_v33, %v794_v34  ;;  %v810_v38 = vld [vmem:[#allocation8 + $0x5b0] sm:$0xff] }
 0x214   : > { %v807_v54 = vld [vmem:[#allocation8 + $0x598] sm:$0xff] }
 0x215   : > { %2399 = vmatpush1.bf16.msra.mxu0 %v10050_v62  ;;  %v767_v62 = vld [vmem:[#allocation8 + $0x458] sm:$0xff] }
 0x216   : > { %2485 = vmatpush1.bf16.msra.mxu1 %v10052_v63  ;;  %2400 = vmatprep.subr.bf16.mxu0 %v10059_v0  ;;  %v771_v63 = vld [vmem:[#allocation8 + $0x478] sm:$0xff]  ;;  %v10100_v0 = vcombine.low %v759_v55, %v763_v57 }
 0x217   : > { %2486 = vmatprep.subr.bf16.mxu1 %v10061_v1  ;;  %v10107_v1 = vcombine.high %v766_v21, %v770_v23  ;;  %v10109_v15 = vcombine.high %v767_v62, %v771_v63  ;;  %v811_v55 = vld [vmem:[#allocation8 + $0x5b8] sm:$0xff] }
 0x219   : > { %2401 = vmatpush1.bf16.msra.mxu0 %v10058_v17  ;;  %v779_v17 = vld [vmem:[#allocation8 + $0x4b8] sm:$0xff] }
 0x21a   : > { %2487 = vmatpush1.bf16.msra.mxu1 %v10060_v18  ;;  %2402 = vmatprep.subr.bf16.mxu0 %v10067_v20  ;;  %v10106_v18 = vcombine.low %v766_v21, %v770_v23  ;;  %v10108_v20 = vcombine.low %v767_v62, %v771_v63  ;;  %v10117_v25 = vcombine.high %v775_v16, %v779_v17  ;;  %v818_v21 = vld [vmem:[#allocation8 + $0x5f0] sm:$0xff]  ;;  %v815_v23 = vld [vmem:[#allocation8 + $0x5d8] sm:$0xff] }
 0x21b   : > { %2488 = vmatprep.subr.bf16.mxu1 %v10069_v22  ;;  %v10115_v22 = vcombine.high %v774_v2, %v778_v14  ;;  %v10148_v63 = vcombine.low %v807_v54, %v811_v55 }
 0x21d   : > { %2403 = vmatpush1.bf16.msra.mxu0 %v10066_v29  ;;  %v787_v29 = vld [vmem:[#allocation8 + $0x4f8] sm:$0xff] }
 0x21e   : > { %2489 = vmatpush1.bf16.msra.mxu1 %v10068_v30  ;;  %2404 = vmatprep.subr.bf16.mxu0 %v10075_v31  ;;  %v10114_v30 = vcombine.low %v774_v2, %v778_v14  ;;  %v10123_v31 = vcombine.high %v782_v26, %v786_v27  ;;  %v822_v2 = vld [vmem:[#allocation8 + $0x610] sm:$0xff] }
 0x21f   : > { %2490 = vmatprep.subr.bf16.mxu1 %v10077_v32  ;;  %v10125_v32 = vcombine.high %v783_v28, %v787_v29  ;;  %v826_v14 = vld [vmem:[#allocation8 + $0x630] sm:$0xff] }
 0x221   : > { %2405 = vmatpush1.bf16.msra.mxu0 %v10074_v37  ;;  %v10124_v37 = vcombine.low %v783_v28, %v787_v29  ;;  %v835_v28 = vld [vmem:[#allocation8 + $0x678] sm:$0xff]  ;;  %v10162_v29 = vcombine.low %v822_v2, %v826_v14 }
 0x222   : > { %2491 = vmatpush1.bf16.msra.mxu1 %v10076_v41  ;;  %2406 = vmatprep.subr.bf16.mxu0 %v10083_v42  ;;  %v10131_v41 = vcombine.high %v790_v33, %v794_v34  ;;  %v10133_v42 = vcombine.high %v791_v35, %v795_v36  ;;  %v842_v33 = vld [vmem:[#allocation8 + $0x6b0] sm:$0xff]  ;;  %v839_v34 = vld [vmem:[#allocation8 + $0x698] sm:$0xff] }
 0x223   : > { %2492 = vmatprep.subr.bf16.mxu1 %v10085_v43  ;;  %v798_v43 = vld [vmem:[#allocation8 + $0x550] sm:$0xff] }
 0x224   : > { %v10138_v57 = vcombine.low %v798_v43, %v802_v44 }
 0x225   : > { %2407 = vmatpush1.bf16.msra.mxu0 %v10082_v49  ;;  %v10132_v49 = vcombine.low %v791_v35, %v795_v36  ;;  %v843_v35 = vld [vmem:[#allocation8 + $0x6b8] sm:$0xff] }
 0x226   : > { %2493 = vmatpush1.bf16.msra.mxu1 %v10084_v50  ;;  %2408 = vmatprep.subr.bf16.mxu0 %v10091_v51  ;;  %v10139_v50 = vcombine.high %v798_v43, %v802_v44  ;;  %v10141_v51 = vcombine.high %v799_v45, %v803_v46  ;;  %v850_v43 = vld [vmem:[#allocation8 + $0x6f0] sm:$0xff]  ;;  %v847_v44 = vld [vmem:[#allocation8 + $0x6d8] sm:$0xff] }
 0x227   : > { %2494 = vmatprep.subr.bf16.mxu1 %v10093_v53  ;;  %v806_v53 = vld [vmem:[#allocation8 + $0x590] sm:$0xff] }
 0x228   : > { %v10146_v62 = vcombine.low %v806_v53, %v810_v38 }
 0x229   : > { %2409 = vmatpush1.bf16.msra.mxu0 %v10090_v58  ;;  %v10140_v58 = vcombine.low %v799_v45, %v803_v46  ;;  %v851_v45 = vld [vmem:[#allocation8 + $0x6f8] sm:$0xff] }
 0x22a   : > { %2495 = vmatpush1.bf16.msra.mxu1 %v10092_v8  ;;  %2421 = vmatprep.subr.bf16.mxu0 %v10099_v9  ;;  %v10147_v8 = vcombine.high %v806_v53, %v810_v38  ;;  %v10149_v9 = vcombine.high %v807_v54, %v811_v55  ;;  %v858_v53 = vld [vmem:[#allocation8 + $0x730] sm:$0xff]  ;;  %v855_v38 = vld [vmem:[#allocation8 + $0x718] sm:$0xff] }
 0x22b   : > { %2507 = vmatprep.subr.bf16.mxu1 %v10101_v13  ;;  %v814_v13 = vld [vmem:[#allocation8 + $0x5d0] sm:$0xff]  ;;  %v859_v54 = vld [vmem:[#allocation8 + $0x738] sm:$0xff] }
 0x22c   : > { %2411 = vmatmul.mubr.bf16.vlgmr.msra.gmra.mrb[4].mxu0 %v12881_v39 }
 0x22d   : > { %2497 = vmatmul.mubr.bf16.vlgmr.msra.gmra.mrb[4].mxu1 %v12881_v39  ;;  %2422 = vmatpush1.bf16.msra.mxu0 %v10098_v24  ;;  %v10116_v39 = vcombine.low %v775_v16, %v779_v17  ;;  %v819_v24 = vld [vmem:[#allocation8 + $0x5f8] sm:$0xff]  ;;  %v10154_v17 = vcombine.low %v814_v13, %v818_v21 }
 0x22e   : > { %2453 = vmatprep.mubr.bf16.mxu0 %v12889_v48  ;;  %2508 = vmatpush1.bf16.msra.mxu1 %v10100_v0  ;;  %v10155_v0 = vcombine.high %v814_v13, %v818_v21  ;;  %v827_v16 = vld [vmem:[#allocation8 + $0x638] sm:$0xff]  ;;  %v866_v13 = vld [vmem:[#allocation8 + $0x770] sm:$0xff] }
 0x22f   : > { %2539 = vmatprep.mubr.bf16.mxu1 %v12889_v48  ;;  %2423 = vmatprep.subr.bf16.mxu0 %v10107_v1  ;;  %v10122_v48 = vcombine.low %v782_v26, %v786_v27  ;;  %v10157_v1 = vcombine.high %v815_v23, %v819_v24  ;;  %v834_v26 = vld [vmem:[#allocation8 + $0x670] sm:$0xff]  ;;  %v831_v27 = vld [vmem:[#allocation8 + $0x658] sm:$0xff] }
 0x230   : > { %2509 = vmatprep.subr.bf16.mxu1 %v10109_v15  ;;  %v823_v15 = vld [vmem:[#allocation8 + $0x618] sm:$0xff] }
 0x231   : > { %2424 = vmatpush1.bf16.msra.mxu0 %v10106_v18  ;;  %v10156_v18 = vcombine.low %v815_v23, %v819_v24  ;;  %v863_v21 = vld [vmem:[#allocation8 + $0x758] sm:$0xff] }
 0x232   : > { %2510 = vmatpush1.bf16.msra.mxu1 %v10108_v20  ;;  %2425 = vmatprep.subr.bf16.mxu0 %v10115_v22  ;;  %v10163_v20 = vcombine.high %v822_v2, %v826_v14  ;;  %v10165_v22 = vcombine.high %v823_v15, %v827_v16  ;;  %v867_v23 = vld [vmem:[#allocation8 + $0x778] sm:$0xff]  ;;  %v874_v2 = vld [vmem:[#allocation8 + $0x7b0] sm:$0xff] }
 0x233   : > { %2511 = vmatprep.subr.bf16.mxu1 %v10117_v25  ;;  %v830_v25 = vld [vmem:[#allocation8 + $0x650] sm:$0xff]  ;;  %v871_v14 = vld [vmem:[#allocation8 + $0x798] sm:$0xff] }
 0x234   : > { %v10170_v36 = vcombine.low %v830_v25, %v834_v26 }
 0x235   : > { %2426 = vmatpush1.bf16.msra.mxu0 %v10114_v30  ;;  %v10164_v30 = vcombine.low %v823_v15, %v827_v16  ;;  %v875_v15 = vld [vmem:[#allocation8 + $0x7b8] sm:$0xff] }
 0x236   : > { %2512 = vmatpush1.bf16.msra.mxu1 %v10116_v39  ;;  %2427 = vmatprep.subr.bf16.mxu0 %v10123_v31  ;;  %v10171_v39 = vcombine.high %v830_v25, %v834_v26  ;;  %v10173_v31 = vcombine.high %v831_v27, %v835_v28  ;;  %v882_v25 = vld [vmem:[#allocation8 + $0x7f0] sm:$0xff]  ;;  %v879_v26 = vld [vmem:[#allocation8 + $0x7d8] sm:$0xff] }
 0x237   : > { %2513 = vmatprep.subr.bf16.mxu1 %v10125_v32  ;;  %v838_v32 = vld [vmem:[#allocation8 + $0x690] sm:$0xff] }
 0x238   : > { %v10178_v46 = vcombine.low %v838_v32, %v842_v33 }
 0x239   : > { %2428 = vmatpush1.bf16.msra.mxu0 %v10122_v48  ;;  %v10172_v48 = vcombine.low %v831_v27, %v835_v28  ;;  %v883_v27 = vld [vmem:[#allocation8 + $0x7f8] sm:$0xff] }
 0x23a   : > { %2514 = vmatpush1.bf16.msra.mxu1 %v10124_v37  ;;  %2429 = vmatprep.subr.bf16.mxu0 %v10131_v41  ;;  %v10179_v37 = vcombine.high %v838_v32, %v842_v33  ;;  %v10181_v41 = vcombine.high %v839_v34, %v843_v35  ;;  %v10220_v32 = vcombine.low %v879_v26, %v883_v27  ;;  %v12912_v33 = vld [vmem:[%s13336_s29] sm:$0xff]  ;;  %s13339_s29 = sld [smem:[#allocation28_spill]] }
 0x23b   : > { %2515 = vmatprep.subr.bf16.mxu1 %v10133_v42  ;;  %v846_v42 = vld [vmem:[#allocation8 + $0x6d0] sm:$0xff] }
 0x23c   : > { %v10186_v55 = vcombine.low %v846_v42, %v850_v43 }
 0x23d   : > { %2430 = vmatpush1.bf16.msra.mxu0 %v10130_v47  ;;  %v10180_v47 = vcombine.low %v839_v34, %v843_v35  ;;  %v889_v34 = vrot.slane %v12912_v33, %v12862_v61  ;;  %v897_v35 = vrot.slane %v12912_v33, %v12856_v59 }
 0x23e   : > { %2516 = vmatpush1.bf16.msra.mxu1 %v10132_v49  ;;  %2431 = vmatprep.subr.bf16.mxu0 %v10139_v50  ;;  %v10187_v49 = vcombine.high %v846_v42, %v850_v43  ;;  %v10189_v50 = vcombine.high %v847_v44, %v851_v45 }
 0x23f   : > { %2517 = vmatprep.subr.bf16.mxu1 %v10141_v51  ;;  %v854_v51 = vld [vmem:[#allocation8 + $0x710] sm:$0xff] }
 0x240   : > { %v10194_v24 = vcombine.low %v854_v51, %v858_v53 }
 0x241   : > { %2432 = vmatpush1.bf16.msra.mxu0 %v10138_v57  ;;  %v10188_v57 = vcombine.low %v847_v44, %v851_v45 }
 0x242   : > { %2518 = vmatpush1.bf16.msra.mxu1 %v10140_v58  ;;  %2433 = vmatprep.subr.bf16.mxu0 %v10147_v8  ;;  %v10195_v58 = vcombine.high %v854_v51, %v858_v53  ;;  %v10197_v8 = vcombine.high %v855_v38, %v859_v54 }
 0x243   : > { %2519 = vmatprep.subr.bf16.mxu1 %v10149_v9  ;;  %v862_v9 = vld [vmem:[#allocation8 + $0x750] sm:$0xff] }
 0x244   : > { %v10202_v16 = vcombine.low %v862_v9, %v866_v13 }
 0x245   : > { %2434 = vmatpush1.bf16.msra.mxu0 %v10146_v62  ;;  %v10196_v62 = vcombine.low %v855_v38, %v859_v54  ;;  %v12934_v38 = vld [vmem:[#allocation5] sm:$0xff]  ;;  %v12936_v54 = vld [vmem:[#allocation7] sm:$0xff] }
 0x246   : > { %2520 = vmatpush1.bf16.msra.mxu1 %v10148_v63  ;;  %2435 = vmatprep.subr.bf16.mxu0 %v10155_v0  ;;  %v10203_v63 = vcombine.high %v862_v9, %v866_v13  ;;  %v10205_v0 = vcombine.high %v863_v21, %v867_v23 }
 0x247   : > { %2521 = vmatprep.subr.bf16.mxu1 %v10157_v1  ;;  %v870_v1 = vld [vmem:[#allocation8 + $0x790] sm:$0xff] }
 0x248   : > { %v10210_v28 = vcombine.low %v870_v1, %v874_v2 }
 0x249   : > { %2436 = vmatpush1.bf16.msra.mxu0 %v10154_v17  ;;  %v10204_v17 = vcombine.low %v863_v21, %v867_v23 }
 0x24a   : > { %2522 = vmatpush1.bf16.msra.mxu1 %v10156_v18  ;;  %2437 = vmatprep.subr.bf16.mxu0 %v10163_v20  ;;  %v10211_v18 = vcombine.high %v870_v1, %v874_v2  ;;  %v10213_v20 = vcombine.high %v871_v14, %v875_v15  ;;  %v912_v2 = vsub.s32 6, %v12850_v56 }
 0x24b   : > { %2523 = vmatprep.subr.bf16.mxu1 %v10165_v22  ;;  %v878_v22 = vld [vmem:[#allocation8 + $0x7d0] sm:$0xff] }
 0x24d   : > { %2438 = vmatpush1.bf16.msra.mxu0 %v10162_v29  ;;  %v10212_v29 = vcombine.low %v871_v14, %v875_v15  ;;  %v916_v15 = vsub.s32 7, %v12850_v56 }
 0x24e   : > { %2524 = vmatpush1.bf16.msra.mxu1 %v10164_v30  ;;  %2439 = vmatprep.subr.bf16.mxu0 %v10171_v39  ;;  %v10219_v30 = vcombine.high %v878_v22, %v882_v25  ;;  %v10221_v39 = vcombine.high %v879_v26, %v883_v27 }
 0x24f   : > { %2525 = vmatprep.subr.bf16.mxu1 %v10173_v31  ;;  %v10218_v31 = vcombine.low %v878_v22, %v882_v25  ;;  %v917_v26 = vrot.slane %v12912_v33, %v916_v15 }
 0x251   : > { %2440 = vmatpush1.bf16.msra.mxu0 %v10170_v36  ;;  %v901_v36 = vrot.slane %v12912_v33, %v12869_v7 }
 0x252   : > { %2526 = vmatpush1.bf16.msra.mxu1 %v10172_v48  ;;  %2441 = vmatprep.subr.bf16.mxu0 %v10179_v37 }
 0x253   : > { %2527 = vmatprep.subr.bf16.mxu1 %v10181_v41 }
 0x255   : > { %2442 = vmatpush1.bf16.msra.mxu0 %v10178_v46 }
 0x256   : > { %2528 = vmatpush1.bf16.msra.mxu1 %v10180_v47  ;;  %2443 = vmatprep.subr.bf16.mxu0 %v10187_v49 }
 0x257   : > { %2529 = vmatprep.subr.bf16.mxu1 %v10189_v50 }
 0x259   : > { %2444 = vmatpush1.bf16.msra.mxu0 %v10186_v55  ;;  %v12938_v55 = vld [vmem:[#allocation5 + $0x8] sm:$0xff] }
 0x25a   : > { %2530 = vmatpush1.bf16.msra.mxu1 %v10188_v57  ;;  %2445 = vmatprep.subr.bf16.mxu0 %v10195_v58  ;;  %v12940_v58 = vld [vmem:[#allocation7 + $0x8] sm:$0xff] }
 0x25b   : > { %2531 = vmatprep.subr.bf16.mxu1 %v10197_v8 }
 0x25d   : > { %2446 = vmatpush1.bf16.msra.mxu0 %v10194_v24 }
 0x25e   : > { %2532 = vmatpush1.bf16.msra.mxu1 %v10196_v62  ;;  %2447 = vmatprep.subr.bf16.mxu0 %v10203_v63  ;;  %v904_v62 = vsub.s32 4, %v12850_v56 }
 0x25f   : > { %2533 = vmatprep.subr.bf16.mxu1 %v10205_v0 }
 0x260   : > { %v905_v14 = vrot.slane %v12912_v33, %v904_v62 }
 0x261   : > { %2448 = vmatpush1.bf16.msra.mxu0 %v10202_v16 }
 0x262   : > { %2534 = vmatpush1.bf16.msra.mxu1 %v10204_v17  ;;  %2449 = vmatprep.subr.bf16.mxu0 %v10211_v18  ;;  %v913_v18 = vrot.slane %v12912_v33, %v912_v2 }
 0x263   : > { %2535 = vmatprep.subr.bf16.mxu1 %v10213_v20 }
 0x265   : > { %2450 = vmatpush1.bf16.msra.mxu0 %v10210_v28 }
 0x266   : > { %2536 = vmatpush1.bf16.msra.mxu1 %v10212_v29  ;;  %2451 = vmatprep.subr.bf16.mxu0 %v10219_v30 }
 0x267   : > { %2537 = vmatprep.subr.bf16.mxu1 %v10221_v39 }
 0x269   : > { %2452 = vmatpush1.bf16.msra.mxu0 %v10218_v31 }
 0x26a   : > { %2538 = vmatpush1.bf16.msra.mxu1 %v10220_v32 }
 0x26c   : > { %2454 = vmatmul.mubr.bf16.vlgmr.msra.gmra.mrb[4].mxu0 %v12883_v40 }
 0x26d   : > { %2540 = vmatmul.mubr.bf16.vlgmr.msra.gmra.mrb[4].mxu1 %v12883_v40 }
 0x2bf   : > { %v2283_v48 = vpop.f32.mrb[0].mxu0  ;;  %v2369_v37 = vpop.f32.mrb[0].mxu1 }
 0x2c0   : > { %v11189_v41 = vadd.f32 %v2283_v48, %v889_v34  ;;  %v12920_v42 = vadd.f32 %v2369_v37, %v897_v35  ;;  %v2285_v40 = vpop.f32.mrb[1].mxu0  ;;  %v2371_v43 = vpop.f32.mrb[1].mxu1 }
 0x2c1   : > { %v12922_v44 = vadd.f32 %v2371_v43, %v901_v36  ;;  %v2287_v45 = vpop.f32.mrb[2].mxu0  ;;  %v2373_v46 = vpop.f32.mrb[2].mxu1 }
 0x2c2   : > { %v11191_v47 = vadd.f32 %v2287_v45, %v889_v34  ;;  %v2289_v49 = vpop.f32.mrb[3].mxu0  ;;  %v2375_v50 = vpop.f32.mrb[3].mxu1  ;;  %2589 = vrot.lane.b32.xlu0 %v11189_v41, %s12417_s8  ;;  %v12925_v51 = vadd.f32 %v2373_v46, %v897_v35  ;;  %v2585_v8 = vmul.f32 %v11189_v41, %v12934_v38  ;;  %v893_v34 = vrot.slane %v12912_v33, %v12859_v60 }
 0x2c3   : > { %v12930_v53 = vadd.f32 %v2375_v50, %v901_v36  ;;  %v908_v45 = vsub.s32 5, %v12850_v56 }
 0x2c4   : > { %2591 = vrot.lane.b32.xlu1 %v11191_v47, %s12417_s8  ;;  %v2586_v21 = vmul.f32 %v11191_v47, %v12938_v55  ;;  %v11190_v43 = vadd.f32 %v2285_v40, %v893_v34  ;;  %v11192_v46 = vadd.f32 %v2289_v49, %v893_v34 }
 0x2c5   : > { %v909_v47 = vrot.slane %v12912_v33, %v908_v45 }
 0x2c6   : > { %2780 = vrot.lane.b32.xlu0 %v12925_v51, %s12417_s8  ;;  %v2588_v2 = vmul.f32 %v11192_v46, %v12938_v55 }
 0x2ca   : > { %2784 = vrot.lane.b32.xlu0 %v12930_v53, %s12417_s8 }
 0x334   : > { %v2590_v57 = vpop.permute.xlu0 %2589 }
 0x335   : > { %v2597_v9 = vmul.f32 %v2590_v57, %v12936_v54 }
 0x336   : > { %v2592_v13 = vpop.permute.xlu1 %2591 }
 0x337   : > { %v2601_v23 = vadd.f32 %v2597_v9, %v2585_v8  ;;  %v2598_v24 = vmul.f32 %v2592_v13, %v12940_v58 }
 0x339   : > { %v2602_v63 = vadd.f32 %v2598_v24, %v2586_v21  ;;  %v2605_v0 = vmul.f32 0.088388346, %v2601_v23 }
 0x33b   : > { %v2606_v1 = vmul.f32 0.088388346, %v2602_v63 }
 0x33d   : > { %v2609_v16 = vpack.c.bf16 %v2606_v1, %v2605_v0  ;;  %v2587_v0 = vmul.f32 %v11190_v43, %v12934_v38 }
 0x33f   : > { %v2455_v17 = vpop.f32.mrb[4].mxu0  ;;  %11167 = vmatprep.mubr.bf16.mxu0 %v2609_v16 }
 0x340   : > { %v11197_v20 = vadd.f32 %v2455_v17, %v905_v14  ;;  %v2541_v22 = vpop.f32.mrb[4].mxu1  ;;  %v2457_v25 = vpop.f32.mrb[5].mxu0 }
 0x341   : > { %v2543_v27 = vpop.f32.mrb[5].mxu1  ;;  %v2459_v28 = vpop.f32.mrb[6].mxu0  ;;  %v11201_v39 = vadd.f32 %v2541_v22, %v913_v18  ;;  %v11198_v50 = vadd.f32 %v2457_v25, %v909_v47 }
 0x342   : > { %v2545_v29 = vpop.f32.mrb[6].mxu1  ;;  %v2461_v30 = vpop.f32.mrb[7].mxu0  ;;  %2576 = vrot.lane.b32.xlu1 %v11197_v20, %s12417_s8  ;;  %v11202_v35 = vadd.f32 %v2543_v27, %v917_v26  ;;  %v11199_v36 = vadd.f32 %v2459_v28, %v905_v14  ;;  %v2574_v33 = vmul.f32 %v11197_v20, %v12934_v38 }
 0x343   : > { %v11203_v31 = vadd.f32 %v2545_v29, %v913_v18  ;;  %v2547_v32 = vpop.f32.mrb[7].mxu1  ;;  %v11200_v57 = vadd.f32 %v2461_v30, %v909_v47  ;;  %v2781_v17 = vpop.permute.xlu0 %2780  ;;  %v2763_v29 = vmul.f32 %v11198_v50, %v12934_v38  ;;  %v2777_v47 = vmul.f32 %v12930_v53, %v12938_v55 }
 0x344   : > { %v11204_v48 = vadd.f32 %v2547_v32, %v917_v26  ;;  %v2575_v9 = vmul.f32 %v11199_v36, %v12938_v55  ;;  %v2787_v28 = vmul.f32 %v2781_v17, %v12940_v58  ;;  %v2775_v32 = vmul.f32 %v12925_v51, %v12938_v55 }
 0x345   : > { %v2573_v37 = vpack.c.bf16 %v11203_v31, %v11201_v39  ;;  %v2764_v30 = vmul.f32 %v11200_v57, %v12938_v55  ;;  %v2776_v51 = vmul.f32 %v12922_v44, %v12934_v38 }
 0x346   : > { %v12955_v41 = vpack.c.bf16 %v11204_v48, %v11202_v35  ;;  %2578 = vrot.lane.b32.xlu1 %v11199_v36, %s12417_s8  ;;  %v2774_v36 = vmul.f32 %v12920_v42, %v12934_v38  ;;  %v12418_v38 = vmov 0  }
 0x347   : > { %11171 = vmatprep.subr.bf16.mxu1 %v2573_v37  ;;  %v2785_v31 = vpop.permute.xlu0 %2784 }
 0x348   : > { %11172 = vmatpush3.bf16.msra.mxu1 %v2573_v37  ;;  %v2791_v37 = vadd.f32 %v2787_v28, %v2775_v32 }
 0x349   : > { %11183 = vmatprep.subr.bf16.mxu1 %v12955_v41 }
 0x34a   : > { %2593 = vrot.lane.b32.xlu1 %v11190_v43, %s12417_s8  ;;  %v2789_v43 = vmul.f32 %v2785_v31, %v12940_v58 }
 0x34e   : > { %2595 = vrot.lane.b32.xlu1 %v11192_v46, %s12417_s8 }
 0x352   : > { %2765 = vrot.lane.b32.xlu1 %v11198_v50, %s12417_s8 }
 0x356   : > { %2767 = vrot.lane.b32.xlu1 %v11200_v57, %s12417_s8 }
 0x35a   : > { %2778 = vrot.lane.b32.xlu1 %v12920_v42, %s12417_s8  ;;  %v2795_v42 = vmul.f32 0.088388346, %v2791_v37 }
 0x35e   : > { %2782 = vrot.lane.b32.xlu1 %v12922_v44, %s12417_s8  ;;  %v2559_v44 = vld [vmem:[%s547_s2] sm:$0x1]  ;;  %s13242_s8 = scalar_lea.hbm %s13339_s29, %s11152_s12  ;;  %s12325_s2 = scalar_lea.vmem %s12324_s30, 1024 }
 0x35f   : > { %vm2560_vm0 = vcmp.gt.f32.partialorder %v2559_v44, 0.5  ;;  %p12327_p6 = scmp.lt.s32.totalorder %s12325_s2, %s12319_s20 }
 0x360   : > { %v2563_v55 = vsel %vm2560_vm0, 1, %v12418_v38 }
 0x361   : > { %p12328_p9 = por %p12327_p6, %p12326_p8 }
 0x363   : > { %p12329_p4 = pnand %p12328_p9, %p12322_p13 }
 0x3b4   : > { %v2577_v40 = vpop.permute.xlu1 %2576 }
 0x3b5   : > { %v2580_v8 = vmul.f32 %v2577_v40, %v12936_v54  ;;  %v2793_v40 = vadd.f32 %v2789_v43, %v2777_v47 }
 0x3b7   : > { %v2582_v21 = vadd.f32 %v2580_v8, %v2574_v33 }
 0x3b8   : > { %v2579_v49 = vpop.permute.xlu1 %2578 }
 0x3b9   : > { %v2581_v13 = vmul.f32 %v2579_v49, %v12940_v58 }
 0x3bb   : > { %v2583_v23 = vadd.f32 %v2581_v13, %v2575_v9  ;;  %v2797_v9 = vmul.f32 0.088388346, %v2793_v40 }
 0x3bc   : > { %v2594_v24 = vpop.permute.xlu1 %2593 }
 0x3bd   : > { %v2599_v62 = vmul.f32 %v2594_v24, %v12936_v54  ;;  %v2584_v63 = vpack.c.bf16 %v2583_v23, %v2582_v21  ;;  %v2558_v21 = vand.u32 127, %v596_v52  ;;  %v2556_v23 = vadd.s32 8, %v12850_v56 }
 0x3be   : > { %v12419_v24 = vmov -1e+09  }
 0x3bf   : > { %11165 = vmatprep.subr.bf16.mxu0 %v2584_v63  ;;  %v2603_v14 = vadd.f32 %v2599_v62, %v2587_v0  ;;  %vm2561_vm1 = vcmp.ge.s32.totalorder %v12850_v56, %v2558_v21  ;;  %vm2562_vm3 = vcmp.ge.s32.totalorder %v2556_v23, %v2558_v21 }
 0x3c0   : > { %11166 = vmatpush3.bf16.xpose.msra.mxu0 %v2584_v63  ;;  %v2596_v1 = vpop.permute.xlu1 %2595 }
 0x3c1   : > { %v2600_v15 = vmul.f32 %v2596_v1, %v12940_v58  ;;  %v2607_v20 = vmul.f32 0.088388346, %v2603_v14 }
 0x3c3   : > { %v2604_v16 = vadd.f32 %v2600_v15, %v2588_v2 }
 0x3c4   : > { %v2766_v18 = vpop.permute.xlu1 %2765 }
 0x3c5   : > { %v2608_v22 = vmul.f32 0.088388346, %v2604_v16  ;;  %v2769_v26 = vmul.f32 %v2766_v18, %v12936_v54 }
 0x3c7   : > { %v2610_v25 = vpack.c.bf16 %v2608_v22, %v2607_v20  ;;  %v2771_v34 = vadd.f32 %v2769_v26, %v2763_v29 }
 0x3c8   : > { %v2768_v27 = vpop.permute.xlu1 %2767 }
 0x3c9   : > { %v2770_v39 = vmul.f32 %v2768_v27, %v12940_v58  ;;  %11168 = vmatmul.mubr.bf16.vlgmr.msra.gmra.mrb[8].mxu0 %v2610_v25 }
 0x3cb   : > { %v2772_v35 = vadd.f32 %v2770_v39, %v2764_v30 }
 0x3cc   : > { %v2779_v48 = vpop.permute.xlu1 %2778 }
 0x3cd   : > { %v2786_v45 = vmul.f32 %v2779_v48, %v12936_v54  ;;  %v2773_v46 = vpack.c.bf16 %v2772_v35, %v2771_v34 }
 0x3cf   : > { %v2790_v50 = vadd.f32 %v2786_v45, %v2774_v36  ;;  %11177 = vmatprep.subr.bf16.mxu0 %v2773_v46 }
 0x3d0   : > { %v2783_v57 = vpop.permute.xlu1 %2782  ;;  %11178 = vmatpush3.bf16.xpose.msra.mxu0 %v2773_v46 }
 0x3d1   : > { %v2794_v8 = vmul.f32 0.088388346, %v2790_v50  ;;  %v2788_v58 = vmul.f32 %v2783_v57, %v12936_v54  ;;  %v2567_v54 = vrot.slane %v2563_v55, %v12862_v61 }
 0x3d3   : > { %v2792_v49 = vadd.f32 %v2788_v58, %v2776_v51  ;;  %v2798_v33 = vpack.c.bf16 %v2795_v42, %v2794_v8  ;;  %vm2568_vm2 = vcmp.eq.s32.totalorder %v2567_v54, 1 }
 0x3d4   : > { %vm2569_vm4 = vmand %vm2561_vm1, %vm2568_vm2 }
 0x3d5   : > { %v2796_v13 = vmul.f32 0.088388346, %v2792_v49  ;;  %11179 = vmatprep.mubr.bf16.mxu0 %v2798_v33  ;;  %vm2570_vm5 = vmand %vm2562_vm3, %vm2568_vm2  ;;  %v2571_v62 = vsel %vm2569_vm4, 0.0, %v12419_v24 }
 0x3d6   : > { %v2572_v1 = vsel %vm2570_vm5, 0.0, %v12419_v24 }
 0x3d7   : > { %v2799_v53 = vpack.c.bf16 %v2797_v9, %v2796_v13 }
 0x3d9   : > { %11180 = vmatmul.mubr.bf16.vlgmr.msra.gmra.mrb[12].mxu0 %v2799_v53 }
 0x49c   : > { %v11169_v63 = vpop.f32.mrb[8].mxu0 }
 0x49d   : > { %v2645_v0 = vpop.f32.mrb[9].mxu0  ;;  %v2654_v18 = vadd.f32 %v11169_v63, %v2571_v62 }
 0x49e   : > { %v2646_v2 = vadd.f32 %v2645_v0, %v2571_v62  ;;  %v11170_v14 = vpop.f32.mrb[10].mxu0 }
 0x49f   : > { %v2648_v15 = vpop.f32.mrb[11].mxu0  ;;  %v2657_v52 = vadd.f32 %v11170_v14, %v2572_v1  ;;  %v2667_v22 = vsel %vm2660_vm6, %v2654_v18, -inf }
 0x4a0   : > { %v2649_v16 = vadd.f32 %v2648_v15, %v2572_v1  ;;  %v2661_v17 = vsel %vm2660_vm6, %v2646_v2, -inf }
 0x4a1   : > { %2662 = vmax.xlane.f32.xlu1 %v2661_v17  ;;  %v2670_v20 = vsel %vm2660_vm6, %v2657_v52, -inf }
 0x4a2   : > { %v2664_v56 = vsel %vm2660_vm6, %v2649_v16, -inf }
 0x4a3   : > { %2665 = vmax.xlane.f32.xlu0 %v2664_v56 }
 0x4a5   : > { %2671 = vmax.xlane.f32.xlu1 %v2670_v20 }
 0x4a7   : > { %2668 = vmax.xlane.f32.xlu0 %v2667_v22 }
 0x4ac   : > { %v11181_v25 = vpop.f32.mrb[12].mxu0 }
 0x4ad   : > { %v2834_v26 = vpop.f32.mrb[13].mxu0  ;;  %v2843_v30 = vadd.f32 %v11181_v25, %v2571_v62 }
 0x4ae   : > { %v2835_v27 = vadd.f32 %v2834_v26, %v2571_v62  ;;  %v11182_v28 = vpop.f32.mrb[14].mxu0  ;;  %v11413_v26 = vld [vmem:[#allocation10] ss:$16 sps:$4 sm:$0xff]  }
 0x4af   : > { %v2837_v29 = vpop.f32.mrb[15].mxu0  ;;  %v2846_v32 = vadd.f32 %v11182_v28, %v2572_v1  ;;  %v2855_v35 = vsel %vm2660_vm6, %v2843_v30, -inf  ;;  %v11421_v28 = vld [vmem:[#allocation10 + $0x24] ss:$16 sps:$4 sm:$0xff]  }
 0x4b0   : > { %v2838_v39 = vadd.f32 %v2837_v29, %v2572_v1  ;;  %v2849_v31 = vsel %vm2660_vm6, %v2835_v27, -inf  ;;  %v11419_v29 = vld [vmem:[#allocation10 + $0x20] ss:$16 sps:$4 sm:$0xff]  }
 0x4b1   : > { %2850 = vmax.xlane.f32.xlu0 %v2849_v31  ;;  %v2858_v36 = vsel %vm2660_vm6, %v2846_v32, -inf  ;;  %v11433_v31 = vld [vmem:[#allocation10 + $0x64] ss:$16 sps:$4 sm:$0xff]  }
 0x4b2   : > { %v2852_v34 = vsel %vm2660_vm6, %v2838_v39, -inf }
 0x4b3   : > { %2853 = vmax.xlane.f32.xlu1 %v2852_v34  ;;  %v11439_v34 = vld [vmem:[#allocation10 + $0x84] ss:$16 sps:$4 sm:$0xff]  }
 0x4b5   : > { %2856 = vmax.xlane.f32.xlu0 %v2855_v35  ;;  %v11437_v35 = vld [vmem:[#allocation10 + $0x80] ss:$16 sps:$4 sm:$0xff]  }
 0x4b7   : > { %2859 = vmax.xlane.f32.xlu1 %v2858_v36  ;;  %v11445_v36 = vld [vmem:[#allocation10 + $0xa4] ss:$16 sps:$4 sm:$0xff]  }
 0x52e   : > { %v2663_v48 = vpop.xlane.xlu1 %2662 }
 0x52f   : > { %v2673_v37 = vsub.f32 %v2646_v2, %v2663_v48  ;;  %v11443_v48 = vld [vmem:[#allocation10 + $0xa0] ss:$16 sps:$4 sm:$0xff]  }
 0x530   : > { %v2666_v43 = vpop.xlane.xlu0 %2665 }
 0x531   : > { %v2677_v45 = vmul.f32 1.442695, %v2673_v37  ;;  %v2674_v46 = vsub.f32 %v2649_v16, %v2666_v43  ;;  %v11451_v37 = vld [vmem:[#allocation10 + $0xc4] ss:$16 sps:$4 sm:$0xff]   ;;  %v11449_v43 = vld [vmem:[#allocation10 + $0xc0] ss:$16 sps:$4 sm:$0xff]  }
 0x532   : > { %v2672_v47 = vpop.xlane.xlu1 %2671 }
 0x533   : > { %11993 = vpow2.f32 %v2677_v45  ;;  %v2679_v50 = vmul.f32 1.442695, %v2674_v46  ;;  %v2676_v51 = vsub.f32 %v2657_v52, %v2672_v47  ;;  %v11457_v45 = vld [vmem:[#allocation10 + $0xe4] ss:$16 sps:$4 sm:$0xff]   ;;  %v11455_v46 = vld [vmem:[#allocation10 + $0xe0] ss:$16 sps:$4 sm:$0xff]  }
 0x534   : > { %v2669_v57 = vpop.xlane.xlu0 %2668  ;;  %v11463_v47 = vld [vmem:[#allocation10 + $0x104] ss:$16 sps:$4 sm:$0xff]  }
 0x535   : > { %11995 = vpow2.f32 %v2679_v50  ;;  %v2683_v42 = vmul.f32 1.442695, %v2676_v51  ;;  %v2675_v40 = vsub.f32 %v2654_v18, %v2669_v57  ;;  %v11461_v50 = vld [vmem:[#allocation10 + $0x100] ss:$16 sps:$4 sm:$0xff]   ;;  %v11469_v51 = vld [vmem:[#allocation10 + $0x124] ss:$16 sps:$4 sm:$0xff]  }
 0x536   : > { %v11467_v57 = vld [vmem:[#allocation10 + $0x120] ss:$16 sps:$4 sm:$0xff]  }
 0x537   : > { %11997 = vpow2.f32 %v2683_v42  ;;  %v2681_v8 = vmul.f32 1.442695, %v2675_v40  ;;  %v11475_v42 = vld [vmem:[#allocation10 + $0x144] ss:$16 sps:$4 sm:$0xff]   ;;  %v11473_v40 = vld [vmem:[#allocation10 + $0x140] ss:$16 sps:$4 sm:$0xff]  }
 0x539   : > { %11999 = vpow2.f32 %v2681_v8  ;;  %v11481_v8 = vld [vmem:[#allocation10 + $0x164] ss:$16 sps:$4 sm:$0xff]  }
 0x53d   : > { %v13010_v58 = vpop.eup %11993 }
 0x53e   : > { %v2851_v49 = vpop.xlane.xlu0 %2850  ;;  %v2685_v33 = vsel %vm2660_vm6, %v13010_v58, 0.0 }
 0x53f   : > { %v13014_v9 = vpop.eup %11995  ;;  %v2861_v13 = vsub.f32 %v2835_v27, %v2851_v49  ;;  %2686 = vadd.xlane.f32.xlu0 %v2685_v33  ;;  %v11415_v27 = vld [vmem:[#allocation10 + $0x4] ss:$16 sps:$4 sm:$0xff]   ;;  %v11479_v49 = vld [vmem:[#allocation10 + $0x160] ss:$16 sps:$4 sm:$0xff]  }
 0x540   : > { %v2854_v53 = vpop.xlane.xlu1 %2853  ;;  %v2688_v44 = vsel %vm2660_vm6, %v13014_v9, 0.0  ;;  %3722 = vmatprep.subr.bf16.mxu0 %v11415_v27  ;;  %v11487_v33 = vld [vmem:[#allocation10 + $0x184] ss:$16 sps:$4 sm:$0xff]  }
 0x541   : > { %v13018_v38 = vpop.eup %11997  ;;  %v2865_v55 = vmul.f32 1.442695, %v2861_v13  ;;  %v2862_v21 = vsub.f32 %v2838_v39, %v2854_v53  ;;  %2689 = vadd.xlane.f32.xlu1 %v2688_v44  ;;  %3723 = vmatpush1.bf16.msra.mxu0 %v11413_v26  ;;  %v11425_v39 = vld [vmem:[#allocation10 + $0x40] ss:$16 sps:$4 sm:$0xff]   ;;  %v11493_v53 = vld [vmem:[#allocation10 + $0x1a4] ss:$16 sps:$4 sm:$0xff]  }
 0x542   : > { %v2857_v54 = vpop.xlane.xlu0 %2856  ;;  %v2694_v1 = vsel %vm2660_vm6, %v13018_v38, 0.0  ;;  %3724 = vmatprep.subr.bf16.mxu0 %v11421_v28  ;;  %v11485_v13 = vld [vmem:[#allocation10 + $0x180] ss:$16 sps:$4 sm:$0xff]  }
 0x543   : > { %v13020_v23 = vpop.eup %11999  ;;  %12001 = vpow2.f32 %v2865_v55  ;;  %v2867_v24 = vmul.f32 1.442695, %v2862_v21  ;;  %v2863_v62 = vsub.f32 %v2843_v30, %v2857_v54  ;;  %v11427_v30 = vld [vmem:[#allocation10 + $0x44] ss:$16 sps:$4 sm:$0xff]   ;;  %v11491_v44 = vld [vmem:[#allocation10 + $0x1a0] ss:$16 sps:$4 sm:$0xff]  }
 0x544   : > { %v2860_v63 = vpop.xlane.xlu1 %2859  ;;  %v2691_v0 = vsel %vm2660_vm6, %v13020_v23, 0.0  ;;  %v11499_v55 = vld [vmem:[#allocation10 + $0x1c4] ss:$16 sps:$4 sm:$0xff]   ;;  %v11497_v21 = vld [vmem:[#allocation10 + $0x1c0] ss:$16 sps:$4 sm:$0xff]  }
 0x545   : > { %12003 = vpow2.f32 %v2867_v24  ;;  %v2869_v2 = vmul.f32 1.442695, %v2863_v62  ;;  %v2864_v14 = vsub.f32 %v2846_v32, %v2860_v63  ;;  %2692 = vadd.xlane.f32.xlu0 %v2691_v0  ;;  %2695 = vadd.xlane.f32.xlu1 %v2694_v1  ;;  %v11431_v32 = vld [vmem:[#allocation10 + $0x60] ss:$16 sps:$4 sm:$0xff]  }
 0x546   : > { %3725 = vmatpush1.bf16.msra.mxu0 %v11419_v29 }
 0x547   : > { %12005 = vpow2.f32 %v2869_v2  ;;  %v2871_v15 = vmul.f32 1.442695, %v2864_v14  ;;  %3726 = vmatprep.subr.bf16.mxu0 %v11427_v30  ;;  %v11418_v30 = vld [vmem:[#allocation10 + $0xc] ss:$16 sps:$4 sm:$0xff]  }
 0x549   : > { %12007 = vpow2.f32 %v2871_v15 }
 0x54a   : > { %3727 = vmatpush1.bf16.msra.mxu0 %v11425_v39 }
 0x54b   : > { %3728 = vmatprep.subr.bf16.mxu0 %v11433_v31 }
 0x54d   : > { %v13026_v52 = vpop.eup %12001 }
 0x54e   : > { %v2873_v16 = vsel %vm2660_vm6, %v13026_v52, 0.0  ;;  %3729 = vmatpush1.bf16.msra.mxu0 %v11431_v32 }
 0x54f   : > { %v13030_v17 = vpop.eup %12003  ;;  %2874 = vadd.xlane.f32.xlu0 %v2873_v16  ;;  %3730 = vmatprep.subr.bf16.mxu0 %v11439_v34 }
 0x550   : > { %v2876_v18 = vsel %vm2660_vm6, %v13030_v17, 0.0 }
 0x551   : > { %v13034_v56 = vpop.eup %12005  ;;  %2877 = vadd.xlane.f32.xlu1 %v2876_v18 }
 0x552   : > { %v2879_v20 = vsel %vm2660_vm6, %v13034_v56, 0.0  ;;  %3731 = vmatpush1.bf16.msra.mxu0 %v11437_v35 }
 0x553   : > { %v13038_v22 = vpop.eup %12007  ;;  %2880 = vadd.xlane.f32.xlu0 %v2879_v20  ;;  %3732 = vmatprep.subr.bf16.mxu0 %v11445_v36 }
 0x554   : > { %v2882_v25 = vsel %vm2660_vm6, %v13038_v22, 0.0 }
 0x555   : > { %2883 = vadd.xlane.f32.xlu1 %v2882_v25 }
 0x556   : > { %3733 = vmatpush1.bf16.msra.mxu0 %v11443_v48  ;;  %v11416_v48 = vld [vmem:[#allocation10 + $0x8] ss:$16 sps:$4 sm:$0xff]  }
 0x557   : > { %3734 = vmatprep.subr.bf16.mxu0 %v11451_v37 }
 0x55a   : > { %3735 = vmatpush1.bf16.msra.mxu0 %v11449_v43  ;;  %v11424_v43 = vld [vmem:[#allocation10 + $0x2c] ss:$16 sps:$4 sm:$0xff]  }
 0x55b   : > { %3736 = vmatprep.subr.bf16.mxu0 %v11457_v45  ;;  %v11436_v45 = vld [vmem:[#allocation10 + $0x6c] ss:$16 sps:$4 sm:$0xff]  }
 0x55e   : > { %3737 = vmatpush1.bf16.msra.mxu0 %v11455_v46  ;;  %v11434_v46 = vld [vmem:[#allocation10 + $0x68] ss:$16 sps:$4 sm:$0xff]  }
 0x55f   : > { %3738 = vmatprep.subr.bf16.mxu0 %v11463_v47  ;;  %v11448_v47 = vld [vmem:[#allocation10 + $0xac] ss:$16 sps:$4 sm:$0xff]  }
 0x562   : > { %3739 = vmatpush1.bf16.msra.mxu0 %v11461_v50  ;;  %v11446_v50 = vld [vmem:[#allocation10 + $0xa8] ss:$16 sps:$4 sm:$0xff]  }
 0x563   : > { %3740 = vmatprep.subr.bf16.mxu0 %v11469_v51  ;;  %v11454_v51 = vld [vmem:[#allocation10 + $0xcc] ss:$16 sps:$4 sm:$0xff]  }
 0x566   : > { %3741 = vmatpush1.bf16.msra.mxu0 %v11467_v57  ;;  %v11452_v57 = vld [vmem:[#allocation10 + $0xc8] ss:$16 sps:$4 sm:$0xff]  }
 0x567   : > { %3742 = vmatprep.subr.bf16.mxu0 %v11475_v42  ;;  %v11460_v42 = vld [vmem:[#allocation10 + $0xec] ss:$16 sps:$4 sm:$0xff]  }
 0x56a   : > { %3743 = vmatpush1.bf16.msra.mxu0 %v11473_v40  ;;  %v11458_v40 = vld [vmem:[#allocation10 + $0xe8] ss:$16 sps:$4 sm:$0xff]  }
 0x56b   : > { %3744 = vmatprep.subr.bf16.mxu0 %v11481_v8  ;;  %v11466_v8 = vld [vmem:[#allocation10 + $0x10c] ss:$16 sps:$4 sm:$0xff]  }
 0x56e   : > { %3745 = vmatpush1.bf16.msra.mxu0 %v11479_v49  ;;  %v11464_v49 = vld [vmem:[#allocation10 + $0x108] ss:$16 sps:$4 sm:$0xff]  }
 0x56f   : > { %3746 = vmatprep.subr.bf16.mxu0 %v11487_v33  ;;  %v11472_v33 = vld [vmem:[#allocation10 + $0x12c] ss:$16 sps:$4 sm:$0xff]  }
 0x572   : > { %3747 = vmatpush1.bf16.msra.mxu0 %v11485_v13  ;;  %v11470_v13 = vld [vmem:[#allocation10 + $0x128] ss:$16 sps:$4 sm:$0xff]  }
 0x573   : > { %3748 = vmatprep.subr.bf16.mxu0 %v11493_v53  ;;  %v11478_v53 = vld [vmem:[#allocation10 + $0x14c] ss:$16 sps:$4 sm:$0xff]  }
 0x576   : > { %3749 = vmatpush1.bf16.msra.mxu0 %v11491_v44  ;;  %v11476_v44 = vld [vmem:[#allocation10 + $0x148] ss:$16 sps:$4 sm:$0xff]  }
 0x577   : > { %3750 = vmatprep.subr.bf16.mxu0 %v11499_v55  ;;  %v11484_v55 = vld [vmem:[#allocation10 + $0x16c] ss:$16 sps:$4 sm:$0xff]  }
 0x57a   : > { %3751 = vmatpush1.bf16.msra.mxu0 %v11497_v21  ;;  %v11482_v21 = vld [vmem:[#allocation10 + $0x168] ss:$16 sps:$4 sm:$0xff]  }
 0x5cc   : > { %v2687_v54 = vpop.xlane.xlu0 %2686 }
 0x5cd   : > { %12009 = vrcp.f32 %v2687_v54  ;;  %v11490_v54 = vld [vmem:[#allocation10 + $0x18c] ss:$16 sps:$4 sm:$0xff]  }
 0x5ce   : > { %v2690_v24 = vpop.xlane.xlu1 %2689 }
 0x5cf   : > { %12011 = vrcp.f32 %v2690_v24  ;;  %v11488_v24 = vld [vmem:[#allocation10 + $0x188] ss:$16 sps:$4 sm:$0xff]  }
 0x5d2   : > { %v2693_v62 = vpop.xlane.xlu0 %2692  ;;  %v2696_v63 = vpop.xlane.xlu1 %2695 }
 0x5d3   : > { %12013 = vrcp.f32 %v2693_v62  ;;  %v11496_v62 = vld [vmem:[#allocation10 + $0x1ac] ss:$16 sps:$4 sm:$0xff]  }
 0x5d4   : > { %12015 = vrcp.f32 %v2696_v63  ;;  %v11494_v63 = vld [vmem:[#allocation10 + $0x1a8] ss:$16 sps:$4 sm:$0xff]  }
 0x5d7   : > { %v12010_v0 = vpop.eup %12009 }
 0x5d8   : > { %v2701_v2 = vmul.f32 %v12010_v0, %v13010_v58  ;;  %v11502_v0 = vld [vmem:[#allocation10 + $0x1cc] ss:$16 sps:$4 sm:$0xff]  }
 0x5d9   : > { %v12012_v1 = vpop.eup %12011 }
 0x5da   : > { %v2702_v14 = vmul.f32 %v12012_v1, %v13014_v9  ;;  %v11500_v1 = vld [vmem:[#allocation10 + $0x1c8] ss:$16 sps:$4 sm:$0xff]  }
 0x5dc   : > { %v2875_v15 = vpop.xlane.xlu0 %2874  ;;  %v2705_v16 = vpack.c.bf16 %v2702_v14, %v2701_v2  ;;  %v11505_v2 = vld [vmem:[#allocation10 + $0x1e4] ss:$16 sps:$4 sm:$0xff]   ;;  %v11508_v14 = vld [vmem:[#allocation10 + $0x1ec] ss:$16 sps:$4 sm:$0xff]  }
 0x5dd   : > { %v12014_v18 = vpop.eup %12013  ;;  %12017 = vrcp.f32 %v2875_v15  ;;  %v11503_v15 = vld [vmem:[#allocation10 + $0x1e0] ss:$16 sps:$4 sm:$0xff]   ;;  %3752 = vmatprep.subr.bf16.mxu0 %v11505_v2  ;;  %v11565_v2 = vld [vmem:[#allocation10 + $0x324] ss:$16 sps:$4 sm:$0xff]  }
 0x5de   : > { %v12016_v20 = vpop.eup %12015  ;;  %v2703_v25 = vmul.f32 %v12014_v18, %v13020_v23  ;;  %11173 = vmatprep.mubr.msk.bf16.mxu1 %vm2660_vm6, %v2705_v16  ;;  %v2878_v26 = vpop.xlane.xlu1 %2877  ;;  %v11506_v16 = vld [vmem:[#allocation10 + $0x1e8] ss:$16 sps:$4 sm:$0xff]   ;;  %3753 = vmatpush1.bf16.msra.mxu0 %v11503_v15  ;;  %v11511_v18 = vld [vmem:[#allocation10 + $0x204] ss:$16 sps:$4 sm:$0xff]   ;;  %v11563_v15 = vld [vmem:[#allocation10 + $0x320] ss:$16 sps:$4 sm:$0xff]  }
 0x5df   : > { %v2704_v27 = vmul.f32 %v12016_v20, %v13018_v38  ;;  %12019 = vrcp.f32 %v2878_v26  ;;  %v11514_v20 = vld [vmem:[#allocation10 + $0x20c] ss:$16 sps:$4 sm:$0xff]   ;;  %3765 = vmatprep.subr.bf16.mxu0 %v11511_v18  ;;  %v11571_v18 = vld [vmem:[#allocation10 + $0x344] ss:$16 sps:$4 sm:$0xff]  }
 0x5e0   : > { %v2881_v28 = vpop.xlane.xlu0 %2880 }
 0x5e1   : > { %12021 = vrcp.f32 %v2881_v28  ;;  %v2706_v29 = vpack.c.bf16 %v2704_v27, %v2703_v25 }
 0x5e2   : > { %v2884_v58 = vpop.xlane.xlu1 %2883 }
 0x5e3   : > { %11174 = vmatmul.mubr.msk.bf16.vlgmr.msra.gmra.mrb[8].mxu1 %vm2660_vm6, %v2706_v29  ;;  %12023 = vrcp.f32 %v2884_v58  ;;  %v11512_v58 = vld [vmem:[#allocation10 + $0x208] ss:$16 sps:$4 sm:$0xff]  }
 0x5e4   : > { %11184 = vmatpush3.bf16.msra.mxu1 %v12955_v41  ;;  %v11422_v41 = vld [vmem:[#allocation10 + $0x28] ss:$16 sps:$4 sm:$0xff]  }
 0x5e5   : > { %3808 = vmatprep.subr.bf16.mxu1 %v11418_v30  ;;  %v11509_v30 = vld [vmem:[#allocation10 + $0x200] ss:$16 sps:$4 sm:$0xff]  }
 0x5e7   : > { %v12018_v9 = vpop.eup %12017 }
 0x5e8   : > { %v2889_v23 = vmul.f32 %v12018_v9, %v13026_v52  ;;  %v11430_v52 = vld [vmem:[#allocation10 + $0x4c] ss:$16 sps:$4 sm:$0xff]  }
 0x5e9   : > { %v12020_v39 = vpop.eup %12019 }
 0x5ea   : > { %v2890_v31 = vmul.f32 %v12020_v39, %v13030_v17  ;;  %v11428_v17 = vld [vmem:[#allocation10 + $0x48] ss:$16 sps:$4 sm:$0xff]   ;;  %v11517_v39 = vld [vmem:[#allocation10 + $0x224] ss:$16 sps:$4 sm:$0xff]  }
 0x5eb   : > { %v12022_v32 = vpop.eup %12021 }
 0x5ec   : > { %v2893_v38 = vpack.c.bf16 %v2890_v31, %v2889_v23  ;;  %v2891_v35 = vmul.f32 %v12022_v32, %v13034_v56  ;;  %v11442_v56 = vld [vmem:[#allocation10 + $0x8c] ss:$16 sps:$4 sm:$0xff]   ;;  %v11515_v31 = vld [vmem:[#allocation10 + $0x220] ss:$16 sps:$4 sm:$0xff]   ;;  %v11518_v32 = vld [vmem:[#allocation10 + $0x228] ss:$16 sps:$4 sm:$0xff]  }
 0x5ed   : > { %v12024_v34 = vpop.eup %12023  ;;  %v11520_v23 = vld [vmem:[#allocation10 + $0x22c] ss:$16 sps:$4 sm:$0xff]  }
 0x5ee   : > { %v2892_v36 = vmul.f32 %v12024_v34, %v13038_v22  ;;  %11185 = vmatprep.mubr.msk.bf16.mxu1 %vm2660_vm6, %v2893_v38  ;;  %v11440_v22 = vld [vmem:[#allocation10 + $0x88] ss:$16 sps:$4 sm:$0xff]   ;;  %v11523_v38 = vld [vmem:[#allocation10 + $0x244] ss:$16 sps:$4 sm:$0xff]   ;;  %v11526_v34 = vld [vmem:[#allocation10 + $0x24c] ss:$16 sps:$4 sm:$0xff]  }
 0x5f0   : > { %v2894_v37 = vpack.c.bf16 %v2892_v36, %v2891_v35  ;;  %v11521_v35 = vld [vmem:[#allocation10 + $0x240] ss:$16 sps:$4 sm:$0xff]   ;;  %v11524_v36 = vld [vmem:[#allocation10 + $0x248] ss:$16 sps:$4 sm:$0xff]  }
 0x5f2   : > { %11186 = vmatmul.mubr.msk.bf16.vlgmr.msra.gmra.mrb[12].mxu1 %vm2660_vm6, %v2894_v37  ;;  %v11532_v37 = vld [vmem:[#allocation10 + $0x26c] ss:$16 sps:$4 sm:$0xff]  }
 0x5f3   : > { %3809 = vmatpush1.bf16.msra.mxu1 %v11416_v48  ;;  %v11529_v48 = vld [vmem:[#allocation10 + $0x264] ss:$16 sps:$4 sm:$0xff]  }
 0x5f4   : > { %3810 = vmatprep.subr.bf16.mxu1 %v11424_v43 }
 0x5f7   : > { %3811 = vmatpush1.bf16.msra.mxu1 %v11422_v41  ;;  %v11527_v41 = vld [vmem:[#allocation10 + $0x260] ss:$16 sps:$4 sm:$0xff]  }
 0x5f8   : > { %3812 = vmatprep.subr.bf16.mxu1 %v11430_v52  ;;  %v11530_v52 = vld [vmem:[#allocation10 + $0x268] ss:$16 sps:$4 sm:$0xff]  }
 0x5fb   : > { %3813 = vmatpush1.bf16.msra.mxu1 %v11428_v17 }
 0x5fc   : > { %3814 = vmatprep.subr.bf16.mxu1 %v11436_v45  ;;  %v11535_v45 = vld [vmem:[#allocation10 + $0x284] ss:$16 sps:$4 sm:$0xff]  }
 0x5ff   : > { %3815 = vmatpush1.bf16.msra.mxu1 %v11434_v46 }
 0x600   : > { %3816 = vmatprep.subr.bf16.mxu1 %v11442_v56  ;;  %v11538_v56 = vld [vmem:[#allocation10 + $0x28c] ss:$16 sps:$4 sm:$0xff]  }
 0x603   : > { %3817 = vmatpush1.bf16.msra.mxu1 %v11440_v22 }
 0x604   : > { %3818 = vmatprep.subr.bf16.mxu1 %v11448_v47 }
 0x607   : > { %3819 = vmatpush1.bf16.msra.mxu1 %v11446_v50 }
 0x608   : > { %3820 = vmatprep.subr.bf16.mxu1 %v11454_v51  ;;  %v11533_v51 = vld [vmem:[#allocation10 + $0x280] ss:$16 sps:$4 sm:$0xff]  }
 0x60b   : > { %3821 = vmatpush1.bf16.msra.mxu1 %v11452_v57  ;;  %v11536_v57 = vld [vmem:[#allocation10 + $0x288] ss:$16 sps:$4 sm:$0xff]  }
 0x60c   : > { %3822 = vmatprep.subr.bf16.mxu1 %v11460_v42  ;;  %v11541_v42 = vld [vmem:[#allocation10 + $0x2a4] ss:$16 sps:$4 sm:$0xff]  }
 0x60f   : > { %3823 = vmatpush1.bf16.msra.mxu1 %v11458_v40  ;;  %v11544_v40 = vld [vmem:[#allocation10 + $0x2ac] ss:$16 sps:$4 sm:$0xff]  }
 0x610   : > { %3824 = vmatprep.subr.bf16.mxu1 %v11466_v8  ;;  %v11539_v8 = vld [vmem:[#allocation10 + $0x2a0] ss:$16 sps:$4 sm:$0xff]  }
 0x613   : > { %3825 = vmatpush1.bf16.msra.mxu1 %v11464_v49  ;;  %v11542_v49 = vld [vmem:[#allocation10 + $0x2a8] ss:$16 sps:$4 sm:$0xff]  }
 0x614   : > { %3826 = vmatprep.subr.bf16.mxu1 %v11472_v33  ;;  %v11547_v33 = vld [vmem:[#allocation10 + $0x2c4] ss:$16 sps:$4 sm:$0xff]  }
 0x617   : > { %3827 = vmatpush1.bf16.msra.mxu1 %v11470_v13  ;;  %v11550_v13 = vld [vmem:[#allocation10 + $0x2cc] ss:$16 sps:$4 sm:$0xff]  }
 0x618   : > { %3828 = vmatprep.subr.bf16.mxu1 %v11478_v53  ;;  %v11545_v53 = vld [vmem:[#allocation10 + $0x2c0] ss:$16 sps:$4 sm:$0xff]  }
 0x61b   : > { %3829 = vmatpush1.bf16.msra.mxu1 %v11476_v44  ;;  %v11548_v44 = vld [vmem:[#allocation10 + $0x2c8] ss:$16 sps:$4 sm:$0xff]  }
 0x61c   : > { %3830 = vmatprep.subr.bf16.mxu1 %v11484_v55  ;;  %v11553_v55 = vld [vmem:[#allocation10 + $0x2e4] ss:$16 sps:$4 sm:$0xff]  }
 0x61f   : > { %3831 = vmatpush1.bf16.msra.mxu1 %v11482_v21  ;;  %v11556_v21 = vld [vmem:[#allocation10 + $0x2ec] ss:$16 sps:$4 sm:$0xff]  }
 0x620   : > { %3832 = vmatprep.subr.bf16.mxu1 %v11490_v54  ;;  %v11551_v54 = vld [vmem:[#allocation10 + $0x2e0] ss:$16 sps:$4 sm:$0xff]  }
 0x623   : > { %3833 = vmatpush1.bf16.msra.mxu1 %v11488_v24  ;;  %v11554_v24 = vld [vmem:[#allocation10 + $0x2e8] ss:$16 sps:$4 sm:$0xff]  }
 0x624   : > { %3834 = vmatprep.subr.bf16.mxu1 %v11496_v62  ;;  %v11559_v62 = vld [vmem:[#allocation10 + $0x304] ss:$16 sps:$4 sm:$0xff]  }
 0x627   : > { %3835 = vmatpush1.bf16.msra.mxu1 %v11494_v63  ;;  %v11562_v63 = vld [vmem:[#allocation10 + $0x30c] ss:$16 sps:$4 sm:$0xff]  }
 0x628   : > { %3836 = vmatprep.subr.bf16.mxu1 %v11502_v0  ;;  %v11557_v0 = vld [vmem:[#allocation10 + $0x300] ss:$16 sps:$4 sm:$0xff]  }
 0x62b   : > { %3837 = vmatpush1.bf16.msra.mxu1 %v11500_v1  ;;  %v11560_v1 = vld [vmem:[#allocation10 + $0x308] ss:$16 sps:$4 sm:$0xff]  }
 0x62c   : > { %3838 = vmatprep.subr.bf16.mxu1 %v11508_v14  ;;  %v11568_v14 = vld [vmem:[#allocation10 + $0x32c] ss:$16 sps:$4 sm:$0xff]  }
 0x62f   : > { %3839 = vmatpush1.bf16.msra.mxu1 %v11506_v16  ;;  %v11566_v16 = vld [vmem:[#allocation10 + $0x328] ss:$16 sps:$4 sm:$0xff]  }
 0x630   : > { %3851 = vmatprep.subr.bf16.mxu1 %v11514_v20  ;;  %v11574_v20 = vld [vmem:[#allocation10 + $0x34c] ss:$16 sps:$4 sm:$0xff]  }
 0x6b6   : > { %v11175_v25 = vpop.f32.mrb[8].mxu1 }
 0x6b7   : > { %v2747_v26 = vpop.f32.mrb[9].mxu1 }
 0x6b8   : > { %v11176_v27 = vpop.f32.mrb[10].mxu1 }
 0x6b9   : > { %v2951_v28 = vpack.c.bf16 %v11176_v27, %v11175_v25  ;;  %v2750_v29 = vpop.f32.mrb[11].mxu1  ;;  %v11569_v25 = vld [vmem:[#allocation10 + $0x340] ss:$16 sps:$4 sm:$0xff]   ;;  %v11577_v27 = vld [vmem:[#allocation10 + $0x364] ss:$16 sps:$4 sm:$0xff]  }
 0x6ba   : > { %v2950_v9 = vpack.c.bf16 %v2750_v29, %v2747_v26  ;;  %v11572_v26 = vld [vmem:[#allocation10 + $0x348] ss:$16 sps:$4 sm:$0xff]   ;;  %v11575_v29 = vld [vmem:[#allocation10 + $0x360] ss:$16 sps:$4 sm:$0xff]  }
 0x6bb   : > { %3754 = vmatprep.mubr.bf16.mxu0 %v2951_v28  ;;  %3840 = vmatprep.mubr.bf16.mxu1 %v2951_v28  ;;  %v11580_v28 = vld [vmem:[#allocation10 + $0x36c] ss:$16 sps:$4 sm:$0xff]  }
 0x6bc   : > { %3755 = vmatmul.mubr.bf16.vlgmr.msra.gmra.mrb[16].mxu0 %v2950_v9  ;;  %3841 = vmatmul.mubr.bf16.vlgmr.msra.gmra.mrb[16].mxu1 %v2950_v9  ;;  %v11586_v9 = vld [vmem:[#allocation10 + $0x38c] ss:$16 sps:$4 sm:$0xff]  }
 0x6bd   : > { %3766 = vmatpush1.bf16.msra.mxu0 %v11509_v30  ;;  %3852 = vmatpush1.bf16.msra.mxu1 %v11512_v58  ;;  %v11578_v30 = vld [vmem:[#allocation10 + $0x368] ss:$16 sps:$4 sm:$0xff]   ;;  %v11583_v58 = vld [vmem:[#allocation10 + $0x384] ss:$16 sps:$4 sm:$0xff]  }
 0x6be   : > { %3767 = vmatprep.subr.bf16.mxu0 %v11517_v39  ;;  %3853 = vmatprep.subr.bf16.mxu1 %v11520_v23  ;;  %v11581_v39 = vld [vmem:[#allocation10 + $0x380] ss:$16 sps:$4 sm:$0xff]   ;;  %v11584_v23 = vld [vmem:[#allocation10 + $0x388] ss:$16 sps:$4 sm:$0xff]  }
 0x6c1   : > { %3768 = vmatpush1.bf16.msra.mxu0 %v11515_v31  ;;  %3854 = vmatpush1.bf16.msra.mxu1 %v11518_v32  ;;  %v11589_v31 = vld [vmem:[#allocation10 + $0x3a4] ss:$16 sps:$4 sm:$0xff]   ;;  %v11592_v32 = vld [vmem:[#allocation10 + $0x3ac] ss:$16 sps:$4 sm:$0xff]  }
 0x6c2   : > { %3769 = vmatprep.subr.bf16.mxu0 %v11523_v38  ;;  %3855 = vmatprep.subr.bf16.mxu1 %v11526_v34  ;;  %v11587_v38 = vld [vmem:[#allocation10 + $0x3a0] ss:$16 sps:$4 sm:$0xff]   ;;  %v11590_v34 = vld [vmem:[#allocation10 + $0x3a8] ss:$16 sps:$4 sm:$0xff]  }
 0x6c5   : > { %3770 = vmatpush1.bf16.msra.mxu0 %v11521_v35  ;;  %3856 = vmatpush1.bf16.msra.mxu1 %v11524_v36  ;;  %v11187_v43 = vpop.f32.mrb[12].mxu1  ;;  %v11595_v35 = vld [vmem:[#allocation10 + $0x3c4] ss:$16 sps:$4 sm:$0xff]   ;;  %v11598_v36 = vld [vmem:[#allocation10 + $0x3cc] ss:$16 sps:$4 sm:$0xff]  }
 0x6c6   : > { %v2935_v17 = vpop.f32.mrb[13].mxu1  ;;  %3771 = vmatprep.subr.bf16.mxu0 %v11529_v48  ;;  %3857 = vmatprep.subr.bf16.mxu1 %v11532_v37  ;;  %v11593_v48 = vld [vmem:[#allocation10 + $0x3c0] ss:$16 sps:$4 sm:$0xff]   ;;  %v11596_v37 = vld [vmem:[#allocation10 + $0x3c8] ss:$16 sps:$4 sm:$0xff]  }
 0x6c7   : > { %v11188_v46 = vpop.f32.mrb[14].mxu1 }
 0x6c8   : > { %v2953_v22 = vpack.c.bf16 %v11188_v46, %v11187_v43  ;;  %v2938_v47 = vpop.f32.mrb[15].mxu1  ;;  %v11601_v43 = vld [vmem:[#allocation10 + $0x3e4] ss:$16 sps:$4 sm:$0xff]  }
 0x6c9   : > { %3772 = vmatpush1.bf16.msra.mxu0 %v11527_v41  ;;  %3858 = vmatpush1.bf16.msra.mxu1 %v11530_v52  ;;  %v13055_v50 = vpack.c.bf16 %v2938_v47, %v2935_v17  ;;  %v11604_v41 = vld [vmem:[#allocation10 + $0x3ec] ss:$16 sps:$4 sm:$0xff]   ;;  %v11599_v52 = vld [vmem:[#allocation10 + $0x3e0] ss:$16 sps:$4 sm:$0xff]   ;;  %v11602_v17 = vld [vmem:[#allocation10 + $0x3e8] ss:$16 sps:$4 sm:$0xff]  }
 0x6ca   : > { %3773 = vmatprep.subr.bf16.mxu0 %v11535_v45  ;;  %3797 = vmatprep.mubr.bf16.mxu0 %v2953_v22  ;;  %v3968_v45 = vld [vmem:[#allocation11] sm:$0xff] }
 0x6cb   : > { %3859 = vmatprep.subr.bf16.mxu1 %v11538_v56  ;;  %3883 = vmatprep.mubr.bf16.mxu1 %v2953_v22  ;;  %v3972_v46 = vld [vmem:[#allocation11 + $0x20] sm:$0xff]  ;;  %v3969_v56 = vld [vmem:[#allocation11 + $0x8] sm:$0xff] }
 0x6cc   : > { %v10354_v22 = vcombine.low %v3968_v45, %v3972_v46  ;;  %v10355_v47 = vcombine.high %v3968_v45, %v3972_v46 }
 0x6cd   : > { %3774 = vmatpush1.bf16.msra.mxu0 %v11533_v51  ;;  %3860 = vmatpush1.bf16.msra.mxu1 %v11536_v57  ;;  %v3973_v51 = vld [vmem:[#allocation11 + $0x28] sm:$0xff]  ;;  %v3976_v57 = vld [vmem:[#allocation11 + $0x40] sm:$0xff] }
 0x6ce   : > { %3775 = vmatprep.subr.bf16.mxu0 %v11541_v42  ;;  %3861 = vmatprep.subr.bf16.mxu1 %v11544_v40  ;;  %v3980_v42 = vld [vmem:[#allocation11 + $0x60] sm:$0xff]  ;;  %v10356_v40 = vcombine.low %v3969_v56, %v3973_v51 }
 0x6d1   : > { %3776 = vmatpush1.bf16.msra.mxu0 %v11539_v8  ;;  %3862 = vmatpush1.bf16.msra.mxu1 %v11542_v49  ;;  %v10357_v8 = vcombine.high %v3969_v56, %v3973_v51  ;;  %v10363_v49 = vcombine.high %v3976_v57, %v3980_v42  ;;  %v4024_v56 = vld [vmem:[#allocation11 + $0x1c0] sm:$0xff]  ;;  %v4029_v51 = vld [vmem:[#allocation11 + $0x1e8] sm:$0xff] }
 0x6d2   : > { %3777 = vmatprep.subr.bf16.mxu0 %v11547_v33  ;;  %3863 = vmatprep.subr.bf16.mxu1 %v11550_v13  ;;  %v3977_v33 = vld [vmem:[#allocation11 + $0x48] sm:$0xff] }
 0x6d3   : > { %v3981_v13 = vld [vmem:[#allocation11 + $0x68] sm:$0xff] }
 0x6d5   : > { %3778 = vmatpush1.bf16.msra.mxu0 %v11545_v53  ;;  %3864 = vmatpush1.bf16.msra.mxu1 %v11548_v44  ;;  %v3984_v53 = vld [vmem:[#allocation11 + $0x80] sm:$0xff]  ;;  %v10365_v44 = vcombine.high %v3977_v33, %v3981_v13 }
 0x6d6   : > { %3779 = vmatprep.subr.bf16.mxu0 %v11553_v55  ;;  %3865 = vmatprep.subr.bf16.mxu1 %v11556_v21  ;;  %v3988_v55 = vld [vmem:[#allocation11 + $0xa0] sm:$0xff]  ;;  %v3985_v21 = vld [vmem:[#allocation11 + $0x88] sm:$0xff] }
 0x6d9   : > { %3780 = vmatpush1.bf16.msra.mxu0 %v11551_v54  ;;  %3866 = vmatpush1.bf16.msra.mxu1 %v11554_v24  ;;  %v3989_v54 = vld [vmem:[#allocation11 + $0xa8] sm:$0xff]  ;;  %v10364_v24 = vcombine.low %v3977_v33, %v3981_v13  ;;  %v4036_v33 = vld [vmem:[#allocation11 + $0x220] sm:$0xff] }
 0x6da   : > { %3781 = vmatprep.subr.bf16.mxu0 %v11559_v62  ;;  %3867 = vmatprep.subr.bf16.mxu1 %v11562_v63  ;;  %v10371_v62 = vcombine.high %v3984_v53, %v3988_v55  ;;  %v10373_v63 = vcombine.high %v3985_v21, %v3989_v54  ;;  %v4033_v13 = vld [vmem:[#allocation11 + $0x208] sm:$0xff] }
 0x6dd   : > { %3782 = vmatpush1.bf16.msra.mxu0 %v11557_v0  ;;  %3868 = vmatpush1.bf16.msra.mxu1 %v11560_v1  ;;  %v3992_v0 = vld [vmem:[#allocation11 + $0xc0] sm:$0xff] }
 0x6de   : > { %3783 = vmatprep.subr.bf16.mxu0 %v11565_v2  ;;  %3869 = vmatprep.subr.bf16.mxu1 %v11568_v14  ;;  %v3996_v1 = vld [vmem:[#allocation11 + $0xe0] sm:$0xff]  ;;  %v3993_v2 = vld [vmem:[#allocation11 + $0xc8] sm:$0xff] }
 0x6df   : > { %v3997_v14 = vld [vmem:[#allocation11 + $0xe8] sm:$0xff] }
 0x6e1   : > { %3784 = vmatpush1.bf16.msra.mxu0 %v11563_v15  ;;  %3870 = vmatpush1.bf16.msra.mxu1 %v11566_v16  ;;  %v10370_v15 = vcombine.low %v3984_v53, %v3988_v55  ;;  %v10372_v16 = vcombine.low %v3985_v21, %v3989_v54  ;;  %v4037_v53 = vld [vmem:[#allocation11 + $0x228] sm:$0xff] }
 0x6e2   : > { %3785 = vmatprep.subr.bf16.mxu0 %v11571_v18  ;;  %3871 = vmatprep.subr.bf16.mxu1 %v11574_v20  ;;  %v10379_v18 = vcombine.high %v3992_v0, %v3996_v1  ;;  %v10381_v20 = vcombine.high %v3993_v2, %v3997_v14  ;;  %v10421_v54 = vcombine.high %v4033_v13, %v4037_v53 }
 0x6e5   : > { %3786 = vmatpush1.bf16.msra.mxu0 %v11569_v25  ;;  %3872 = vmatpush1.bf16.msra.mxu1 %v11572_v26  ;;  %v4000_v25 = vld [vmem:[#allocation11 + $0x100] sm:$0xff] }
 0x6e6   : > { %3787 = vmatprep.subr.bf16.mxu0 %v11577_v27  ;;  %3873 = vmatprep.subr.bf16.mxu1 %v11580_v28  ;;  %v4004_v26 = vld [vmem:[#allocation11 + $0x120] sm:$0xff]  ;;  %v4001_v27 = vld [vmem:[#allocation11 + $0x108] sm:$0xff] }
 0x6e7   : > { %v4005_v28 = vld [vmem:[#allocation11 + $0x128] sm:$0xff] }
 0x6e9   : > { %3788 = vmatpush1.bf16.msra.mxu0 %v11575_v29  ;;  %3874 = vmatpush1.bf16.msra.mxu1 %v11578_v30  ;;  %v10378_v29 = vcombine.low %v3992_v0, %v3996_v1  ;;  %v10380_v30 = vcombine.low %v3993_v2, %v3997_v14  ;;  %v10420_v1 = vcombine.low %v4033_v13, %v4037_v53 }
 0x6ea   : > { %3789 = vmatprep.subr.bf16.mxu0 %v11583_v58  ;;  %3875 = vmatprep.subr.bf16.mxu1 %v11586_v9  ;;  %v10387_v58 = vcombine.high %v4000_v25, %v4004_v26  ;;  %v10389_v9 = vcombine.high %v4001_v27, %v4005_v28 }
 0x6ed   : > { %3790 = vmatpush1.bf16.msra.mxu0 %v11581_v39  ;;  %3876 = vmatpush1.bf16.msra.mxu1 %v11584_v23  ;;  %v4008_v39 = vld [vmem:[#allocation11 + $0x140] sm:$0xff] }
 0x6ee   : > { %3791 = vmatprep.subr.bf16.mxu0 %v11589_v31  ;;  %3877 = vmatprep.subr.bf16.mxu1 %v11592_v32  ;;  %v4012_v23 = vld [vmem:[#allocation11 + $0x160] sm:$0xff]  ;;  %v4009_v31 = vld [vmem:[#allocation11 + $0x148] sm:$0xff] }
 0x6ef   : > { %v4013_v32 = vld [vmem:[#allocation11 + $0x168] sm:$0xff] }
 0x6f1   : > { %3792 = vmatpush1.bf16.msra.mxu0 %v11587_v38  ;;  %3878 = vmatpush1.bf16.msra.mxu1 %v11590_v34  ;;  %v10386_v38 = vcombine.low %v4000_v25, %v4004_v26  ;;  %v10388_v34 = vcombine.low %v4001_v27, %v4005_v28 }
 0x6f2   : > { %3793 = vmatprep.subr.bf16.mxu0 %v11595_v35  ;;  %3879 = vmatprep.subr.bf16.mxu1 %v11598_v36  ;;  %v10395_v35 = vcombine.high %v4008_v39, %v4012_v23  ;;  %v10397_v36 = vcombine.high %v4009_v31, %v4013_v32 }
 0x6f5   : > { %3794 = vmatpush1.bf16.msra.mxu0 %v11593_v48  ;;  %3880 = vmatpush1.bf16.msra.mxu1 %v11596_v37  ;;  %v4016_v48 = vld [vmem:[#allocation11 + $0x180] sm:$0xff] }
 0x6f6   : > { %3795 = vmatprep.subr.bf16.mxu0 %v11601_v43  ;;  %3881 = vmatprep.subr.bf16.mxu1 %v11604_v41  ;;  %v4020_v37 = vld [vmem:[#allocation11 + $0x1a0] sm:$0xff]  ;;  %v4017_v43 = vld [vmem:[#allocation11 + $0x188] sm:$0xff] }
 0x6f7   : > { %v4021_v41 = vld [vmem:[#allocation11 + $0x1a8] sm:$0xff]  ;;  %v10403_v45 = vcombine.high %v4016_v48, %v4020_v37 }
 0x6f8   : > { %v10405_v46 = vcombine.high %v4017_v43, %v4021_v41 }
 0x6f9   : > { %3796 = vmatpush1.bf16.msra.mxu0 %v11599_v52  ;;  %3882 = vmatpush1.bf16.msra.mxu1 %v11602_v17  ;;  %v10394_v52 = vcombine.low %v4008_v39, %v4012_v23  ;;  %v10396_v17 = vcombine.low %v4009_v31, %v4013_v32 }
 0x6fa   : > { %5504 = vmatprep.subr.bf16.mxu0 %v10355_v47  ;;  %5590 = vmatprep.subr.bf16.mxu1 %v10357_v8  ;;  %v4025_v47 = vld [vmem:[#allocation11 + $0x1c8] sm:$0xff] }
 0x6fb   : > { %v10413_v8 = vcombine.high %v4025_v47, %v4029_v51  ;;  %v10412_v55 = vcombine.low %v4025_v47, %v4029_v51 }
 0x6fc   : > { %3798 = vmatmul.mubr.bf16.vlgmr.msra.gmra.mrb[16].mxu0 %v13055_v50  ;;  %3884 = vmatmul.mubr.bf16.vlgmr.msra.gmra.mrb[16].mxu1 %v13055_v50  ;;  %v10362_v50 = vcombine.low %v3976_v57, %v3980_v42  ;;  %v10402_v57 = vcombine.low %v4016_v48, %v4020_v37  ;;  %v10404_v42 = vcombine.low %v4017_v43, %v4021_v41 }
 0x6fd   : > { %5505 = vmatpush1.bf16.msra.mxu0 %v10354_v22  ;;  %5591 = vmatpush1.bf16.msra.mxu1 %v10356_v40  ;;  %v4028_v22 = vld [vmem:[#allocation11 + $0x1e0] sm:$0xff] }
 0x6fe   : > { %5506 = vmatprep.subr.bf16.mxu0 %v10363_v49  ;;  %5592 = vmatprep.subr.bf16.mxu1 %v10365_v44  ;;  %v10411_v40 = vcombine.high %v4024_v56, %v4028_v22  ;;  %v4032_v49 = vld [vmem:[#allocation11 + $0x200] sm:$0xff]  ;;  %v10410_v44 = vcombine.low %v4024_v56, %v4028_v22 }
 0x6ff   : > { %v10419_v21 = vcombine.high %v4032_v49, %v4036_v33  ;;  %v10418_v0 = vcombine.low %v4032_v49, %v4036_v33  ;;  %v4061_v49 = vld [vmem:[#allocation11 + $0x2e8] sm:$0xff] }
 0x701   : > { %5507 = vmatpush1.bf16.msra.mxu0 %v10362_v50  ;;  %5593 = vmatpush1.bf16.msra.mxu1 %v10364_v24  ;;  %v4040_v50 = vld [vmem:[#allocation11 + $0x240] sm:$0xff] }
 0x702   : > { %5508 = vmatprep.subr.bf16.mxu0 %v10371_v62  ;;  %5594 = vmatprep.subr.bf16.mxu1 %v10373_v63  ;;  %v4044_v24 = vld [vmem:[#allocation11 + $0x260] sm:$0xff]  ;;  %v4041_v62 = vld [vmem:[#allocation11 + $0x248] sm:$0xff] }
 0x703   : > { %v4045_v63 = vld [vmem:[#allocation11 + $0x268] sm:$0xff]  ;;  %v10427_v2 = vcombine.high %v4040_v50, %v4044_v24  ;;  %v10426_v25 = vcombine.low %v4040_v50, %v4044_v24 }
 0x704   : > { %v10429_v14 = vcombine.high %v4041_v62, %v4045_v63  ;;  %v10428_v26 = vcombine.low %v4041_v62, %v4045_v63  ;;  %v4069_v50 = vld [vmem:[#allocation11 + $0x328] sm:$0xff] }
 0x705   : > { %5509 = vmatpush1.bf16.msra.mxu0 %v10370_v15  ;;  %5595 = vmatpush1.bf16.msra.mxu1 %v10372_v16  ;;  %v4048_v15 = vld [vmem:[#allocation11 + $0x280] sm:$0xff] }
 0x706   : > { %5510 = vmatprep.subr.bf16.mxu0 %v10379_v18  ;;  %5596 = vmatprep.subr.bf16.mxu1 %v10381_v20  ;;  %v4052_v16 = vld [vmem:[#allocation11 + $0x2a0] sm:$0xff]  ;;  %v4049_v18 = vld [vmem:[#allocation11 + $0x288] sm:$0xff] }
 0x707   : > { %v4053_v20 = vld [vmem:[#allocation11 + $0x2a8] sm:$0xff]  ;;  %v10435_v27 = vcombine.high %v4048_v15, %v4052_v16 }
 0x708   : > { %v10437_v28 = vcombine.high %v4049_v18, %v4053_v20 }
 0x709   : > { %5511 = vmatpush1.bf16.msra.mxu0 %v10378_v29  ;;  %5597 = vmatpush1.bf16.msra.mxu1 %v10380_v30  ;;  %v10434_v29 = vcombine.low %v4048_v15, %v4052_v16  ;;  %v10436_v30 = vcombine.low %v4049_v18, %v4053_v20  ;;  %v4077_v15 = vld [vmem:[#allocation11 + $0x368] sm:$0xff]  ;;  %v4080_v16 = vld [vmem:[#allocation11 + $0x380] sm:$0xff] }
 0x70a   : > { %5512 = vmatprep.subr.bf16.mxu0 %v10387_v58  ;;  %5598 = vmatprep.subr.bf16.mxu1 %v10389_v9  ;;  %v4084_v18 = vld [vmem:[#allocation11 + $0x3a0] sm:$0xff] }
 0x70d   : > { %5513 = vmatpush1.bf16.msra.mxu0 %v10386_v38  ;;  %5599 = vmatpush1.bf16.msra.mxu1 %v10388_v34 }
 0x70e   : > { %5514 = vmatprep.subr.bf16.mxu0 %v10395_v35  ;;  %5600 = vmatprep.subr.bf16.mxu1 %v10397_v36 }
 0x711   : > { %5515 = vmatpush1.bf16.msra.mxu0 %v10394_v52  ;;  %5601 = vmatpush1.bf16.msra.mxu1 %v10396_v17 }
 0x712   : > { %5516 = vmatprep.subr.bf16.mxu0 %v10403_v45  ;;  %5602 = vmatprep.subr.bf16.mxu1 %v10405_v46 }
 0x715   : > { %5517 = vmatpush1.bf16.msra.mxu0 %v10402_v57  ;;  %5603 = vmatpush1.bf16.msra.mxu1 %v10404_v42  ;;  %v4056_v42 = vld [vmem:[#allocation11 + $0x2c0] sm:$0xff] }
 0x716   : > { %5518 = vmatprep.subr.bf16.mxu0 %v10411_v40  ;;  %5604 = vmatprep.subr.bf16.mxu1 %v10413_v8  ;;  %v4057_v40 = vld [vmem:[#allocation11 + $0x2c8] sm:$0xff] }
 0x717   : > { %v10444_v13 = vcombine.low %v4057_v40, %v4061_v49  ;;  %v10445_v53 = vcombine.high %v4057_v40, %v4061_v49  ;;  %v3934_v40 = vld [vmem:[%s13338_s28] sm:$0xf] }
 0x718   : > { %v3943_v49 = vrot.slane %v3934_v40, %v12859_v60 }
 0x719   : > { %5519 = vmatpush1.bf16.msra.mxu0 %v10410_v44  ;;  %5605 = vmatpush1.bf16.msra.mxu1 %v10412_v55  ;;  %v4064_v44 = vld [vmem:[#allocation11 + $0x300] sm:$0xff] }
 0x71a   : > { %5520 = vmatprep.subr.bf16.mxu0 %v10419_v21  ;;  %5606 = vmatprep.subr.bf16.mxu1 %v10421_v54  ;;  %v4068_v55 = vld [vmem:[#allocation11 + $0x320] sm:$0xff]  ;;  %v4065_v21 = vld [vmem:[#allocation11 + $0x308] sm:$0xff] }
 0x71b   : > { %v10451_v54 = vcombine.high %v4064_v44, %v4068_v55  ;;  %v10450_v24 = vcombine.low %v4064_v44, %v4068_v55  ;;  %v10452_v62 = vcombine.low %v4065_v21, %v4069_v50  ;;  %v10453_v63 = vcombine.high %v4065_v21, %v4069_v50 }
 0x71d   : > { %5521 = vmatpush1.bf16.msra.mxu0 %v10418_v0  ;;  %5607 = vmatpush1.bf16.msra.mxu1 %v10420_v1  ;;  %v4072_v0 = vld [vmem:[#allocation11 + $0x340] sm:$0xff] }
 0x71e   : > { %5522 = vmatprep.subr.bf16.mxu0 %v10427_v2  ;;  %5608 = vmatprep.subr.bf16.mxu1 %v10429_v14  ;;  %v4076_v1 = vld [vmem:[#allocation11 + $0x360] sm:$0xff]  ;;  %v4073_v2 = vld [vmem:[#allocation11 + $0x348] sm:$0xff] }
 0x71f   : > { %v10459_v14 = vcombine.high %v4072_v0, %v4076_v1  ;;  %v10458_v20 = vcombine.low %v4072_v0, %v4076_v1 }
 0x721   : > { %5523 = vmatpush1.bf16.msra.mxu0 %v10426_v25  ;;  %5609 = vmatpush1.bf16.msra.mxu1 %v10428_v26  ;;  %v10461_v25 = vcombine.high %v4073_v2, %v4077_v15  ;;  %v4081_v26 = vld [vmem:[#allocation11 + $0x388] sm:$0xff] }
 0x722   : > { %5524 = vmatprep.subr.bf16.mxu0 %v10435_v27  ;;  %5610 = vmatprep.subr.bf16.mxu1 %v10437_v28  ;;  %v4085_v27 = vld [vmem:[#allocation11 + $0x3a8] sm:$0xff]  ;;  %v10460_v28 = vcombine.low %v4073_v2, %v4077_v15 }
 0x725   : > { %5525 = vmatpush1.bf16.msra.mxu0 %v10434_v29  ;;  %5611 = vmatpush1.bf16.msra.mxu1 %v10436_v30  ;;  %v10467_v29 = vcombine.high %v4080_v16, %v4084_v18  ;;  %v10469_v30 = vcombine.high %v4081_v26, %v4085_v27 }
 0x726   : > { %5612 = vmatprep.subr.bf16.mxu1 %v10445_v53 }
 0x729   : > { %5613 = vmatpush1.bf16.msra.mxu1 %v10444_v13  ;;  %v3939_v13 = vrot.slane %v3934_v40, %v12862_v61 }
 0x72a   : > { %5614 = vmatprep.subr.bf16.mxu1 %v10453_v63 }
 0x72d   : > { %5615 = vmatpush1.bf16.msra.mxu1 %v10452_v62 }
 0x72e   : > { %5616 = vmatprep.subr.bf16.mxu1 %v10461_v25 }
 0x731   : > { %5617 = vmatpush1.bf16.msra.mxu1 %v10460_v28  ;;  %v4112_v28 = vld [vmem:[#allocation11 + $0x480] sm:$0xff] }
 0x732   : > { %5618 = vmatprep.subr.bf16.mxu1 %v10469_v30 }
 0x7cf   : > { %v3799_v58 = vpop.f32.mrb[16].mxu0  ;;  %v3885_v9 = vpop.f32.mrb[16].mxu1 }
 0x7d0   : > { %v13060_v39 = vadd.f32 %v3799_v58, %v12801_v3  ;;  %v3801_v23 = vpop.f32.mrb[17].mxu0  ;;  %v3887_v31 = vpop.f32.mrb[17].mxu1  ;;  %v13063_v32 = vadd.f32 %v3885_v9, %v12805_v5  ;;  %v4088_v58 = vld [vmem:[#allocation11 + $0x3c0] sm:$0xff] }
 0x7d1   : > { %v13066_v38 = vadd.f32 %v3801_v23, %v12803_v4  ;;  %v3803_v34 = vpop.f32.mrb[18].mxu0  ;;  %v3889_v35 = vpop.f32.mrb[18].mxu1  ;;  %v13076_v41 = vadd.f32 %v3887_v31, %v12807_v6  ;;  %v4092_v9 = vld [vmem:[#allocation11 + $0x3e0] sm:$0xff]  ;;  %v4089_v23 = vld [vmem:[#allocation11 + $0x3c8] sm:$0xff] }
 0x7d2   : > { %v3902_v36 = vmul.f32 %v13060_v39, %v13060_v39  ;;  %v13071_v48 = vadd.f32 %v3803_v34, %v12809_v10  ;;  %v3805_v37 = vpop.f32.mrb[19].mxu0  ;;  %v3891_v43 = vpop.f32.mrb[19].mxu1  ;;  %v13079_v5 = vadd.f32 %v3889_v35, %v12813_v12  ;;  %v3904_v10 = vmul.f32 %v13063_v32, %v13063_v32  ;;  %v4093_v31 = vld [vmem:[#allocation11 + $0x3e8] sm:$0xff] }
 0x7d3   : > { %v3903_v3 = vmul.f32 %v13066_v38, %v13066_v38  ;;  %v13082_v4 = vadd.f32 %v3805_v37, %v12811_v11  ;;  %v13091_v45 = vadd.f32 %v3891_v43, %v12821_v19  ;;  %v3905_v11 = vmul.f32 %v13076_v41, %v13076_v41  ;;  %v4060_v19 = vld [vmem:[#allocation11 + $0x2e0] sm:$0xff] }
 0x7d4   : > { %v3906_v52 = vmul.f32 %v13071_v48, %v13071_v48  ;;  %v3908_v12 = vmul.f32 %v13079_v5, %v13079_v5  ;;  %v10443_v8 = vcombine.high %v4056_v42, %v4060_v19  ;;  %v10442_v33 = vcombine.low %v4056_v42, %v4060_v19 }
 0x7d5   : > { %v3907_v17 = vmul.f32 %v13082_v4, %v13082_v4  ;;  %v3910_v6 = vadd.f32 %v3903_v3, %v3902_v36  ;;  %v3909_v47 = vmul.f32 %v13091_v45, %v13091_v45  ;;  %v10466_v34 = vcombine.low %v4080_v16, %v4084_v18  ;;  %v4108_v16 = vld [vmem:[#allocation11 + $0x460] sm:$0xff]  ;;  %v4105_v18 = vld [vmem:[#allocation11 + $0x448] sm:$0xff] }
 0x7d6   : > { %5526 = vmatprep.subr.bf16.mxu0 %v10443_v8  ;;  %v10468_v35 = vcombine.low %v4081_v26, %v4085_v27  ;;  %v10475_v36 = vcombine.high %v4088_v58, %v4092_v9  ;;  %v10477_v37 = vcombine.high %v4089_v23, %v4093_v31  ;;  %v10474_v43 = vcombine.low %v4088_v58, %v4092_v9  ;;  %v4116_v9 = vld [vmem:[#allocation11 + $0x4a0] sm:$0xff] }
 0x7d7   : > { %v3911_v46 = vadd.f32 %v3910_v6, %v3904_v10  ;;  %v3915_v56 = vadd.f32 %v3907_v17, %v3906_v52  ;;  %5527 = vmatpush1.bf16.msra.mxu0 %v10442_v33  ;;  %v10476_v3 = vcombine.low %v4089_v23, %v4093_v31  ;;  %v4096_v52 = vld [vmem:[#allocation11 + $0x400] sm:$0xff]  ;;  %v4097_v17 = vld [vmem:[#allocation11 + $0x408] sm:$0xff]  ;;  %v3947_v33 = vrot.slane %v3934_v40, %v12856_v59 }
 0x7d8   : > { %5528 = vmatprep.subr.bf16.mxu0 %v10451_v54  ;;  %5619 = vmatpush1.bf16.msra.mxu1 %v10468_v35  ;;  %v4100_v10 = vld [vmem:[#allocation11 + $0x420] sm:$0xff]  ;;  %v3951_v54 = vrot.slane %v3934_v40, %v12869_v7  ;;  %v4109_v7 = vld [vmem:[#allocation11 + $0x468] sm:$0xff] }
 0x7d9   : > { %v3912_v22 = vadd.f32 %v3911_v46, %v3905_v11  ;;  %v3916_v51 = vadd.f32 %v3915_v56, %v3908_v12  ;;  %5620 = vmatprep.subr.bf16.mxu1 %v10477_v37  ;;  %v10483_v6 = vcombine.high %v4096_v52, %v4100_v10  ;;  %v4101_v12 = vld [vmem:[#allocation11 + $0x428] sm:$0xff]  ;;  %v10482_v11 = vcombine.low %v4096_v52, %v4100_v10  ;;  %v4124_v52 = vld [vmem:[#allocation11 + $0x4e0] sm:$0xff] }
 0x7da   : > { %v10484_v46 = vcombine.low %v4097_v17, %v4101_v12  ;;  %v10485_v56 = vcombine.high %v4097_v17, %v4101_v12  ;;  %v10493_v58 = vcombine.high %v4105_v18, %v4109_v7  ;;  %v4113_v23 = vld [vmem:[#allocation11 + $0x488] sm:$0xff]  ;;  %v10499_v37 = vcombine.high %v4112_v28, %v4116_v9 }
 0x7db   : > { %3913 = vadd.xlane.f32.xlu0 %v3912_v22  ;;  %v3917_v57 = vadd.f32 %v3916_v51, %v3909_v47  ;;  %5529 = vmatpush1.bf16.msra.mxu0 %v10450_v24  ;;  %v4117_v31 = vld [vmem:[#allocation11 + $0x4a8] sm:$0xff] }
 0x7dc   : > { %5530 = vmatprep.subr.bf16.mxu0 %v10459_v14  ;;  %5621 = vmatpush1.bf16.msra.mxu1 %v10476_v3  ;;  %v4104_v14 = vld [vmem:[#allocation11 + $0x440] sm:$0xff]  ;;  %v4121_v10 = vld [vmem:[#allocation11 + $0x4c8] sm:$0xff]  ;;  %v10500_v12 = vcombine.low %v4113_v23, %v4117_v31 }
 0x7dd   : > { %3918 = vadd.xlane.f32.xlu1 %v3917_v57  ;;  %5633 = vmatprep.subr.bf16.mxu1 %v10485_v56  ;;  %v10491_v30 = vcombine.high %v4104_v14, %v4108_v16  ;;  %v10490_v35 = vcombine.low %v4104_v14, %v4108_v16  ;;  %v4120_v3 = vld [vmem:[#allocation11 + $0x4c0] sm:$0xff]  ;;  %v4125_v17 = vld [vmem:[#allocation11 + $0x4e8] sm:$0xff] }
 0x7de   : > { %v4128_v56 = vld [vmem:[#allocation11 + $0x500] sm:$0xff]  ;;  %v4157_v14 = vld [vmem:[#allocation11 + $0x5e8] sm:$0xff] }
 0x7df   : > { %5531 = vmatpush1.bf16.msra.mxu0 %v10458_v20 }
 0x7e0   : > { %5532 = vmatprep.subr.bf16.mxu0 %v10467_v29 }
 0x7e3   : > { %5533 = vmatpush1.bf16.msra.mxu0 %v10466_v34 }
 0x7e4   : > { %5534 = vmatprep.subr.bf16.mxu0 %v10475_v36  ;;  %v10492_v36 = vcombine.low %v4105_v18, %v4109_v7 }
 0x7e7   : > { %5535 = vmatpush1.bf16.msra.mxu0 %v10474_v43  ;;  %v10501_v43 = vcombine.high %v4113_v23, %v4117_v31 }
 0x7e8   : > { %5547 = vmatprep.subr.bf16.mxu0 %v10483_v6  ;;  %v10498_v6 = vcombine.low %v4112_v28, %v4116_v9  ;;  %v4161_v28 = vld [vmem:[#allocation11 + $0x608] sm:$0xff] }
 0x868   : > { %v3914_v22 = vpop.xlane.xlu0 %3913 }
 0x869   : > { %v3920_v47 = vmul.f32 0.001953125, %v3914_v22  ;;  %v4132_v22 = vld [vmem:[#allocation11 + $0x520] sm:$0xff] }
 0x86a   : > { %v3919_v51 = vpop.xlane.xlu1 %3918 }
 0x86b   : > { %v3922_v57 = vadd.f32 1e-06, %v3920_v47  ;;  %v3921_v42 = vmul.f32 0.001953125, %v3919_v51  ;;  %v4129_v47 = vld [vmem:[#allocation11 + $0x508] sm:$0xff] }
 0x86c   : > { %v4133_v51 = vld [vmem:[#allocation11 + $0x528] sm:$0xff] }
 0x86d   : > { %12025 = vrsqrt.f32 %v3922_v57  ;;  %v3923_v19 = vadd.f32 1e-06, %v3921_v42  ;;  %v10506_v57 = vcombine.low %v4120_v3, %v4124_v52  ;;  %v10508_v42 = vcombine.low %v4121_v10, %v4125_v17 }
 0x86e   : > { %v10517_v40 = vcombine.high %v4129_v47, %v4133_v51 }
 0x86f   : > { %12027 = vrsqrt.f32 %v3923_v19  ;;  %v10515_v19 = vcombine.high %v4128_v56, %v4132_v22 }
 0x877   : > { %v12026_v8 = vpop.eup %12025 }
 0x878   : > { %v3927_v53 = vmul.f32 %v12026_v8, %v13066_v38  ;;  %v3926_v44 = vmul.f32 %v12026_v8, %v13060_v39  ;;  %v3928_v55 = vmul.f32 %v12026_v8, %v13063_v32  ;;  %v3929_v62 = vmul.f32 %v12026_v8, %v13076_v41  ;;  %v4136_v8 = vld [vmem:[#allocation11 + $0x540] sm:$0xff] }
 0x879   : > { %v12028_v21 = vpop.eup %12027 }
 0x87a   : > { %v3931_v50 = vmul.f32 %v12028_v21, %v13082_v4  ;;  %v3930_v24 = vmul.f32 %v12028_v21, %v13071_v48  ;;  %v3933_v60 = vmul.f32 %v12028_v21, %v13091_v45  ;;  %v3932_v59 = vmul.f32 %v12028_v21, %v13079_v5 }
 0x87b   : > { %v3958_v61 = vmul.f32 %v3947_v33, %v3928_v55  ;;  %v3957_v63 = vmul.f32 %v3943_v49, %v3927_v53  ;;  %v3956_v1 = vmul.f32 %v3939_v13, %v3926_v44  ;;  %v3959_v27 = vmul.f32 %v3951_v54, %v3929_v62  ;;  %v4149_v62 = vld [vmem:[#allocation11 + $0x5a8] sm:$0xff] }
 0x87c   : > { %v3961_v0 = vmul.f32 %v3943_v49, %v3931_v50  ;;  %v3960_v2 = vmul.f32 %v3939_v13, %v3930_v24  ;;  %v3963_v15 = vmul.f32 %v3951_v54, %v3933_v60  ;;  %v3962_v20 = vmul.f32 %v3947_v33, %v3932_v59  ;;  %v4140_v49 = vld [vmem:[#allocation11 + $0x560] sm:$0xff]  ;;  %v4137_v33 = vld [vmem:[#allocation11 + $0x548] sm:$0xff] }
 0x87d   : > { %v4141_v13 = vld [vmem:[#allocation11 + $0x568] sm:$0xff]  ;;  %v10514_v53 = vcombine.low %v4128_v56, %v4132_v22  ;;  %v10516_v44 = vcombine.low %v4129_v47, %v4133_v51  ;;  %v10523_v55 = vcombine.high %v4136_v8, %v4140_v49  ;;  %v4144_v54 = vld [vmem:[#allocation11 + $0x580] sm:$0xff]  ;;  %v10522_v60 = vcombine.low %v4136_v8, %v4140_v49 }
 0x87e   : > { %v13114_v25 = vpack.c.bf16 %v3961_v0, %v3957_v63  ;;  %v13116_v26 = vpack.c.bf16 %v3960_v2, %v3956_v1  ;;  %v13118_v29 = vpack.c.bf16 %v3962_v20, %v3958_v61  ;;  %v13124_v34 = vpack.c.bf16 %v3963_v15, %v3959_v27  ;;  %v4148_v50 = vld [vmem:[#allocation11 + $0x5a0] sm:$0xff]  ;;  %v4145_v24 = vld [vmem:[#allocation11 + $0x588] sm:$0xff] }
 0x87f   : > { %v10525_v21 = vcombine.high %v4137_v33, %v4141_v13  ;;  %v10524_v59 = vcombine.low %v4137_v33, %v4141_v13  ;;  %v10531_v61 = vcombine.high %v4144_v54, %v4148_v50  ;;  %v10533_v63 = vcombine.high %v4145_v24, %v4149_v62  ;;  %v4152_v0 = vld [vmem:[#allocation11 + $0x5c0] sm:$0xff]  ;;  %v4153_v2 = vld [vmem:[#allocation11 + $0x5c8] sm:$0xff] }
 0x880   : > { %5536 = vmatprep.mubr.bf16.mxu0 %v13114_v25  ;;  %5622 = vmatprep.mubr.bf16.mxu1 %v13114_v25  ;;  %v4156_v1 = vld [vmem:[#allocation11 + $0x5e0] sm:$0xff]  ;;  %v10530_v15 = vcombine.low %v4144_v54, %v4148_v50  ;;  %v10532_v16 = vcombine.low %v4145_v24, %v4149_v62  ;;  %v10541_v7 = vcombine.high %v4153_v2, %v4157_v14 }
 0x881   : > { %5537 = vmatmul.mubr.bf16.vlgmr.msra.gmra.mrb[20].mxu0 %v13116_v26  ;;  %5623 = vmatmul.mubr.bf16.vlgmr.msra.gmra.mrb[20].mxu1 %v13116_v26  ;;  %v10539_v18 = vcombine.high %v4152_v0, %v4156_v1  ;;  %v4160_v20 = vld [vmem:[#allocation11 + $0x600] sm:$0xff]  ;;  %v10540_v9 = vcombine.low %v4153_v2, %v4157_v14 }
 0x882   : > { %5548 = vmatpush1.bf16.msra.mxu0 %v10482_v11  ;;  %5634 = vmatpush1.bf16.msra.mxu1 %v10484_v46  ;;  %v10507_v11 = vcombine.high %v4120_v3, %v4124_v52  ;;  %v10509_v46 = vcombine.high %v4121_v10, %v4125_v17  ;;  %v4164_v27 = vld [vmem:[#allocation11 + $0x620] sm:$0xff] }
 0x883   : > { %5579 = vmatprep.mubr.bf16.mxu0 %v13124_v34  ;;  %5665 = vmatprep.mubr.bf16.mxu1 %v13124_v34  ;;  %v10547_v23 = vcombine.high %v4160_v20, %v4164_v27  ;;  %v10546_v3 = vcombine.low %v4160_v20, %v4164_v27 }
 0x884   : > { %5549 = vmatprep.subr.bf16.mxu0 %v10491_v30  ;;  %5635 = vmatprep.subr.bf16.mxu1 %v10493_v58  ;;  %v4165_v30 = vld [vmem:[#allocation11 + $0x628] sm:$0xff]  ;;  %v10538_v58 = vcombine.low %v4152_v0, %v4156_v1 }
 0x885   : > { %v10549_v31 = vcombine.high %v4161_v28, %v4165_v30  ;;  %v10548_v52 = vcombine.low %v4161_v28, %v4165_v30 }
 0x886   : > { %5550 = vmatpush1.bf16.msra.mxu0 %v10490_v35  ;;  %5636 = vmatpush1.bf16.msra.mxu1 %v10492_v36  ;;  %v4168_v35 = vld [vmem:[#allocation11 + $0x640] sm:$0xff] }
 0x887   : > { %5551 = vmatprep.subr.bf16.mxu0 %v10499_v37  ;;  %5637 = vmatprep.subr.bf16.mxu1 %v10501_v43  ;;  %v4172_v36 = vld [vmem:[#allocation11 + $0x660] sm:$0xff]  ;;  %v4169_v37 = vld [vmem:[#allocation11 + $0x648] sm:$0xff] }
 0x888   : > { %v4173_v43 = vld [vmem:[#allocation11 + $0x668] sm:$0xff]  ;;  %v10555_v10 = vcombine.high %v4168_v35, %v4172_v36  ;;  %v10554_v56 = vcombine.low %v4168_v35, %v4172_v36 }
 0x889   : > { %v10557_v17 = vcombine.high %v4169_v37, %v4173_v43  ;;  %v10556_v22 = vcombine.low %v4169_v37, %v4173_v43 }
 0x88a   : > { %5552 = vmatpush1.bf16.msra.mxu0 %v10498_v6  ;;  %5638 = vmatpush1.bf16.msra.mxu1 %v10500_v12  ;;  %v4176_v6 = vld [vmem:[#allocation11 + $0x680] sm:$0xff] }
 0x88b   : > { %5553 = vmatprep.subr.bf16.mxu0 %v10507_v11  ;;  %5639 = vmatprep.subr.bf16.mxu1 %v10509_v46  ;;  %v4180_v12 = vld [vmem:[#allocation11 + $0x6a0] sm:$0xff]  ;;  %v4177_v11 = vld [vmem:[#allocation11 + $0x688] sm:$0xff] }
 0x88c   : > { %v4181_v46 = vld [vmem:[#allocation11 + $0x6a8] sm:$0xff]  ;;  %v10563_v47 = vcombine.high %v4176_v6, %v4180_v12  ;;  %v10562_v8 = vcombine.low %v4176_v6, %v4180_v12 }
 0x88d   : > { %v10565_v51 = vcombine.high %v4177_v11, %v4181_v46  ;;  %v10564_v49 = vcombine.low %v4177_v11, %v4181_v46 }
 0x88e   : > { %5554 = vmatpush1.bf16.msra.mxu0 %v10506_v57  ;;  %5640 = vmatpush1.bf16.msra.mxu1 %v10508_v42  ;;  %v4184_v57 = vld [vmem:[#allocation11 + $0x6c0] sm:$0xff] }
 0x88f   : > { %5555 = vmatprep.subr.bf16.mxu0 %v10515_v19  ;;  %5641 = vmatprep.subr.bf16.mxu1 %v10517_v40  ;;  %v4188_v42 = vld [vmem:[#allocation11 + $0x6e0] sm:$0xff]  ;;  %v4185_v19 = vld [vmem:[#allocation11 + $0x6c8] sm:$0xff] }
 0x890   : > { %v4189_v40 = vld [vmem:[#allocation11 + $0x6e8] sm:$0xff]  ;;  %v10571_v33 = vcombine.high %v4184_v57, %v4188_v42  ;;  %v10570_v54 = vcombine.low %v4184_v57, %v4188_v42 }
 0x891   : > { %v10573_v13 = vcombine.high %v4185_v19, %v4189_v40  ;;  %v10572_v50 = vcombine.low %v4185_v19, %v4189_v40 }
 0x892   : > { %5556 = vmatpush1.bf16.msra.mxu0 %v10514_v53  ;;  %5642 = vmatpush1.bf16.msra.mxu1 %v10516_v44  ;;  %v4192_v53 = vld [vmem:[#allocation11 + $0x700] sm:$0xff] }
 0x893   : > { %5557 = vmatprep.subr.bf16.mxu0 %v10523_v55  ;;  %5643 = vmatprep.subr.bf16.mxu1 %v10525_v21  ;;  %v4196_v44 = vld [vmem:[#allocation11 + $0x720] sm:$0xff]  ;;  %v4193_v55 = vld [vmem:[#allocation11 + $0x708] sm:$0xff] }
 0x894   : > { %v4197_v21 = vld [vmem:[#allocation11 + $0x728] sm:$0xff]  ;;  %v10579_v24 = vcombine.high %v4192_v53, %v4196_v44  ;;  %v10578_v0 = vcombine.low %v4192_v53, %v4196_v44 }
 0x895   : > { %v10581_v62 = vcombine.high %v4193_v55, %v4197_v21  ;;  %v10580_v1 = vcombine.low %v4193_v55, %v4197_v21 }
 0x896   : > { %5558 = vmatpush1.bf16.msra.mxu0 %v10522_v60  ;;  %5644 = vmatpush1.bf16.msra.mxu1 %v10524_v59  ;;  %v4200_v60 = vld [vmem:[#allocation11 + $0x740] sm:$0xff] }
 0x897   : > { %5559 = vmatprep.subr.bf16.mxu0 %v10531_v61  ;;  %5645 = vmatprep.subr.bf16.mxu1 %v10533_v63  ;;  %v4204_v59 = vld [vmem:[#allocation11 + $0x760] sm:$0xff]  ;;  %v4201_v61 = vld [vmem:[#allocation11 + $0x748] sm:$0xff] }
 0x898   : > { %v4205_v63 = vld [vmem:[#allocation11 + $0x768] sm:$0xff]  ;;  %v10587_v2 = vcombine.high %v4200_v60, %v4204_v59  ;;  %v10586_v20 = vcombine.low %v4200_v60, %v4204_v59 }
 0x899   : > { %v10589_v14 = vcombine.high %v4201_v61, %v4205_v63  ;;  %v10588_v27 = vcombine.low %v4201_v61, %v4205_v63 }
 0x89a   : > { %5560 = vmatpush1.bf16.msra.mxu0 %v10530_v15  ;;  %5646 = vmatpush1.bf16.msra.mxu1 %v10532_v16  ;;  %v4208_v15 = vld [vmem:[#allocation11 + $0x780] sm:$0xff] }
 0x89b   : > { %5561 = vmatprep.subr.bf16.mxu0 %v10539_v18  ;;  %5647 = vmatprep.subr.bf16.mxu1 %v10541_v7  ;;  %v4212_v16 = vld [vmem:[#allocation11 + $0x7a0] sm:$0xff]  ;;  %v4209_v18 = vld [vmem:[#allocation11 + $0x788] sm:$0xff] }
 0x89c   : > { %v4213_v7 = vld [vmem:[#allocation11 + $0x7a8] sm:$0xff]  ;;  %v10595_v28 = vcombine.high %v4208_v15, %v4212_v16  ;;  %v10594_v35 = vcombine.low %v4208_v15, %v4212_v16 }
 0x89d   : > { %v10597_v30 = vcombine.high %v4209_v18, %v4213_v7  ;;  %v10596_v36 = vcombine.low %v4209_v18, %v4213_v7 }
 0x89e   : > { %5562 = vmatpush1.bf16.msra.mxu0 %v10538_v58  ;;  %5648 = vmatpush1.bf16.msra.mxu1 %v10540_v9  ;;  %v4216_v58 = vld [vmem:[#allocation11 + $0x7c0] sm:$0xff] }
 0x89f   : > { %5563 = vmatprep.subr.bf16.mxu0 %v10547_v23  ;;  %5649 = vmatprep.subr.bf16.mxu1 %v10549_v31  ;;  %v4220_v9 = vld [vmem:[#allocation11 + $0x7e0] sm:$0xff]  ;;  %v4217_v23 = vld [vmem:[#allocation11 + $0x7c8] sm:$0xff] }
 0x8a0   : > { %v4221_v31 = vld [vmem:[#allocation11 + $0x7e8] sm:$0xff]  ;;  %v10603_v37 = vcombine.high %v4216_v58, %v4220_v9  ;;  %v10602_v6 = vcombine.low %v4216_v58, %v4220_v9 }
 0x8a1   : > { %v10605_v43 = vcombine.high %v4217_v23, %v4221_v31  ;;  %v10604_v12 = vcombine.low %v4217_v23, %v4221_v31 }
 0x8a2   : > { %5564 = vmatpush1.bf16.msra.mxu0 %v10546_v3  ;;  %5650 = vmatpush1.bf16.msra.mxu1 %v10548_v52  ;;  %v3970_v3 = vld [vmem:[#allocation11 + $0x10] sm:$0xff] }
 0x8a3   : > { %5565 = vmatprep.subr.bf16.mxu0 %v10555_v10  ;;  %5651 = vmatprep.subr.bf16.mxu1 %v10557_v17  ;;  %v3974_v52 = vld [vmem:[#allocation11 + $0x30] sm:$0xff]  ;;  %v3971_v10 = vld [vmem:[#allocation11 + $0x18] sm:$0xff] }
 0x8a4   : > { %v3975_v17 = vld [vmem:[#allocation11 + $0x38] sm:$0xff]  ;;  %v10359_v11 = vcombine.high %v3970_v3, %v3974_v52  ;;  %v10358_v57 = vcombine.low %v3970_v3, %v3974_v52 }
 0x8a5   : > { %v10361_v46 = vcombine.high %v3971_v10, %v3975_v17  ;;  %v10360_v42 = vcombine.low %v3971_v10, %v3975_v17 }
 0x8a6   : > { %5566 = vmatpush1.bf16.msra.mxu0 %v10554_v56  ;;  %5652 = vmatpush1.bf16.msra.mxu1 %v10556_v22  ;;  %v3978_v56 = vld [vmem:[#allocation11 + $0x50] sm:$0xff] }
 0x8a7   : > { %5567 = vmatprep.subr.bf16.mxu0 %v10563_v47  ;;  %5653 = vmatprep.subr.bf16.mxu1 %v10565_v51  ;;  %v3982_v22 = vld [vmem:[#allocation11 + $0x70] sm:$0xff]  ;;  %v3979_v47 = vld [vmem:[#allocation11 + $0x58] sm:$0xff] }
 0x8a8   : > { %v3983_v51 = vld [vmem:[#allocation11 + $0x78] sm:$0xff]  ;;  %v10367_v19 = vcombine.high %v3978_v56, %v3982_v22  ;;  %v10366_v53 = vcombine.low %v3978_v56, %v3982_v22 }
 0x8a9   : > { %v10369_v40 = vcombine.high %v3979_v47, %v3983_v51  ;;  %v10368_v44 = vcombine.low %v3979_v47, %v3983_v51 }
 0x8aa   : > { %5568 = vmatpush1.bf16.msra.mxu0 %v10562_v8  ;;  %5654 = vmatpush1.bf16.msra.mxu1 %v10564_v49  ;;  %v3986_v8 = vld [vmem:[#allocation11 + $0x90] sm:$0xff] }
 0x8ab   : > { %5569 = vmatprep.subr.bf16.mxu0 %v10571_v33  ;;  %5655 = vmatprep.subr.bf16.mxu1 %v10573_v13  ;;  %v3990_v49 = vld [vmem:[#allocation11 + $0xb0] sm:$0xff]  ;;  %v3987_v33 = vld [vmem:[#allocation11 + $0x98] sm:$0xff] }
 0x8ac   : > { %v3991_v13 = vld [vmem:[#allocation11 + $0xb8] sm:$0xff]  ;;  %v10375_v55 = vcombine.high %v3986_v8, %v3990_v49  ;;  %v10374_v60 = vcombine.low %v3986_v8, %v3990_v49 }
 0x8ad   : > { %v10377_v21 = vcombine.high %v3987_v33, %v3991_v13  ;;  %v10376_v59 = vcombine.low %v3987_v33, %v3991_v13 }
 0x8ae   : > { %5570 = vmatpush1.bf16.msra.mxu0 %v10570_v54  ;;  %5656 = vmatpush1.bf16.msra.mxu1 %v10572_v50  ;;  %v3994_v54 = vld [vmem:[#allocation11 + $0xd0] sm:$0xff] }
 0x8af   : > { %5571 = vmatprep.subr.bf16.mxu0 %v10579_v24  ;;  %5657 = vmatprep.subr.bf16.mxu1 %v10581_v62  ;;  %v3998_v50 = vld [vmem:[#allocation11 + $0xf0] sm:$0xff]  ;;  %v3995_v24 = vld [vmem:[#allocation11 + $0xd8] sm:$0xff] }
 0x8b0   : > { %v3999_v62 = vld [vmem:[#allocation11 + $0xf8] sm:$0xff]  ;;  %v10383_v61 = vcombine.high %v3994_v54, %v3998_v50  ;;  %v10382_v15 = vcombine.low %v3994_v54, %v3998_v50 }
 0x8b1   : > { %v10385_v63 = vcombine.high %v3995_v24, %v3999_v62  ;;  %v10384_v16 = vcombine.low %v3995_v24, %v3999_v62 }
 0x8b2   : > { %5572 = vmatpush1.bf16.msra.mxu0 %v10578_v0  ;;  %5658 = vmatpush1.bf16.msra.mxu1 %v10580_v1  ;;  %v4002_v0 = vld [vmem:[#allocation11 + $0x110] sm:$0xff] }
 0x8b3   : > { %5573 = vmatprep.subr.bf16.mxu0 %v10587_v2  ;;  %5659 = vmatprep.subr.bf16.mxu1 %v10589_v14  ;;  %v4006_v1 = vld [vmem:[#allocation11 + $0x130] sm:$0xff]  ;;  %v4003_v2 = vld [vmem:[#allocation11 + $0x118] sm:$0xff] }
 0x8b4   : > { %v4007_v14 = vld [vmem:[#allocation11 + $0x138] sm:$0xff]  ;;  %v10391_v18 = vcombine.high %v4002_v0, %v4006_v1  ;;  %v10390_v58 = vcombine.low %v4002_v0, %v4006_v1 }
 0x8b5   : > { %v10393_v7 = vcombine.high %v4003_v2, %v4007_v14  ;;  %v10392_v9 = vcombine.low %v4003_v2, %v4007_v14 }
 0x8b6   : > { %5574 = vmatpush1.bf16.msra.mxu0 %v10586_v20  ;;  %5660 = vmatpush1.bf16.msra.mxu1 %v10588_v27  ;;  %v4010_v20 = vld [vmem:[#allocation11 + $0x150] sm:$0xff] }
 0x8b7   : > { %5575 = vmatprep.subr.bf16.mxu0 %v10595_v28  ;;  %5661 = vmatprep.subr.bf16.mxu1 %v10597_v30  ;;  %v4014_v27 = vld [vmem:[#allocation11 + $0x170] sm:$0xff]  ;;  %v4011_v28 = vld [vmem:[#allocation11 + $0x158] sm:$0xff] }
 0x8b8   : > { %v4015_v30 = vld [vmem:[#allocation11 + $0x178] sm:$0xff]  ;;  %v10399_v23 = vcombine.high %v4010_v20, %v4014_v27  ;;  %v10398_v3 = vcombine.low %v4010_v20, %v4014_v27 }
 0x8b9   : > { %v10401_v31 = vcombine.high %v4011_v28, %v4015_v30  ;;  %v10400_v52 = vcombine.low %v4011_v28, %v4015_v30 }
 0x8ba   : > { %5576 = vmatpush1.bf16.msra.mxu0 %v10594_v35  ;;  %5662 = vmatpush1.bf16.msra.mxu1 %v10596_v36  ;;  %v4018_v35 = vld [vmem:[#allocation11 + $0x190] sm:$0xff] }
 0x8bb   : > { %5577 = vmatprep.subr.bf16.mxu0 %v10603_v37  ;;  %5663 = vmatprep.subr.bf16.mxu1 %v10605_v43  ;;  %v4022_v36 = vld [vmem:[#allocation11 + $0x1b0] sm:$0xff]  ;;  %v4019_v37 = vld [vmem:[#allocation11 + $0x198] sm:$0xff] }
 0x8bc   : > { %v4023_v43 = vld [vmem:[#allocation11 + $0x1b8] sm:$0xff]  ;;  %v10407_v10 = vcombine.high %v4018_v35, %v4022_v36  ;;  %v10406_v56 = vcombine.low %v4018_v35, %v4022_v36 }
 0x8bd   : > { %v10409_v17 = vcombine.high %v4019_v37, %v4023_v43  ;;  %v10408_v22 = vcombine.low %v4019_v37, %v4023_v43 }
 0x8be   : > { %5578 = vmatpush1.bf16.msra.mxu0 %v10602_v6  ;;  %5664 = vmatpush1.bf16.msra.mxu1 %v10604_v12  ;;  %v4026_v6 = vld [vmem:[#allocation11 + $0x1d0] sm:$0xff] }
 0x8bf   : > { %5676 = vmatprep.subr.bf16.mxu0 %v10359_v11  ;;  %5762 = vmatprep.subr.bf16.mxu1 %v10361_v46  ;;  %v4030_v12 = vld [vmem:[#allocation11 + $0x1f0] sm:$0xff]  ;;  %v4027_v11 = vld [vmem:[#allocation11 + $0x1d8] sm:$0xff] }
 0x8c0   : > { %v4031_v46 = vld [vmem:[#allocation11 + $0x1f8] sm:$0xff]  ;;  %v10415_v47 = vcombine.high %v4026_v6, %v4030_v12  ;;  %v10414_v8 = vcombine.low %v4026_v6, %v4030_v12 }
 0x8c1   : > { %5580 = vmatmul.mubr.bf16.vlgmr.msra.gmra.mrb[20].mxu0 %v13118_v29  ;;  %5666 = vmatmul.mubr.bf16.vlgmr.msra.gmra.mrb[20].mxu1 %v13118_v29  ;;  %v10417_v51 = vcombine.high %v4027_v11, %v4031_v46  ;;  %v10416_v49 = vcombine.low %v4027_v11, %v4031_v46 }
 0x8c2   : > { %5677 = vmatpush1.bf16.msra.mxu0 %v10358_v57  ;;  %5708 = vmatprep.mubr.bf16.mxu0 %v13114_v25  ;;  %v4034_v57 = vld [vmem:[#allocation11 + $0x210] sm:$0xff] }
 0x8c3   : > { %5763 = vmatpush1.bf16.msra.mxu1 %v10360_v42  ;;  %5794 = vmatprep.mubr.bf16.mxu1 %v13114_v25  ;;  %v4038_v42 = vld [vmem:[#allocation11 + $0x230] sm:$0xff] }
 0x8c4   : > { %5678 = vmatprep.subr.bf16.mxu0 %v10367_v19  ;;  %5764 = vmatprep.subr.bf16.mxu1 %v10369_v40  ;;  %v4035_v19 = vld [vmem:[#allocation11 + $0x218] sm:$0xff]  ;;  %v10423_v33 = vcombine.high %v4034_v57, %v4038_v42  ;;  %v10422_v54 = vcombine.low %v4034_v57, %v4038_v42 }
 0x8c5   : > { %v4039_v40 = vld [vmem:[#allocation11 + $0x238] sm:$0xff] }
 0x8c6   : > { %5679 = vmatpush1.bf16.msra.mxu0 %v10366_v53  ;;  %v10425_v13 = vcombine.high %v4035_v19, %v4039_v40  ;;  %v4042_v53 = vld [vmem:[#allocation11 + $0x250] sm:$0xff]  ;;  %v10424_v50 = vcombine.low %v4035_v19, %v4039_v40 }
 0x8c7   : > { %5765 = vmatpush1.bf16.msra.mxu1 %v10368_v44  ;;  %5680 = vmatprep.subr.bf16.mxu0 %v10375_v55  ;;  %v4046_v44 = vld [vmem:[#allocation11 + $0x270] sm:$0xff]  ;;  %v4043_v55 = vld [vmem:[#allocation11 + $0x258] sm:$0xff] }
 0x8c8   : > { %5766 = vmatprep.subr.bf16.mxu1 %v10377_v21  ;;  %v4047_v21 = vld [vmem:[#allocation11 + $0x278] sm:$0xff]  ;;  %v10431_v24 = vcombine.high %v4042_v53, %v4046_v44  ;;  %v10430_v0 = vcombine.low %v4042_v53, %v4046_v44 }
 0x8c9   : > { %v10433_v62 = vcombine.high %v4043_v55, %v4047_v21  ;;  %v10432_v1 = vcombine.low %v4043_v55, %v4047_v21 }
 0x8ca   : > { %5681 = vmatpush1.bf16.msra.mxu0 %v10374_v60  ;;  %v4050_v60 = vld [vmem:[#allocation11 + $0x290] sm:$0xff] }
 0x8cb   : > { %5767 = vmatpush1.bf16.msra.mxu1 %v10376_v59  ;;  %5682 = vmatprep.subr.bf16.mxu0 %v10383_v61  ;;  %v4054_v59 = vld [vmem:[#allocation11 + $0x2b0] sm:$0xff]  ;;  %v4051_v61 = vld [vmem:[#allocation11 + $0x298] sm:$0xff] }
 0x8cc   : > { %5768 = vmatprep.subr.bf16.mxu1 %v10385_v63  ;;  %v4055_v63 = vld [vmem:[#allocation11 + $0x2b8] sm:$0xff]  ;;  %v10439_v2 = vcombine.high %v4050_v60, %v4054_v59  ;;  %v10438_v20 = vcombine.low %v4050_v60, %v4054_v59 }
 0x8cd   : > { %v10441_v14 = vcombine.high %v4051_v61, %v4055_v63  ;;  %v10440_v27 = vcombine.low %v4051_v61, %v4055_v63 }
 0x8ce   : > { %5683 = vmatpush1.bf16.msra.mxu0 %v10382_v15  ;;  %v4058_v15 = vld [vmem:[#allocation11 + $0x2d0] sm:$0xff] }
 0x8cf   : > { %5769 = vmatpush1.bf16.msra.mxu1 %v10384_v16  ;;  %5684 = vmatprep.subr.bf16.mxu0 %v10391_v18  ;;  %v4062_v16 = vld [vmem:[#allocation11 + $0x2f0] sm:$0xff]  ;;  %v4059_v18 = vld [vmem:[#allocation11 + $0x2d8] sm:$0xff] }
 0x8d0   : > { %5770 = vmatprep.subr.bf16.mxu1 %v10393_v7  ;;  %v4063_v7 = vld [vmem:[#allocation11 + $0x2f8] sm:$0xff]  ;;  %v10447_v28 = vcombine.high %v4058_v15, %v4062_v16  ;;  %v10446_v35 = vcombine.low %v4058_v15, %v4062_v16 }
 0x8d1   : > { %v10449_v30 = vcombine.high %v4059_v18, %v4063_v7  ;;  %v10448_v36 = vcombine.low %v4059_v18, %v4063_v7  ;;  %v4111_v15 = vld [vmem:[#allocation11 + $0x478] sm:$0xff]  ;;  %v4114_v7 = vld [vmem:[#allocation11 + $0x490] sm:$0xff] }
 0x8d2   : > { %5685 = vmatpush1.bf16.msra.mxu0 %v10390_v58  ;;  %v4066_v58 = vld [vmem:[#allocation11 + $0x310] sm:$0xff] }
 0x8d3   : > { %5771 = vmatpush1.bf16.msra.mxu1 %v10392_v9  ;;  %5686 = vmatprep.subr.bf16.mxu0 %v10399_v23  ;;  %v4070_v9 = vld [vmem:[#allocation11 + $0x330] sm:$0xff]  ;;  %v4067_v23 = vld [vmem:[#allocation11 + $0x318] sm:$0xff] }
 0x8d4   : > { %5772 = vmatprep.subr.bf16.mxu1 %v10401_v31  ;;  %v4071_v31 = vld [vmem:[#allocation11 + $0x338] sm:$0xff]  ;;  %v10455_v37 = vcombine.high %v4066_v58, %v4070_v9  ;;  %v10454_v6 = vcombine.low %v4066_v58, %v4070_v9 }
 0x8d5   : > { %v10457_v43 = vcombine.high %v4067_v23, %v4071_v31  ;;  %v10456_v12 = vcombine.low %v4067_v23, %v4071_v31 }
 0x8d6   : > { %5687 = vmatpush1.bf16.msra.mxu0 %v10398_v3  ;;  %v4074_v3 = vld [vmem:[#allocation11 + $0x350] sm:$0xff] }
 0x8d7   : > { %5773 = vmatpush1.bf16.msra.mxu1 %v10400_v52  ;;  %5688 = vmatprep.subr.bf16.mxu0 %v10407_v10  ;;  %v4078_v52 = vld [vmem:[#allocation11 + $0x370] sm:$0xff]  ;;  %v4075_v10 = vld [vmem:[#allocation11 + $0x358] sm:$0xff] }
 0x8d8   : > { %5774 = vmatprep.subr.bf16.mxu1 %v10409_v17  ;;  %v4079_v17 = vld [vmem:[#allocation11 + $0x378] sm:$0xff]  ;;  %v10463_v11 = vcombine.high %v4074_v3, %v4078_v52  ;;  %v10462_v57 = vcombine.low %v4074_v3, %v4078_v52 }
 0x8d9   : > { %v10465_v46 = vcombine.high %v4075_v10, %v4079_v17  ;;  %v10464_v42 = vcombine.low %v4075_v10, %v4079_v17 }
 0x8da   : > { %5689 = vmatpush1.bf16.msra.mxu0 %v10406_v56  ;;  %v4082_v56 = vld [vmem:[#allocation11 + $0x390] sm:$0xff] }
 0x8db   : > { %5775 = vmatpush1.bf16.msra.mxu1 %v10408_v22  ;;  %5690 = vmatprep.subr.bf16.mxu0 %v10415_v47  ;;  %v4086_v22 = vld [vmem:[#allocation11 + $0x3b0] sm:$0xff]  ;;  %v4083_v47 = vld [vmem:[#allocation11 + $0x398] sm:$0xff] }
 0x8dc   : > { %5776 = vmatprep.subr.bf16.mxu1 %v10417_v51  ;;  %v4087_v51 = vld [vmem:[#allocation11 + $0x3b8] sm:$0xff]  ;;  %v10471_v19 = vcombine.high %v4082_v56, %v4086_v22  ;;  %v10470_v53 = vcombine.low %v4082_v56, %v4086_v22 }
 0x8dd   : > { %v10473_v40 = vcombine.high %v4083_v47, %v4087_v51  ;;  %v10472_v44 = vcombine.low %v4083_v47, %v4087_v51 }
 0x8de   : > { %5691 = vmatpush1.bf16.msra.mxu0 %v10414_v8  ;;  %v4090_v8 = vld [vmem:[#allocation11 + $0x3d0] sm:$0xff] }
 0x8df   : > { %5777 = vmatpush1.bf16.msra.mxu1 %v10416_v49  ;;  %5692 = vmatprep.subr.bf16.mxu0 %v10423_v33  ;;  %v4094_v49 = vld [vmem:[#allocation11 + $0x3f0] sm:$0xff]  ;;  %v4091_v33 = vld [vmem:[#allocation11 + $0x3d8] sm:$0xff] }
 0x8e0   : > { %5778 = vmatprep.subr.bf16.mxu1 %v10425_v13  ;;  %v4095_v13 = vld [vmem:[#allocation11 + $0x3f8] sm:$0xff]  ;;  %v10479_v55 = vcombine.high %v4090_v8, %v4094_v49  ;;  %v10478_v60 = vcombine.low %v4090_v8, %v4094_v49 }
 0x8e1   : > { %v10481_v21 = vcombine.high %v4091_v33, %v4095_v13  ;;  %v10480_v59 = vcombine.low %v4091_v33, %v4095_v13 }
 0x8e2   : > { %5693 = vmatpush1.bf16.msra.mxu0 %v10422_v54  ;;  %v4098_v54 = vld [vmem:[#allocation11 + $0x410] sm:$0xff] }
 0x8e3   : > { %5779 = vmatpush1.bf16.msra.mxu1 %v10424_v50  ;;  %5694 = vmatprep.subr.bf16.mxu0 %v10431_v24  ;;  %v4102_v50 = vld [vmem:[#allocation11 + $0x430] sm:$0xff]  ;;  %v4099_v24 = vld [vmem:[#allocation11 + $0x418] sm:$0xff] }
 0x8e4   : > { %5780 = vmatprep.subr.bf16.mxu1 %v10433_v62  ;;  %v4103_v62 = vld [vmem:[#allocation11 + $0x438] sm:$0xff]  ;;  %v10487_v61 = vcombine.high %v4098_v54, %v4102_v50 }
 0x8e5   : > { %v10489_v63 = vcombine.high %v4099_v24, %v4103_v62  ;;  %v10488_v16 = vcombine.low %v4099_v24, %v4103_v62 }
 0x8e6   : > { %5695 = vmatpush1.bf16.msra.mxu0 %v10430_v0  ;;  %v4106_v0 = vld [vmem:[#allocation11 + $0x450] sm:$0xff] }
 0x8e7   : > { %5781 = vmatpush1.bf16.msra.mxu1 %v10432_v1  ;;  %5696 = vmatprep.subr.bf16.mxu0 %v10439_v2  ;;  %v4110_v1 = vld [vmem:[#allocation11 + $0x470] sm:$0xff]  ;;  %v10486_v2 = vcombine.low %v4098_v54, %v4102_v50 }
 0x8e8   : > { %5782 = vmatprep.subr.bf16.mxu1 %v10441_v14  ;;  %v4107_v14 = vld [vmem:[#allocation11 + $0x458] sm:$0xff]  ;;  %v10495_v18 = vcombine.high %v4106_v0, %v4110_v1  ;;  %v10494_v58 = vcombine.low %v4106_v0, %v4110_v1 }
 0x8e9   : > { %v10496_v9 = vcombine.low %v4107_v14, %v4111_v15 }
 0x8ea   : > { %5697 = vmatpush1.bf16.msra.mxu0 %v10438_v20  ;;  %v4118_v20 = vld [vmem:[#allocation11 + $0x4b0] sm:$0xff] }
 0x8eb   : > { %5783 = vmatpush1.bf16.msra.mxu1 %v10440_v27  ;;  %5698 = vmatprep.subr.bf16.mxu0 %v10447_v28  ;;  %v10497_v27 = vcombine.high %v4107_v14, %v4111_v15  ;;  %v4115_v28 = vld [vmem:[#allocation11 + $0x498] sm:$0xff]  ;;  %v10503_v23 = vcombine.high %v4114_v7, %v4118_v20  ;;  %v10502_v3 = vcombine.low %v4114_v7, %v4118_v20  ;;  %v4162_v15 = vld [vmem:[#allocation11 + $0x610] sm:$0xff] }
 0x8ec   : > { %5784 = vmatprep.subr.bf16.mxu1 %v10449_v30  ;;  %v4119_v30 = vld [vmem:[#allocation11 + $0x4b8] sm:$0xff] }
 0x8ed   : > { %v10505_v31 = vcombine.high %v4115_v28, %v4119_v30  ;;  %v10504_v52 = vcombine.low %v4115_v28, %v4119_v30  ;;  %v4167_v7 = vld [vmem:[#allocation11 + $0x638] sm:$0xff] }
 0x8ee   : > { %5699 = vmatpush1.bf16.msra.mxu0 %v10446_v35  ;;  %v4122_v35 = vld [vmem:[#allocation11 + $0x4d0] sm:$0xff] }
 0x8ef   : > { %5785 = vmatpush1.bf16.msra.mxu1 %v10448_v36  ;;  %5700 = vmatprep.subr.bf16.mxu0 %v10455_v37  ;;  %v4126_v36 = vld [vmem:[#allocation11 + $0x4f0] sm:$0xff]  ;;  %v4123_v37 = vld [vmem:[#allocation11 + $0x4d8] sm:$0xff] }
 0x8f0   : > { %5786 = vmatprep.subr.bf16.mxu1 %v10457_v43  ;;  %v4127_v43 = vld [vmem:[#allocation11 + $0x4f8] sm:$0xff]  ;;  %v10511_v10 = vcombine.high %v4122_v35, %v4126_v36  ;;  %v10510_v56 = vcombine.low %v4122_v35, %v4126_v36 }
 0x8f1   : > { %v10513_v17 = vcombine.high %v4123_v37, %v4127_v43  ;;  %v10512_v22 = vcombine.low %v4123_v37, %v4127_v43 }
 0x8f2   : > { %5701 = vmatpush1.bf16.msra.mxu0 %v10454_v6  ;;  %v4130_v6 = vld [vmem:[#allocation11 + $0x510] sm:$0xff] }
 0x8f3   : > { %5787 = vmatpush1.bf16.msra.mxu1 %v10456_v12  ;;  %5702 = vmatprep.subr.bf16.mxu0 %v10463_v11  ;;  %v4134_v12 = vld [vmem:[#allocation11 + $0x530] sm:$0xff]  ;;  %v4131_v11 = vld [vmem:[#allocation11 + $0x518] sm:$0xff] }
 0x8f4   : > { %5788 = vmatprep.subr.bf16.mxu1 %v10465_v46  ;;  %v4135_v46 = vld [vmem:[#allocation11 + $0x538] sm:$0xff]  ;;  %v10519_v47 = vcombine.high %v4130_v6, %v4134_v12  ;;  %v10518_v8 = vcombine.low %v4130_v6, %v4134_v12 }
 0x8f5   : > { %v10521_v51 = vcombine.high %v4131_v11, %v4135_v46  ;;  %v10520_v49 = vcombine.low %v4131_v11, %v4135_v46 }
 0x8f6   : > { %5703 = vmatpush1.bf16.msra.mxu0 %v10462_v57  ;;  %v4138_v57 = vld [vmem:[#allocation11 + $0x550] sm:$0xff] }
 0x8f7   : > { %5789 = vmatpush1.bf16.msra.mxu1 %v10464_v42  ;;  %5704 = vmatprep.subr.bf16.mxu0 %v10471_v19  ;;  %v4142_v42 = vld [vmem:[#allocation11 + $0x570] sm:$0xff]  ;;  %v4139_v19 = vld [vmem:[#allocation11 + $0x558] sm:$0xff] }
 0x8f8   : > { %5790 = vmatprep.subr.bf16.mxu1 %v10473_v40  ;;  %v4143_v40 = vld [vmem:[#allocation11 + $0x578] sm:$0xff]  ;;  %v10527_v33 = vcombine.high %v4138_v57, %v4142_v42  ;;  %v10526_v54 = vcombine.low %v4138_v57, %v4142_v42 }
 0x8f9   : > { %v10529_v13 = vcombine.high %v4139_v19, %v4143_v40  ;;  %v10528_v50 = vcombine.low %v4139_v19, %v4143_v40 }
 0x8fa   : > { %5705 = vmatpush1.bf16.msra.mxu0 %v10470_v53  ;;  %v4146_v53 = vld [vmem:[#allocation11 + $0x590] sm:$0xff] }
 0x8fb   : > { %5791 = vmatpush1.bf16.msra.mxu1 %v10472_v44  ;;  %5706 = vmatprep.subr.bf16.mxu0 %v10479_v55  ;;  %v4150_v44 = vld [vmem:[#allocation11 + $0x5b0] sm:$0xff]  ;;  %v4147_v55 = vld [vmem:[#allocation11 + $0x598] sm:$0xff] }
 0x8fc   : > { %5792 = vmatprep.subr.bf16.mxu1 %v10481_v21  ;;  %v4151_v21 = vld [vmem:[#allocation11 + $0x5b8] sm:$0xff]  ;;  %v10535_v24 = vcombine.high %v4146_v53, %v4150_v44  ;;  %v10534_v0 = vcombine.low %v4146_v53, %v4150_v44 }
 0x8fd   : > { %v10537_v62 = vcombine.high %v4147_v55, %v4151_v21  ;;  %v10536_v1 = vcombine.low %v4147_v55, %v4151_v21 }
 0x8fe   : > { %5707 = vmatpush1.bf16.msra.mxu0 %v10478_v60  ;;  %v4154_v60 = vld [vmem:[#allocation11 + $0x5d0] sm:$0xff] }
 0x8ff   : > { %5793 = vmatpush1.bf16.msra.mxu1 %v10480_v59  ;;  %5719 = vmatprep.subr.bf16.mxu0 %v10487_v61  ;;  %v4158_v59 = vld [vmem:[#allocation11 + $0x5f0] sm:$0xff]  ;;  %v4155_v61 = vld [vmem:[#allocation11 + $0x5d8] sm:$0xff] }
 0x900   : > { %5805 = vmatprep.subr.bf16.mxu1 %v10489_v63  ;;  %v4159_v63 = vld [vmem:[#allocation11 + $0x5f8] sm:$0xff]  ;;  %v10542_v20 = vcombine.low %v4154_v60, %v4158_v59 }
 0x901   : > { %5709 = vmatmul.mubr.bf16.vlgmr.msra.gmra.mrb[24].mxu0 %v13116_v26  ;;  %v10545_v14 = vcombine.high %v4155_v61, %v4159_v63 }
 0x902   : > { %5795 = vmatmul.mubr.bf16.vlgmr.msra.gmra.mrb[24].mxu1 %v13116_v26  ;;  %5720 = vmatpush1.bf16.msra.mxu0 %v10486_v2  ;;  %v10543_v2 = vcombine.high %v4154_v60, %v4158_v59 }
 0x903   : > { %5751 = vmatprep.mubr.bf16.mxu0 %v13124_v34  ;;  %5806 = vmatpush1.bf16.msra.mxu1 %v10488_v16  ;;  %v4166_v16 = vld [vmem:[#allocation11 + $0x630] sm:$0xff] }
 0x904   : > { %5837 = vmatprep.mubr.bf16.mxu1 %v13124_v34  ;;  %5721 = vmatprep.subr.bf16.mxu0 %v10495_v18  ;;  %v4163_v18 = vld [vmem:[#allocation11 + $0x618] sm:$0xff]  ;;  %v10551_v28 = vcombine.high %v4162_v15, %v4166_v16  ;;  %v10550_v35 = vcombine.low %v4162_v15, %v4166_v16 }
 0x905   : > { %5807 = vmatprep.subr.bf16.mxu1 %v10497_v27  ;;  %v10544_v27 = vcombine.low %v4155_v61, %v4159_v63  ;;  %v10553_v30 = vcombine.high %v4163_v18, %v4167_v7  ;;  %v10552_v36 = vcombine.low %v4163_v18, %v4167_v7 }
 0x906   : > { %5722 = vmatpush1.bf16.msra.mxu0 %v10494_v58  ;;  %v4170_v58 = vld [vmem:[#allocation11 + $0x650] sm:$0xff] }
 0x907   : > { %5808 = vmatpush1.bf16.msra.mxu1 %v10496_v9  ;;  %5723 = vmatprep.subr.bf16.mxu0 %v10503_v23  ;;  %v4174_v9 = vld [vmem:[#allocation11 + $0x670] sm:$0xff]  ;;  %v4171_v23 = vld [vmem:[#allocation11 + $0x658] sm:$0xff] }
 0x908   : > { %5809 = vmatprep.subr.bf16.mxu1 %v10505_v31  ;;  %v4175_v31 = vld [vmem:[#allocation11 + $0x678] sm:$0xff]  ;;  %v10559_v37 = vcombine.high %v4170_v58, %v4174_v9  ;;  %v10558_v6 = vcombine.low %v4170_v58, %v4174_v9 }
 0x909   : > { %v10561_v43 = vcombine.high %v4171_v23, %v4175_v31  ;;  %v10560_v12 = vcombine.low %v4171_v23, %v4175_v31 }
 0x90a   : > { %5724 = vmatpush1.bf16.msra.mxu0 %v10502_v3  ;;  %v4178_v3 = vld [vmem:[#allocation11 + $0x690] sm:$0xff] }
 0x90b   : > { %5810 = vmatpush1.bf16.msra.mxu1 %v10504_v52  ;;  %5725 = vmatprep.subr.bf16.mxu0 %v10511_v10  ;;  %v4182_v52 = vld [vmem:[#allocation11 + $0x6b0] sm:$0xff]  ;;  %v4179_v10 = vld [vmem:[#allocation11 + $0x698] sm:$0xff] }
 0x90c   : > { %5811 = vmatprep.subr.bf16.mxu1 %v10513_v17  ;;  %v4183_v17 = vld [vmem:[#allocation11 + $0x6b8] sm:$0xff]  ;;  %v10567_v11 = vcombine.high %v4178_v3, %v4182_v52  ;;  %v10566_v57 = vcombine.low %v4178_v3, %v4182_v52 }
 0x90d   : > { %v10569_v46 = vcombine.high %v4179_v10, %v4183_v17  ;;  %v10568_v42 = vcombine.low %v4179_v10, %v4183_v17 }
 0x90e   : > { %5726 = vmatpush1.bf16.msra.mxu0 %v10510_v56  ;;  %v4186_v56 = vld [vmem:[#allocation11 + $0x6d0] sm:$0xff] }
 0x90f   : > { %5812 = vmatpush1.bf16.msra.mxu1 %v10512_v22  ;;  %5727 = vmatprep.subr.bf16.mxu0 %v10519_v47  ;;  %v4190_v22 = vld [vmem:[#allocation11 + $0x6f0] sm:$0xff]  ;;  %v4187_v47 = vld [vmem:[#allocation11 + $0x6d8] sm:$0xff] }
 0x910   : > { %5813 = vmatprep.subr.bf16.mxu1 %v10521_v51  ;;  %v4191_v51 = vld [vmem:[#allocation11 + $0x6f8] sm:$0xff]  ;;  %v10575_v19 = vcombine.high %v4186_v56, %v4190_v22  ;;  %v10574_v53 = vcombine.low %v4186_v56, %v4190_v22  ;;  %v5861_v56 = vld [vmem:[#allocation13 + $0x68] sm:$0xff] }
 0x911   : > { %v10577_v40 = vcombine.high %v4187_v47, %v4191_v51  ;;  %v10576_v44 = vcombine.low %v4187_v47, %v4191_v51  ;;  %v5864_v51 = vld [vmem:[#allocation13 + $0x80] sm:$0xff] }
 0x912   : > { %5728 = vmatpush1.bf16.msra.mxu0 %v10518_v8  ;;  %v4194_v8 = vld [vmem:[#allocation11 + $0x710] sm:$0xff] }
 0x913   : > { %5814 = vmatpush1.bf16.msra.mxu1 %v10520_v49  ;;  %5729 = vmatprep.subr.bf16.mxu0 %v10527_v33  ;;  %v4198_v49 = vld [vmem:[#allocation11 + $0x730] sm:$0xff]  ;;  %v4195_v33 = vld [vmem:[#allocation11 + $0x718] sm:$0xff] }
 0x914   : > { %5815 = vmatprep.subr.bf16.mxu1 %v10529_v13  ;;  %v4199_v13 = vld [vmem:[#allocation11 + $0x738] sm:$0xff]  ;;  %v10583_v55 = vcombine.high %v4194_v8, %v4198_v49  ;;  %v10582_v60 = vcombine.low %v4194_v8, %v4198_v49 }
 0x915   : > { %v10585_v21 = vcombine.high %v4195_v33, %v4199_v13  ;;  %v10584_v59 = vcombine.low %v4195_v33, %v4199_v13 }
 0x916   : > { %5730 = vmatpush1.bf16.msra.mxu0 %v10526_v54  ;;  %v4202_v54 = vld [vmem:[#allocation11 + $0x750] sm:$0xff] }
 0x917   : > { %5816 = vmatpush1.bf16.msra.mxu1 %v10528_v50  ;;  %5731 = vmatprep.subr.bf16.mxu0 %v10535_v24  ;;  %v4206_v50 = vld [vmem:[#allocation11 + $0x770] sm:$0xff]  ;;  %v4203_v24 = vld [vmem:[#allocation11 + $0x758] sm:$0xff] }
 0x918   : > { %5817 = vmatprep.subr.bf16.mxu1 %v10537_v62  ;;  %v4207_v62 = vld [vmem:[#allocation11 + $0x778] sm:$0xff]  ;;  %v10591_v61 = vcombine.high %v4202_v54, %v4206_v50  ;;  %v10590_v15 = vcombine.low %v4202_v54, %v4206_v50 }
 0x919   : > { %v10593_v63 = vcombine.high %v4203_v24, %v4207_v62  ;;  %v10592_v16 = vcombine.low %v4203_v24, %v4207_v62 }
 0x91a   : > { %5732 = vmatpush1.bf16.msra.mxu0 %v10534_v0  ;;  %v4210_v0 = vld [vmem:[#allocation11 + $0x790] sm:$0xff] }
 0x91b   : > { %5818 = vmatpush1.bf16.msra.mxu1 %v10536_v1  ;;  %5733 = vmatprep.subr.bf16.mxu0 %v10543_v2  ;;  %v4214_v1 = vld [vmem:[#allocation11 + $0x7b0] sm:$0xff]  ;;  %v4211_v2 = vld [vmem:[#allocation11 + $0x798] sm:$0xff] }
 0x91c   : > { %5819 = vmatprep.subr.bf16.mxu1 %v10545_v14  ;;  %v4215_v14 = vld [vmem:[#allocation11 + $0x7b8] sm:$0xff]  ;;  %v10599_v18 = vcombine.high %v4210_v0, %v4214_v1  ;;  %v10598_v58 = vcombine.low %v4210_v0, %v4214_v1 }
 0x91d   : > { %v10601_v7 = vcombine.high %v4211_v2, %v4215_v14  ;;  %v10600_v9 = vcombine.low %v4211_v2, %v4215_v14 }
 0x91e   : > { %5734 = vmatpush1.bf16.msra.mxu0 %v10542_v20  ;;  %v4218_v20 = vld [vmem:[#allocation11 + $0x7d0] sm:$0xff] }
 0x91f   : > { %5820 = vmatpush1.bf16.msra.mxu1 %v10544_v27  ;;  %5735 = vmatprep.subr.bf16.mxu0 %v10551_v28  ;;  %v4222_v27 = vld [vmem:[#allocation11 + $0x7f0] sm:$0xff]  ;;  %v4219_v28 = vld [vmem:[#allocation11 + $0x7d8] sm:$0xff] }
 0x920   : > { %5821 = vmatprep.subr.bf16.mxu1 %v10553_v30  ;;  %v4223_v30 = vld [vmem:[#allocation11 + $0x7f8] sm:$0xff]  ;;  %v10607_v23 = vcombine.high %v4218_v20, %v4222_v27  ;;  %v10606_v3 = vcombine.low %v4218_v20, %v4222_v27 }
 0x921   : > { %v10609_v31 = vcombine.high %v4219_v28, %v4223_v30  ;;  %v10608_v52 = vcombine.low %v4219_v28, %v4223_v30 }
 0x922   : > { %5736 = vmatpush1.bf16.msra.mxu0 %v10550_v35  ;;  %v5848_v35 = vld [vmem:[#allocation13] sm:$0xff] }
 0x923   : > { %5822 = vmatpush1.bf16.msra.mxu1 %v10552_v36  ;;  %5737 = vmatprep.subr.bf16.mxu0 %v10559_v37  ;;  %v5852_v36 = vld [vmem:[#allocation13 + $0x20] sm:$0xff]  ;;  %v5849_v37 = vld [vmem:[#allocation13 + $0x8] sm:$0xff] }
 0x924   : > { %5823 = vmatprep.subr.bf16.mxu1 %v10561_v43  ;;  %v5853_v43 = vld [vmem:[#allocation13 + $0x28] sm:$0xff]  ;;  %v10611_v10 = vcombine.high %v5848_v35, %v5852_v36 }
 0x925   : > { %v10613_v17 = vcombine.high %v5849_v37, %v5853_v43  ;;  %v10612_v22 = vcombine.low %v5849_v37, %v5853_v43 }
 0x926   : > { %5738 = vmatpush1.bf16.msra.mxu0 %v10558_v6  ;;  %v5856_v6 = vld [vmem:[#allocation13 + $0x40] sm:$0xff] }
 0x927   : > { %5824 = vmatpush1.bf16.msra.mxu1 %v10560_v12  ;;  %5739 = vmatprep.subr.bf16.mxu0 %v10567_v11  ;;  %v5860_v12 = vld [vmem:[#allocation13 + $0x60] sm:$0xff]  ;;  %v10610_v11 = vcombine.low %v5848_v35, %v5852_v36 }
 0x928   : > { %5825 = vmatprep.subr.bf16.mxu1 %v10569_v46  ;;  %v5857_v46 = vld [vmem:[#allocation13 + $0x48] sm:$0xff]  ;;  %v10619_v47 = vcombine.high %v5856_v6, %v5860_v12  ;;  %v10618_v8 = vcombine.low %v5856_v6, %v5860_v12 }
 0x929   : > { %v10620_v49 = vcombine.low %v5857_v46, %v5861_v56 }
 0x92a   : > { %5740 = vmatpush1.bf16.msra.mxu0 %v10566_v57  ;;  %v5868_v57 = vld [vmem:[#allocation13 + $0xa0] sm:$0xff] }
 0x92b   : > { %5826 = vmatpush1.bf16.msra.mxu1 %v10568_v42  ;;  %5741 = vmatprep.subr.bf16.mxu0 %v10575_v19  ;;  %v10621_v42 = vcombine.high %v5857_v46, %v5861_v56  ;;  %v5865_v19 = vld [vmem:[#allocation13 + $0x88] sm:$0xff]  ;;  %v10627_v33 = vcombine.high %v5864_v51, %v5868_v57  ;;  %v10626_v54 = vcombine.low %v5864_v51, %v5868_v57  ;;  %v5912_v56 = vld [vmem:[#allocation13 + $0x200] sm:$0xff] }
 0x92c   : > { %5827 = vmatprep.subr.bf16.mxu1 %v10577_v40  ;;  %v5869_v40 = vld [vmem:[#allocation13 + $0xa8] sm:$0xff] }
 0x92d   : > { %v10629_v13 = vcombine.high %v5865_v19, %v5869_v40  ;;  %v10628_v50 = vcombine.low %v5865_v19, %v5869_v40  ;;  %v5917_v51 = vld [vmem:[#allocation13 + $0x228] sm:$0xff] }
 0x92e   : > { %5742 = vmatpush1.bf16.msra.mxu0 %v10574_v53  ;;  %v5872_v53 = vld [vmem:[#allocation13 + $0xc0] sm:$0xff] }
 0x92f   : > { %5828 = vmatpush1.bf16.msra.mxu1 %v10576_v44  ;;  %5743 = vmatprep.subr.bf16.mxu0 %v10583_v55  ;;  %v5876_v44 = vld [vmem:[#allocation13 + $0xe0] sm:$0xff]  ;;  %v5873_v55 = vld [vmem:[#allocation13 + $0xc8] sm:$0xff] }
 0x930   : > { %5829 = vmatprep.subr.bf16.mxu1 %v10585_v21  ;;  %v5877_v21 = vld [vmem:[#allocation13 + $0xe8] sm:$0xff]  ;;  %v10635_v24 = vcombine.high %v5872_v53, %v5876_v44  ;;  %v10634_v0 = vcombine.low %v5872_v53, %v5876_v44 }
 0x931   : > { %v10637_v62 = vcombine.high %v5873_v55, %v5877_v21  ;;  %v10636_v1 = vcombine.low %v5873_v55, %v5877_v21 }
 0x932   : > { %5744 = vmatpush1.bf16.msra.mxu0 %v10582_v60  ;;  %v5880_v60 = vld [vmem:[#allocation13 + $0x100] sm:$0xff] }
 0x933   : > { %5830 = vmatpush1.bf16.msra.mxu1 %v10584_v59  ;;  %5745 = vmatprep.subr.bf16.mxu0 %v10591_v61  ;;  %v5884_v59 = vld [vmem:[#allocation13 + $0x120] sm:$0xff]  ;;  %v5881_v61 = vld [vmem:[#allocation13 + $0x108] sm:$0xff] }
 0x934   : > { %5831 = vmatprep.subr.bf16.mxu1 %v10593_v63  ;;  %v5885_v63 = vld [vmem:[#allocation13 + $0x128] sm:$0xff]  ;;  %v10643_v2 = vcombine.high %v5880_v60, %v5884_v59  ;;  %v10642_v20 = vcombine.low %v5880_v60, %v5884_v59 }
 0x935   : > { %v10645_v14 = vcombine.high %v5881_v61, %v5885_v63  ;;  %v10644_v27 = vcombine.low %v5881_v61, %v5885_v63 }
 0x936   : > { %5746 = vmatpush1.bf16.msra.mxu0 %v10590_v15  ;;  %v5888_v15 = vld [vmem:[#allocation13 + $0x140] sm:$0xff] }
 0x937   : > { %5832 = vmatpush1.bf16.msra.mxu1 %v10592_v16  ;;  %5747 = vmatprep.subr.bf16.mxu0 %v10599_v18  ;;  %v5892_v16 = vld [vmem:[#allocation13 + $0x160] sm:$0xff]  ;;  %v5889_v18 = vld [vmem:[#allocation13 + $0x148] sm:$0xff] }
 0x938   : > { %5833 = vmatprep.subr.bf16.mxu1 %v10601_v7  ;;  %v5893_v7 = vld [vmem:[#allocation13 + $0x168] sm:$0xff]  ;;  %v10651_v28 = vcombine.high %v5888_v15, %v5892_v16  ;;  %v10650_v35 = vcombine.low %v5888_v15, %v5892_v16 }
 0x939   : > { %v10653_v30 = vcombine.high %v5889_v18, %v5893_v7  ;;  %v10652_v36 = vcombine.low %v5889_v18, %v5893_v7 }
 0x93a   : > { %5748 = vmatpush1.bf16.msra.mxu0 %v10598_v58  ;;  %v5896_v58 = vld [vmem:[#allocation13 + $0x180] sm:$0xff] }
 0x93b   : > { %5834 = vmatpush1.bf16.msra.mxu1 %v10600_v9  ;;  %5749 = vmatprep.subr.bf16.mxu0 %v10607_v23  ;;  %v5900_v9 = vld [vmem:[#allocation13 + $0x1a0] sm:$0xff]  ;;  %v5897_v23 = vld [vmem:[#allocation13 + $0x188] sm:$0xff] }
 0x93c   : > { %5835 = vmatprep.subr.bf16.mxu1 %v10609_v31  ;;  %v5901_v31 = vld [vmem:[#allocation13 + $0x1a8] sm:$0xff]  ;;  %v10659_v37 = vcombine.high %v5896_v58, %v5900_v9  ;;  %v10658_v6 = vcombine.low %v5896_v58, %v5900_v9 }
 0x93d   : > { %v10661_v43 = vcombine.high %v5897_v23, %v5901_v31  ;;  %v10660_v12 = vcombine.low %v5897_v23, %v5901_v31 }
 0x93e   : > { %5750 = vmatpush1.bf16.msra.mxu0 %v10606_v3  ;;  %v5904_v3 = vld [vmem:[#allocation13 + $0x1c0] sm:$0xff] }
 0x93f   : > { %5836 = vmatpush1.bf16.msra.mxu1 %v10608_v52  ;;  %7384 = vmatprep.subr.bf16.mxu0 %v10611_v10  ;;  %v5908_v52 = vld [vmem:[#allocation13 + $0x1e0] sm:$0xff]  ;;  %v5905_v10 = vld [vmem:[#allocation13 + $0x1c8] sm:$0xff] }
 0x940   : > { %7470 = vmatprep.subr.bf16.mxu1 %v10613_v17  ;;  %v5909_v17 = vld [vmem:[#allocation13 + $0x1e8] sm:$0xff]  ;;  %v10666_v57 = vcombine.low %v5904_v3, %v5908_v52 }
 0x941   : > { %5752 = vmatmul.mubr.bf16.vlgmr.msra.gmra.mrb[24].mxu0 %v13118_v29  ;;  %v10669_v46 = vcombine.high %v5905_v10, %v5909_v17 }
 0x942   : > { %5838 = vmatmul.mubr.bf16.vlgmr.msra.gmra.mrb[24].mxu1 %v13118_v29  ;;  %7385 = vmatpush1.bf16.msra.mxu0 %v10610_v11  ;;  %v10667_v11 = vcombine.high %v5904_v3, %v5908_v52 }
 0x943   : > { %7416 = vmatprep.mubr.bf16.mxu0 %v13114_v25  ;;  %7471 = vmatpush1.bf16.msra.mxu1 %v10612_v22  ;;  %v5916_v22 = vld [vmem:[#allocation13 + $0x220] sm:$0xff] }
 0x944   : > { %7502 = vmatprep.mubr.bf16.mxu1 %v13114_v25  ;;  %7386 = vmatprep.subr.bf16.mxu0 %v10619_v47  ;;  %v5913_v47 = vld [vmem:[#allocation13 + $0x208] sm:$0xff]  ;;  %v10675_v19 = vcombine.high %v5912_v56, %v5916_v22  ;;  %v10674_v53 = vcombine.low %v5912_v56, %v5916_v22 }
 0x945   : > { %7472 = vmatprep.subr.bf16.mxu1 %v10621_v42  ;;  %v10668_v42 = vcombine.low %v5905_v10, %v5909_v17  ;;  %v10677_v40 = vcombine.high %v5913_v47, %v5917_v51  ;;  %v10676_v44 = vcombine.low %v5913_v47, %v5917_v51 }
 0x946   : > { %7387 = vmatpush1.bf16.msra.mxu0 %v10618_v8  ;;  %v5920_v8 = vld [vmem:[#allocation13 + $0x240] sm:$0xff] }
 0x947   : > { %7473 = vmatpush1.bf16.msra.mxu1 %v10620_v49  ;;  %7388 = vmatprep.subr.bf16.mxu0 %v10627_v33  ;;  %v5924_v49 = vld [vmem:[#allocation13 + $0x260] sm:$0xff]  ;;  %v5921_v33 = vld [vmem:[#allocation13 + $0x248] sm:$0xff] }
 0x948   : > { %7474 = vmatprep.subr.bf16.mxu1 %v10629_v13  ;;  %v5925_v13 = vld [vmem:[#allocation13 + $0x268] sm:$0xff]  ;;  %v10683_v55 = vcombine.high %v5920_v8, %v5924_v49  ;;  %v10682_v60 = vcombine.low %v5920_v8, %v5924_v49 }
 0x949   : > { %v10685_v21 = vcombine.high %v5921_v33, %v5925_v13  ;;  %v10684_v59 = vcombine.low %v5921_v33, %v5925_v13 }
 0x94a   : > { %7389 = vmatpush1.bf16.msra.mxu0 %v10626_v54  ;;  %v5928_v54 = vld [vmem:[#allocation13 + $0x280] sm:$0xff] }
 0x94b   : > { %7475 = vmatpush1.bf16.msra.mxu1 %v10628_v50  ;;  %7390 = vmatprep.subr.bf16.mxu0 %v10635_v24  ;;  %v5932_v50 = vld [vmem:[#allocation13 + $0x2a0] sm:$0xff]  ;;  %v5929_v24 = vld [vmem:[#allocation13 + $0x288] sm:$0xff] }
 0x94c   : > { %7476 = vmatprep.subr.bf16.mxu1 %v10637_v62  ;;  %v5933_v62 = vld [vmem:[#allocation13 + $0x2a8] sm:$0xff]  ;;  %v10691_v61 = vcombine.high %v5928_v54, %v5932_v50  ;;  %v10690_v15 = vcombine.low %v5928_v54, %v5932_v50 }
 0x94d   : > { %v10693_v63 = vcombine.high %v5929_v24, %v5933_v62  ;;  %v10692_v16 = vcombine.low %v5929_v24, %v5933_v62 }
 0x94e   : > { %7391 = vmatpush1.bf16.msra.mxu0 %v10634_v0  ;;  %v5936_v0 = vld [vmem:[#allocation13 + $0x2c0] sm:$0xff] }
 0x94f   : > { %7477 = vmatpush1.bf16.msra.mxu1 %v10636_v1  ;;  %7392 = vmatprep.subr.bf16.mxu0 %v10643_v2  ;;  %v5940_v1 = vld [vmem:[#allocation13 + $0x2e0] sm:$0xff]  ;;  %v5937_v2 = vld [vmem:[#allocation13 + $0x2c8] sm:$0xff] }
 0x950   : > { %7478 = vmatprep.subr.bf16.mxu1 %v10645_v14  ;;  %v5941_v14 = vld [vmem:[#allocation13 + $0x2e8] sm:$0xff]  ;;  %v10699_v18 = vcombine.high %v5936_v0, %v5940_v1  ;;  %v10698_v58 = vcombine.low %v5936_v0, %v5940_v1 }
 0x951   : > { %v10701_v7 = vcombine.high %v5937_v2, %v5941_v14  ;;  %v10700_v9 = vcombine.low %v5937_v2, %v5941_v14  ;;  %v5989_v0 = vld [vmem:[#allocation13 + $0x468] sm:$0xff]  ;;  %v5992_v14 = vld [vmem:[#allocation13 + $0x480] sm:$0xff] }
 0x952   : > { %7393 = vmatpush1.bf16.msra.mxu0 %v10642_v20  ;;  %v5944_v20 = vld [vmem:[#allocation13 + $0x300] sm:$0xff] }
 0x953   : > { %7479 = vmatpush1.bf16.msra.mxu1 %v10644_v27  ;;  %7394 = vmatprep.subr.bf16.mxu0 %v10651_v28  ;;  %v5948_v27 = vld [vmem:[#allocation13 + $0x320] sm:$0xff]  ;;  %v5945_v28 = vld [vmem:[#allocation13 + $0x308] sm:$0xff] }
 0x954   : > { %7480 = vmatprep.subr.bf16.mxu1 %v10653_v30  ;;  %v5949_v30 = vld [vmem:[#allocation13 + $0x328] sm:$0xff]  ;;  %v10707_v23 = vcombine.high %v5944_v20, %v5948_v27  ;;  %v10706_v3 = vcombine.low %v5944_v20, %v5948_v27 }
 0x955   : > { %v10709_v31 = vcombine.high %v5945_v28, %v5949_v30  ;;  %v10708_v52 = vcombine.low %v5945_v28, %v5949_v30 }
 0x956   : > { %7395 = vmatpush1.bf16.msra.mxu0 %v10650_v35  ;;  %v5952_v35 = vld [vmem:[#allocation13 + $0x340] sm:$0xff] }
 0x957   : > { %7481 = vmatpush1.bf16.msra.mxu1 %v10652_v36  ;;  %7396 = vmatprep.subr.bf16.mxu0 %v10659_v37  ;;  %v5956_v36 = vld [vmem:[#allocation13 + $0x360] sm:$0xff]  ;;  %v5953_v37 = vld [vmem:[#allocation13 + $0x348] sm:$0xff] }
 0x958   : > { %7482 = vmatprep.subr.bf16.mxu1 %v10661_v43  ;;  %v5957_v43 = vld [vmem:[#allocation13 + $0x368] sm:$0xff]  ;;  %v10715_v10 = vcombine.high %v5952_v35, %v5956_v36  ;;  %v10714_v56 = vcombine.low %v5952_v35, %v5956_v36 }
 0x959   : > { %v10717_v17 = vcombine.high %v5953_v37, %v5957_v43  ;;  %v10716_v22 = vcombine.low %v5953_v37, %v5957_v43 }
 0x95a   : > { %7397 = vmatpush1.bf16.msra.mxu0 %v10658_v6  ;;  %v5960_v6 = vld [vmem:[#allocation13 + $0x380] sm:$0xff] }
 0x95b   : > { %7483 = vmatpush1.bf16.msra.mxu1 %v10660_v12  ;;  %7398 = vmatprep.subr.bf16.mxu0 %v10667_v11  ;;  %v5964_v12 = vld [vmem:[#allocation13 + $0x3a0] sm:$0xff]  ;;  %v5961_v11 = vld [vmem:[#allocation13 + $0x388] sm:$0xff] }
 0x95c   : > { %7484 = vmatprep.subr.bf16.mxu1 %v10669_v46  ;;  %v5965_v46 = vld [vmem:[#allocation13 + $0x3a8] sm:$0xff]  ;;  %v10723_v47 = vcombine.high %v5960_v6, %v5964_v12  ;;  %v10722_v8 = vcombine.low %v5960_v6, %v5964_v12 }
 0x95d   : > { %v10725_v51 = vcombine.high %v5961_v11, %v5965_v46  ;;  %v10724_v49 = vcombine.low %v5961_v11, %v5965_v46 }
 0x95e   : > { %7399 = vmatpush1.bf16.msra.mxu0 %v10666_v57  ;;  %v5968_v57 = vld [vmem:[#allocation13 + $0x3c0] sm:$0xff] }
 0x95f   : > { %7485 = vmatpush1.bf16.msra.mxu1 %v10668_v42  ;;  %7400 = vmatprep.subr.bf16.mxu0 %v10675_v19  ;;  %v5972_v42 = vld [vmem:[#allocation13 + $0x3e0] sm:$0xff]  ;;  %v5969_v19 = vld [vmem:[#allocation13 + $0x3c8] sm:$0xff] }
 0x960   : > { %7486 = vmatprep.subr.bf16.mxu1 %v10677_v40  ;;  %v5973_v40 = vld [vmem:[#allocation13 + $0x3e8] sm:$0xff]  ;;  %v10731_v33 = vcombine.high %v5968_v57, %v5972_v42  ;;  %v10730_v54 = vcombine.low %v5968_v57, %v5972_v42 }
 0x961   : > { %v10733_v13 = vcombine.high %v5969_v19, %v5973_v40  ;;  %v10732_v50 = vcombine.low %v5969_v19, %v5973_v40 }
 0x962   : > { %7401 = vmatpush1.bf16.msra.mxu0 %v10674_v53  ;;  %v5976_v53 = vld [vmem:[#allocation13 + $0x400] sm:$0xff] }
 0x963   : > { %7487 = vmatpush1.bf16.msra.mxu1 %v10676_v44  ;;  %7402 = vmatprep.subr.bf16.mxu0 %v10683_v55  ;;  %v5980_v44 = vld [vmem:[#allocation13 + $0x420] sm:$0xff]  ;;  %v5977_v55 = vld [vmem:[#allocation13 + $0x408] sm:$0xff] }
 0x964   : > { %7488 = vmatprep.subr.bf16.mxu1 %v10685_v21  ;;  %v5981_v21 = vld [vmem:[#allocation13 + $0x428] sm:$0xff]  ;;  %v10739_v24 = vcombine.high %v5976_v53, %v5980_v44 }
 0x965   : > { %v10741_v62 = vcombine.high %v5977_v55, %v5981_v21  ;;  %v10740_v1 = vcombine.low %v5977_v55, %v5981_v21 }
 0x966   : > { %7403 = vmatpush1.bf16.msra.mxu0 %v10682_v60  ;;  %v5984_v60 = vld [vmem:[#allocation13 + $0x440] sm:$0xff] }
 0x967   : > { %7489 = vmatpush1.bf16.msra.mxu1 %v10684_v59  ;;  %7404 = vmatprep.subr.bf16.mxu0 %v10691_v61  ;;  %v5988_v59 = vld [vmem:[#allocation13 + $0x460] sm:$0xff]  ;;  %v10738_v61 = vcombine.low %v5976_v53, %v5980_v44 }
 0x968   : > { %7490 = vmatprep.subr.bf16.mxu1 %v10693_v63  ;;  %v5985_v63 = vld [vmem:[#allocation13 + $0x448] sm:$0xff]  ;;  %v10747_v2 = vcombine.high %v5984_v60, %v5988_v59  ;;  %v10746_v20 = vcombine.low %v5984_v60, %v5988_v59 }
 0x969   : > { %v10748_v27 = vcombine.low %v5985_v63, %v5989_v0 }
 0x96a   : > { %7405 = vmatpush1.bf16.msra.mxu0 %v10690_v15  ;;  %v5996_v15 = vld [vmem:[#allocation13 + $0x4a0] sm:$0xff] }
 0x96b   : > { %7491 = vmatpush1.bf16.msra.mxu1 %v10692_v16  ;;  %7406 = vmatprep.subr.bf16.mxu0 %v10699_v18  ;;  %v10749_v16 = vcombine.high %v5985_v63, %v5989_v0  ;;  %v5993_v18 = vld [vmem:[#allocation13 + $0x488] sm:$0xff]  ;;  %v10755_v28 = vcombine.high %v5992_v14, %v5996_v15  ;;  %v10754_v35 = vcombine.low %v5992_v14, %v5996_v15 }
 0x96c   : > { %7492 = vmatprep.subr.bf16.mxu1 %v10701_v7  ;;  %v5997_v7 = vld [vmem:[#allocation13 + $0x4a8] sm:$0xff] }
 0x96d   : > { %v10757_v30 = vcombine.high %v5993_v18, %v5997_v7  ;;  %v10756_v36 = vcombine.low %v5993_v18, %v5997_v7  ;;  %v6037_v63 = vld [vmem:[#allocation13 + $0x5e8] sm:$0xff] }
 0x96e   : > { %7407 = vmatpush1.bf16.msra.mxu0 %v10698_v58  ;;  %v6000_v58 = vld [vmem:[#allocation13 + $0x4c0] sm:$0xff] }
 0x96f   : > { %7493 = vmatpush1.bf16.msra.mxu1 %v10700_v9  ;;  %7408 = vmatprep.subr.bf16.mxu0 %v10707_v23  ;;  %v6004_v9 = vld [vmem:[#allocation13 + $0x4e0] sm:$0xff]  ;;  %v6001_v23 = vld [vmem:[#allocation13 + $0x4c8] sm:$0xff] }
 0x970   : > { %7494 = vmatprep.subr.bf16.mxu1 %v10709_v31  ;;  %v6005_v31 = vld [vmem:[#allocation13 + $0x4e8] sm:$0xff]  ;;  %v10763_v37 = vcombine.high %v6000_v58, %v6004_v9  ;;  %v10762_v6 = vcombine.low %v6000_v58, %v6004_v9 }
 0x971   : > { %v10765_v43 = vcombine.high %v6001_v23, %v6005_v31  ;;  %v10764_v12 = vcombine.low %v6001_v23, %v6005_v31 }
 0x972   : > { %7409 = vmatpush1.bf16.msra.mxu0 %v10706_v3  ;;  %v6008_v3 = vld [vmem:[#allocation13 + $0x500] sm:$0xff] }
 0x973   : > { %7495 = vmatpush1.bf16.msra.mxu1 %v10708_v52  ;;  %7410 = vmatprep.subr.bf16.mxu0 %v10715_v10  ;;  %v6012_v52 = vld [vmem:[#allocation13 + $0x520] sm:$0xff]  ;;  %v6009_v10 = vld [vmem:[#allocation13 + $0x508] sm:$0xff] }
 0x974   : > { %7496 = vmatprep.subr.bf16.mxu1 %v10717_v17  ;;  %v6013_v17 = vld [vmem:[#allocation13 + $0x528] sm:$0xff]  ;;  %v10771_v11 = vcombine.high %v6008_v3, %v6012_v52  ;;  %v10770_v57 = vcombine.low %v6008_v3, %v6012_v52 }
 0x975   : > { %v10773_v46 = vcombine.high %v6009_v10, %v6013_v17  ;;  %v10772_v42 = vcombine.low %v6009_v10, %v6013_v17 }
 0x976   : > { %7411 = vmatpush1.bf16.msra.mxu0 %v10714_v56  ;;  %v6016_v56 = vld [vmem:[#allocation13 + $0x540] sm:$0xff] }
 0x977   : > { %7497 = vmatpush1.bf16.msra.mxu1 %v10716_v22  ;;  %7412 = vmatprep.subr.bf16.mxu0 %v10723_v47  ;;  %v6020_v22 = vld [vmem:[#allocation13 + $0x560] sm:$0xff]  ;;  %v6017_v47 = vld [vmem:[#allocation13 + $0x548] sm:$0xff] }
 0x978   : > { %7498 = vmatprep.subr.bf16.mxu1 %v10725_v51  ;;  %v6021_v51 = vld [vmem:[#allocation13 + $0x568] sm:$0xff]  ;;  %v10779_v19 = vcombine.high %v6016_v56, %v6020_v22  ;;  %v10778_v53 = vcombine.low %v6016_v56, %v6020_v22 }
 0x979   : > { %v10781_v40 = vcombine.high %v6017_v47, %v6021_v51  ;;  %v10780_v44 = vcombine.low %v6017_v47, %v6021_v51 }
 0x97a   : > { %7413 = vmatpush1.bf16.msra.mxu0 %v10722_v8  ;;  %v6024_v8 = vld [vmem:[#allocation13 + $0x580] sm:$0xff] }
 0x97b   : > { %7499 = vmatpush1.bf16.msra.mxu1 %v10724_v49  ;;  %7414 = vmatprep.subr.bf16.mxu0 %v10731_v33  ;;  %v6028_v49 = vld [vmem:[#allocation13 + $0x5a0] sm:$0xff]  ;;  %v6025_v33 = vld [vmem:[#allocation13 + $0x588] sm:$0xff] }
 0x97c   : > { %7500 = vmatprep.subr.bf16.mxu1 %v10733_v13  ;;  %v6029_v13 = vld [vmem:[#allocation13 + $0x5a8] sm:$0xff]  ;;  %v10787_v55 = vcombine.high %v6024_v8, %v6028_v49 }
 0x97e   : > { %7415 = vmatpush1.bf16.msra.mxu0 %v10730_v54 }
 0x97f   : > { %7501 = vmatpush1.bf16.msra.mxu1 %v10732_v50  ;;  %7427 = vmatprep.subr.bf16.mxu0 %v10739_v24  ;;  %v10789_v50 = vcombine.high %v6025_v33, %v6029_v13  ;;  %v6032_v24 = vld [vmem:[#allocation13 + $0x5c0] sm:$0xff] }
 0x980   : > { %7513 = vmatprep.subr.bf16.mxu1 %v10741_v62  ;;  %v6036_v62 = vld [vmem:[#allocation13 + $0x5e0] sm:$0xff] }
 0x981   : > { %7417 = vmatmul.mubr.bf16.vlgmr.msra.gmra.mrb[28].mxu0 %v13116_v26  ;;  %v10795_v18 = vcombine.high %v6032_v24, %v6036_v62  ;;  %v10794_v58 = vcombine.low %v6032_v24, %v6036_v62 }
 0x982   : > { %7503 = vmatmul.mubr.bf16.vlgmr.msra.gmra.mrb[28].mxu1 %v13116_v26  ;;  %7428 = vmatpush1.bf16.msra.mxu0 %v10738_v61  ;;  %v6033_v61 = vld [vmem:[#allocation13 + $0x5c8] sm:$0xff] }
 0x983   : > { %7459 = vmatprep.mubr.bf16.mxu0 %v13124_v34  ;;  %7514 = vmatpush1.bf16.msra.mxu1 %v10740_v1  ;;  %v10797_v7 = vcombine.high %v6033_v61, %v6037_v63  ;;  %v10796_v9 = vcombine.low %v6033_v61, %v6037_v63 }
 0x984   : > { %7545 = vmatprep.mubr.bf16.mxu1 %v13124_v34  ;;  %7429 = vmatprep.subr.bf16.mxu0 %v10747_v2  ;;  %v10786_v2 = vcombine.low %v6024_v8, %v6028_v49 }
 0x985   : > { %7515 = vmatprep.subr.bf16.mxu1 %v10749_v16  ;;  %v10788_v16 = vcombine.low %v6025_v33, %v6029_v13 }
 0x986   : > { %7430 = vmatpush1.bf16.msra.mxu0 %v10746_v20  ;;  %v6040_v20 = vld [vmem:[#allocation13 + $0x600] sm:$0xff] }
 0x987   : > { %7516 = vmatpush1.bf16.msra.mxu1 %v10748_v27  ;;  %7431 = vmatprep.subr.bf16.mxu0 %v10755_v28  ;;  %v6044_v27 = vld [vmem:[#allocation13 + $0x620] sm:$0xff]  ;;  %v6041_v28 = vld [vmem:[#allocation13 + $0x608] sm:$0xff] }
 0x988   : > { %7517 = vmatprep.subr.bf16.mxu1 %v10757_v30  ;;  %v6045_v30 = vld [vmem:[#allocation13 + $0x628] sm:$0xff]  ;;  %v10803_v23 = vcombine.high %v6040_v20, %v6044_v27  ;;  %v10802_v3 = vcombine.low %v6040_v20, %v6044_v27 }
 0x989   : > { %v10805_v31 = vcombine.high %v6041_v28, %v6045_v30  ;;  %v10804_v52 = vcombine.low %v6041_v28, %v6045_v30 }
 0x98a   : > { %7432 = vmatpush1.bf16.msra.mxu0 %v10754_v35  ;;  %v6048_v35 = vld [vmem:[#allocation13 + $0x640] sm:$0xff] }
 0x98b   : > { %7518 = vmatpush1.bf16.msra.mxu1 %v10756_v36  ;;  %7433 = vmatprep.subr.bf16.mxu0 %v10763_v37  ;;  %v6052_v36 = vld [vmem:[#allocation13 + $0x660] sm:$0xff]  ;;  %v6049_v37 = vld [vmem:[#allocation13 + $0x648] sm:$0xff] }
 0x98c   : > { %7519 = vmatprep.subr.bf16.mxu1 %v10765_v43  ;;  %v6053_v43 = vld [vmem:[#allocation13 + $0x668] sm:$0xff]  ;;  %v10811_v10 = vcombine.high %v6048_v35, %v6052_v36  ;;  %v10810_v56 = vcombine.low %v6048_v35, %v6052_v36 }
 0x98d   : > { %v10813_v17 = vcombine.high %v6049_v37, %v6053_v43  ;;  %v10812_v22 = vcombine.low %v6049_v37, %v6053_v43 }
 0x98e   : > { %7434 = vmatpush1.bf16.msra.mxu0 %v10762_v6  ;;  %v6056_v6 = vld [vmem:[#allocation13 + $0x680] sm:$0xff] }
 0x98f   : > { %7520 = vmatpush1.bf16.msra.mxu1 %v10764_v12  ;;  %7435 = vmatprep.subr.bf16.mxu0 %v10771_v11  ;;  %v6060_v12 = vld [vmem:[#allocation13 + $0x6a0] sm:$0xff]  ;;  %v6057_v11 = vld [vmem:[#allocation13 + $0x688] sm:$0xff] }
 0x990   : > { %7521 = vmatprep.subr.bf16.mxu1 %v10773_v46  ;;  %v6061_v46 = vld [vmem:[#allocation13 + $0x6a8] sm:$0xff]  ;;  %v10819_v47 = vcombine.high %v6056_v6, %v6060_v12  ;;  %v10818_v8 = vcombine.low %v6056_v6, %v6060_v12 }
 0x991   : > { %v10821_v51 = vcombine.high %v6057_v11, %v6061_v46  ;;  %v10820_v49 = vcombine.low %v6057_v11, %v6061_v46 }
 0x992   : > { %7436 = vmatpush1.bf16.msra.mxu0 %v10770_v57  ;;  %v6064_v57 = vld [vmem:[#allocation13 + $0x6c0] sm:$0xff] }
 0x993   : > { %7522 = vmatpush1.bf16.msra.mxu1 %v10772_v42  ;;  %7437 = vmatprep.subr.bf16.mxu0 %v10779_v19  ;;  %v6068_v42 = vld [vmem:[#allocation13 + $0x6e0] sm:$0xff]  ;;  %v6065_v19 = vld [vmem:[#allocation13 + $0x6c8] sm:$0xff] }
 0x994   : > { %v13144_v21 = vpop.f32.mrb[20].mxu0  ;;  %v13146_v54 = vpop.f32.mrb[20].mxu1  ;;  %7523 = vmatprep.subr.bf16.mxu1 %v10781_v40  ;;  %v6069_v40 = vld [vmem:[#allocation13 + $0x6e8] sm:$0xff]  ;;  %v10827_v33 = vcombine.high %v6064_v57, %v6068_v42  ;;  %v10826_v24 = vcombine.low %v6064_v57, %v6068_v42 }
 0x995   : > { %v13148_v60 = vpop.f32.mrb[21].mxu0  ;;  %v13150_v59 = vpop.f32.mrb[21].mxu1  ;;  %v10829_v13 = vcombine.high %v6065_v19, %v6069_v40  ;;  %v10828_v62 = vcombine.low %v6065_v19, %v6069_v40 }
 0x996   : > { %v13152_v0 = vpop.f32.mrb[22].mxu0  ;;  %v13154_v1 = vpop.f32.mrb[22].mxu1  ;;  %7438 = vmatpush1.bf16.msra.mxu0 %v10778_v53  ;;  %v6072_v53 = vld [vmem:[#allocation13 + $0x700] sm:$0xff] }
 0x997   : > { %7524 = vmatpush1.bf16.msra.mxu1 %v10780_v44  ;;  %v13156_v14 = vpop.f32.mrb[23].mxu0  ;;  %v13158_v15 = vpop.f32.mrb[23].mxu1  ;;  %7439 = vmatprep.subr.bf16.mxu0 %v10787_v55  ;;  %v6076_v44 = vld [vmem:[#allocation13 + $0x720] sm:$0xff]  ;;  %v6073_v55 = vld [vmem:[#allocation13 + $0x708] sm:$0xff] }
 0x998   : > { %7525 = vmatprep.subr.bf16.mxu1 %v10789_v50  ;;  %v6077_v50 = vld [vmem:[#allocation13 + $0x728] sm:$0xff]  ;;  %v10835_v61 = vcombine.high %v6072_v53, %v6076_v44  ;;  %v10834_v20 = vcombine.low %v6072_v53, %v6076_v44  ;;  %v5863_v53 = vld [vmem:[#allocation13 + $0x78] sm:$0xff] }
 0x999   : > { %v10837_v63 = vcombine.high %v6073_v55, %v6077_v50  ;;  %v10836_v27 = vcombine.low %v6073_v55, %v6077_v50  ;;  %v5866_v50 = vld [vmem:[#allocation13 + $0x90] sm:$0xff] }
 0x99a   : > { %7440 = vmatpush1.bf16.msra.mxu0 %v10786_v2  ;;  %v6080_v2 = vld [vmem:[#allocation13 + $0x740] sm:$0xff] }
 0x99b   : > { %7526 = vmatpush1.bf16.msra.mxu1 %v10788_v16  ;;  %7441 = vmatprep.subr.bf16.mxu0 %v10795_v18  ;;  %v6084_v16 = vld [vmem:[#allocation13 + $0x760] sm:$0xff]  ;;  %v6081_v18 = vld [vmem:[#allocation13 + $0x748] sm:$0xff] }
 0x99c   : > { %7527 = vmatprep.subr.bf16.mxu1 %v10797_v7  ;;  %v6085_v7 = vld [vmem:[#allocation13 + $0x768] sm:$0xff]  ;;  %v10843_v28 = vcombine.high %v6080_v2, %v6084_v16  ;;  %v10842_v35 = vcombine.low %v6080_v2, %v6084_v16 }
 0x99d   : > { %v10845_v30 = vcombine.high %v6081_v18, %v6085_v7  ;;  %v10844_v36 = vcombine.low %v6081_v18, %v6085_v7 }
 0x99e   : > { %7442 = vmatpush1.bf16.msra.mxu0 %v10794_v58  ;;  %v6088_v58 = vld [vmem:[#allocation13 + $0x780] sm:$0xff] }
 0x99f   : > { %7528 = vmatpush1.bf16.msra.mxu1 %v10796_v9  ;;  %7443 = vmatprep.subr.bf16.mxu0 %v10803_v23  ;;  %v6092_v9 = vld [vmem:[#allocation13 + $0x7a0] sm:$0xff]  ;;  %v6089_v23 = vld [vmem:[#allocation13 + $0x788] sm:$0xff] }
 0x9a0   : > { %7529 = vmatprep.subr.bf16.mxu1 %v10805_v31  ;;  %v6093_v31 = vld [vmem:[#allocation13 + $0x7a8] sm:$0xff]  ;;  %v10851_v37 = vcombine.high %v6088_v58, %v6092_v9  ;;  %v10850_v6 = vcombine.low %v6088_v58, %v6092_v9 }
 0x9a1   : > { %v10853_v43 = vcombine.high %v6089_v23, %v6093_v31  ;;  %v10852_v12 = vcombine.low %v6089_v23, %v6093_v31 }
 0x9a2   : > { %7444 = vmatpush1.bf16.msra.mxu0 %v10802_v3  ;;  %v6096_v3 = vld [vmem:[#allocation13 + $0x7c0] sm:$0xff] }
 0x9a3   : > { %7530 = vmatpush1.bf16.msra.mxu1 %v10804_v52  ;;  %7445 = vmatprep.subr.bf16.mxu0 %v10811_v10  ;;  %v6100_v52 = vld [vmem:[#allocation13 + $0x7e0] sm:$0xff]  ;;  %v6097_v10 = vld [vmem:[#allocation13 + $0x7c8] sm:$0xff] }
 0x9a4   : > { %7531 = vmatprep.subr.bf16.mxu1 %v10813_v17  ;;  %v6101_v17 = vld [vmem:[#allocation13 + $0x7e8] sm:$0xff]  ;;  %v10859_v11 = vcombine.high %v6096_v3, %v6100_v52  ;;  %v10858_v57 = vcombine.low %v6096_v3, %v6100_v52 }
 0x9a5   : > { %v10861_v46 = vcombine.high %v6097_v10, %v6101_v17  ;;  %v10860_v42 = vcombine.low %v6097_v10, %v6101_v17  ;;  %v5890_v17 = vld [vmem:[#allocation13 + $0x150] sm:$0xff] }
 0x9a6   : > { %7446 = vmatpush1.bf16.msra.mxu0 %v10810_v56  ;;  %v5850_v56 = vld [vmem:[#allocation13 + $0x10] sm:$0xff] }
 0x9a7   : > { %7532 = vmatpush1.bf16.msra.mxu1 %v10812_v22  ;;  %7447 = vmatprep.subr.bf16.mxu0 %v10819_v47  ;;  %v5854_v22 = vld [vmem:[#allocation13 + $0x30] sm:$0xff]  ;;  %v5851_v47 = vld [vmem:[#allocation13 + $0x18] sm:$0xff] }
 0x9a8   : > { %7533 = vmatprep.subr.bf16.mxu1 %v10821_v51  ;;  %v5855_v51 = vld [vmem:[#allocation13 + $0x38] sm:$0xff]  ;;  %v10615_v19 = vcombine.high %v5850_v56, %v5854_v22 }
 0x9a9   : > { %v10617_v40 = vcombine.high %v5851_v47, %v5855_v51  ;;  %v10616_v44 = vcombine.low %v5851_v47, %v5855_v51  ;;  %v5898_v51 = vld [vmem:[#allocation13 + $0x190] sm:$0xff] }
 0x9aa   : > { %7448 = vmatpush1.bf16.msra.mxu0 %v10818_v8  ;;  %v5858_v8 = vld [vmem:[#allocation13 + $0x50] sm:$0xff] }
 0x9ab   : > { %7534 = vmatpush1.bf16.msra.mxu1 %v10820_v49  ;;  %7449 = vmatprep.subr.bf16.mxu0 %v10827_v33  ;;  %v5862_v49 = vld [vmem:[#allocation13 + $0x70] sm:$0xff]  ;;  %v10614_v33 = vcombine.low %v5850_v56, %v5854_v22 }
 0x9ac   : > { %7535 = vmatprep.subr.bf16.mxu1 %v10829_v13  ;;  %v5859_v13 = vld [vmem:[#allocation13 + $0x58] sm:$0xff]  ;;  %v10623_v55 = vcombine.high %v5858_v8, %v5862_v49  ;;  %v10622_v2 = vcombine.low %v5858_v8, %v5862_v49 }
 0x9ad   : > { %v10624_v16 = vcombine.low %v5859_v13, %v5863_v53 }
 0x9ae   : > { %7450 = vmatpush1.bf16.msra.mxu0 %v10826_v24  ;;  %v5870_v24 = vld [vmem:[#allocation13 + $0xb0] sm:$0xff] }
 0x9af   : > { %7536 = vmatpush1.bf16.msra.mxu1 %v10828_v62  ;;  %7451 = vmatprep.subr.bf16.mxu0 %v10835_v61  ;;  %v10625_v62 = vcombine.high %v5859_v13, %v5863_v53  ;;  %v5867_v61 = vld [vmem:[#allocation13 + $0x98] sm:$0xff]  ;;  %v10631_v18 = vcombine.high %v5866_v50, %v5870_v24  ;;  %v10630_v58 = vcombine.low %v5866_v50, %v5870_v24  ;;  %v5906_v13 = vld [vmem:[#allocation13 + $0x1d0] sm:$0xff] }
 0x9b0   : > { %7537 = vmatprep.subr.bf16.mxu1 %v10837_v63  ;;  %v5871_v63 = vld [vmem:[#allocation13 + $0xb8] sm:$0xff]  ;;  %v5910_v53 = vld [vmem:[#allocation13 + $0x1f0] sm:$0xff] }
 0x9b1   : > { %v10633_v7 = vcombine.high %v5867_v61, %v5871_v63  ;;  %v10632_v9 = vcombine.low %v5867_v61, %v5871_v63  ;;  %v5914_v63 = vld [vmem:[#allocation13 + $0x210] sm:$0xff] }
 0x9b2   : > { %7452 = vmatpush1.bf16.msra.mxu0 %v10834_v20  ;;  %v5874_v20 = vld [vmem:[#allocation13 + $0xd0] sm:$0xff] }
 0x9b3   : > { %7538 = vmatpush1.bf16.msra.mxu1 %v10836_v27  ;;  %7453 = vmatprep.subr.bf16.mxu0 %v10843_v28  ;;  %v5878_v27 = vld [vmem:[#allocation13 + $0xf0] sm:$0xff]  ;;  %v5875_v28 = vld [vmem:[#allocation13 + $0xd8] sm:$0xff] }
 0x9b4   : > { %7539 = vmatprep.subr.bf16.mxu1 %v10845_v30  ;;  %v5879_v30 = vld [vmem:[#allocation13 + $0xf8] sm:$0xff]  ;;  %v10639_v23 = vcombine.high %v5874_v20, %v5878_v27 }
 0x9b5   : > { %v10641_v31 = vcombine.high %v5875_v28, %v5879_v30  ;;  %v10640_v3 = vcombine.low %v5875_v28, %v5879_v30  ;;  %v5922_v30 = vld [vmem:[#allocation13 + $0x250] sm:$0xff] }
 0x9b6   : > { %7454 = vmatpush1.bf16.msra.mxu0 %v10842_v35  ;;  %v5882_v35 = vld [vmem:[#allocation13 + $0x110] sm:$0xff] }
 0x9b7   : > { %7540 = vmatpush1.bf16.msra.mxu1 %v10844_v36  ;;  %7455 = vmatprep.subr.bf16.mxu0 %v10851_v37  ;;  %v5886_v36 = vld [vmem:[#allocation13 + $0x130] sm:$0xff]  ;;  %v5883_v37 = vld [vmem:[#allocation13 + $0x118] sm:$0xff] }
 0x9b8   : > { %7541 = vmatprep.subr.bf16.mxu1 %v10853_v43  ;;  %v5887_v43 = vld [vmem:[#allocation13 + $0x138] sm:$0xff]  ;;  %v10647_v52 = vcombine.high %v5882_v35, %v5886_v36 }
 0x9b9   : > { %v10649_v10 = vcombine.high %v5883_v37, %v5887_v43  ;;  %v10648_v56 = vcombine.low %v5883_v37, %v5887_v43  ;;  %v5930_v43 = vld [vmem:[#allocation13 + $0x290] sm:$0xff] }
 0x9ba   : > { %7456 = vmatpush1.bf16.msra.mxu0 %v10850_v6  ;;  %v5894_v6 = vld [vmem:[#allocation13 + $0x170] sm:$0xff] }
 0x9bb   : > { %7542 = vmatpush1.bf16.msra.mxu1 %v10852_v12  ;;  %7457 = vmatprep.subr.bf16.mxu0 %v10859_v11  ;;  %v5891_v12 = vld [vmem:[#allocation13 + $0x158] sm:$0xff]  ;;  %v10655_v22 = vcombine.high %v5890_v17, %v5894_v6 }
 0x9bc   : > { %7543 = vmatprep.subr.bf16.mxu1 %v10861_v46  ;;  %v5895_v11 = vld [vmem:[#allocation13 + $0x178] sm:$0xff]  ;;  %v10646_v46 = vcombine.low %v5882_v35, %v5886_v36 }
 0x9bd   : > { %v10657_v47 = vcombine.high %v5891_v12, %v5895_v11  ;;  %v10656_v8 = vcombine.low %v5891_v12, %v5895_v11  ;;  %v5938_v11 = vld [vmem:[#allocation13 + $0x2d0] sm:$0xff] }
 0x9be   : > { %7458 = vmatpush1.bf16.msra.mxu0 %v10858_v57  ;;  %v5902_v57 = vld [vmem:[#allocation13 + $0x1b0] sm:$0xff] }
 0x9bf   : > { %7544 = vmatpush1.bf16.msra.mxu1 %v10860_v42  ;;  %7556 = vmatprep.subr.bf16.mxu0 %v10615_v19  ;;  %v5899_v42 = vld [vmem:[#allocation13 + $0x198] sm:$0xff]  ;;  %v10663_v49 = vcombine.high %v5898_v51, %v5902_v57  ;;  %v10662_v50 = vcombine.low %v5898_v51, %v5902_v57 }
 0x9c0   : > { %7642 = vmatprep.subr.bf16.mxu1 %v10617_v40  ;;  %v5903_v19 = vld [vmem:[#allocation13 + $0x1b8] sm:$0xff]  ;;  %v10654_v40 = vcombine.low %v5890_v17, %v5894_v6 }
 0x9c1   : > { %7460 = vmatmul.mubr.bf16.vlgmr.msra.gmra.mrb[28].mxu0 %v13118_v29  ;;  %v10664_v24 = vcombine.low %v5899_v42, %v5903_v19 }
 0x9c2   : > { %7546 = vmatmul.mubr.bf16.vlgmr.msra.gmra.mrb[28].mxu1 %v13118_v29  ;;  %7557 = vmatpush1.bf16.msra.mxu0 %v10614_v33  ;;  %v10665_v33 = vcombine.high %v5899_v42, %v5903_v19  ;;  %v5946_v19 = vld [vmem:[#allocation13 + $0x310] sm:$0xff] }
 0x9c3   : > { %7588 = vmatprep.mubr.bf16.mxu0 %v13114_v25  ;;  %7643 = vmatpush1.bf16.msra.mxu1 %v10616_v44  ;;  %v5907_v44 = vld [vmem:[#allocation13 + $0x1d8] sm:$0xff] }
 0x9c4   : > { %7674 = vmatprep.mubr.bf16.mxu1 %v13114_v25  ;;  %7558 = vmatprep.subr.bf16.mxu0 %v10623_v55  ;;  %v10638_v25 = vcombine.low %v5874_v20, %v5878_v27  ;;  %v5911_v55 = vld [vmem:[#allocation13 + $0x1f8] sm:$0xff] }
 0x9c5   : > { %7644 = vmatprep.subr.bf16.mxu1 %v10625_v62  ;;  %v10671_v62 = vcombine.high %v5906_v13, %v5910_v53  ;;  %v10673_v61 = vcombine.high %v5907_v44, %v5911_v55  ;;  %v10672_v20 = vcombine.low %v5907_v44, %v5911_v55  ;;  %v5954_v55 = vld [vmem:[#allocation13 + $0x350] sm:$0xff] }
 0x9c6   : > { %7559 = vmatpush1.bf16.msra.mxu0 %v10622_v2  ;;  %v5918_v2 = vld [vmem:[#allocation13 + $0x230] sm:$0xff] }
 0x9c7   : > { %7645 = vmatpush1.bf16.msra.mxu1 %v10624_v16  ;;  %7560 = vmatprep.subr.bf16.mxu0 %v10631_v18  ;;  %v5915_v16 = vld [vmem:[#allocation13 + $0x218] sm:$0xff]  ;;  %v10679_v27 = vcombine.high %v5914_v63, %v5918_v2 }
 0x9c8   : > { %7646 = vmatprep.subr.bf16.mxu1 %v10633_v7  ;;  %v5919_v18 = vld [vmem:[#allocation13 + $0x238] sm:$0xff]  ;;  %v10670_v7 = vcombine.low %v5906_v13, %v5910_v53 }
 0x9c9   : > { %v10681_v28 = vcombine.high %v5915_v16, %v5919_v18  ;;  %v10680_v35 = vcombine.low %v5915_v16, %v5919_v18  ;;  %v5962_v18 = vld [vmem:[#allocation13 + $0x390] sm:$0xff] }
 0x9ca   : > { %7561 = vmatpush1.bf16.msra.mxu0 %v10630_v58  ;;  %v5926_v58 = vld [vmem:[#allocation13 + $0x270] sm:$0xff] }
 0x9cb   : > { %7647 = vmatpush1.bf16.msra.mxu1 %v10632_v9  ;;  %7562 = vmatprep.subr.bf16.mxu0 %v10639_v23  ;;  %v5923_v9 = vld [vmem:[#allocation13 + $0x258] sm:$0xff]  ;;  %v10687_v36 = vcombine.high %v5922_v30, %v5926_v58 }
 0x9cc   : > { %7648 = vmatprep.subr.bf16.mxu1 %v10641_v31  ;;  %v5927_v23 = vld [vmem:[#allocation13 + $0x278] sm:$0xff]  ;;  %v10678_v31 = vcombine.low %v5914_v63, %v5918_v2 }
 0x9cd   : > { %v10689_v37 = vcombine.high %v5923_v9, %v5927_v23  ;;  %v10688_v17 = vcombine.low %v5923_v9, %v5927_v23  ;;  %v5970_v23 = vld [vmem:[#allocation13 + $0x3d0] sm:$0xff] }
 0x9ce   : > { %7563 = vmatpush1.bf16.msra.mxu0 %v10638_v25  ;;  %v5934_v25 = vld [vmem:[#allocation13 + $0x2b0] sm:$0xff] }
 0x9cf   : > { %7649 = vmatpush1.bf16.msra.mxu1 %v10640_v3  ;;  %7564 = vmatprep.subr.bf16.mxu0 %v10647_v52  ;;  %v5931_v3 = vld [vmem:[#allocation13 + $0x298] sm:$0xff]  ;;  %v10695_v6 = vcombine.high %v5930_v43, %v5934_v25 }
 0x9d0   : > { %7650 = vmatprep.subr.bf16.mxu1 %v10649_v10  ;;  %v5935_v52 = vld [vmem:[#allocation13 + $0x2b8] sm:$0xff]  ;;  %v10686_v10 = vcombine.low %v5922_v30, %v5926_v58 }
 0x9d1   : > { %v10697_v12 = vcombine.high %v5931_v3, %v5935_v52  ;;  %v10696_v51 = vcombine.low %v5931_v3, %v5935_v52  ;;  %v5978_v52 = vld [vmem:[#allocation13 + $0x410] sm:$0xff] }
 0x9d2   : > { %7565 = vmatpush1.bf16.msra.mxu0 %v10646_v46  ;;  %v5942_v46 = vld [vmem:[#allocation13 + $0x2f0] sm:$0xff] }
 0x9d3   : > { %7651 = vmatpush1.bf16.msra.mxu1 %v10648_v56  ;;  %7566 = vmatprep.subr.bf16.mxu0 %v10655_v22  ;;  %v5939_v56 = vld [vmem:[#allocation13 + $0x2d8] sm:$0xff]  ;;  %v10703_v57 = vcombine.high %v5938_v11, %v5942_v46 }
 0x9d4   : > { %7652 = vmatprep.subr.bf16.mxu1 %v10657_v47  ;;  %v5943_v22 = vld [vmem:[#allocation13 + $0x2f8] sm:$0xff]  ;;  %v10694_v47 = vcombine.low %v5930_v43, %v5934_v25 }
 0x9d5   : > { %v10705_v42 = vcombine.high %v5939_v56, %v5943_v22  ;;  %v10704_v13 = vcombine.low %v5939_v56, %v5943_v22  ;;  %v5986_v22 = vld [vmem:[#allocation13 + $0x450] sm:$0xff] }
 0x9d6   : > { %7567 = vmatpush1.bf16.msra.mxu0 %v10654_v40  ;;  %v5950_v40 = vld [vmem:[#allocation13 + $0x330] sm:$0xff] }
 0x9d7   : > { %7653 = vmatpush1.bf16.msra.mxu1 %v10656_v8  ;;  %7568 = vmatprep.subr.bf16.mxu0 %v10663_v49  ;;  %v5947_v8 = vld [vmem:[#allocation13 + $0x318] sm:$0xff]  ;;  %v10711_v53 = vcombine.high %v5946_v19, %v5950_v40 }
 0x9d8   : > { %7654 = vmatprep.subr.bf16.mxu1 %v10665_v33  ;;  %v5951_v49 = vld [vmem:[#allocation13 + $0x338] sm:$0xff]  ;;  %v10702_v33 = vcombine.low %v5938_v11, %v5942_v46 }
 0x9d9   : > { %v10713_v44 = vcombine.high %v5947_v8, %v5951_v49  ;;  %v10712_v63 = vcombine.low %v5947_v8, %v5951_v49  ;;  %v5994_v8 = vld [vmem:[#allocation13 + $0x490] sm:$0xff] }
 0x9da   : > { %7569 = vmatpush1.bf16.msra.mxu0 %v10662_v50  ;;  %v5958_v50 = vld [vmem:[#allocation13 + $0x370] sm:$0xff] }
 0x9db   : > { %7655 = vmatpush1.bf16.msra.mxu1 %v10664_v24  ;;  %7570 = vmatprep.subr.bf16.mxu0 %v10671_v62  ;;  %v5955_v24 = vld [vmem:[#allocation13 + $0x358] sm:$0xff]  ;;  %v10719_v2 = vcombine.high %v5954_v55, %v5958_v50  ;;  %v5998_v49 = vld [vmem:[#allocation13 + $0x4b0] sm:$0xff] }
 0x9dc   : > { %7656 = vmatprep.subr.bf16.mxu1 %v10673_v61  ;;  %v5959_v62 = vld [vmem:[#allocation13 + $0x378] sm:$0xff]  ;;  %v10710_v61 = vcombine.low %v5946_v19, %v5950_v40 }
 0x9dd   : > { %v10721_v16 = vcombine.high %v5955_v24, %v5959_v62  ;;  %v10720_v30 = vcombine.low %v5955_v24, %v5959_v62  ;;  %v6002_v62 = vld [vmem:[#allocation13 + $0x4d0] sm:$0xff] }
 0x9de   : > { %7571 = vmatpush1.bf16.msra.mxu0 %v10670_v7  ;;  %v5966_v7 = vld [vmem:[#allocation13 + $0x3b0] sm:$0xff] }
 0x9df   : > { %7657 = vmatpush1.bf16.msra.mxu1 %v10672_v20  ;;  %7572 = vmatprep.subr.bf16.mxu0 %v10679_v27  ;;  %v5963_v20 = vld [vmem:[#allocation13 + $0x398] sm:$0xff]  ;;  %v10727_v58 = vcombine.high %v5962_v18, %v5966_v7 }
 0x9e0   : > { %7658 = vmatprep.subr.bf16.mxu1 %v10681_v28  ;;  %v5967_v27 = vld [vmem:[#allocation13 + $0x3b8] sm:$0xff]  ;;  %v10718_v28 = vcombine.low %v5954_v55, %v5958_v50  ;;  %v10759_v50 = vcombine.high %v5994_v8, %v5998_v49 }
 0x9e1   : > { %v10729_v9 = vcombine.high %v5963_v20, %v5967_v27  ;;  %v10728_v43 = vcombine.low %v5963_v20, %v5967_v27  ;;  %v6010_v20 = vld [vmem:[#allocation13 + $0x510] sm:$0xff] }
 0x9e2   : > { %7573 = vmatpush1.bf16.msra.mxu0 %v10678_v31  ;;  %v5974_v31 = vld [vmem:[#allocation13 + $0x3f0] sm:$0xff] }
 0x9e3   : > { %7659 = vmatpush1.bf16.msra.mxu1 %v10680_v35  ;;  %7574 = vmatprep.subr.bf16.mxu0 %v10687_v36  ;;  %v5971_v35 = vld [vmem:[#allocation13 + $0x3d8] sm:$0xff]  ;;  %v10735_v25 = vcombine.high %v5970_v23, %v5974_v31  ;;  %v6014_v27 = vld [vmem:[#allocation13 + $0x530] sm:$0xff] }
 0x9e4   : > { %7660 = vmatprep.subr.bf16.mxu1 %v10689_v37  ;;  %v5975_v36 = vld [vmem:[#allocation13 + $0x3f8] sm:$0xff]  ;;  %v10726_v37 = vcombine.low %v5962_v18, %v5966_v7 }
 0x9e5   : > { %v10737_v3 = vcombine.high %v5971_v35, %v5975_v36  ;;  %v10736_v11 = vcombine.low %v5971_v35, %v5975_v36  ;;  %v6022_v35 = vld [vmem:[#allocation13 + $0x570] sm:$0xff]  ;;  %v6019_v36 = vld [vmem:[#allocation13 + $0x558] sm:$0xff] }
 0x9e6   : > { %7575 = vmatpush1.bf16.msra.mxu0 %v10686_v10  ;;  %v5982_v10 = vld [vmem:[#allocation13 + $0x430] sm:$0xff] }
 0x9e7   : > { %7661 = vmatpush1.bf16.msra.mxu1 %v10688_v17  ;;  %7576 = vmatprep.subr.bf16.mxu0 %v10695_v6  ;;  %v5979_v17 = vld [vmem:[#allocation13 + $0x418] sm:$0xff]  ;;  %v10743_v46 = vcombine.high %v5978_v52, %v5982_v10 }
 0x9e8   : > { %7662 = vmatprep.subr.bf16.mxu1 %v10697_v12  ;;  %v5983_v6 = vld [vmem:[#allocation13 + $0x438] sm:$0xff]  ;;  %v10734_v12 = vcombine.low %v5970_v23, %v5974_v31  ;;  %v6018_v31 = vld [vmem:[#allocation13 + $0x550] sm:$0xff] }
 0x9e9   : > { %v10745_v56 = vcombine.high %v5979_v17, %v5983_v6  ;;  %v10744_v19 = vcombine.low %v5979_v17, %v5983_v6  ;;  %v6030_v17 = vld [vmem:[#allocation13 + $0x5b0] sm:$0xff]  ;;  %v6027_v6 = vld [vmem:[#allocation13 + $0x598] sm:$0xff] }
 0x9ea   : > { %7577 = vmatpush1.bf16.msra.mxu0 %v10694_v47  ;;  %v5990_v47 = vld [vmem:[#allocation13 + $0x470] sm:$0xff] }
 0x9eb   : > { %7663 = vmatpush1.bf16.msra.mxu1 %v10696_v51  ;;  %7578 = vmatprep.subr.bf16.mxu0 %v10703_v57  ;;  %v10742_v51 = vcombine.low %v5978_v52, %v5982_v10  ;;  %v5987_v57 = vld [vmem:[#allocation13 + $0x458] sm:$0xff]  ;;  %v10751_v40 = vcombine.high %v5986_v22, %v5990_v47  ;;  %v6026_v10 = vld [vmem:[#allocation13 + $0x590] sm:$0xff] }
 0x9ec   : > { %7664 = vmatprep.subr.bf16.mxu1 %v10705_v42  ;;  %v5991_v42 = vld [vmem:[#allocation13 + $0x478] sm:$0xff] }
 0x9ed   : > { %v10752_v55 = vcombine.low %v5987_v57, %v5991_v42 }
 0x9ee   : > { %7579 = vmatpush1.bf16.msra.mxu0 %v10702_v33  ;;  %v10753_v33 = vcombine.high %v5987_v57, %v5991_v42  ;;  %v6038_v57 = vld [vmem:[#allocation13 + $0x5f0] sm:$0xff] }
 0x9ef   : > { %7665 = vmatpush1.bf16.msra.mxu1 %v10704_v13  ;;  %7580 = vmatprep.subr.bf16.mxu0 %v10711_v53  ;;  %v5995_v13 = vld [vmem:[#allocation13 + $0x498] sm:$0xff] }
 0x9f0   : > { %7666 = vmatprep.subr.bf16.mxu1 %v10713_v44  ;;  %v5999_v53 = vld [vmem:[#allocation13 + $0x4b8] sm:$0xff]  ;;  %v10750_v44 = vcombine.low %v5986_v22, %v5990_v47 }
 0x9f1   : > { %v10761_v24 = vcombine.high %v5995_v13, %v5999_v53 }
 0x9f2   : > { %7581 = vmatpush1.bf16.msra.mxu0 %v10710_v61  ;;  %v6006_v61 = vld [vmem:[#allocation13 + $0x4f0] sm:$0xff] }
 0x9f3   : > { %7667 = vmatpush1.bf16.msra.mxu1 %v10712_v63  ;;  %7582 = vmatprep.subr.bf16.mxu0 %v10719_v2  ;;  %v6003_v63 = vld [vmem:[#allocation13 + $0x4d8] sm:$0xff]  ;;  %v10767_v18 = vcombine.high %v6002_v62, %v6006_v61 }
 0x9f4   : > { %7668 = vmatprep.subr.bf16.mxu1 %v10721_v16  ;;  %v6007_v2 = vld [vmem:[#allocation13 + $0x4f8] sm:$0xff]  ;;  %v10758_v16 = vcombine.low %v5994_v8, %v5998_v49 }
 0x9f5   : > { %v10769_v7 = vcombine.high %v6003_v63, %v6007_v2  ;;  %v6039_v8 = vld [vmem:[#allocation13 + $0x5f8] sm:$0xff] }
 0x9f6   : > { %7583 = vmatpush1.bf16.msra.mxu0 %v10718_v28  ;;  %v6011_v28 = vld [vmem:[#allocation13 + $0x518] sm:$0xff] }
 0x9f7   : > { %7669 = vmatpush1.bf16.msra.mxu1 %v10720_v30  ;;  %7584 = vmatprep.subr.bf16.mxu0 %v10727_v58  ;;  %v6015_v30 = vld [vmem:[#allocation13 + $0x538] sm:$0xff]  ;;  %v10768_v58 = vcombine.low %v6003_v63, %v6007_v2  ;;  %v6046_v63 = vld [vmem:[#allocation13 + $0x630] sm:$0xff] }
 0x9f8   : > { %7670 = vmatprep.subr.bf16.mxu1 %v10729_v9  ;;  %v10775_v9 = vcombine.high %v6010_v20, %v6014_v27  ;;  %v10777_v23 = vcombine.high %v6011_v28, %v6015_v30  ;;  %v6043_v2 = vld [vmem:[#allocation13 + $0x618] sm:$0xff] }
 0x9fa   : > { %7585 = vmatpush1.bf16.msra.mxu0 %v10726_v37  ;;  %v6023_v37 = vld [vmem:[#allocation13 + $0x578] sm:$0xff] }
 0x9fb   : > { %7671 = vmatpush1.bf16.msra.mxu1 %v10728_v43  ;;  %7586 = vmatprep.subr.bf16.mxu0 %v10735_v25  ;;  %v10774_v43 = vcombine.low %v6010_v20, %v6014_v27  ;;  %v10776_v25 = vcombine.low %v6011_v28, %v6015_v30  ;;  %v10785_v52 = vcombine.high %v6019_v36, %v6023_v37  ;;  %v6050_v27 = vld [vmem:[#allocation13 + $0x650] sm:$0xff]  ;;  %v6051_v30 = vld [vmem:[#allocation13 + $0x658] sm:$0xff] }
 0x9fc   : > { %7672 = vmatprep.subr.bf16.mxu1 %v10737_v3  ;;  %v10783_v3 = vcombine.high %v6018_v31, %v6022_v35  ;;  %v6054_v28 = vld [vmem:[#allocation13 + $0x670] sm:$0xff] }
 0x9fe   : > { %7587 = vmatpush1.bf16.msra.mxu0 %v10734_v12  ;;  %v6031_v12 = vld [vmem:[#allocation13 + $0x5b8] sm:$0xff] }
 0x9ff   : > { %7673 = vmatpush1.bf16.msra.mxu1 %v10736_v11  ;;  %7599 = vmatprep.subr.bf16.mxu0 %v10743_v46  ;;  %v10782_v11 = vcombine.low %v6018_v31, %v6022_v35  ;;  %v10784_v46 = vcombine.low %v6019_v36, %v6023_v37  ;;  %v10793_v47 = vcombine.high %v6027_v6, %v6031_v12  ;;  %v6058_v35 = vld [vmem:[#allocation13 + $0x690] sm:$0xff]  ;;  %v6059_v37 = vld [vmem:[#allocation13 + $0x698] sm:$0xff] }
 0xa00   : > { %7685 = vmatprep.subr.bf16.mxu1 %v10745_v56  ;;  %v10791_v56 = vcombine.high %v6026_v10, %v6030_v17  ;;  %v6062_v36 = vld [vmem:[#allocation13 + $0x6b0] sm:$0xff] }
 0xa01   : > { %7589 = vmatmul.mubr.bf16.vlgmr.msra.gmra.mrb[32].mxu0 %v13116_v26 }
 0xa02   : > { %7675 = vmatmul.mubr.bf16.vlgmr.msra.gmra.mrb[32].mxu1 %v13116_v26  ;;  %7600 = vmatpush1.bf16.msra.mxu0 %v10742_v51  ;;  %v10760_v26 = vcombine.low %v5995_v13, %v5999_v53  ;;  %v6034_v51 = vld [vmem:[#allocation13 + $0x5d0] sm:$0xff]  ;;  %v10790_v13 = vcombine.low %v6026_v10, %v6030_v17 }
 0xa03   : > { %7631 = vmatprep.mubr.bf16.mxu0 %v13124_v34  ;;  %7686 = vmatpush1.bf16.msra.mxu1 %v10744_v19  ;;  %v6066_v17 = vld [vmem:[#allocation13 + $0x6d0] sm:$0xff] }
 0xa04   : > { %7717 = vmatprep.mubr.bf16.mxu1 %v13124_v34  ;;  %7601 = vmatprep.subr.bf16.mxu0 %v10751_v40  ;;  %v10766_v34 = vcombine.low %v6002_v62, %v6006_v61  ;;  %v6035_v40 = vld [vmem:[#allocation13 + $0x5d8] sm:$0xff]  ;;  %v6042_v61 = vld [vmem:[#allocation13 + $0x610] sm:$0xff] }
 0xa05   : > { %7687 = vmatprep.subr.bf16.mxu1 %v10753_v33  ;;  %v10801_v62 = vcombine.high %v6035_v40, %v6039_v8 }
 0xa06   : > { %7602 = vmatpush1.bf16.msra.mxu0 %v10750_v44 }
 0xa07   : > { %7688 = vmatpush1.bf16.msra.mxu1 %v10752_v55  ;;  %7603 = vmatprep.subr.bf16.mxu0 %v10759_v50  ;;  %v10792_v55 = vcombine.low %v6027_v6, %v6031_v12  ;;  %v10799_v50 = vcombine.high %v6034_v51, %v6038_v57  ;;  %v6070_v6 = vld [vmem:[#allocation13 + $0x6f0] sm:$0xff]  ;;  %v6067_v12 = vld [vmem:[#allocation13 + $0x6d8] sm:$0xff] }
 0xa08   : > { %7689 = vmatprep.subr.bf16.mxu1 %v10761_v24 }
 0xa0a   : > { %7604 = vmatpush1.bf16.msra.mxu0 %v10758_v16  ;;  %v6047_v16 = vld [vmem:[#allocation13 + $0x638] sm:$0xff] }
 0xa0b   : > { %7690 = vmatpush1.bf16.msra.mxu1 %v10760_v26  ;;  %7605 = vmatprep.subr.bf16.mxu0 %v10767_v18  ;;  %v10798_v26 = vcombine.low %v6034_v51, %v6038_v57  ;;  %v10800_v18 = vcombine.low %v6035_v40, %v6039_v8  ;;  %v10809_v20 = vcombine.high %v6043_v2, %v6047_v16  ;;  %v6074_v57 = vld [vmem:[#allocation13 + $0x710] sm:$0xff]  ;;  %v6075_v8 = vld [vmem:[#allocation13 + $0x718] sm:$0xff] }
 0xa0c   : > { %7691 = vmatprep.subr.bf16.mxu1 %v10769_v7  ;;  %v10807_v7 = vcombine.high %v6042_v61, %v6046_v63  ;;  %v6078_v40 = vld [vmem:[#allocation13 + $0x730] sm:$0xff] }
 0xa0e   : > { %7606 = vmatpush1.bf16.msra.mxu0 %v10766_v34  ;;  %v6055_v34 = vld [vmem:[#allocation13 + $0x678] sm:$0xff] }
 0xa0f   : > { %7692 = vmatpush1.bf16.msra.mxu1 %v10768_v58  ;;  %7607 = vmatprep.subr.bf16.mxu0 %v10775_v9  ;;  %v10806_v58 = vcombine.low %v6042_v61, %v6046_v63  ;;  %v10808_v9 = vcombine.low %v6043_v2, %v6047_v16  ;;  %v10817_v31 = vcombine.high %v6051_v30, %v6055_v34  ;;  %v6082_v63 = vld [vmem:[#allocation13 + $0x750] sm:$0xff]  ;;  %v6083_v16 = vld [vmem:[#allocation13 + $0x758] sm:$0xff] }
 0xa10   : > { %7693 = vmatprep.subr.bf16.mxu1 %v10777_v23  ;;  %v10815_v23 = vcombine.high %v6050_v27, %v6054_v28  ;;  %v6086_v2 = vld [vmem:[#allocation13 + $0x770] sm:$0xff] }
 0xa12   : > { %7608 = vmatpush1.bf16.msra.mxu0 %v10774_v43  ;;  %v6063_v43 = vld [vmem:[#allocation13 + $0x6b8] sm:$0xff] }
 0xa13   : > { %7694 = vmatpush1.bf16.msra.mxu1 %v10776_v25  ;;  %7609 = vmatprep.subr.bf16.mxu0 %v10783_v3  ;;  %v10814_v25 = vcombine.low %v6050_v27, %v6054_v28  ;;  %v10816_v3 = vcombine.low %v6051_v30, %v6055_v34  ;;  %v10825_v10 = vcombine.high %v6059_v37, %v6063_v43  ;;  %v6090_v28 = vld [vmem:[#allocation13 + $0x790] sm:$0xff]  ;;  %v6091_v34 = vld [vmem:[#allocation13 + $0x798] sm:$0xff] }
 0xa14   : > { %v13168_v22 = vpop.f32.mrb[24].mxu0  ;;  %7695 = vmatprep.subr.bf16.mxu1 %v10785_v52  ;;  %v10823_v52 = vcombine.high %v6058_v35, %v6062_v36  ;;  %v6094_v30 = vld [vmem:[#allocation13 + $0x7b0] sm:$0xff] }
 0xa15   : > { %v13170_v42 = vpop.f32.mrb[24].mxu1  ;;  %v13172_v19 = vpop.f32.mrb[25].mxu0 }
 0xa16   : > { %v13174_v49 = vpop.f32.mrb[25].mxu1  ;;  %v13176_v33 = vpop.f32.mrb[26].mxu0  ;;  %7610 = vmatpush1.bf16.msra.mxu0 %v10782_v11  ;;  %v6071_v11 = vld [vmem:[#allocation13 + $0x6f8] sm:$0xff] }
 0xa17   : > { %v13178_v53 = vpop.f32.mrb[26].mxu1  ;;  %7696 = vmatpush1.bf16.msra.mxu1 %v10784_v46  ;;  %v13180_v44 = vpop.f32.mrb[27].mxu0  ;;  %7611 = vmatprep.subr.bf16.mxu0 %v10791_v56  ;;  %v10822_v46 = vcombine.low %v6058_v35, %v6062_v36  ;;  %v10824_v56 = vcombine.low %v6059_v37, %v6063_v43  ;;  %v10833_v51 = vcombine.high %v6067_v12, %v6071_v11  ;;  %v6098_v36 = vld [vmem:[#allocation13 + $0x7d0] sm:$0xff]  ;;  %v6099_v43 = vld [vmem:[#allocation13 + $0x7d8] sm:$0xff] }
 0xa18   : > { %v13182_v24 = vpop.f32.mrb[27].mxu1  ;;  %7697 = vmatprep.subr.bf16.mxu1 %v10793_v47  ;;  %v10831_v47 = vcombine.high %v6066_v17, %v6070_v6  ;;  %v6102_v37 = vld [vmem:[#allocation13 + $0x7f0] sm:$0xff] }
 0xa1a   : > { %7612 = vmatpush1.bf16.msra.mxu0 %v10790_v13  ;;  %v6079_v13 = vld [vmem:[#allocation13 + $0x738] sm:$0xff] }
 0xa1b   : > { %7698 = vmatpush1.bf16.msra.mxu1 %v10792_v55  ;;  %7613 = vmatprep.subr.bf16.mxu0 %v10799_v50  ;;  %v10830_v55 = vcombine.low %v6066_v17, %v6070_v6  ;;  %v10832_v50 = vcombine.low %v6067_v12, %v6071_v11  ;;  %v10841_v61 = vcombine.high %v6075_v8, %v6079_v13  ;;  %v11607_v11 = vld [vmem:[#allocation14 + $0x4] ss:$16 sps:$4 sm:$0xff]  }
 0xa1c   : > { %7699 = vmatprep.subr.bf16.mxu1 %v10801_v62  ;;  %v10839_v62 = vcombine.high %v6074_v57, %v6078_v40  ;;  %v10862_v6 = vcombine.low %v6098_v36, %v6102_v37 }
 0xa1e   : > { %7614 = vmatpush1.bf16.msra.mxu0 %v10798_v26  ;;  %v6087_v26 = vld [vmem:[#allocation13 + $0x778] sm:$0xff] }
 0xa1f   : > { %7700 = vmatpush1.bf16.msra.mxu1 %v10800_v18  ;;  %7615 = vmatprep.subr.bf16.mxu0 %v10807_v7  ;;  %v10838_v18 = vcombine.low %v6074_v57, %v6078_v40  ;;  %v10840_v7 = vcombine.low %v6075_v8, %v6079_v13  ;;  %v10849_v27 = vcombine.high %v6083_v16, %v6087_v26  ;;  %v11616_v57 = vld [vmem:[#allocation14 + $0x2c] ss:$16 sps:$4 sm:$0xff]   ;;  %v11611_v40 = vld [vmem:[#allocation14 + $0x20] ss:$16 sps:$4 sm:$0xff]   ;;  %v11614_v8 = vld [vmem:[#allocation14 + $0x28] ss:$16 sps:$4 sm:$0xff]  }
 0xa20   : > { %7701 = vmatprep.subr.bf16.mxu1 %v10809_v20  ;;  %v10847_v20 = vcombine.high %v6082_v63, %v6086_v2  ;;  %v11619_v13 = vld [vmem:[#allocation14 + $0x44] ss:$16 sps:$4 sm:$0xff]  }
 0xa22   : > { %7616 = vmatpush1.bf16.msra.mxu0 %v10806_v58  ;;  %v6095_v58 = vld [vmem:[#allocation13 + $0x7b8] sm:$0xff] }
 0xa23   : > { %7702 = vmatpush1.bf16.msra.mxu1 %v10808_v9  ;;  %7617 = vmatprep.subr.bf16.mxu0 %v10815_v23  ;;  %v10846_v9 = vcombine.low %v6082_v63, %v6086_v2  ;;  %v10848_v23 = vcombine.low %v6083_v16, %v6087_v26  ;;  %v10857_v35 = vcombine.high %v6091_v34, %v6095_v58  ;;  %v11628_v63 = vld [vmem:[#allocation14 + $0x6c] ss:$16 sps:$4 sm:$0xff]   ;;  %v11623_v2 = vld [vmem:[#allocation14 + $0x60] ss:$16 sps:$4 sm:$0xff]   ;;  %v11631_v16 = vld [vmem:[#allocation14 + $0x84] ss:$16 sps:$4 sm:$0xff]  }
 0xa24   : > { %7703 = vmatprep.subr.bf16.mxu1 %v10817_v31  ;;  %v10855_v31 = vcombine.high %v6090_v28, %v6094_v30  ;;  %v11634_v26 = vld [vmem:[#allocation14 + $0x8c] ss:$16 sps:$4 sm:$0xff]  }
 0xa26   : > { %7618 = vmatpush1.bf16.msra.mxu0 %v10814_v25  ;;  %v6103_v25 = vld [vmem:[#allocation13 + $0x7f8] sm:$0xff] }
 0xa27   : > { %7704 = vmatpush1.bf16.msra.mxu1 %v10816_v3  ;;  %7619 = vmatprep.subr.bf16.mxu0 %v10823_v52  ;;  %v10854_v3 = vcombine.low %v6090_v28, %v6094_v30  ;;  %v10856_v52 = vcombine.low %v6091_v34, %v6095_v58  ;;  %v10865_v17 = vcombine.high %v6099_v43, %v6103_v25  ;;  %v11635_v28 = vld [vmem:[#allocation14 + $0xa0] ss:$16 sps:$4 sm:$0xff]   ;;  %v11638_v30 = vld [vmem:[#allocation14 + $0xa8] ss:$16 sps:$4 sm:$0xff]   ;;  %v11643_v34 = vld [vmem:[#allocation14 + $0xc4] ss:$16 sps:$4 sm:$0xff]  }
 0xa28   : > { %7705 = vmatprep.subr.bf16.mxu1 %v10825_v10  ;;  %v10863_v10 = vcombine.high %v6098_v36, %v6102_v37  ;;  %v10864_v12 = vcombine.low %v6099_v43, %v6103_v25  ;;  %v11646_v58 = vld [vmem:[#allocation14 + $0xcc] ss:$16 sps:$4 sm:$0xff]   ;;  %v11647_v36 = vld [vmem:[#allocation14 + $0xe0] ss:$16 sps:$4 sm:$0xff]   ;;  %v11650_v37 = vld [vmem:[#allocation14 + $0xe8] ss:$16 sps:$4 sm:$0xff]  }
 0xa29   : > { %v11655_v43 = vld [vmem:[#allocation14 + $0x104] ss:$16 sps:$4 sm:$0xff]   ;;  %v11658_v25 = vld [vmem:[#allocation14 + $0x10c] ss:$16 sps:$4 sm:$0xff]  }
 0xa2a   : > { %7620 = vmatpush1.bf16.msra.mxu0 %v10822_v46  ;;  %v11610_v46 = vld [vmem:[#allocation14 + $0xc] ss:$16 sps:$4 sm:$0xff]  }
 0xa2b   : > { %7706 = vmatpush1.bf16.msra.mxu1 %v10824_v56  ;;  %7621 = vmatprep.subr.bf16.mxu0 %v10831_v47  ;;  %v11605_v56 = vld [vmem:[#allocation14] ss:$16 sps:$4 sm:$0xff]   ;;  %v11608_v47 = vld [vmem:[#allocation14 + $0x8] ss:$16 sps:$4 sm:$0xff]  }
 0xa2c   : > { %7707 = vmatprep.subr.bf16.mxu1 %v10833_v51  ;;  %v11613_v51 = vld [vmem:[#allocation14 + $0x24] ss:$16 sps:$4 sm:$0xff]  }
 0xa2e   : > { %7622 = vmatpush1.bf16.msra.mxu0 %v10830_v55  ;;  %v11622_v55 = vld [vmem:[#allocation14 + $0x4c] ss:$16 sps:$4 sm:$0xff]  }
 0xa2f   : > { %7708 = vmatpush1.bf16.msra.mxu1 %v10832_v50  ;;  %7623 = vmatprep.subr.bf16.mxu0 %v10839_v62  ;;  %v11617_v50 = vld [vmem:[#allocation14 + $0x40] ss:$16 sps:$4 sm:$0xff]   ;;  %v11620_v62 = vld [vmem:[#allocation14 + $0x48] ss:$16 sps:$4 sm:$0xff]  }
 0xa30   : > { %7709 = vmatprep.subr.bf16.mxu1 %v10841_v61  ;;  %v11625_v61 = vld [vmem:[#allocation14 + $0x64] ss:$16 sps:$4 sm:$0xff]  }
 0xa32   : > { %7624 = vmatpush1.bf16.msra.mxu0 %v10838_v18  ;;  %v11629_v18 = vld [vmem:[#allocation14 + $0x80] ss:$16 sps:$4 sm:$0xff]  }
 0xa33   : > { %7710 = vmatpush1.bf16.msra.mxu1 %v10840_v7  ;;  %7625 = vmatprep.subr.bf16.mxu0 %v10847_v20  ;;  %v11632_v7 = vld [vmem:[#allocation14 + $0x88] ss:$16 sps:$4 sm:$0xff]   ;;  %v11637_v20 = vld [vmem:[#allocation14 + $0xa4] ss:$16 sps:$4 sm:$0xff]  }
 0xa34   : > { %7711 = vmatprep.subr.bf16.mxu1 %v10849_v27  ;;  %v11640_v27 = vld [vmem:[#allocation14 + $0xac] ss:$16 sps:$4 sm:$0xff]  }
 0xa36   : > { %7626 = vmatpush1.bf16.msra.mxu0 %v10846_v9  ;;  %v11641_v9 = vld [vmem:[#allocation14 + $0xc0] ss:$16 sps:$4 sm:$0xff]  }
 0xa37   : > { %7712 = vmatpush1.bf16.msra.mxu1 %v10848_v23  ;;  %7627 = vmatprep.subr.bf16.mxu0 %v10855_v31  ;;  %v11644_v23 = vld [vmem:[#allocation14 + $0xc8] ss:$16 sps:$4 sm:$0xff]   ;;  %v11649_v31 = vld [vmem:[#allocation14 + $0xe4] ss:$16 sps:$4 sm:$0xff]  }
 0xa38   : > { %7713 = vmatprep.subr.bf16.mxu1 %v10857_v35  ;;  %v11652_v35 = vld [vmem:[#allocation14 + $0xec] ss:$16 sps:$4 sm:$0xff]  }
 0xa3a   : > { %7628 = vmatpush1.bf16.msra.mxu0 %v10854_v3  ;;  %v11653_v3 = vld [vmem:[#allocation14 + $0x100] ss:$16 sps:$4 sm:$0xff]  }
 0xa3b   : > { %7714 = vmatpush1.bf16.msra.mxu1 %v10856_v52  ;;  %7629 = vmatprep.subr.bf16.mxu0 %v10863_v10  ;;  %v11656_v52 = vld [vmem:[#allocation14 + $0x108] ss:$16 sps:$4 sm:$0xff]   ;;  %v11661_v10 = vld [vmem:[#allocation14 + $0x124] ss:$16 sps:$4 sm:$0xff]  }
 0xa3c   : > { %7715 = vmatprep.subr.bf16.mxu1 %v10865_v17  ;;  %v11664_v17 = vld [vmem:[#allocation14 + $0x12c] ss:$16 sps:$4 sm:$0xff]  }
 0xa3e   : > { %7630 = vmatpush1.bf16.msra.mxu0 %v10862_v6  ;;  %v11659_v6 = vld [vmem:[#allocation14 + $0x120] ss:$16 sps:$4 sm:$0xff]  }
 0xa3f   : > { %7716 = vmatpush1.bf16.msra.mxu1 %v10864_v12  ;;  %9400 = vmatprep.subr.bf16.mxu0 %v11607_v11  ;;  %v11662_v12 = vld [vmem:[#allocation14 + $0x128] ss:$16 sps:$4 sm:$0xff]   ;;  %v11667_v11 = vld [vmem:[#allocation14 + $0x144] ss:$16 sps:$4 sm:$0xff]  }
 0xa40   : > { %9572 = vmatprep.subr.bf16.mxu1 %v11610_v46  ;;  %v11670_v46 = vld [vmem:[#allocation14 + $0x14c] ss:$16 sps:$4 sm:$0xff]  }
 0xa41   : > { %7632 = vmatmul.mubr.bf16.vlgmr.msra.gmra.mrb[32].mxu0 %v13118_v29 }
 0xa42   : > { %7718 = vmatmul.mubr.bf16.vlgmr.msra.gmra.mrb[32].mxu1 %v13118_v29  ;;  %9401 = vmatpush1.bf16.msra.mxu0 %v11605_v56  ;;  %v11626_v29 = vld [vmem:[#allocation14 + $0x68] ss:$16 sps:$4 sm:$0xff]   ;;  %v11665_v56 = vld [vmem:[#allocation14 + $0x140] ss:$16 sps:$4 sm:$0xff]  }
 0xa43   : > { %9573 = vmatpush1.bf16.msra.mxu1 %v11608_v47  ;;  %9402 = vmatprep.subr.bf16.mxu0 %v11613_v51  ;;  %v11668_v47 = vld [vmem:[#allocation14 + $0x148] ss:$16 sps:$4 sm:$0xff]   ;;  %v11673_v51 = vld [vmem:[#allocation14 + $0x164] ss:$16 sps:$4 sm:$0xff]  }
 0xa44   : > { %9574 = vmatprep.subr.bf16.mxu1 %v11616_v57  ;;  %v11676_v57 = vld [vmem:[#allocation14 + $0x16c] ss:$16 sps:$4 sm:$0xff]  }
 0xa46   : > { %9403 = vmatpush1.bf16.msra.mxu0 %v11611_v40  ;;  %v11671_v40 = vld [vmem:[#allocation14 + $0x160] ss:$16 sps:$4 sm:$0xff]  }
 0xa47   : > { %9575 = vmatpush1.bf16.msra.mxu1 %v11614_v8  ;;  %9404 = vmatprep.subr.bf16.mxu0 %v11619_v13  ;;  %v11674_v8 = vld [vmem:[#allocation14 + $0x168] ss:$16 sps:$4 sm:$0xff]   ;;  %v11679_v13 = vld [vmem:[#allocation14 + $0x184] ss:$16 sps:$4 sm:$0xff]  }
 0xa48   : > { %9576 = vmatprep.subr.bf16.mxu1 %v11622_v55  ;;  %v11682_v55 = vld [vmem:[#allocation14 + $0x18c] ss:$16 sps:$4 sm:$0xff]  }
 0xa4a   : > { %9405 = vmatpush1.bf16.msra.mxu0 %v11617_v50  ;;  %v10866_v50 = vmul.f32 -1.442695, %v13144_v21 }
 0xa4b   : > { %9577 = vmatpush1.bf16.msra.mxu1 %v11620_v62  ;;  %9406 = vmatprep.subr.bf16.mxu0 %v11625_v61  ;;  %v11677_v62 = vld [vmem:[#allocation14 + $0x180] ss:$16 sps:$4 sm:$0xff]   ;;  %v10868_v61 = vmul.f32 -1.442695, %v13146_v54 }
 0xa4c   : > { %9578 = vmatprep.subr.bf16.mxu1 %v11628_v63  ;;  %v11680_v63 = vld [vmem:[#allocation14 + $0x188] ss:$16 sps:$4 sm:$0xff]   ;;  %12029 = vpow2.f32 %v10866_v50 }
 0xa4d   : > { %12031 = vpow2.f32 %v10868_v61 }
 0xa4e   : > { %9407 = vmatpush1.bf16.msra.mxu0 %v11623_v2  ;;  %v11685_v2 = vld [vmem:[#allocation14 + $0x1a4] ss:$16 sps:$4 sm:$0xff]  }
 0xa4f   : > { %9579 = vmatpush1.bf16.msra.mxu1 %v11626_v29  ;;  %9408 = vmatprep.subr.bf16.mxu0 %v11631_v16  ;;  %v10867_v29 = vmul.f32 -1.442695, %v13148_v60  ;;  %v11688_v16 = vld [vmem:[#allocation14 + $0x1ac] ss:$16 sps:$4 sm:$0xff]  }
 0xa50   : > { %9580 = vmatprep.subr.bf16.mxu1 %v11634_v26  ;;  %v10869_v26 = vmul.f32 -1.442695, %v13150_v59 }
 0xa51   : > { %12033 = vpow2.f32 %v10867_v29 }
 0xa52   : > { %9409 = vmatpush1.bf16.msra.mxu0 %v11629_v18  ;;  %v10874_v18 = vmul.f32 -1.442695, %v13152_v0  ;;  %12035 = vpow2.f32 %v10869_v26 }
 0xa53   : > { %9581 = vmatpush1.bf16.msra.mxu1 %v11632_v7  ;;  %9410 = vmatprep.subr.bf16.mxu0 %v11637_v20  ;;  %v11683_v7 = vld [vmem:[#allocation14 + $0x1a0] ss:$16 sps:$4 sm:$0xff]   ;;  %v10876_v20 = vmul.f32 -1.442695, %v13154_v1 }
 0xa54   : > { %9582 = vmatprep.subr.bf16.mxu1 %v11640_v27  ;;  %v11686_v27 = vld [vmem:[#allocation14 + $0x1a8] ss:$16 sps:$4 sm:$0xff]   ;;  %12037 = vpow2.f32 %v10874_v18 }
 0xa55   : > { %12039 = vpow2.f32 %v10876_v20 }
 0xa56   : > { %9411 = vmatpush1.bf16.msra.mxu0 %v11635_v28  ;;  %v11691_v28 = vld [vmem:[#allocation14 + $0x1c4] ss:$16 sps:$4 sm:$0xff]  }
 0xa57   : > { %9583 = vmatpush1.bf16.msra.mxu1 %v11638_v30  ;;  %9412 = vmatprep.subr.bf16.mxu0 %v11643_v34  ;;  %v10875_v30 = vmul.f32 -1.442695, %v13156_v14  ;;  %v11694_v34 = vld [vmem:[#allocation14 + $0x1cc] ss:$16 sps:$4 sm:$0xff]  }
 0xa58   : > { %9584 = vmatprep.subr.bf16.mxu1 %v11646_v58  ;;  %v10877_v58 = vmul.f32 -1.442695, %v13158_v15 }
 0xa59   : > { %12041 = vpow2.f32 %v10875_v30 }
 0xa5a   : > { %9413 = vmatpush1.bf16.msra.mxu0 %v11641_v9  ;;  %v11689_v9 = vld [vmem:[#allocation14 + $0x1c0] ss:$16 sps:$4 sm:$0xff]   ;;  %12043 = vpow2.f32 %v10877_v58 }
 0xa5b   : > { %9585 = vmatpush1.bf16.msra.mxu1 %v11644_v23  ;;  %9414 = vmatprep.subr.bf16.mxu0 %v11649_v31  ;;  %v11692_v23 = vld [vmem:[#allocation14 + $0x1c8] ss:$16 sps:$4 sm:$0xff]   ;;  %v11697_v31 = vld [vmem:[#allocation14 + $0x1e4] ss:$16 sps:$4 sm:$0xff]  }
 0xa5c   : > { %9586 = vmatprep.subr.bf16.mxu1 %v11652_v35  ;;  %v11700_v35 = vld [vmem:[#allocation14 + $0x1ec] ss:$16 sps:$4 sm:$0xff]  }
 0xa5e   : > { %9415 = vmatpush1.bf16.msra.mxu0 %v11647_v36  ;;  %v11695_v36 = vld [vmem:[#allocation14 + $0x1e0] ss:$16 sps:$4 sm:$0xff]  }
 0xa5f   : > { %9587 = vmatpush1.bf16.msra.mxu1 %v11650_v37  ;;  %9416 = vmatprep.subr.bf16.mxu0 %v11655_v43  ;;  %v11698_v37 = vld [vmem:[#allocation14 + $0x1e8] ss:$16 sps:$4 sm:$0xff]   ;;  %v11703_v43 = vld [vmem:[#allocation14 + $0x204] ss:$16 sps:$4 sm:$0xff]  }
 0xa60   : > { %9588 = vmatprep.subr.bf16.mxu1 %v11658_v25  ;;  %v12030_v25 = vpop.eup %12029 }
 0xa62   : > { %9417 = vmatpush1.bf16.msra.mxu0 %v11653_v3  ;;  %v11706_v3 = vld [vmem:[#allocation14 + $0x20c] ss:$16 sps:$4 sm:$0xff]  }
 0xa63   : > { %9589 = vmatpush1.bf16.msra.mxu1 %v11656_v52  ;;  %9418 = vmatprep.subr.bf16.mxu0 %v11661_v10  ;;  %v12032_v52 = vpop.eup %12031 }
 0xa64   : > { %9590 = vmatprep.subr.bf16.mxu1 %v11664_v17  ;;  %v12034_v10 = vpop.eup %12033 }
 0xa65   : > { %v12036_v17 = vpop.eup %12035 }
 0xa66   : > { %9419 = vmatpush1.bf16.msra.mxu0 %v11659_v6  ;;  %v7776_v6 = vadd.f32 1.0, %v12030_v25 }
 0xa67   : > { %9591 = vmatpush1.bf16.msra.mxu1 %v11662_v12  ;;  %9420 = vmatprep.subr.bf16.mxu0 %v11667_v11  ;;  %v12038_v12 = vpop.eup %12037  ;;  %v7778_v11 = vadd.f32 1.0, %v12032_v52 }
 0xa68   : > { %9592 = vmatprep.subr.bf16.mxu1 %v11670_v46  ;;  %v12040_v46 = vpop.eup %12039  ;;  %12045 = vrcp.f32 %v7776_v6 }
 0xa69   : > { %12047 = vrcp.f32 %v7778_v11 }
 0xa6a   : > { %9421 = vmatpush1.bf16.msra.mxu0 %v11665_v56  ;;  %v7777_v56 = vadd.f32 1.0, %v12034_v10 }
 0xa6b   : > { %9593 = vmatpush1.bf16.msra.mxu1 %v11668_v47  ;;  %9422 = vmatprep.subr.bf16.mxu0 %v11673_v51  ;;  %v12042_v47 = vpop.eup %12041  ;;  %v7779_v51 = vadd.f32 1.0, %v12036_v17 }
 0xa6c   : > { %9594 = vmatprep.subr.bf16.mxu1 %v11676_v57  ;;  %v12044_v57 = vpop.eup %12043  ;;  %12049 = vrcp.f32 %v7777_v56  ;;  %v11712_v56 = vld [vmem:[#allocation14 + $0x22c] ss:$16 sps:$4 sm:$0xff]  }
 0xa6d   : > { %12051 = vrcp.f32 %v7779_v51  ;;  %v11715_v51 = vld [vmem:[#allocation14 + $0x244] ss:$16 sps:$4 sm:$0xff]  }
 0xa6e   : > { %9423 = vmatpush1.bf16.msra.mxu0 %v11671_v40  ;;  %v7784_v40 = vadd.f32 1.0, %v12038_v12  ;;  %v11701_v12 = vld [vmem:[#allocation14 + $0x200] ss:$16 sps:$4 sm:$0xff]  }
 0xa6f   : > { %9595 = vmatpush1.bf16.msra.mxu1 %v11674_v8  ;;  %9424 = vmatprep.subr.bf16.mxu0 %v11679_v13  ;;  %v7786_v8 = vadd.f32 1.0, %v12040_v46  ;;  %v7785_v13 = vadd.f32 1.0, %v12042_v47  ;;  %v11709_v46 = vld [vmem:[#allocation14 + $0x224] ss:$16 sps:$4 sm:$0xff]   ;;  %v11710_v47 = vld [vmem:[#allocation14 + $0x228] ss:$16 sps:$4 sm:$0xff]  }
 0xa70   : > { %9596 = vmatprep.subr.bf16.mxu1 %v11682_v55  ;;  %v7787_v55 = vadd.f32 1.0, %v12044_v57  ;;  %12053 = vrcp.f32 %v7784_v40  ;;  %v11718_v57 = vld [vmem:[#allocation14 + $0x24c] ss:$16 sps:$4 sm:$0xff]   ;;  %v11713_v40 = vld [vmem:[#allocation14 + $0x240] ss:$16 sps:$4 sm:$0xff]  }
 0xa71   : > { %12055 = vrcp.f32 %v7786_v8  ;;  %v11716_v8 = vld [vmem:[#allocation14 + $0x248] ss:$16 sps:$4 sm:$0xff]  }
 0xa72   : > { %9425 = vmatpush1.bf16.msra.mxu0 %v11677_v62  ;;  %12057 = vrcp.f32 %v7785_v13  ;;  %v12046_v50 = vpop.eup %12045  ;;  %v11721_v13 = vld [vmem:[#allocation14 + $0x264] ss:$16 sps:$4 sm:$0xff]  }
 0xa73   : > { %9597 = vmatpush1.bf16.msra.mxu1 %v11680_v63  ;;  %9426 = vmatprep.subr.bf16.mxu0 %v11685_v2  ;;  %12059 = vrcp.f32 %v7787_v55  ;;  %v12048_v62 = vpop.eup %12047  ;;  %v7824_v26 = vmul.f32 %v12046_v50, %v13144_v21  ;;  %v11724_v55 = vld [vmem:[#allocation14 + $0x26c] ss:$16 sps:$4 sm:$0xff]   ;;  %v11719_v50 = vld [vmem:[#allocation14 + $0x260] ss:$16 sps:$4 sm:$0xff]  }
 0xa74   : > { %9598 = vmatprep.subr.bf16.mxu1 %v11688_v16 }
 0xa76   : > { %9427 = vmatpush1.bf16.msra.mxu0 %v11683_v7  ;;  %v12050_v61 = vpop.eup %12049  ;;  %v7826_v7 = vmul.f32 %v12048_v62, %v13146_v54  ;;  %v11722_v62 = vld [vmem:[#allocation14 + $0x268] ss:$16 sps:$4 sm:$0xff]  }
 0xa77   : > { %9599 = vmatpush1.bf16.msra.mxu1 %v11686_v27  ;;  %9428 = vmatprep.subr.bf16.mxu0 %v11691_v28  ;;  %v12052_v63 = vpop.eup %12051  ;;  %v7825_v20 = vmul.f32 %v12050_v61, %v13148_v60  ;;  %v11727_v61 = vld [vmem:[#allocation14 + $0x284] ss:$16 sps:$4 sm:$0xff]  }
 0xa78   : > { %9600 = vmatprep.subr.bf16.mxu1 %v11694_v34  ;;  %v7827_v28 = vmul.f32 %v12052_v63, %v13150_v59  ;;  %v11730_v63 = vld [vmem:[#allocation14 + $0x28c] ss:$16 sps:$4 sm:$0xff]  }
 0xa7a   : > { %9429 = vmatpush1.bf16.msra.mxu0 %v11689_v9  ;;  %v12054_v2 = vpop.eup %12053 }
 0xa7b   : > { %9601 = vmatpush1.bf16.msra.mxu1 %v11692_v23  ;;  %9430 = vmatprep.subr.bf16.mxu0 %v11697_v31  ;;  %v12056_v29 = vpop.eup %12055  ;;  %v7832_v30 = vmul.f32 %v12054_v2, %v13152_v0  ;;  %v11725_v2 = vld [vmem:[#allocation14 + $0x280] ss:$16 sps:$4 sm:$0xff]  }
 0xa7c   : > { %9602 = vmatprep.subr.bf16.mxu1 %v11700_v35  ;;  %v12058_v16 = vpop.eup %12057  ;;  %v7834_v23 = vmul.f32 %v12056_v29, %v13154_v1  ;;  %v11728_v29 = vld [vmem:[#allocation14 + $0x288] ss:$16 sps:$4 sm:$0xff]  }
 0xa7d   : > { %v12060_v18 = vpop.eup %12059  ;;  %v7833_v31 = vmul.f32 %v12058_v16, %v13156_v14  ;;  %v11704_v14 = vld [vmem:[#allocation14 + $0x208] ss:$16 sps:$4 sm:$0xff]   ;;  %v11733_v16 = vld [vmem:[#allocation14 + $0x2a4] ss:$16 sps:$4 sm:$0xff]  }
 0xa7e   : > { %9431 = vmatpush1.bf16.msra.mxu0 %v11695_v36  ;;  %v7835_v54 = vmul.f32 %v12060_v18, %v13158_v15  ;;  %v11707_v15 = vld [vmem:[#allocation14 + $0x220] ss:$16 sps:$4 sm:$0xff]  }
 0xa7f   : > { %9603 = vmatpush1.bf16.msra.mxu1 %v11698_v37  ;;  %9443 = vmatprep.subr.bf16.mxu0 %v11703_v43  ;;  %v11731_v18 = vld [vmem:[#allocation14 + $0x2a0] ss:$16 sps:$4 sm:$0xff]  }
 0xa80   : > { %9615 = vmatprep.subr.bf16.mxu1 %v11706_v3 }
 0xa94   : > { %v7461_v27 = vpop.f32.mrb[28].mxu0 }
 0xa95   : > { %v7840_v34 = vmul.f32 %v7824_v26, %v7461_v27  ;;  %v7547_v58 = vpop.f32.mrb[28].mxu1  ;;  %v7463_v9 = vpop.f32.mrb[29].mxu0  ;;  %v11736_v26 = vld [vmem:[#allocation14 + $0x2ac] ss:$16 sps:$4 sm:$0xff]  }
 0xa96   : > { %v7842_v35 = vmul.f32 %v7826_v7, %v7547_v58  ;;  %v7841_v36 = vmul.f32 %v7825_v20, %v7463_v9  ;;  %v7549_v21 = vpop.f32.mrb[29].mxu1  ;;  %v7465_v37 = vpop.f32.mrb[30].mxu0  ;;  %v11734_v7 = vld [vmem:[#allocation14 + $0x2a8] ss:$16 sps:$4 sm:$0xff]   ;;  %v11739_v20 = vld [vmem:[#allocation14 + $0x2c4] ss:$16 sps:$4 sm:$0xff]  }
 0xa97   : > { %v7843_v43 = vmul.f32 %v7827_v28, %v7549_v21  ;;  %v7848_v60 = vmul.f32 %v7832_v30, %v7465_v37  ;;  %v7551_v25 = vpop.f32.mrb[30].mxu1  ;;  %v7467_v3 = vpop.f32.mrb[31].mxu0  ;;  %v11742_v27 = vld [vmem:[#allocation14 + $0x2cc] ss:$16 sps:$4 sm:$0xff]   ;;  %v11737_v28 = vld [vmem:[#allocation14 + $0x2c0] ss:$16 sps:$4 sm:$0xff]  }
 0xa98   : > { %v7850_v59 = vmul.f32 %v7834_v23, %v7551_v25  ;;  %v7849_v52 = vmul.f32 %v7833_v31, %v7467_v3  ;;  %v7553_v0 = vpop.f32.mrb[31].mxu1  ;;  %v11740_v30 = vld [vmem:[#allocation14 + $0x2c8] ss:$16 sps:$4 sm:$0xff]   ;;  %v11748_v58 = vld [vmem:[#allocation14 + $0x2ec] ss:$16 sps:$4 sm:$0xff]  }
 0xa99   : > { %v7856_v10 = vpack.c.bf16 %v7848_v60, %v7840_v34  ;;  %v7851_v17 = vmul.f32 %v7835_v54, %v7553_v0  ;;  %v11745_v34 = vld [vmem:[#allocation14 + $0x2e4] ss:$16 sps:$4 sm:$0xff]   ;;  %v11743_v9 = vld [vmem:[#allocation14 + $0x2e0] ss:$16 sps:$4 sm:$0xff]   ;;  %v11746_v23 = vld [vmem:[#allocation14 + $0x2e8] ss:$16 sps:$4 sm:$0xff]  }
 0xa9a   : > { %v13202_v6 = vpack.c.bf16 %v7850_v59, %v7842_v35  ;;  %v7857_v1 = vpack.c.bf16 %v7849_v52, %v7841_v36  ;;  %v11751_v31 = vld [vmem:[#allocation14 + $0x304] ss:$16 sps:$4 sm:$0xff]   ;;  %v11754_v35 = vld [vmem:[#allocation14 + $0x30c] ss:$16 sps:$4 sm:$0xff]   ;;  %v11749_v36 = vld [vmem:[#allocation14 + $0x300] ss:$16 sps:$4 sm:$0xff]  }
 0xa9b   : > { %v7859_v11 = vpack.c.bf16 %v7851_v17, %v7843_v43  ;;  %v11752_v21 = vld [vmem:[#allocation14 + $0x308] ss:$16 sps:$4 sm:$0xff]   ;;  %v11757_v37 = vld [vmem:[#allocation14 + $0x324] ss:$16 sps:$4 sm:$0xff]   ;;  %v11760_v54 = vld [vmem:[#allocation14 + $0x32c] ss:$16 sps:$4 sm:$0xff]  }
 0xa9c   : > { %9432 = vmatprep.mubr.bf16.mxu0 %v7857_v1  ;;  %9604 = vmatprep.mubr.bf16.mxu1 %v7857_v1  ;;  %v11755_v43 = vld [vmem:[#allocation14 + $0x320] ss:$16 sps:$4 sm:$0xff]   ;;  %v11758_v60 = vld [vmem:[#allocation14 + $0x328] ss:$16 sps:$4 sm:$0xff]   ;;  %v11763_v25 = vld [vmem:[#allocation14 + $0x344] ss:$16 sps:$4 sm:$0xff]  }
 0xa9d   : > { %9433 = vmatmul.mubr.bf16.vlgmr.msra.gmra.mrb[36].mxu0 %v7856_v10  ;;  %9605 = vmatmul.mubr.bf16.vlgmr.msra.gmra.mrb[36].mxu1 %v7856_v10  ;;  %v11766_v3 = vld [vmem:[#allocation14 + $0x34c] ss:$16 sps:$4 sm:$0xff]   ;;  %v11761_v59 = vld [vmem:[#allocation14 + $0x340] ss:$16 sps:$4 sm:$0xff]   ;;  %v11764_v52 = vld [vmem:[#allocation14 + $0x348] ss:$16 sps:$4 sm:$0xff]  }
 0xa9e   : > { %9444 = vmatpush1.bf16.msra.mxu0 %v11701_v12  ;;  %9616 = vmatpush1.bf16.msra.mxu1 %v11704_v14  ;;  %v11769_v0 = vld [vmem:[#allocation14 + $0x364] ss:$16 sps:$4 sm:$0xff]   ;;  %v11772_v10 = vld [vmem:[#allocation14 + $0x36c] ss:$16 sps:$4 sm:$0xff]   ;;  %v11767_v17 = vld [vmem:[#allocation14 + $0x360] ss:$16 sps:$4 sm:$0xff]  }
 0xa9f   : > { %9475 = vmatprep.mubr.bf16.mxu0 %v7859_v11  ;;  %9647 = vmatprep.mubr.bf16.mxu1 %v7859_v11  ;;  %v11770_v1 = vld [vmem:[#allocation14 + $0x368] ss:$16 sps:$4 sm:$0xff]   ;;  %v11775_v12 = vld [vmem:[#allocation14 + $0x384] ss:$16 sps:$4 sm:$0xff]   ;;  %v11778_v14 = vld [vmem:[#allocation14 + $0x38c] ss:$16 sps:$4 sm:$0xff]  }
 0xaa0   : > { %9445 = vmatprep.subr.bf16.mxu0 %v11709_v46  ;;  %9617 = vmatprep.subr.bf16.mxu1 %v11712_v56  ;;  %v11773_v11 = vld [vmem:[#allocation14 + $0x380] ss:$16 sps:$4 sm:$0xff]   ;;  %v11776_v46 = vld [vmem:[#allocation14 + $0x388] ss:$16 sps:$4 sm:$0xff]   ;;  %v11781_v56 = vld [vmem:[#allocation14 + $0x3a4] ss:$16 sps:$4 sm:$0xff]  }
 0xaa2   : > { %9446 = vmatpush1.bf16.msra.mxu0 %v11707_v15  ;;  %9618 = vmatpush1.bf16.msra.mxu1 %v11710_v47  ;;  %v11784_v15 = vld [vmem:[#allocation14 + $0x3ac] ss:$16 sps:$4 sm:$0xff]   ;;  %v11779_v47 = vld [vmem:[#allocation14 + $0x3a0] ss:$16 sps:$4 sm:$0xff]  }
 0xaa3   : > { %9447 = vmatprep.subr.bf16.mxu0 %v11715_v51  ;;  %9619 = vmatprep.subr.bf16.mxu1 %v11718_v57  ;;  %v11782_v51 = vld [vmem:[#allocation14 + $0x3a8] ss:$16 sps:$4 sm:$0xff]   ;;  %v11787_v57 = vld [vmem:[#allocation14 + $0x3c4] ss:$16 sps:$4 sm:$0xff]  }
 0xaa6   : > { %9448 = vmatpush1.bf16.msra.mxu0 %v11713_v40  ;;  %9620 = vmatpush1.bf16.msra.mxu1 %v11716_v8  ;;  %v11790_v40 = vld [vmem:[#allocation14 + $0x3cc] ss:$16 sps:$4 sm:$0xff]   ;;  %v11785_v8 = vld [vmem:[#allocation14 + $0x3c0] ss:$16 sps:$4 sm:$0xff]  }
 0xaa7   : > { %9449 = vmatprep.subr.bf16.mxu0 %v11721_v13  ;;  %9621 = vmatprep.subr.bf16.mxu1 %v11724_v55  ;;  %v11788_v13 = vld [vmem:[#allocation14 + $0x3c8] ss:$16 sps:$4 sm:$0xff]   ;;  %v11793_v55 = vld [vmem:[#allocation14 + $0x3e4] ss:$16 sps:$4 sm:$0xff]  }
 0xaaa   : > { %9450 = vmatpush1.bf16.msra.mxu0 %v11719_v50  ;;  %9622 = vmatpush1.bf16.msra.mxu1 %v11722_v62  ;;  %v11796_v50 = vld [vmem:[#allocation14 + $0x3ec] ss:$16 sps:$4 sm:$0xff]   ;;  %v11791_v62 = vld [vmem:[#allocation14 + $0x3e0] ss:$16 sps:$4 sm:$0xff]  }
 0xaab   : > { %9451 = vmatprep.subr.bf16.mxu0 %v11727_v61  ;;  %9623 = vmatprep.subr.bf16.mxu1 %v11730_v63  ;;  %v11794_v61 = vld [vmem:[#allocation14 + $0x3e8] ss:$16 sps:$4 sm:$0xff]   ;;  %v11799_v63 = vld [vmem:[#allocation14 + $0x404] ss:$16 sps:$4 sm:$0xff]  }
 0xaae   : > { %9452 = vmatpush1.bf16.msra.mxu0 %v11725_v2  ;;  %9624 = vmatpush1.bf16.msra.mxu1 %v11728_v29  ;;  %v11802_v2 = vld [vmem:[#allocation14 + $0x40c] ss:$16 sps:$4 sm:$0xff]   ;;  %v11797_v29 = vld [vmem:[#allocation14 + $0x400] ss:$16 sps:$4 sm:$0xff]  }
 0xaaf   : > { %9453 = vmatprep.subr.bf16.mxu0 %v11733_v16  ;;  %9625 = vmatprep.subr.bf16.mxu1 %v11736_v26  ;;  %v11800_v16 = vld [vmem:[#allocation14 + $0x408] ss:$16 sps:$4 sm:$0xff]   ;;  %v11805_v26 = vld [vmem:[#allocation14 + $0x424] ss:$16 sps:$4 sm:$0xff]  }
 0xab2   : > { %9454 = vmatpush1.bf16.msra.mxu0 %v11731_v18  ;;  %9626 = vmatpush1.bf16.msra.mxu1 %v11734_v7  ;;  %v11808_v18 = vld [vmem:[#allocation14 + $0x42c] ss:$16 sps:$4 sm:$0xff]   ;;  %v11803_v7 = vld [vmem:[#allocation14 + $0x420] ss:$16 sps:$4 sm:$0xff]  }
 0xab3   : > { %9455 = vmatprep.subr.bf16.mxu0 %v11739_v20  ;;  %9627 = vmatprep.subr.bf16.mxu1 %v11742_v27  ;;  %v11806_v20 = vld [vmem:[#allocation14 + $0x428] ss:$16 sps:$4 sm:$0xff]   ;;  %v11811_v27 = vld [vmem:[#allocation14 + $0x444] ss:$16 sps:$4 sm:$0xff]  }
 0xab6   : > { %9456 = vmatpush1.bf16.msra.mxu0 %v11737_v28  ;;  %9628 = vmatpush1.bf16.msra.mxu1 %v11740_v30  ;;  %v11814_v28 = vld [vmem:[#allocation14 + $0x44c] ss:$16 sps:$4 sm:$0xff]   ;;  %v11809_v30 = vld [vmem:[#allocation14 + $0x440] ss:$16 sps:$4 sm:$0xff]  }
 0xab7   : > { %9457 = vmatprep.subr.bf16.mxu0 %v11745_v34  ;;  %9629 = vmatprep.subr.bf16.mxu1 %v11748_v58  ;;  %v11812_v34 = vld [vmem:[#allocation14 + $0x448] ss:$16 sps:$4 sm:$0xff]   ;;  %v11817_v58 = vld [vmem:[#allocation14 + $0x464] ss:$16 sps:$4 sm:$0xff]  }
 0xaba   : > { %9458 = vmatpush1.bf16.msra.mxu0 %v11743_v9  ;;  %9630 = vmatpush1.bf16.msra.mxu1 %v11746_v23  ;;  %v11820_v9 = vld [vmem:[#allocation14 + $0x46c] ss:$16 sps:$4 sm:$0xff]   ;;  %v11815_v23 = vld [vmem:[#allocation14 + $0x460] ss:$16 sps:$4 sm:$0xff]  }
 0xabb   : > { %9459 = vmatprep.subr.bf16.mxu0 %v11751_v31  ;;  %9631 = vmatprep.subr.bf16.mxu1 %v11754_v35  ;;  %v11823_v31 = vld [vmem:[#allocation14 + $0x484] ss:$16 sps:$4 sm:$0xff]   ;;  %v11826_v35 = vld [vmem:[#allocation14 + $0x48c] ss:$16 sps:$4 sm:$0xff]  }
 0xabe   : > { %9460 = vmatpush1.bf16.msra.mxu0 %v11749_v36  ;;  %9632 = vmatpush1.bf16.msra.mxu1 %v11752_v21  ;;  %v11821_v36 = vld [vmem:[#allocation14 + $0x480] ss:$16 sps:$4 sm:$0xff]   ;;  %v11824_v21 = vld [vmem:[#allocation14 + $0x488] ss:$16 sps:$4 sm:$0xff]  }
 0xabf   : > { %9461 = vmatprep.subr.bf16.mxu0 %v11757_v37  ;;  %9633 = vmatprep.subr.bf16.mxu1 %v11760_v54  ;;  %v11829_v37 = vld [vmem:[#allocation14 + $0x4a4] ss:$16 sps:$4 sm:$0xff]   ;;  %v11832_v54 = vld [vmem:[#allocation14 + $0x4ac] ss:$16 sps:$4 sm:$0xff]  }
 0xac2   : > { %9462 = vmatpush1.bf16.msra.mxu0 %v11755_v43  ;;  %9634 = vmatpush1.bf16.msra.mxu1 %v11758_v60  ;;  %v10870_v43 = vmul.f32 -1.442695, %v13168_v22  ;;  %v11827_v60 = vld [vmem:[#allocation14 + $0x4a0] ss:$16 sps:$4 sm:$0xff]  }
 0xac3   : > { %9463 = vmatprep.subr.bf16.mxu0 %v11763_v25  ;;  %9635 = vmatprep.subr.bf16.mxu1 %v11766_v3  ;;  %v11830_v25 = vld [vmem:[#allocation14 + $0x4a8] ss:$16 sps:$4 sm:$0xff]   ;;  %v10872_v3 = vmul.f32 -1.442695, %v13170_v42 }
 0xac4   : > { %12061 = vpow2.f32 %v10870_v43  ;;  %v11863_v43 = vld [vmem:[#allocation14 + $0x560] ss:$16 sps:$4 sm:$0xff]  }
 0xac5   : > { %12063 = vpow2.f32 %v10872_v3  ;;  %v11874_v3 = vld [vmem:[#allocation14 + $0x58c] ss:$16 sps:$4 sm:$0xff]  }
 0xac6   : > { %9464 = vmatpush1.bf16.msra.mxu0 %v11761_v59  ;;  %9636 = vmatpush1.bf16.msra.mxu1 %v11764_v52  ;;  %v11835_v59 = vld [vmem:[#allocation14 + $0x4c4] ss:$16 sps:$4 sm:$0xff]   ;;  %v11838_v52 = vld [vmem:[#allocation14 + $0x4cc] ss:$16 sps:$4 sm:$0xff]  }
 0xac7   : > { %9465 = vmatprep.subr.bf16.mxu0 %v11769_v0  ;;  %9637 = vmatprep.subr.bf16.mxu1 %v11772_v10  ;;  %v10871_v0 = vmul.f32 -1.442695, %v13172_v19  ;;  %v10873_v10 = vmul.f32 -1.442695, %v13174_v49 }
 0xac9   : > { %12065 = vpow2.f32 %v10871_v0  ;;  %v11877_v0 = vld [vmem:[#allocation14 + $0x5a4] ss:$16 sps:$4 sm:$0xff]  }
 0xaca   : > { %9466 = vmatpush1.bf16.msra.mxu0 %v11767_v17  ;;  %9638 = vmatpush1.bf16.msra.mxu1 %v11770_v1  ;;  %v10878_v17 = vmul.f32 -1.442695, %v13176_v33  ;;  %v11833_v1 = vld [vmem:[#allocation14 + $0x4c0] ss:$16 sps:$4 sm:$0xff]   ;;  %12067 = vpow2.f32 %v10873_v10  ;;  %v11880_v10 = vld [vmem:[#allocation14 + $0x5ac] ss:$16 sps:$4 sm:$0xff]  }
 0xacb   : > { %9467 = vmatprep.subr.bf16.mxu0 %v11775_v12  ;;  %9639 = vmatprep.subr.bf16.mxu1 %v11778_v14  ;;  %v11836_v12 = vld [vmem:[#allocation14 + $0x4c8] ss:$16 sps:$4 sm:$0xff]   ;;  %v10880_v14 = vmul.f32 -1.442695, %v13178_v53 }
 0xacc   : > { %12069 = vpow2.f32 %v10878_v17 }
 0xacd   : > { %12071 = vpow2.f32 %v10880_v14  ;;  %v11878_v14 = vld [vmem:[#allocation14 + $0x5a8] ss:$16 sps:$4 sm:$0xff]  }
 0xace   : > { %9468 = vmatpush1.bf16.msra.mxu0 %v11773_v11  ;;  %9640 = vmatpush1.bf16.msra.mxu1 %v11776_v46  ;;  %v11841_v11 = vld [vmem:[#allocation14 + $0x4e4] ss:$16 sps:$4 sm:$0xff]   ;;  %v11844_v46 = vld [vmem:[#allocation14 + $0x4ec] ss:$16 sps:$4 sm:$0xff]  }
 0xacf   : > { %9469 = vmatprep.subr.bf16.mxu0 %v11781_v56  ;;  %9641 = vmatprep.subr.bf16.mxu1 %v11784_v15  ;;  %v10879_v56 = vmul.f32 -1.442695, %v13180_v44  ;;  %v10881_v15 = vmul.f32 -1.442695, %v13182_v24 }
 0xad1   : > { %12073 = vpow2.f32 %v10879_v56  ;;  %v11886_v56 = vld [vmem:[#allocation14 + $0x5cc] ss:$16 sps:$4 sm:$0xff]  }
 0xad2   : > { %9470 = vmatpush1.bf16.msra.mxu0 %v11779_v47  ;;  %9642 = vmatpush1.bf16.msra.mxu1 %v11782_v51  ;;  %v11839_v47 = vld [vmem:[#allocation14 + $0x4e0] ss:$16 sps:$4 sm:$0xff]   ;;  %v11842_v51 = vld [vmem:[#allocation14 + $0x4e8] ss:$16 sps:$4 sm:$0xff]   ;;  %12075 = vpow2.f32 %v10881_v15 }
 0xad3   : > { %9471 = vmatprep.subr.bf16.mxu0 %v11787_v57  ;;  %9643 = vmatprep.subr.bf16.mxu1 %v11790_v40  ;;  %v11847_v57 = vld [vmem:[#allocation14 + $0x504] ss:$16 sps:$4 sm:$0xff]   ;;  %v11850_v40 = vld [vmem:[#allocation14 + $0x50c] ss:$16 sps:$4 sm:$0xff]  }
 0xad6   : > { %9472 = vmatpush1.bf16.msra.mxu0 %v11785_v8  ;;  %9644 = vmatpush1.bf16.msra.mxu1 %v11788_v13  ;;  %v11845_v8 = vld [vmem:[#allocation14 + $0x500] ss:$16 sps:$4 sm:$0xff]   ;;  %v11848_v13 = vld [vmem:[#allocation14 + $0x508] ss:$16 sps:$4 sm:$0xff]  }
 0xad7   : > { %9473 = vmatprep.subr.bf16.mxu0 %v11793_v55  ;;  %9645 = vmatprep.subr.bf16.mxu1 %v11796_v50  ;;  %v11853_v55 = vld [vmem:[#allocation14 + $0x524] ss:$16 sps:$4 sm:$0xff]   ;;  %v11856_v50 = vld [vmem:[#allocation14 + $0x52c] ss:$16 sps:$4 sm:$0xff]  }
 0xada   : > { %9474 = vmatpush1.bf16.msra.mxu0 %v11791_v62  ;;  %9646 = vmatpush1.bf16.msra.mxu1 %v11794_v61  ;;  %v12062_v62 = vpop.eup %12061 }
 0xadb   : > { %9486 = vmatprep.subr.bf16.mxu0 %v11799_v63  ;;  %9658 = vmatprep.subr.bf16.mxu1 %v11802_v2  ;;  %v12064_v61 = vpop.eup %12063  ;;  %v11851_v2 = vld [vmem:[#allocation14 + $0x520] ss:$16 sps:$4 sm:$0xff]  }
 0xadc   : > { %v12066_v63 = vpop.eup %12065 }
 0xadd   : > { %9476 = vmatmul.mubr.bf16.vlgmr.msra.gmra.mrb[36].mxu0 %v13202_v6  ;;  %9648 = vmatmul.mubr.bf16.vlgmr.msra.gmra.mrb[36].mxu1 %v13202_v6  ;;  %v11818_v6 = vld [vmem:[#allocation14 + $0x468] ss:$16 sps:$4 sm:$0xff]  }
 0xade   : > { %9487 = vmatpush1.bf16.msra.mxu0 %v11797_v29  ;;  %9659 = vmatpush1.bf16.msra.mxu1 %v11800_v16  ;;  %v11854_v29 = vld [vmem:[#allocation14 + $0x528] ss:$16 sps:$4 sm:$0xff]   ;;  %v12068_v16 = vpop.eup %12067 }
 0xadf   : > { %9488 = vmatprep.subr.bf16.mxu0 %v11805_v26  ;;  %9660 = vmatprep.subr.bf16.mxu1 %v11808_v18  ;;  %v7780_v26 = vadd.f32 1.0, %v12062_v62  ;;  %v11859_v18 = vld [vmem:[#allocation14 + $0x544] ss:$16 sps:$4 sm:$0xff]  }
 0xae1   : > { %12077 = vrcp.f32 %v7780_v26 }
 0xae2   : > { %9489 = vmatpush1.bf16.msra.mxu0 %v11803_v7  ;;  %9661 = vmatpush1.bf16.msra.mxu1 %v11806_v20  ;;  %v11862_v7 = vld [vmem:[#allocation14 + $0x54c] ss:$16 sps:$4 sm:$0xff]   ;;  %v12070_v20 = vpop.eup %12069 }
 0xae3   : > { %9490 = vmatprep.subr.bf16.mxu0 %v11811_v27  ;;  %9662 = vmatprep.subr.bf16.mxu1 %v11814_v28  ;;  %v7782_v27 = vadd.f32 1.0, %v12064_v61  ;;  %v12072_v28 = vpop.eup %12071 }
 0xae5   : > { %12079 = vrcp.f32 %v7782_v27 }
 0xae6   : > { %9491 = vmatpush1.bf16.msra.mxu0 %v11809_v30  ;;  %9663 = vmatpush1.bf16.msra.mxu1 %v11812_v34  ;;  %v7781_v30 = vadd.f32 1.0, %v12066_v63  ;;  %v12074_v34 = vpop.eup %12073 }
 0xae7   : > { %9492 = vmatprep.subr.bf16.mxu0 %v11817_v58  ;;  %9664 = vmatprep.subr.bf16.mxu1 %v11820_v9  ;;  %v7783_v58 = vadd.f32 1.0, %v12068_v16  ;;  %v11857_v9 = vld [vmem:[#allocation14 + $0x540] ss:$16 sps:$4 sm:$0xff]  }
 0xae8   : > { %12081 = vrcp.f32 %v7781_v30 }
 0xae9   : > { %12083 = vrcp.f32 %v7783_v58 }
 0xaea   : > { %9493 = vmatpush1.bf16.msra.mxu0 %v11815_v23  ;;  %9665 = vmatpush1.bf16.msra.mxu1 %v11818_v6  ;;  %v11860_v23 = vld [vmem:[#allocation14 + $0x548] ss:$16 sps:$4 sm:$0xff]   ;;  %v12076_v6 = vpop.eup %12075 }
 0xaeb   : > { %9494 = vmatprep.subr.bf16.mxu0 %v11823_v31  ;;  %9666 = vmatprep.subr.bf16.mxu1 %v11826_v35  ;;  %v7788_v31 = vadd.f32 1.0, %v12070_v20  ;;  %v11865_v35 = vld [vmem:[#allocation14 + $0x564] ss:$16 sps:$4 sm:$0xff]   ;;  %v12078_v17 = vpop.eup %12077 }
 0xaed   : > { %12085 = vrcp.f32 %v7788_v31 }
 0xaee   : > { %9495 = vmatpush1.bf16.msra.mxu0 %v11821_v36  ;;  %9667 = vmatpush1.bf16.msra.mxu1 %v11824_v21  ;;  %v11868_v36 = vld [vmem:[#allocation14 + $0x56c] ss:$16 sps:$4 sm:$0xff]   ;;  %v7790_v21 = vadd.f32 1.0, %v12072_v28 }
 0xaef   : > { %9496 = vmatprep.subr.bf16.mxu0 %v11829_v37  ;;  %9668 = vmatprep.subr.bf16.mxu1 %v11832_v54  ;;  %v7789_v37 = vadd.f32 1.0, %v12074_v34  ;;  %v7791_v54 = vadd.f32 1.0, %v12076_v6  ;;  %v11887_v34 = vld [vmem:[#allocation14 + $0x5e0] ss:$16 sps:$4 sm:$0xff]   ;;  %v11898_v6 = vld [vmem:[#allocation14 + $0x60c] ss:$16 sps:$4 sm:$0xff]  }
 0xaf0   : > { %12087 = vrcp.f32 %v7790_v21 }
 0xaf1   : > { %12089 = vrcp.f32 %v7789_v37 }
 0xaf2   : > { %9497 = vmatpush1.bf16.msra.mxu0 %v11827_v60  ;;  %9669 = vmatpush1.bf16.msra.mxu1 %v11830_v25  ;;  %v11866_v60 = vld [vmem:[#allocation14 + $0x568] ss:$16 sps:$4 sm:$0xff]   ;;  %v11871_v25 = vld [vmem:[#allocation14 + $0x584] ss:$16 sps:$4 sm:$0xff]   ;;  %12091 = vrcp.f32 %v7791_v54 }
 0xaf3   : > { %9498 = vmatprep.subr.bf16.mxu0 %v11835_v59  ;;  %9670 = vmatprep.subr.bf16.mxu1 %v11838_v52  ;;  %v11869_v59 = vld [vmem:[#allocation14 + $0x580] ss:$16 sps:$4 sm:$0xff]   ;;  %v11872_v52 = vld [vmem:[#allocation14 + $0x588] ss:$16 sps:$4 sm:$0xff]  }
 0xaf6   : > { %9499 = vmatpush1.bf16.msra.mxu0 %v11833_v1  ;;  %9671 = vmatpush1.bf16.msra.mxu1 %v11836_v12  ;;  %v12080_v1 = vpop.eup %12079  ;;  %v11875_v12 = vld [vmem:[#allocation14 + $0x5a0] ss:$16 sps:$4 sm:$0xff]  }
 0xaf7   : > { %9500 = vmatprep.subr.bf16.mxu0 %v11841_v11  ;;  %9672 = vmatprep.subr.bf16.mxu1 %v11844_v46  ;;  %v12082_v11 = vpop.eup %12081  ;;  %v11883_v46 = vld [vmem:[#allocation14 + $0x5c4] ss:$16 sps:$4 sm:$0xff]   ;;  %v7830_v61 = vmul.f32 %v12080_v1, %v13170_v42  ;;  %v11908_v1 = vld [vmem:[#allocation14 + $0x648] ss:$16 sps:$4 sm:$0xff]  }
 0xaf8   : > { %v12084_v15 = vpop.eup %12083  ;;  %v7829_v63 = vmul.f32 %v12082_v11, %v13172_v19  ;;  %v11890_v19 = vld [vmem:[#allocation14 + $0x5e8] ss:$16 sps:$4 sm:$0xff]   ;;  %v11911_v11 = vld [vmem:[#allocation14 + $0x660] ss:$16 sps:$4 sm:$0xff]  }
 0xafa   : > { %9501 = vmatpush1.bf16.msra.mxu0 %v11839_v47  ;;  %9673 = vmatpush1.bf16.msra.mxu1 %v11842_v51  ;;  %v12086_v47 = vpop.eup %12085 }
 0xafb   : > { %9502 = vmatprep.subr.bf16.mxu0 %v11847_v57  ;;  %9674 = vmatprep.subr.bf16.mxu1 %v11850_v40  ;;  %v12088_v51 = vpop.eup %12087  ;;  %v11881_v57 = vld [vmem:[#allocation14 + $0x5c0] ss:$16 sps:$4 sm:$0xff]   ;;  %v11884_v40 = vld [vmem:[#allocation14 + $0x5c8] ss:$16 sps:$4 sm:$0xff]   ;;  %v7836_v16 = vmul.f32 %v12086_v47, %v13176_v33 }
 0xafc   : > { %v7838_v26 = vmul.f32 %v12088_v51, %v13178_v53  ;;  %v11895_v53 = vld [vmem:[#allocation14 + $0x604] ss:$16 sps:$4 sm:$0xff]   ;;  %v11917_v47 = vld [vmem:[#allocation14 + $0x680] ss:$16 sps:$4 sm:$0xff]   ;;  %v11920_v51 = vld [vmem:[#allocation14 + $0x688] ss:$16 sps:$4 sm:$0xff]  }
 0xafe   : > { %9503 = vmatpush1.bf16.msra.mxu0 %v11845_v8  ;;  %9675 = vmatpush1.bf16.msra.mxu1 %v11848_v13  ;;  %v12090_v8 = vpop.eup %12089  ;;  %v7828_v13 = vmul.f32 %v12078_v17, %v13168_v22  ;;  %v11905_v17 = vld [vmem:[#allocation14 + $0x640] ss:$16 sps:$4 sm:$0xff]  }
 0xaff   : > { %9504 = vmatprep.subr.bf16.mxu0 %v11853_v55  ;;  %9676 = vmatprep.subr.bf16.mxu1 %v11856_v50  ;;  %v11889_v55 = vld [vmem:[#allocation14 + $0x5e4] ss:$16 sps:$4 sm:$0xff]   ;;  %v11892_v50 = vld [vmem:[#allocation14 + $0x5ec] ss:$16 sps:$4 sm:$0xff]   ;;  %v12092_v62 = vpop.eup %12091  ;;  %v7837_v22 = vmul.f32 %v12090_v8, %v13180_v44  ;;  %v11923_v8 = vld [vmem:[#allocation14 + $0x6a0] ss:$16 sps:$4 sm:$0xff]  }
 0xb00   : > { %v7839_v58 = vmul.f32 %v12092_v62, %v13182_v24  ;;  %v11896_v24 = vld [vmem:[#allocation14 + $0x608] ss:$16 sps:$4 sm:$0xff]   ;;  %v11929_v62 = vld [vmem:[#allocation14 + $0x6c0] ss:$16 sps:$4 sm:$0xff]  }
 0xb02   : > { %9505 = vmatpush1.bf16.msra.mxu0 %v11851_v2  ;;  %9677 = vmatpush1.bf16.msra.mxu1 %v11854_v29  ;;  %v7831_v29 = vmul.f32 %v12084_v15, %v13174_v49  ;;  %v11922_v15 = vld [vmem:[#allocation14 + $0x68c] ss:$16 sps:$4 sm:$0xff]  }
 0xb03   : > { %9506 = vmatprep.subr.bf16.mxu0 %v11859_v18  ;;  %9678 = vmatprep.subr.bf16.mxu1 %v11862_v7 }
 0xb06   : > { %9507 = vmatpush1.bf16.msra.mxu0 %v11857_v9  ;;  %9679 = vmatpush1.bf16.msra.mxu1 %v11860_v23 }
 0xb07   : > { %9508 = vmatprep.subr.bf16.mxu0 %v11865_v35  ;;  %9680 = vmatprep.subr.bf16.mxu1 %v11868_v36 }
 0xb0a   : > { %9509 = vmatpush1.bf16.msra.mxu0 %v11863_v43  ;;  %9681 = vmatpush1.bf16.msra.mxu1 %v11866_v60  ;;  %v11893_v43 = vld [vmem:[#allocation14 + $0x600] ss:$16 sps:$4 sm:$0xff]  }
 0xb0b   : > { %9510 = vmatprep.subr.bf16.mxu0 %v11871_v25  ;;  %9682 = vmatprep.subr.bf16.mxu1 %v11874_v3  ;;  %v11901_v25 = vld [vmem:[#allocation14 + $0x624] ss:$16 sps:$4 sm:$0xff]   ;;  %v11904_v3 = vld [vmem:[#allocation14 + $0x62c] ss:$16 sps:$4 sm:$0xff]  }
 0xb0e   : > { %9511 = vmatpush1.bf16.msra.mxu0 %v11869_v59  ;;  %9683 = vmatpush1.bf16.msra.mxu1 %v11872_v52  ;;  %v11899_v59 = vld [vmem:[#allocation14 + $0x620] ss:$16 sps:$4 sm:$0xff]   ;;  %v11902_v52 = vld [vmem:[#allocation14 + $0x628] ss:$16 sps:$4 sm:$0xff]  }
 0xb0f   : > { %9512 = vmatprep.subr.bf16.mxu0 %v11877_v0  ;;  %9684 = vmatprep.subr.bf16.mxu1 %v11880_v10  ;;  %v11907_v0 = vld [vmem:[#allocation14 + $0x644] ss:$16 sps:$4 sm:$0xff]   ;;  %v11910_v10 = vld [vmem:[#allocation14 + $0x64c] ss:$16 sps:$4 sm:$0xff]  }
 0xb12   : > { %9513 = vmatpush1.bf16.msra.mxu0 %v11875_v12  ;;  %9685 = vmatpush1.bf16.msra.mxu1 %v11878_v14  ;;  %v11913_v12 = vld [vmem:[#allocation14 + $0x664] ss:$16 sps:$4 sm:$0xff]   ;;  %v11916_v14 = vld [vmem:[#allocation14 + $0x66c] ss:$16 sps:$4 sm:$0xff]  }
 0xb13   : > { %9514 = vmatprep.subr.bf16.mxu0 %v11883_v46  ;;  %9686 = vmatprep.subr.bf16.mxu1 %v11886_v56  ;;  %v11914_v46 = vld [vmem:[#allocation14 + $0x668] ss:$16 sps:$4 sm:$0xff]   ;;  %v11919_v56 = vld [vmem:[#allocation14 + $0x684] ss:$16 sps:$4 sm:$0xff]  }
 0xb14   : > { %v7633_v2 = vpop.f32.mrb[32].mxu0 }
 0xb15   : > { %v7844_v18 = vmul.f32 %v7828_v13, %v7633_v2  ;;  %v7719_v7 = vpop.f32.mrb[32].mxu1  ;;  %v7635_v20 = vpop.f32.mrb[33].mxu0  ;;  %v11926_v13 = vld [vmem:[#allocation14 + $0x6a8] ss:$16 sps:$4 sm:$0xff]   ;;  %v11940_v2 = vld [vmem:[#allocation14 + $0x6ec] ss:$16 sps:$4 sm:$0xff]  }
 0xb16   : > { %v7846_v27 = vmul.f32 %v7830_v61, %v7719_v7  ;;  %v7845_v28 = vmul.f32 %v7829_v63, %v7635_v20  ;;  %v7721_v30 = vpop.f32.mrb[33].mxu1  ;;  %9515 = vmatpush1.bf16.msra.mxu0 %v11881_v57  ;;  %9687 = vmatpush1.bf16.msra.mxu1 %v11884_v40  ;;  %v7637_v42 = vpop.f32.mrb[34].mxu0  ;;  %v11925_v57 = vld [vmem:[#allocation14 + $0x6a4] ss:$16 sps:$4 sm:$0xff]   ;;  %v11928_v40 = vld [vmem:[#allocation14 + $0x6ac] ss:$16 sps:$4 sm:$0xff]  }
 0xb17   : > { %v7847_v49 = vmul.f32 %v7831_v29, %v7721_v30  ;;  %v7852_v9 = vmul.f32 %v7836_v16, %v7637_v42  ;;  %v7723_v33 = vpop.f32.mrb[34].mxu1  ;;  %v7639_v23 = vpop.f32.mrb[35].mxu0  ;;  %9516 = vmatprep.subr.bf16.mxu0 %v11889_v55  ;;  %9688 = vmatprep.subr.bf16.mxu1 %v11892_v50  ;;  %v11931_v55 = vld [vmem:[#allocation14 + $0x6c4] ss:$16 sps:$4 sm:$0xff]   ;;  %v11934_v50 = vld [vmem:[#allocation14 + $0x6cc] ss:$16 sps:$4 sm:$0xff]  }
 0xb18   : > { %v7854_v31 = vmul.f32 %v7838_v26, %v7723_v33  ;;  %v7853_v44 = vmul.f32 %v7837_v22, %v7639_v23  ;;  %v7725_v35 = vpop.f32.mrb[35].mxu1  ;;  %v11932_v61 = vld [vmem:[#allocation14 + $0x6c8] ss:$16 sps:$4 sm:$0xff]   ;;  %v11937_v63 = vld [vmem:[#allocation14 + $0x6e4] ss:$16 sps:$4 sm:$0xff]  }
 0xb19   : > { %v7860_v36 = vpack.c.bf16 %v7852_v9, %v7844_v18  ;;  %v7855_v21 = vmul.f32 %v7839_v58, %v7725_v35  ;;  %v11935_v29 = vld [vmem:[#allocation14 + $0x6e0] ss:$16 sps:$4 sm:$0xff]   ;;  %v11938_v16 = vld [vmem:[#allocation14 + $0x6e8] ss:$16 sps:$4 sm:$0xff]   ;;  %v11943_v26 = vld [vmem:[#allocation14 + $0x704] ss:$16 sps:$4 sm:$0xff]  }
 0xb1a   : > { %v13222_v37 = vpack.c.bf16 %v7854_v31, %v7846_v27  ;;  %v7861_v54 = vpack.c.bf16 %v7853_v44, %v7845_v28  ;;  %9517 = vmatpush1.bf16.msra.mxu0 %v11887_v34  ;;  %9689 = vmatpush1.bf16.msra.mxu1 %v11890_v19  ;;  %v11946_v18 = vld [vmem:[#allocation14 + $0x70c] ss:$16 sps:$4 sm:$0xff]   ;;  %v11941_v7 = vld [vmem:[#allocation14 + $0x700] ss:$16 sps:$4 sm:$0xff]   ;;  %v11944_v20 = vld [vmem:[#allocation14 + $0x708] ss:$16 sps:$4 sm:$0xff]  }
 0xb1b   : > { %v7863_v60 = vpack.c.bf16 %v7855_v21, %v7847_v49  ;;  %9529 = vmatprep.subr.bf16.mxu0 %v11895_v53  ;;  %9701 = vmatprep.subr.bf16.mxu1 %v11898_v6  ;;  %v11949_v22 = vld [vmem:[#allocation14 + $0x724] ss:$16 sps:$4 sm:$0xff]   ;;  %v11952_v27 = vld [vmem:[#allocation14 + $0x72c] ss:$16 sps:$4 sm:$0xff]   ;;  %v11947_v28 = vld [vmem:[#allocation14 + $0x720] ss:$16 sps:$4 sm:$0xff]  }
 0xb1c   : > { %9518 = vmatprep.mubr.bf16.mxu0 %v7861_v54  ;;  %9690 = vmatprep.mubr.bf16.mxu1 %v7861_v54  ;;  %v11950_v30 = vld [vmem:[#allocation14 + $0x728] ss:$16 sps:$4 sm:$0xff]   ;;  %v11955_v42 = vld [vmem:[#allocation14 + $0x744] ss:$16 sps:$4 sm:$0xff]   ;;  %v11958_v34 = vld [vmem:[#allocation14 + $0x74c] ss:$16 sps:$4 sm:$0xff]  }
 0xb1d   : > { %9519 = vmatmul.mubr.bf16.vlgmr.msra.gmra.mrb[36].mxu0 %v7860_v36  ;;  %9691 = vmatmul.mubr.bf16.vlgmr.msra.gmra.mrb[36].mxu1 %v7860_v36  ;;  %v11953_v19 = vld [vmem:[#allocation14 + $0x740] ss:$16 sps:$4 sm:$0xff]   ;;  %v11956_v58 = vld [vmem:[#allocation14 + $0x748] ss:$16 sps:$4 sm:$0xff]   ;;  %v11961_v49 = vld [vmem:[#allocation14 + $0x764] ss:$16 sps:$4 sm:$0xff]  }
 0xb1e   : > { %9530 = vmatpush1.bf16.msra.mxu0 %v11893_v43  ;;  %9702 = vmatpush1.bf16.msra.mxu1 %v11896_v24  ;;  %v11964_v9 = vld [vmem:[#allocation14 + $0x76c] ss:$16 sps:$4 sm:$0xff]   ;;  %v11959_v33 = vld [vmem:[#allocation14 + $0x760] ss:$16 sps:$4 sm:$0xff]   ;;  %v11962_v23 = vld [vmem:[#allocation14 + $0x768] ss:$16 sps:$4 sm:$0xff]  }
 0xb1f   : > { %9561 = vmatprep.mubr.bf16.mxu0 %v7863_v60  ;;  %9733 = vmatprep.mubr.bf16.mxu1 %v7863_v60  ;;  %v11967_v53 = vld [vmem:[#allocation14 + $0x784] ss:$16 sps:$4 sm:$0xff]   ;;  %v11970_v6 = vld [vmem:[#allocation14 + $0x78c] ss:$16 sps:$4 sm:$0xff]   ;;  %v11965_v31 = vld [vmem:[#allocation14 + $0x780] ss:$16 sps:$4 sm:$0xff]  }
 0xb20   : > { %9531 = vmatprep.subr.bf16.mxu0 %v11901_v25  ;;  %9703 = vmatprep.subr.bf16.mxu1 %v11904_v3  ;;  %v11968_v44 = vld [vmem:[#allocation14 + $0x788] ss:$16 sps:$4 sm:$0xff]   ;;  %v11973_v35 = vld [vmem:[#allocation14 + $0x7a4] ss:$16 sps:$4 sm:$0xff]   ;;  %v11976_v36 = vld [vmem:[#allocation14 + $0x7ac] ss:$16 sps:$4 sm:$0xff]  }
 0xb21   : > { %v11971_v21 = vld [vmem:[#allocation14 + $0x7a0] ss:$16 sps:$4 sm:$0xff]   ;;  %v11974_v54 = vld [vmem:[#allocation14 + $0x7a8] ss:$16 sps:$4 sm:$0xff]   ;;  %v11979_v43 = vld [vmem:[#allocation14 + $0x7c4] ss:$16 sps:$4 sm:$0xff]  }
 0xb22   : > { %9532 = vmatpush1.bf16.msra.mxu0 %v11899_v59  ;;  %9704 = vmatpush1.bf16.msra.mxu1 %v11902_v52  ;;  %v11982_v24 = vld [vmem:[#allocation14 + $0x7cc] ss:$16 sps:$4 sm:$0xff]   ;;  %v11977_v60 = vld [vmem:[#allocation14 + $0x7c0] ss:$16 sps:$4 sm:$0xff]   ;;  %v11980_v25 = vld [vmem:[#allocation14 + $0x7c8] ss:$16 sps:$4 sm:$0xff]  }
 0xb23   : > { %9533 = vmatprep.subr.bf16.mxu0 %v11907_v0  ;;  %9705 = vmatprep.subr.bf16.mxu1 %v11910_v10  ;;  %v11985_v3 = vld [vmem:[#allocation14 + $0x7e4] ss:$16 sps:$4 sm:$0xff]   ;;  %v11988_v59 = vld [vmem:[#allocation14 + $0x7ec] ss:$16 sps:$4 sm:$0xff]   ;;  %v11983_v52 = vld [vmem:[#allocation14 + $0x7e0] ss:$16 sps:$4 sm:$0xff]  }
 0xb24   : > { %v11986_v0 = vld [vmem:[#allocation14 + $0x7e8] ss:$16 sps:$4 sm:$0xff]  }
 0xb26   : > { %9534 = vmatpush1.bf16.msra.mxu0 %v11905_v17  ;;  %9706 = vmatpush1.bf16.msra.mxu1 %v11908_v1 }
 0xb27   : > { %9535 = vmatprep.subr.bf16.mxu0 %v11913_v12  ;;  %9707 = vmatprep.subr.bf16.mxu1 %v11916_v14 }
 0xb2a   : > { %9536 = vmatpush1.bf16.msra.mxu0 %v11911_v11  ;;  %9708 = vmatpush1.bf16.msra.mxu1 %v11914_v46 }
 0xb2b   : > { %9537 = vmatprep.subr.bf16.mxu0 %v11919_v56  ;;  %9709 = vmatprep.subr.bf16.mxu1 %v11922_v15 }
 0xb2e   : > { %9538 = vmatpush1.bf16.msra.mxu0 %v11917_v47  ;;  %9710 = vmatpush1.bf16.msra.mxu1 %v11920_v51 }
 0xb2f   : > { %9539 = vmatprep.subr.bf16.mxu0 %v11925_v57  ;;  %9711 = vmatprep.subr.bf16.mxu1 %v11928_v40 }
 0xb32   : > { %9540 = vmatpush1.bf16.msra.mxu0 %v11923_v8  ;;  %9712 = vmatpush1.bf16.msra.mxu1 %v11926_v13 }
 0xb33   : > { %9541 = vmatprep.subr.bf16.mxu0 %v11931_v55  ;;  %9713 = vmatprep.subr.bf16.mxu1 %v11934_v50 }
 0xb36   : > { %9542 = vmatpush1.bf16.msra.mxu0 %v11929_v62  ;;  %9714 = vmatpush1.bf16.msra.mxu1 %v11932_v61 }
 0xb37   : > { %9543 = vmatprep.subr.bf16.mxu0 %v11937_v63  ;;  %9715 = vmatprep.subr.bf16.mxu1 %v11940_v2 }
 0xb3a   : > { %9544 = vmatpush1.bf16.msra.mxu0 %v11935_v29  ;;  %9716 = vmatpush1.bf16.msra.mxu1 %v11938_v16 }
 0xb3b   : > { %9545 = vmatprep.subr.bf16.mxu0 %v11943_v26  ;;  %9717 = vmatprep.subr.bf16.mxu1 %v11946_v18 }
 0xb3e   : > { %9546 = vmatpush1.bf16.msra.mxu0 %v11941_v7  ;;  %9718 = vmatpush1.bf16.msra.mxu1 %v11944_v20 }
 0xb3f   : > { %9547 = vmatprep.subr.bf16.mxu0 %v11949_v22  ;;  %9719 = vmatprep.subr.bf16.mxu1 %v11952_v27 }
 0xb42   : > { %9548 = vmatpush1.bf16.msra.mxu0 %v11947_v28  ;;  %9720 = vmatpush1.bf16.msra.mxu1 %v11950_v30 }
 0xb43   : > { %9549 = vmatprep.subr.bf16.mxu0 %v11955_v42  ;;  %9721 = vmatprep.subr.bf16.mxu1 %v11958_v34 }
 0xb46   : > { %9550 = vmatpush1.bf16.msra.mxu0 %v11953_v19  ;;  %9722 = vmatpush1.bf16.msra.mxu1 %v11956_v58 }
 0xb47   : > { %9551 = vmatprep.subr.bf16.mxu0 %v11961_v49  ;;  %9723 = vmatprep.subr.bf16.mxu1 %v11964_v9 }
 0xb4a   : > { %9552 = vmatpush1.bf16.msra.mxu0 %v11959_v33  ;;  %9724 = vmatpush1.bf16.msra.mxu1 %v11962_v23 }
 0xb4b   : > { %9553 = vmatprep.subr.bf16.mxu0 %v11967_v53  ;;  %9725 = vmatprep.subr.bf16.mxu1 %v11970_v6 }
 0xb4e   : > { %9554 = vmatpush1.bf16.msra.mxu0 %v11965_v31  ;;  %9726 = vmatpush1.bf16.msra.mxu1 %v11968_v44 }
 0xb4f   : > { %9555 = vmatprep.subr.bf16.mxu0 %v11973_v35  ;;  %9727 = vmatprep.subr.bf16.mxu1 %v11976_v36 }
 0xb52   : > { %9556 = vmatpush1.bf16.msra.mxu0 %v11971_v21  ;;  %9728 = vmatpush1.bf16.msra.mxu1 %v11974_v54 }
 0xb53   : > { %9557 = vmatprep.subr.bf16.mxu0 %v11979_v43  ;;  %9729 = vmatprep.subr.bf16.mxu1 %v11982_v24 }
 0xb56   : > { %9558 = vmatpush1.bf16.msra.mxu0 %v11977_v60  ;;  %9730 = vmatpush1.bf16.msra.mxu1 %v11980_v25 }
 0xb57   : > { %9559 = vmatprep.subr.bf16.mxu0 %v11985_v3  ;;  %9731 = vmatprep.subr.bf16.mxu1 %v11988_v59 }
 0xb5a   : > { %9560 = vmatpush1.bf16.msra.mxu0 %v11983_v52  ;;  %9732 = vmatpush1.bf16.msra.mxu1 %v11986_v0 }
 0xb5d   : > { %9562 = vmatmul.mubr.bf16.vlgmr.msra.gmra.mrb[36].mxu0 %v13222_v37  ;;  %9734 = vmatmul.mubr.bf16.vlgmr.msra.gmra.mrb[36].mxu1 %v13222_v37 }
 0xc30   : > { %v9563_v10 = vpop.f32.mrb[36].mxu0  ;;  %v9735_v17 = vpop.f32.mrb[36].mxu1 }
 0xc31   : > { %v9744_v1 = vadd.f32 %v9563_v10, %v13060_v39  ;;  %v9746_v12 = vadd.f32 %v9735_v17, %v13063_v32  ;;  %v9565_v14 = vpop.f32.mrb[37].mxu0  ;;  %v9737_v11 = vpop.f32.mrb[37].mxu1 }
 0xc32   : > { %v9745_v46 = vadd.f32 %v9565_v14, %v13066_v38  ;;  %v9747_v56 = vadd.f32 %v9737_v11, %v13076_v41  ;;  %v9567_v15 = vpop.f32.mrb[38].mxu0  ;;  %v9739_v47 = vpop.f32.mrb[38].mxu1 }
 0xc33   : > { %v9748_v37 = vadd.f32 %v9567_v15, %v13071_v48  ;;  %v9750_v51 = vadd.f32 %v9739_v47, %v13079_v5  ;;  %v9569_v39 = vpop.f32.mrb[39].mxu0  ;;  %v9741_v57 = vpop.f32.mrb[39].mxu1 }
 0xc34   : > { %v11148_v32 = vpack.c.bf16 %v9745_v46, %v9744_v1  ;;  %v11149_v40 = vpack.c.bf16 %v9747_v56, %v9746_v12  ;;  %v9749_v38 = vadd.f32 %v9569_v39, %v13082_v4  ;;  %v9751_v41 = vadd.f32 %v9741_v57, %v13091_v45 }
 0xc36   : > { %9776 = vst [vmem:[%s544_s19] sm:$0xff] %v11148_v32  ;;  %9777 = vst [vmem:[%s544_s19 + $0x8] sm:$0xff] %v11149_v40  ;;  %v11150_v48 = vpack.c.bf16 %v9749_v38, %v9748_v37  ;;  %v11151_v5 = vpack.c.bf16 %v9751_v41, %v9750_v51 }
 0xc38   : > { %9778 = vst [vmem:[%s544_s19 + $0x10] sm:$0xff] %v11150_v48  ;;  %9779 = vst [vmem:[%s544_s19 + $0x18] sm:$0xff] %v11151_v5 }
 0xc39   : > { %12332 = shalt.err (!%p12329_p4)
}
 0xc3a   : > { %s12333_s14 = scalar_lea.hbm %s13242_s8, 512  ;;  %s12337_s19 = scalar_lea.hbm %s13339_s29, 1024 }
 0xc3b   : > { %p12334_p3 = scmp.ne.s32.totalorder %s13242_s8, %s12333_s14  ;;  %p12338_p2 = scmp.lt.u32.totalorder %s13242_s8, %s13339_s29 }
 0xc3c   : > { %p12339_p7 = scmp.lt.u32.totalorder %s12337_s19, %s12333_s14  ;;  %p12341_p1 = scmp.lt.u32.totalorder %s12333_s14, %s13242_s8 }
 0xc3d   : > { %p12335_p0 = pnand %p12334_p3, %p13340_p11 }
 0xc3e   : > { %p12340_p10 = por %p12339_p7, %p12338_p2 }
 0xc3f   : > { %p12336_p5 = pneg %p12335_p0 }
 0xc40   : > { %p12342_p12 = por %p12341_p1, %p12340_p10 }
 0xc42   : > { %p12343_p13 = pnand %p12342_p12, %p12336_p5 }
 0xc44   : > { %12346 = shalt.err (!%p12343_p13)
}
 0xc45   : > { %s12421_s27 = smov 256   ;;  %s12422_s20 = smov 16  }
 0xc46   : > { %11315 = dma.vmem_to_hbm [thread:$0]  (%p13340_p11), %s13235_s18, 512, %s13242_s8, %s9781_s17, %s12421_s27, %s12421_s27, %s12422_s20  }
 0xc47 PF: > { %s9809_s6 = sand.u32 1, %s12389_s21   ;;  %p13341_p8 = scmp.ne.s32.totalorder %s13325_s16, 0 }
 0xc48   : > { %p13342_p6 = scmp.ge.s32.totalorder %s12401_s24, 2  ;;  %s9810_s30 = scalar_lea.sflag [#allocation4], %s9809_s6 }
 0xc4a   : > { %p11344_p9 = pnand %p13342_p6, %p13341_p8 }
 0xc4c   : > { %12384 = dma.done.wait (!%p11344_p9), %s9810_s30, 512  }
 0xc4d   : > { %12386 = vsyncadd (!%p11344_p9), %s9810_s30, 4294966784  ;;  %p29_p4 = scmp.ge.s32.totalorder %s12699_s25, 4   ;;  %s13343_s21 = smov %s12393_s22 }
 0xc4e   : > { %s13344_s22 = smov %s12397_s23  ;;  %s13345_s23 = smov %s12711_s1 }
 0xc4f   : > { %s13346_s24 = smov %s12699_s25  ;;  %31 = sbr.rel (!%p29_p4) target bundleno = 16 (0x10), region = 144 }
 0xc56   :  { %9815 = vsyncpa [#allocation3], 1 }
 0xc57   :  { %9817 = vsyncpa [#allocation3 + $0x1], 1 }
 0xc58   :  { %9818 = vsyncpa [#allocation6], 1 }
 0xc59   :  { %9819 = vsyncpa [#allocation9], 1 }
 0xc5a   :  { %9820 = vsyncpa [#allocation12], 1 }
 0xc5b   :  { %9821 = vsyncpa [#allocation15], 1 }
 0xc5c   :  { %9822 = vsyncpa [#allocation4], 1 }
 0xc5d   :  { %9824 = vsyncpa [#allocation4 + $0x1], 1 }

</bundles_post_ra>
